<compile_context>
chip_gen: v7x
topology: tpu7x:2x2x1
jax: 0.10.0
libtpu: 0.0.40
codegen_flags: <defaults>
</compile_context>

<pallas_src>
import jax
import jax.numpy as jnp
import numpy as np
from jax import lax
from jax.experimental import pallas as pl
from jax.experimental.pallas import tpu as pltpu

_EPS = 1e-8


def _head_kernel(x_ref, wfc_ref, bfc_ref, wcls_ref, scale_ref,
                 feat_ref, logits_ref):
    """Grid = (C // tk,) over the fc contraction dim.

    x_ref:      (B, tk, HW)    f32   backbone feature map K-tile (N, C, H*W)
    wfc_ref:    (Cout, tk)     bf16  fc weight, native (out, in) layout, K-tile
    bfc_ref:    (1, Cout)      f32   fc bias (resident across grid)
    wcls_ref:   (Cout, nclass) bf16  pre-column-normalized classifier weights
    scale_ref:  (1, 1)         f32   scale scalar, SMEM
    feat_ref:   (B, Cout)      f32   out: L2-normalized features; also serves
                                     as the f32 accumulator (resident across K)
    logits_ref: (B, nclass)    f32   out: scaled cosine logits
    """
    k = pl.program_id(0)

    @pl.when(k == 0)
    def _():
        feat_ref[...] = jnp.zeros_like(feat_ref)

    # Fused AdaptiveAvgPool2d((1,1)) + flatten: mean over the spatial axis of
    # this K-tile of channels.
    pooled = jnp.mean(x_ref[...], axis=2)                      # (B, tk) f32
    # TODO(synk): F.dropout2d(p=0.8) treated as identity (eval semantics).

    # y[b, o] += sum_i pooled[b, i] * fc_w[o, i]  (contract on fc_w's 2nd dim,
    # i.e. a trans_b matmul; no transpose of the 8 MiB weight anywhere).
    feat_ref[...] += lax.dot_general(
        pooled.astype(jnp.bfloat16), wfc_ref[...],
        dimension_numbers=(((1,), (1,)), ((), ())),
        preferred_element_type=jnp.float32)

    @pl.when(k == pl.num_programs(0) - 1)
    def _():
        y = feat_ref[...] + bfc_ref[...]                       # (B, Cout) f32
        # F.normalize(y, p=2, dim=1, eps=1e-8)
        y_norm = jnp.sqrt(jnp.sum(y * y, axis=1, keepdims=True))
        feat = y / jnp.maximum(y_norm, _EPS)
        feat_ref[...] = feat

        logits_ref[...] = scale_ref[0, 0] * jnp.dot(
            feat.astype(wcls_ref.dtype), wcls_ref[...],
            preferred_element_type=jnp.float32)


def prepare_params(fc_w, fc_b, cls_w):
    """One-time parameter preparation (outside the per-call path).

    * fc weight kept in its native (out, in) layout, cast to bf16 once.
    * fc bias reshaped to (1, Cout) f32.
    * classifier weights column-L2-normalized (parameter-only quantity) and
      cast to bf16 once.
    """
    wn = cls_w / jnp.maximum(
        jnp.sqrt(jnp.sum(cls_w * cls_w, axis=0, keepdims=True)), _EPS)
    return (fc_w.astype(jnp.bfloat16),
            jnp.asarray(fc_b, jnp.float32).reshape(1, -1),
            wn.astype(jnp.bfloat16))


@jax.jit
def product_cosine_softmax_head(x_nchw, fc_w_bf, fc_b_2d, wcls_bf, scale):
    """x_nchw: (B, C, H, W) backbone features (C = 2048).

    fc_w_bf:  (C_out, C_in) bf16 Linear weight, native PyTorch layout.
    fc_b_2d:  (1, C_out) f32, wcls_bf: (C, nclass) bf16 (pre-column-normalized),
    scale: () scalar.
    Returns (features_normed (B, C) f32, logits (B, nclass) f32).
    """
    B, C, H, W = x_nchw.shape
    nclass = wcls_bf.shape[1]

    # Free reshape (collapses contiguous trailing dims); pooling happens inside
    # the kernel so no separate XLA mean fusion is dispatched.
    x3 = x_nchw.astype(jnp.float32).reshape(B, C, H * W)
    scale2d = jnp.asarray(scale, jnp.float32).reshape(1, 1)

    tk = 1024 if C % 1024 == 0 else C     # K-tile of the contraction dim
    nk = C // tk

    feat, logits = pl.pallas_call(
        _head_kernel,
        out_shape=(
            jax.ShapeDtypeStruct((B, C), jnp.float32),
            jax.ShapeDtypeStruct((B, nclass), jnp.float32),
        ),
        grid_spec=pltpu.PrefetchScalarGridSpec(
            num_scalar_prefetch=0,
            grid=(nk,),
            in_specs=[
                pl.BlockSpec((B, tk, H * W), lambda k: (0, k, 0)),  # x K-tile
                pl.BlockSpec((C, tk), lambda k: (0, k)),            # fc weight K-tile
                pl.BlockSpec((1, C), lambda k: (0, 0)),             # fc bias
                pl.BlockSpec((C, nclass), lambda k: (0, 0)),        # cls weights
                pl.BlockSpec(memory_space=pltpu.MemorySpace.SMEM),  # scale
            ],
            out_specs=(
                pl.BlockSpec((B, C), lambda k: (0, 0)),
                pl.BlockSpec((B, nclass), lambda k: (0, 0)),
            ),
        ),
        compiler_params=pltpu.CompilerParams(
            dimension_semantics=("arbitrary",)),
    )(x3, fc_w_bf, fc_b_2d, wcls_bf, scale2d)
    return feat, logits


def _reference(x_nchw, fc_w_bf, fc_b_2d, wcls_bf, scale):
    """Pure-JAX reference mirroring the kernel's bf16 weight streaming."""
    pooled = jnp.mean(x_nchw.astype(jnp.float32), axis=(2, 3))
    y = lax.dot_general(pooled.astype(jnp.bfloat16), fc_w_bf,
                        dimension_numbers=(((1,), (1,)), ((), ())),
                        preferred_element_type=jnp.float32) + fc_b_2d
    feat = y / jnp.maximum(jnp.sqrt(jnp.sum(y * y, axis=1, keepdims=True)), _EPS)
    logits = jnp.asarray(scale, jnp.float32) * jnp.dot(
        feat.astype(jnp.bfloat16), wcls_bf, preferred_element_type=jnp.float32)
    return feat, logits


if __name__ == "__main__":
    B, C, H, W = 2, 2048, 4, 4        # C=2048 is hardcoded by the module
    NCLASS = 128

    key = jax.random.PRNGKey(0)
    k_x, k_w, k_s, k_fw, k_fb = jax.random.split(key, 5)

    # deterministic "backbone output" + parameters
    x = jax.random.normal(k_x, (B, C, H, W), dtype=jnp.float32)
    cls_w = jax.random.normal(k_w, (C, NCLASS), dtype=jnp.float32)   # torch.randn(2048, nclass)
    scale = jax.nn.softplus(jax.random.normal(k_s, (), dtype=jnp.float32))
    fc_w = jax.random.normal(k_fw, (C, C), dtype=jnp.float32) / jnp.sqrt(C)
    fc_b = jax.random.normal(k_fb, (C,), dtype=jnp.float32) * 0.01

    # One-time parameter prep (bf16 casts + classifier column-norm), outside
    # the per-call path.
    fc_w_bf, fc_b_2d, wcls_bf = jax.block_until_ready(
        prepare_params(fc_w, fc_b, cls_w))

    feat, logits = product_cosine_softmax_head(x, fc_w_bf, fc_b_2d, wcls_bf, scale)
    jax.block_until_ready((feat, logits))

    feat_ref, logits_ref = _reference(x, fc_w_bf, fc_b_2d, wcls_bf, scale)
    assert feat.shape == (B, C) and logits.shape == (B, NCLASS)
    np.testing.assert_allclose(np.asarray(feat), np.asarray(feat_ref),
                               rtol=2e-2, atol=2e-3)
    np.testing.assert_allclose(np.asarray(logits), np.asarray(logits_ref),
                               rtol=2e-2, atol=2e-2)
    print("KERNEL_OK")
</pallas_src>

<mosaic_0001>
module attributes {stable_mosaic.version = 11 : i64} {
  func.func @_head_kernel(%arg0: i32, %arg1: memref<2x1024x16xf32, #tpu.memory_space<vmem>>, %arg2: memref<2048x1024xbf16, #tpu.memory_space<vmem>>, %arg3: memref<1x2048xf32, #tpu.memory_space<vmem>>, %arg4: memref<2048x128xbf16, #tpu.memory_space<vmem>>, %arg5: memref<1x1xf32, #tpu.memory_space<smem>>, %arg6: memref<2x2048xf32, #tpu.memory_space<vmem>>, %arg7: memref<2x128xf32, #tpu.memory_space<vmem>>) attributes {dimension_semantics = [#tpu.dimension_semantics<arbitrary>], iteration_bounds = array<i64: 2>, scalar_prefetch = 0 : i64, scratch_operands = 0 : i64, tpu.core_type = #tpu.core_type<tc>, window_params = [{transform_indices = @transform_0, window_bounds = array<i64: 2, 1024, 16>}, {transform_indices = @transform_1, window_bounds = array<i64: 2048, 1024>}, {pipeline_mode = #tpu.pipeline_mode<synchronous>, transform_indices = @transform_2, window_bounds = array<i64: 1, 2048>}, {pipeline_mode = #tpu.pipeline_mode<synchronous>, transform_indices = @transform_3, window_bounds = array<i64: 2048, 128>}, {transform_indices = @transform_4, window_bounds = array<i64: 1, 1>}, {pipeline_mode = #tpu.pipeline_mode<synchronous>, transform_indices = @transform_5, window_bounds = array<i64: 2, 2048>}, {pipeline_mode = #tpu.pipeline_mode<synchronous>, transform_indices = @transform_6, window_bounds = array<i64: 2, 128>}]} {
    %c0_i32 = arith.constant 0 : i32
    %0 = arith.cmpi eq, %arg0, %c0_i32 : i32
    %1 = arith.extui %0 : i1 to i32
    %c0_i32_0 = arith.constant 0 : i32
    %2 = arith.cmpi ne, %1, %c0_i32_0 : i32
    scf.if %2 {
      %cst_12 = arith.constant 0.000000e+00 : f32
      %16 = vector.broadcast %cst_12 : f32 to vector<2x2048xf32>
      %c0_13 = arith.constant 0 : index
      %c0_14 = arith.constant 0 : index
      %17 = vector.load %arg6[%c0_13, %c0_14] : memref<2x2048xf32, #tpu.memory_space<vmem>>, vector<2x2048xf32>
      tpu.vector_store %arg6[%c0_13, %c0_14], %16 {strides = array<i32>} : memref<2x2048xf32, #tpu.memory_space<vmem>>, vector<2x2048xf32>,
    } else {
    }
    %c0 = arith.constant 0 : index
    %c0_1 = arith.constant 0 : index
    %c0_2 = arith.constant 0 : index
    %3 = vector.load %arg1[%c0, %c0_1, %c0_2] : memref<2x1024x16xf32, #tpu.memory_space<vmem>>, vector<2x1024x16xf32>
    %cst = arith.constant dense<0.000000e+00> : vector<2x1024xf32>
    %4 = vector.multi_reduction <add>, %3, %cst [2] : vector<2x1024x16xf32> to vector<2x1024xf32>
    %cst_3 = arith.constant 1.600000e+01 : f32
    %5 = vector.broadcast %cst_3 : f32 to vector<2x1024xf32>
    %6 = arith.divf %4, %5 : vector<2x1024xf32>
    %c0_4 = arith.constant 0 : index
    %c0_5 = arith.constant 0 : index
    %7 = vector.load %arg6[%c0_4, %c0_5] : memref<2x2048xf32, #tpu.memory_space<vmem>>, vector<2x2048xf32>
    %8 = arith.truncf %6 : vector<2x1024xf32> to vector<2x1024xbf16>
    %c0_6 = arith.constant 0 : index
    %c0_7 = arith.constant 0 : index
    %9 = vector.load %arg2[%c0_6, %c0_7] : memref<2048x1024xbf16, #tpu.memory_space<vmem>>, vector<2048x1024xbf16>
    %cst_8 = arith.constant dense<0.000000e+00> : vector<2x2048xf32>
    %10 = tpu.matmul %8, %9, %cst_8 {dimension_numbers = #tpu.dot_dimension_numbers<[1], [1], [0], [0], [0, 0, 1, 0], [], []>} : vector<2x1024xbf16>, vector<2048x1024xbf16>, vector<2x2048xf32> -> vector<2x2048xf32>
    %11 = arith.addf %7, %10 : vector<2x2048xf32>
    %c0_9 = arith.constant 0 : index
    %c0_10 = arith.constant 0 : index
    %12 = vector.load %arg6[%c0_9, %c0_10] : memref<2x2048xf32, #tpu.memory_space<vmem>>, vector<2x2048xf32>
    tpu.vector_store %arg6[%c0_9, %c0_10], %11 {strides = array<i32>} : memref<2x2048xf32, #tpu.memory_space<vmem>>, vector<2x2048xf32>,
    %c1_i32 = arith.constant 1 : i32
    %13 = arith.cmpi eq, %arg0, %c1_i32 : i32
    %14 = arith.extui %13 : i1 to i32
    %c0_i32_11 = arith.constant 0 : i32
    %15 = arith.cmpi ne, %14, %c0_i32_11 : i32
    scf.if %15 {
      %c0_12 = arith.constant 0 : index
      %c0_13 = arith.constant 0 : index
      %16 = vector.load %arg6[%c0_12, %c0_13] : memref<2x2048xf32, #tpu.memory_space<vmem>>, vector<2x2048xf32>
      %c0_14 = arith.constant 0 : index
      %c0_15 = arith.constant 0 : index
      %17 = vector.load %arg3[%c0_14, %c0_15] : memref<1x2048xf32, #tpu.memory_space<vmem>>, vector<1x2048xf32>
      %18 = vector.broadcast %17 : vector<1x2048xf32> to vector<2x2048xf32>
      %19 = arith.addf %16, %18 : vector<2x2048xf32>
      %20 = arith.mulf %19, %19 : vector<2x2048xf32>
      %cst_16 = arith.constant dense<0.000000e+00> : vector<2xf32>
      %21 = vector.multi_reduction <add>, %20, %cst_16 [1] : vector<2x2048xf32> to vector<2xf32>
      %22 = vector.shape_cast %21 : vector<2xf32> to vector<2x1xf32>
      %23 = math.sqrt %22 : vector<2x1xf32>
      %cst_17 = arith.constant 9.99999993E-9 : f32
      %24 = vector.broadcast %cst_17 : f32 to vector<2x1xf32>
      %25 = arith.maximumf %23, %24 : vector<2x1xf32>
      %26 = vector.broadcast %25 : vector<2x1xf32> to vector<2x2048xf32>
      %27 = arith.divf %19, %26 : vector<2x2048xf32>
      %c0_18 = arith.constant 0 : index
      %c0_19 = arith.constant 0 : index
      %28 = vector.load %arg6[%c0_18, %c0_19] : memref<2x2048xf32, #tpu.memory_space<vmem>>, vector<2x2048xf32>
      tpu.vector_store %arg6[%c0_18, %c0_19], %27 {strides = array<i32>} : memref<2x2048xf32, #tpu.memory_space<vmem>>, vector<2x2048xf32>,
      %c0_20 = arith.constant 0 : index
      %c0_21 = arith.constant 0 : index
      %29 = memref.load %arg5[%c0_20, %c0_21] : memref<1x1xf32, #tpu.memory_space<smem>>
      %30 = arith.truncf %27 : vector<2x2048xf32> to vector<2x2048xbf16>
      %c0_22 = arith.constant 0 : index
      %c0_23 = arith.constant 0 : index
      %31 = vector.load %arg4[%c0_22, %c0_23] : memref<2048x128xbf16, #tpu.memory_space<vmem>>, vector<2048x128xbf16>
      %cst_24 = arith.constant dense<0.000000e+00> : vector<2x128xf32>
      %32 = tpu.matmul %30, %31, %cst_24 {dimension_numbers = #tpu.dot_dimension_numbers<[1], [0], [0], [1], [0, 0, 1, 1], [], []>} : vector<2x2048xbf16>, vector<2048x128xbf16>, vector<2x128xf32> -> vector<2x128xf32>
      %33 = vector.broadcast %29 : f32 to vector<2x128xf32>
      %34 = arith.mulf %33, %32 : vector<2x128xf32>
      %c0_25 = arith.constant 0 : index
      %c0_26 = arith.constant 0 : index
      %35 = vector.load %arg7[%c0_25, %c0_26] : memref<2x128xf32, #tpu.memory_space<vmem>>, vector<2x128xf32>
      tpu.vector_store %arg7[%c0_25, %c0_26], %34 {strides = array<i32>} : memref<2x128xf32, #tpu.memory_space<vmem>>, vector<2x128xf32>,
    } else {
    }
    return
  }
  func.func @transform_0(%arg0: i32) -> (i32, i32, i32) {
    %c0_i32 = arith.constant 0 : i32
    %c0_i32_0 = arith.constant 0 : i32
    %c0_i32_1 = arith.constant 0 : i32
    return %c0_i32, %arg0, %c0_i32_0 : i32, i32, i32
  }
  func.func @transform_1(%arg0: i32) -> (i32, i32) {
    %c0_i32 = arith.constant 0 : i32
    %c0_i32_0 = arith.constant 0 : i32
    return %c0_i32, %arg0 : i32, i32
  }
  func.func @transform_2(%arg0: i32) -> (i32, i32) {
    %c0_i32 = arith.constant 0 : i32
    %c0_i32_0 = arith.constant 0 : i32
    %c0_i32_1 = arith.constant 0 : i32
    return %c0_i32, %c0_i32_0 : i32, i32
  }
  func.func @transform_3(%arg0: i32) -> (i32, i32) {
    %c0_i32 = arith.constant 0 : i32
    %c0_i32_0 = arith.constant 0 : i32
    %c0_i32_1 = arith.constant 0 : i32
    return %c0_i32, %c0_i32_0 : i32, i32
  }
  func.func @transform_4(%arg0: i32) -> (i32, i32) {
    %c0_i32 = arith.constant 0 : i32
    %c0_i32_0 = arith.constant 0 : i32
    %c0_i32_1 = arith.constant 0 : i32
    return %c0_i32, %c0_i32_0 : i32, i32
  }
  func.func @transform_5(%arg0: i32) -> (i32, i32) {
    %c0_i32 = arith.constant 0 : i32
    %c0_i32_0 = arith.constant 0 : i32
    %c0_i32_1 = arith.constant 0 : i32
    return %c0_i32, %c0_i32_0 : i32, i32
  }
  func.func @transform_6(%arg0: i32) -> (i32, i32) {
    %c0_i32 = arith.constant 0 : i32
    %c0_i32_0 = arith.constant 0 : i32
    %c0_i32_1 = arith.constant 0 : i32
    return %c0_i32, %c0_i32_0 : i32, i32
  }
}

</mosaic_0001>

<bundles_post_ra>
// kernel: product_cosine_softmax_head.1
= control target key start
LH: loop header
LB: loop body
LE: loop exit
PB: predicated region body
PF: predicated region fallthrough
CT: control target
= control target key end

     0   :  { %s20357_s0 = inlined_call_operand.vmem [shape: f32[2,2048,16], index: 0, kind: input, shape index: {}]   ;;  %s20358_s1 = inlined_call_operand.hbm [shape: bf16[2048,2048], index: 1, kind: input, shape index: {}]   ;;  %s20359_s2 = inlined_call_operand.hbm [shape: f32[1,2048], index: 2, kind: input, shape index: {}]   ;;  %s20360_s3 = inlined_call_operand.hbm [shape: bf16[2048,128], index: 3, kind: input, shape index: {}]   ;;  %s20361_s4 = inlined_call_operand.<no memory space> [shape: f32[1,1], index: 4, kind: input, shape index: {}]   ;;  %s20362_s5 = inlined_call_operand.hbm [shape: f32[2,2048], index: 5, kind: output, shape index: {0}]   ;;  %s20363_s6 = inlined_call_operand.hbm [shape: f32[2,128], index: 6, kind: output, shape index: {1}]  }
   0x1   :  { %12 = sst [smem:[#allocation2]] %s20361_s4 }
   0x2   :  { %13 = vsyncpa [#allocation5], 0 }
   0x3   :  { %15 = vsyncpa [#allocation5 + $0x1], 0 }
   0x4   :  { %16 = vsyncpa [#allocation8], 0 }
   0x5   :  { %17 = vsyncpa [#allocation6], 0 }
   0x6   :  { %18 = vsyncpa [#allocation12], 0  ;;  %s15808_s23 = smov 0   ;;  %s15810_s24 = smov 0  }
   0x7   :  { %s15812_s25 = smov 0   ;;  %s15814_s26 = smov 0  }
   0x8 LB: > { %s15827_s4 = sadd.s32 4294967295, %s15755_s26   ;;  %s15830_s27 = sadd.s32 1, %s15755_s26   ;;  %s15755_s26 = sphi %s15814_s26, %s20710_s26   ;;  %s15751_s25 = sphi %s15812_s25, %s20709_s25   ;;  %s15747_s24 = sphi %s15810_s24, %s20708_s24   ;;  %s15743_s23 = sphi %s15808_s23, %s20707_s23  }
   0x9   : > { %s28_s28 = ssub.s32 %s15755_s26, %s15830_s27  ;;  %s31_s29 = sadd.s32 1, %s15751_s25 }
   0xa   : > { %p29_p0 = scmp.eq.s32.totalorder %s28_s28, 0  ;;  %p38_p1 = scmp.ne.s32.totalorder %s15751_s25, %s15747_s24 }
   0xb   : > { %p39_p2 = scmp.eq.s32.totalorder %s15755_s26, 0  ;;  %p70_p3 = scmp.ne.s32.totalorder %s15747_s24, %s15743_s23 }
   0xc   : > { %s15840_s30 = scalar_select %p29_p0, %s15751_s25, %s31_s29  }
   0xd   : > { %p15842_p4 = por %p39_p2, %p38_p1  ;;  %p20364_p5 = scmp.eq.s32.totalorder %s15827_s4, 0 }
   0xe   : > { %p13915_p6 = scmp.ge.s32.totalorder %s15755_s26, 1  ;;  %p186_p7 = scmp.lt.s32.totalorder %s15755_s26, 3 }
   0xf   : > { %s20471_s7 = scalar_select %p15842_p4, 1, 0 }
  0x10   : > { %p15851_p8 = por %p20364_p5, %p70_p3  ;;  %p15856_p10 = pnand %p13915_p6, %p186_p7 }
  0x11   : > { %s15757_s10 = smov [#allocation7]   ;;  %s15758_s12 = smov [#allocation9]  }
  0x12   : > { %s20472_s8 = scalar_select %p15851_p8, 1, 0 }
  0x13   : > { %s20473_s9 = scalar_select %p15856_p10, 1, 0 }
  0x14   : > { %s199_s11 = sshll.u32 %s15757_s10, 4  ;;  %p15382_p11 = pneg %p15856_p10  ;;  %s200_s11 = int_to_ptr.vmem [resolvable:$true] %s199_s11 }
  0x15   : > { %s209_s13 = sshll.u32 %s15758_s12, 4  ;;  %s15573_s17 = scalar_lea.hbm %s20359_s2, 256  ;;  %s15868_s13 = int_to_ptr.vmem [resolvable:$true] %s209_s13 }
  0x16   : > { %p15864_p12 = pnand %p15382_p11, %p20364_p5  ;;  %p15574_p13 = scmp.ne.s32.totalorder %s20359_s2, %s15573_s17 }
  0x17   : > { %p15580_p3 = scmp.lt.u32.totalorder %s15573_s17, %s20359_s2 }
  0x18   : > { %p15575_p0 = pneg %p15864_p12 }
  0x1a   : > { %p15576_p1 = pnand %p15575_p0, %p15574_p13 }
  0x1c   : > { %p15577_p2 = pneg %p15576_p1 }
  0x1e   : > { %p15582_p6 = pnand %p15580_p3, %p15577_p2 }
  0x20   : > { %15585 = shalt.err (!%p15582_p6)
}
  0x21   : > { %s15586_s22 = scalar_lea.vmem %s200_s11, 256  ;;  %p15594_p5 = scmp.lt.s32.totalorder %s200_s11, %s200_s11 }
  0x22   : > { %p15587_p7 = scmp.ne.s32.totalorder %s200_s11, %s15586_s22  ;;  %p15595_p8 = scmp.lt.s32.totalorder %s15586_s22, %s15586_s22 }
  0x24   : > { %p15589_p11 = pnand %p15587_p7, %p15575_p0  ;;  %p15596_p10 = por %p15595_p8, %p15594_p5 }
  0x26   : > { %p15590_p9 = pneg %p15589_p11 }
  0x28   : > { %p15597_p4 = pnand %p15596_p10, %p15590_p9 }
  0x2a   : > { %15600 = shalt.err (!%p15597_p4)
}
  0x2b   : > { %15385 = dma.hbm_to_vmem [thread:$0]  (!%p15864_p12), %s20359_s2, 256, %s200_s11, [#allocation8]  }
  0x2c   : > { %s15601_s12 = scalar_lea.hbm %s20360_s3, 16384 }
  0x2d   : > { %p15602_p13 = scmp.ne.s32.totalorder %s20360_s3, %s15601_s12  ;;  %p15608_p4 = scmp.lt.u32.totalorder %s15601_s12, %s20360_s3 }
  0x2f   : > { %p15604_p5 = pnand %p15602_p13, %p15575_p0 }
  0x31   : > { %p15605_p8 = pneg %p15604_p5 }
  0x33   : > { %p15610_p9 = pnand %p15608_p4, %p15605_p8 }
  0x35   : > { %15613 = shalt.err (!%p15610_p9)
}
  0x36   : > { %s15614_s11 = scalar_lea.vmem %s15868_s13, 16384  ;;  %p15622_p3 = scmp.lt.s32.totalorder %s15868_s13, %s15868_s13 }
  0x37   : > { %p15615_p10 = scmp.ne.s32.totalorder %s15868_s13, %s15614_s11  ;;  %p15623_p6 = scmp.lt.s32.totalorder %s15614_s11, %s15614_s11 }
  0x39   : > { %p15617_p1 = pnand %p15615_p10, %p15575_p0  ;;  %p15624_p7 = por %p15623_p6, %p15622_p3 }
  0x3b   : > { %p15618_p2 = pneg %p15617_p1 }
  0x3d   : > { %p15625_p11 = pnand %p15624_p7, %p15618_p2 }
  0x3f   : > { %15628 = shalt.err (!%p15625_p11)
}
  0x40   : > { %s15759_s19 = smov 64   ;;  %s15760_s20 = smov 4  }
  0x41   : > { %15388 = dma.hbm_to_vmem [thread:$0]  (!%p15864_p12), %s20360_s3, 16384, %s15868_s13, [#allocation8], %s15759_s19, %s15759_s19, %s15760_s20  }
  0x42   : > { %p13918_p13 = scmp.ge.s32.totalorder %s15755_s26, 2 }
  0x43   : > { %p20475_p0 = scmp.ne.s32.totalorder (!%p13918_p13), %s20471_s7, 0 }
  0x44   : > { %222 = sbr.rel (%p13918_p13) target bundleno = 235 (0xeb), region = 28 }
  0x4b   : > { %225 = sbr.rel (!%p20475_p0) target bundleno = 207 (0xcf), region = 32  ;;  %s227_s23 = sand.u32 (%p20475_p0), 1, %s15751_s25  }
  0x4c   : > { %s15090_s28 = sshll.u32 (%p20475_p0), %s15755_s26, 10  ;;  %s13919_s29 = sshll.u32 (%p20475_p0), %s227_s23, 11 }
  0x4d   : > { %s15925_s15 = scalar_lea.vmem (%p20475_p0), %s20357_s0, %s15090_s28  ;;  %s15930_s13 = scalar_lea.vmem (%p20475_p0), [#allocation3], %s13919_s29 }
  0x4e   : > { %v770_v0 = vld [vmem:[%s15925_s15] sm:$0xff] (%p20475_p0)  ;;  %v772_v1 = vld [vmem:[%s15925_s15 + $0x8] sm:$0xff] (%p20475_p0)  ;;  %v774_v2 = vld [vmem:[%s15925_s15 + $0x10] sm:$0xff] (%p20475_p0) }
  0x4f   : > { %771 = vst [vmem:[%s15930_s13] sm:$0xff] (%p20475_p0), %v770_v0  ;;  %773 = vst [vmem:[%s15930_s13 + $0x8] sm:$0xff] (%p20475_p0), %v772_v1  ;;  %v776_v3 = vld [vmem:[%s15925_s15 + $0x18] sm:$0xff] (%p20475_p0)  ;;  %v778_v4 = vld [vmem:[%s15925_s15 + $0x20] sm:$0xff] (%p20475_p0) }
  0x50   : > { %775 = vst [vmem:[%s15930_s13 + $0x10] sm:$0xff] (%p20475_p0), %v774_v2  ;;  %v780_v5 = vld [vmem:[%s15925_s15 + $0x28] sm:$0xff] (%p20475_p0)  ;;  %777 = vst [vmem:[%s15930_s13 + $0x18] sm:$0xff] (%p20475_p0), %v776_v3  ;;  %v782_v6 = vld [vmem:[%s15925_s15 + $0x30] sm:$0xff] (%p20475_p0) }
  0x51   : > { %779 = vst [vmem:[%s15930_s13 + $0x20] sm:$0xff] (%p20475_p0), %v778_v4  ;;  %781 = vst [vmem:[%s15930_s13 + $0x28] sm:$0xff] (%p20475_p0), %v780_v5  ;;  %v784_v7 = vld [vmem:[%s15925_s15 + $0x38] sm:$0xff] (%p20475_p0)  ;;  %v786_v8 = vld [vmem:[%s15925_s15 + $0x40] sm:$0xff] (%p20475_p0) }
  0x52   : > { %783 = vst [vmem:[%s15930_s13 + $0x30] sm:$0xff] %v782_v6  ;;  %785 = vst [vmem:[%s15930_s13 + $0x38] sm:$0xff] %v784_v7  ;;  %v788_v9 = vld [vmem:[%s15925_s15 + $0x48] sm:$0xff]  ;;  %v790_v10 = vld [vmem:[%s15925_s15 + $0x50] sm:$0xff] }
  0x53   : > { %787 = vst [vmem:[%s15930_s13 + $0x40] sm:$0xff] %v786_v8  ;;  %v792_v11 = vld [vmem:[%s15925_s15 + $0x58] sm:$0xff]  ;;  %789 = vst [vmem:[%s15930_s13 + $0x48] sm:$0xff] %v788_v9  ;;  %v794_v12 = vld [vmem:[%s15925_s15 + $0x60] sm:$0xff] }
  0x54   : > { %791 = vst [vmem:[%s15930_s13 + $0x50] sm:$0xff] %v790_v10  ;;  %793 = vst [vmem:[%s15930_s13 + $0x58] sm:$0xff] %v792_v11  ;;  %v796_v13 = vld [vmem:[%s15925_s15 + $0x68] sm:$0xff]  ;;  %v798_v14 = vld [vmem:[%s15925_s15 + $0x70] sm:$0xff] }
  0x55   : > { %795 = vst [vmem:[%s15930_s13 + $0x60] sm:$0xff] %v794_v12  ;;  %797 = vst [vmem:[%s15930_s13 + $0x68] sm:$0xff] %v796_v13  ;;  %v800_v15 = vld [vmem:[%s15925_s15 + $0x78] sm:$0xff]  ;;  %v802_v16 = vld [vmem:[%s15925_s15 + $0x80] sm:$0xff] }
  0x56   : > { %799 = vst [vmem:[%s15930_s13 + $0x70] sm:$0xff] %v798_v14  ;;  %v804_v17 = vld [vmem:[%s15925_s15 + $0x88] sm:$0xff]  ;;  %801 = vst [vmem:[%s15930_s13 + $0x78] sm:$0xff] %v800_v15  ;;  %v806_v18 = vld [vmem:[%s15925_s15 + $0x90] sm:$0xff] }
  0x57   : > { %803 = vst [vmem:[%s15930_s13 + $0x80] sm:$0xff] %v802_v16  ;;  %805 = vst [vmem:[%s15930_s13 + $0x88] sm:$0xff] %v804_v17  ;;  %v808_v19 = vld [vmem:[%s15925_s15 + $0x98] sm:$0xff]  ;;  %v810_v20 = vld [vmem:[%s15925_s15 + $0xa0] sm:$0xff] }
  0x58   : > { %807 = vst [vmem:[%s15930_s13 + $0x90] sm:$0xff] %v806_v18  ;;  %809 = vst [vmem:[%s15930_s13 + $0x98] sm:$0xff] %v808_v19  ;;  %v812_v21 = vld [vmem:[%s15925_s15 + $0xa8] sm:$0xff]  ;;  %v814_v22 = vld [vmem:[%s15925_s15 + $0xb0] sm:$0xff] }
  0x59   : > { %811 = vst [vmem:[%s15930_s13 + $0xa0] sm:$0xff] %v810_v20  ;;  %v816_v23 = vld [vmem:[%s15925_s15 + $0xb8] sm:$0xff]  ;;  %813 = vst [vmem:[%s15930_s13 + $0xa8] sm:$0xff] %v812_v21  ;;  %v818_v24 = vld [vmem:[%s15925_s15 + $0xc0] sm:$0xff] }
  0x5a   : > { %815 = vst [vmem:[%s15930_s13 + $0xb0] sm:$0xff] %v814_v22  ;;  %817 = vst [vmem:[%s15930_s13 + $0xb8] sm:$0xff] %v816_v23  ;;  %v820_v25 = vld [vmem:[%s15925_s15 + $0xc8] sm:$0xff]  ;;  %v822_v26 = vld [vmem:[%s15925_s15 + $0xd0] sm:$0xff] }
  0x5b   : > { %819 = vst [vmem:[%s15930_s13 + $0xc0] sm:$0xff] %v818_v24  ;;  %821 = vst [vmem:[%s15930_s13 + $0xc8] sm:$0xff] %v820_v25  ;;  %v824_v27 = vld [vmem:[%s15925_s15 + $0xd8] sm:$0xff]  ;;  %v826_v28 = vld [vmem:[%s15925_s15 + $0xe0] sm:$0xff] }
  0x5c   : > { %823 = vst [vmem:[%s15930_s13 + $0xd0] sm:$0xff] %v822_v26  ;;  %v828_v29 = vld [vmem:[%s15925_s15 + $0xe8] sm:$0xff]  ;;  %825 = vst [vmem:[%s15930_s13 + $0xd8] sm:$0xff] %v824_v27  ;;  %v830_v30 = vld [vmem:[%s15925_s15 + $0xf0] sm:$0xff] }
  0x5d   : > { %827 = vst [vmem:[%s15930_s13 + $0xe0] sm:$0xff] %v826_v28  ;;  %829 = vst [vmem:[%s15930_s13 + $0xe8] sm:$0xff] %v828_v29  ;;  %v832_v31 = vld [vmem:[%s15925_s15 + $0xf8] sm:$0xff]  ;;  %v834_v32 = vld [vmem:[%s15925_s15 + $0x100] sm:$0xff] }
  0x5e   : > { %831 = vst [vmem:[%s15930_s13 + $0xf0] sm:$0xff] %v830_v30  ;;  %833 = vst [vmem:[%s15930_s13 + $0xf8] sm:$0xff] %v832_v31  ;;  %v836_v33 = vld [vmem:[%s15925_s15 + $0x108] sm:$0xff]  ;;  %v838_v34 = vld [vmem:[%s15925_s15 + $0x110] sm:$0xff] }
  0x5f   : > { %835 = vst [vmem:[%s15930_s13 + $0x100] sm:$0xff] %v834_v32  ;;  %v840_v35 = vld [vmem:[%s15925_s15 + $0x118] sm:$0xff]  ;;  %837 = vst [vmem:[%s15930_s13 + $0x108] sm:$0xff] %v836_v33  ;;  %v842_v36 = vld [vmem:[%s15925_s15 + $0x120] sm:$0xff] }
  0x60   : > { %839 = vst [vmem:[%s15930_s13 + $0x110] sm:$0xff] %v838_v34  ;;  %841 = vst [vmem:[%s15930_s13 + $0x118] sm:$0xff] %v840_v35  ;;  %v844_v37 = vld [vmem:[%s15925_s15 + $0x128] sm:$0xff]  ;;  %v846_v38 = vld [vmem:[%s15925_s15 + $0x130] sm:$0xff] }
  0x61   : > { %843 = vst [vmem:[%s15930_s13 + $0x120] sm:$0xff] %v842_v36  ;;  %845 = vst [vmem:[%s15930_s13 + $0x128] sm:$0xff] %v844_v37  ;;  %v848_v39 = vld [vmem:[%s15925_s15 + $0x138] sm:$0xff]  ;;  %v850_v40 = vld [vmem:[%s15925_s15 + $0x140] sm:$0xff] }
  0x62   : > { %847 = vst [vmem:[%s15930_s13 + $0x130] sm:$0xff] %v846_v38  ;;  %v852_v41 = vld [vmem:[%s15925_s15 + $0x148] sm:$0xff]  ;;  %849 = vst [vmem:[%s15930_s13 + $0x138] sm:$0xff] %v848_v39  ;;  %v854_v42 = vld [vmem:[%s15925_s15 + $0x150] sm:$0xff] }
  0x63   : > { %851 = vst [vmem:[%s15930_s13 + $0x140] sm:$0xff] %v850_v40  ;;  %853 = vst [vmem:[%s15930_s13 + $0x148] sm:$0xff] %v852_v41  ;;  %v856_v43 = vld [vmem:[%s15925_s15 + $0x158] sm:$0xff]  ;;  %v858_v44 = vld [vmem:[%s15925_s15 + $0x160] sm:$0xff] }
  0x64   : > { %855 = vst [vmem:[%s15930_s13 + $0x150] sm:$0xff] %v854_v42  ;;  %857 = vst [vmem:[%s15930_s13 + $0x158] sm:$0xff] %v856_v43  ;;  %v860_v45 = vld [vmem:[%s15925_s15 + $0x168] sm:$0xff]  ;;  %v862_v46 = vld [vmem:[%s15925_s15 + $0x170] sm:$0xff] }
  0x65   : > { %859 = vst [vmem:[%s15930_s13 + $0x160] sm:$0xff] %v858_v44  ;;  %v864_v47 = vld [vmem:[%s15925_s15 + $0x178] sm:$0xff]  ;;  %861 = vst [vmem:[%s15930_s13 + $0x168] sm:$0xff] %v860_v45  ;;  %v866_v48 = vld [vmem:[%s15925_s15 + $0x180] sm:$0xff] }
  0x66   : > { %863 = vst [vmem:[%s15930_s13 + $0x170] sm:$0xff] %v862_v46  ;;  %865 = vst [vmem:[%s15930_s13 + $0x178] sm:$0xff] %v864_v47  ;;  %v868_v49 = vld [vmem:[%s15925_s15 + $0x188] sm:$0xff]  ;;  %v870_v50 = vld [vmem:[%s15925_s15 + $0x190] sm:$0xff] }
  0x67   : > { %867 = vst [vmem:[%s15930_s13 + $0x180] sm:$0xff] %v866_v48  ;;  %869 = vst [vmem:[%s15930_s13 + $0x188] sm:$0xff] %v868_v49  ;;  %v872_v51 = vld [vmem:[%s15925_s15 + $0x198] sm:$0xff]  ;;  %v874_v52 = vld [vmem:[%s15925_s15 + $0x1a0] sm:$0xff] }
  0x68   : > { %871 = vst [vmem:[%s15930_s13 + $0x190] sm:$0xff] %v870_v50  ;;  %v876_v53 = vld [vmem:[%s15925_s15 + $0x1a8] sm:$0xff]  ;;  %873 = vst [vmem:[%s15930_s13 + $0x198] sm:$0xff] %v872_v51  ;;  %v878_v54 = vld [vmem:[%s15925_s15 + $0x1b0] sm:$0xff] }
  0x69   : > { %875 = vst [vmem:[%s15930_s13 + $0x1a0] sm:$0xff] %v874_v52  ;;  %877 = vst [vmem:[%s15930_s13 + $0x1a8] sm:$0xff] %v876_v53  ;;  %v880_v55 = vld [vmem:[%s15925_s15 + $0x1b8] sm:$0xff]  ;;  %v882_v56 = vld [vmem:[%s15925_s15 + $0x1c0] sm:$0xff] }
  0x6a   : > { %879 = vst [vmem:[%s15930_s13 + $0x1b0] sm:$0xff] %v878_v54  ;;  %881 = vst [vmem:[%s15930_s13 + $0x1b8] sm:$0xff] %v880_v55  ;;  %v884_v57 = vld [vmem:[%s15925_s15 + $0x1c8] sm:$0xff]  ;;  %v886_v58 = vld [vmem:[%s15925_s15 + $0x1d0] sm:$0xff] }
  0x6b   : > { %883 = vst [vmem:[%s15930_s13 + $0x1c0] sm:$0xff] %v882_v56  ;;  %v888_v59 = vld [vmem:[%s15925_s15 + $0x1d8] sm:$0xff]  ;;  %885 = vst [vmem:[%s15930_s13 + $0x1c8] sm:$0xff] %v884_v57  ;;  %v890_v60 = vld [vmem:[%s15925_s15 + $0x1e0] sm:$0xff] }
  0x6c   : > { %887 = vst [vmem:[%s15930_s13 + $0x1d0] sm:$0xff] %v886_v58  ;;  %889 = vst [vmem:[%s15930_s13 + $0x1d8] sm:$0xff] %v888_v59  ;;  %v892_v61 = vld [vmem:[%s15925_s15 + $0x1e8] sm:$0xff]  ;;  %v894_v62 = vld [vmem:[%s15925_s15 + $0x1f0] sm:$0xff] }
  0x6d   : > { %891 = vst [vmem:[%s15930_s13 + $0x1e0] sm:$0xff] %v890_v60  ;;  %893 = vst [vmem:[%s15930_s13 + $0x1e8] sm:$0xff] %v892_v61  ;;  %v896_v63 = vld [vmem:[%s15925_s15 + $0x1f8] sm:$0xff]  ;;  %v898_v0 = vld [vmem:[%s15925_s15 + $0x200] sm:$0xff] }
  0x6e   : > { %895 = vst [vmem:[%s15930_s13 + $0x1f0] sm:$0xff] %v894_v62  ;;  %v900_v1 = vld [vmem:[%s15925_s15 + $0x208] sm:$0xff]  ;;  %897 = vst [vmem:[%s15930_s13 + $0x1f8] sm:$0xff] %v896_v63  ;;  %v902_v2 = vld [vmem:[%s15925_s15 + $0x210] sm:$0xff] }
  0x6f   : > { %899 = vst [vmem:[%s15930_s13 + $0x200] sm:$0xff] %v898_v0  ;;  %901 = vst [vmem:[%s15930_s13 + $0x208] sm:$0xff] %v900_v1  ;;  %v904_v3 = vld [vmem:[%s15925_s15 + $0x218] sm:$0xff]  ;;  %v906_v4 = vld [vmem:[%s15925_s15 + $0x220] sm:$0xff] }
  0x70   : > { %903 = vst [vmem:[%s15930_s13 + $0x210] sm:$0xff] %v902_v2  ;;  %905 = vst [vmem:[%s15930_s13 + $0x218] sm:$0xff] %v904_v3  ;;  %v908_v5 = vld [vmem:[%s15925_s15 + $0x228] sm:$0xff]  ;;  %v910_v6 = vld [vmem:[%s15925_s15 + $0x230] sm:$0xff] }
  0x71   : > { %907 = vst [vmem:[%s15930_s13 + $0x220] sm:$0xff] %v906_v4  ;;  %v912_v7 = vld [vmem:[%s15925_s15 + $0x238] sm:$0xff]  ;;  %909 = vst [vmem:[%s15930_s13 + $0x228] sm:$0xff] %v908_v5  ;;  %v914_v8 = vld [vmem:[%s15925_s15 + $0x240] sm:$0xff] }
  0x72   : > { %911 = vst [vmem:[%s15930_s13 + $0x230] sm:$0xff] %v910_v6  ;;  %913 = vst [vmem:[%s15930_s13 + $0x238] sm:$0xff] %v912_v7  ;;  %v916_v9 = vld [vmem:[%s15925_s15 + $0x248] sm:$0xff]  ;;  %v918_v10 = vld [vmem:[%s15925_s15 + $0x250] sm:$0xff] }
  0x73   : > { %915 = vst [vmem:[%s15930_s13 + $0x240] sm:$0xff] %v914_v8  ;;  %917 = vst [vmem:[%s15930_s13 + $0x248] sm:$0xff] %v916_v9  ;;  %v920_v11 = vld [vmem:[%s15925_s15 + $0x258] sm:$0xff]  ;;  %v922_v12 = vld [vmem:[%s15925_s15 + $0x260] sm:$0xff] }
  0x74   : > { %919 = vst [vmem:[%s15930_s13 + $0x250] sm:$0xff] %v918_v10  ;;  %v924_v13 = vld [vmem:[%s15925_s15 + $0x268] sm:$0xff]  ;;  %921 = vst [vmem:[%s15930_s13 + $0x258] sm:$0xff] %v920_v11  ;;  %v926_v14 = vld [vmem:[%s15925_s15 + $0x270] sm:$0xff] }
  0x75   : > { %923 = vst [vmem:[%s15930_s13 + $0x260] sm:$0xff] %v922_v12  ;;  %925 = vst [vmem:[%s15930_s13 + $0x268] sm:$0xff] %v924_v13  ;;  %v928_v15 = vld [vmem:[%s15925_s15 + $0x278] sm:$0xff]  ;;  %v930_v16 = vld [vmem:[%s15925_s15 + $0x280] sm:$0xff] }
  0x76   : > { %927 = vst [vmem:[%s15930_s13 + $0x270] sm:$0xff] %v926_v14  ;;  %929 = vst [vmem:[%s15930_s13 + $0x278] sm:$0xff] %v928_v15  ;;  %v932_v17 = vld [vmem:[%s15925_s15 + $0x288] sm:$0xff]  ;;  %v934_v18 = vld [vmem:[%s15925_s15 + $0x290] sm:$0xff] }
  0x77   : > { %931 = vst [vmem:[%s15930_s13 + $0x280] sm:$0xff] %v930_v16  ;;  %v936_v19 = vld [vmem:[%s15925_s15 + $0x298] sm:$0xff]  ;;  %933 = vst [vmem:[%s15930_s13 + $0x288] sm:$0xff] %v932_v17  ;;  %v938_v20 = vld [vmem:[%s15925_s15 + $0x2a0] sm:$0xff] }
  0x78   : > { %935 = vst [vmem:[%s15930_s13 + $0x290] sm:$0xff] %v934_v18  ;;  %937 = vst [vmem:[%s15930_s13 + $0x298] sm:$0xff] %v936_v19  ;;  %v940_v21 = vld [vmem:[%s15925_s15 + $0x2a8] sm:$0xff]  ;;  %v942_v22 = vld [vmem:[%s15925_s15 + $0x2b0] sm:$0xff] }
  0x79   : > { %939 = vst [vmem:[%s15930_s13 + $0x2a0] sm:$0xff] %v938_v20  ;;  %941 = vst [vmem:[%s15930_s13 + $0x2a8] sm:$0xff] %v940_v21  ;;  %v944_v23 = vld [vmem:[%s15925_s15 + $0x2b8] sm:$0xff]  ;;  %v946_v24 = vld [vmem:[%s15925_s15 + $0x2c0] sm:$0xff] }
  0x7a   : > { %943 = vst [vmem:[%s15930_s13 + $0x2b0] sm:$0xff] %v942_v22  ;;  %v948_v25 = vld [vmem:[%s15925_s15 + $0x2c8] sm:$0xff]  ;;  %945 = vst [vmem:[%s15930_s13 + $0x2b8] sm:$0xff] %v944_v23  ;;  %v950_v26 = vld [vmem:[%s15925_s15 + $0x2d0] sm:$0xff] }
  0x7b   : > { %947 = vst [vmem:[%s15930_s13 + $0x2c0] sm:$0xff] %v946_v24  ;;  %949 = vst [vmem:[%s15930_s13 + $0x2c8] sm:$0xff] %v948_v25  ;;  %v952_v27 = vld [vmem:[%s15925_s15 + $0x2d8] sm:$0xff]  ;;  %v954_v28 = vld [vmem:[%s15925_s15 + $0x2e0] sm:$0xff] }
  0x7c   : > { %951 = vst [vmem:[%s15930_s13 + $0x2d0] sm:$0xff] %v950_v26  ;;  %953 = vst [vmem:[%s15930_s13 + $0x2d8] sm:$0xff] %v952_v27  ;;  %v956_v29 = vld [vmem:[%s15925_s15 + $0x2e8] sm:$0xff]  ;;  %v958_v30 = vld [vmem:[%s15925_s15 + $0x2f0] sm:$0xff] }
  0x7d   : > { %955 = vst [vmem:[%s15930_s13 + $0x2e0] sm:$0xff] %v954_v28  ;;  %v960_v31 = vld [vmem:[%s15925_s15 + $0x2f8] sm:$0xff]  ;;  %957 = vst [vmem:[%s15930_s13 + $0x2e8] sm:$0xff] %v956_v29  ;;  %v962_v32 = vld [vmem:[%s15925_s15 + $0x300] sm:$0xff] }
  0x7e   : > { %959 = vst [vmem:[%s15930_s13 + $0x2f0] sm:$0xff] %v958_v30  ;;  %961 = vst [vmem:[%s15930_s13 + $0x2f8] sm:$0xff] %v960_v31  ;;  %v964_v33 = vld [vmem:[%s15925_s15 + $0x308] sm:$0xff]  ;;  %v966_v34 = vld [vmem:[%s15925_s15 + $0x310] sm:$0xff] }
  0x7f   : > { %963 = vst [vmem:[%s15930_s13 + $0x300] sm:$0xff] %v962_v32  ;;  %965 = vst [vmem:[%s15930_s13 + $0x308] sm:$0xff] %v964_v33  ;;  %v968_v35 = vld [vmem:[%s15925_s15 + $0x318] sm:$0xff]  ;;  %v970_v36 = vld [vmem:[%s15925_s15 + $0x320] sm:$0xff] }
  0x80   : > { %967 = vst [vmem:[%s15930_s13 + $0x310] sm:$0xff] %v966_v34  ;;  %v972_v37 = vld [vmem:[%s15925_s15 + $0x328] sm:$0xff]  ;;  %969 = vst [vmem:[%s15930_s13 + $0x318] sm:$0xff] %v968_v35  ;;  %v974_v38 = vld [vmem:[%s15925_s15 + $0x330] sm:$0xff] }
  0x81   : > { %971 = vst [vmem:[%s15930_s13 + $0x320] sm:$0xff] %v970_v36  ;;  %973 = vst [vmem:[%s15930_s13 + $0x328] sm:$0xff] %v972_v37  ;;  %v976_v39 = vld [vmem:[%s15925_s15 + $0x338] sm:$0xff]  ;;  %v978_v40 = vld [vmem:[%s15925_s15 + $0x340] sm:$0xff] }
  0x82   : > { %975 = vst [vmem:[%s15930_s13 + $0x330] sm:$0xff] %v974_v38  ;;  %977 = vst [vmem:[%s15930_s13 + $0x338] sm:$0xff] %v976_v39  ;;  %v980_v41 = vld [vmem:[%s15925_s15 + $0x348] sm:$0xff]  ;;  %v982_v42 = vld [vmem:[%s15925_s15 + $0x350] sm:$0xff] }
  0x83   : > { %979 = vst [vmem:[%s15930_s13 + $0x340] sm:$0xff] %v978_v40  ;;  %v984_v43 = vld [vmem:[%s15925_s15 + $0x358] sm:$0xff]  ;;  %981 = vst [vmem:[%s15930_s13 + $0x348] sm:$0xff] %v980_v41  ;;  %v986_v44 = vld [vmem:[%s15925_s15 + $0x360] sm:$0xff] }
  0x84   : > { %983 = vst [vmem:[%s15930_s13 + $0x350] sm:$0xff] %v982_v42  ;;  %985 = vst [vmem:[%s15930_s13 + $0x358] sm:$0xff] %v984_v43  ;;  %v988_v45 = vld [vmem:[%s15925_s15 + $0x368] sm:$0xff]  ;;  %v990_v46 = vld [vmem:[%s15925_s15 + $0x370] sm:$0xff] }
  0x85   : > { %987 = vst [vmem:[%s15930_s13 + $0x360] sm:$0xff] %v986_v44  ;;  %989 = vst [vmem:[%s15930_s13 + $0x368] sm:$0xff] %v988_v45  ;;  %v992_v47 = vld [vmem:[%s15925_s15 + $0x378] sm:$0xff]  ;;  %v994_v48 = vld [vmem:[%s15925_s15 + $0x380] sm:$0xff] }
  0x86   : > { %991 = vst [vmem:[%s15930_s13 + $0x370] sm:$0xff] %v990_v46  ;;  %v996_v49 = vld [vmem:[%s15925_s15 + $0x388] sm:$0xff]  ;;  %993 = vst [vmem:[%s15930_s13 + $0x378] sm:$0xff] %v992_v47  ;;  %v998_v50 = vld [vmem:[%s15925_s15 + $0x390] sm:$0xff] }
  0x87   : > { %995 = vst [vmem:[%s15930_s13 + $0x380] sm:$0xff] %v994_v48  ;;  %997 = vst [vmem:[%s15930_s13 + $0x388] sm:$0xff] %v996_v49  ;;  %v1000_v51 = vld [vmem:[%s15925_s15 + $0x398] sm:$0xff]  ;;  %v1002_v52 = vld [vmem:[%s15925_s15 + $0x3a0] sm:$0xff] }
  0x88   : > { %999 = vst [vmem:[%s15930_s13 + $0x390] sm:$0xff] %v998_v50  ;;  %1001 = vst [vmem:[%s15930_s13 + $0x398] sm:$0xff] %v1000_v51  ;;  %v1004_v53 = vld [vmem:[%s15925_s15 + $0x3a8] sm:$0xff]  ;;  %v1006_v54 = vld [vmem:[%s15925_s15 + $0x3b0] sm:$0xff] }
  0x89   : > { %1003 = vst [vmem:[%s15930_s13 + $0x3a0] sm:$0xff] %v1002_v52  ;;  %v1008_v55 = vld [vmem:[%s15925_s15 + $0x3b8] sm:$0xff]  ;;  %1005 = vst [vmem:[%s15930_s13 + $0x3a8] sm:$0xff] %v1004_v53  ;;  %v1010_v56 = vld [vmem:[%s15925_s15 + $0x3c0] sm:$0xff] }
  0x8a   : > { %1007 = vst [vmem:[%s15930_s13 + $0x3b0] sm:$0xff] %v1006_v54  ;;  %1009 = vst [vmem:[%s15930_s13 + $0x3b8] sm:$0xff] %v1008_v55  ;;  %v1012_v57 = vld [vmem:[%s15925_s15 + $0x3c8] sm:$0xff]  ;;  %v1014_v58 = vld [vmem:[%s15925_s15 + $0x3d0] sm:$0xff] }
  0x8b   : > { %1011 = vst [vmem:[%s15930_s13 + $0x3c0] sm:$0xff] %v1010_v56  ;;  %1013 = vst [vmem:[%s15930_s13 + $0x3c8] sm:$0xff] %v1012_v57  ;;  %v1016_v59 = vld [vmem:[%s15925_s15 + $0x3d8] sm:$0xff]  ;;  %v1018_v60 = vld [vmem:[%s15925_s15 + $0x3e0] sm:$0xff] }
  0x8c   : > { %1015 = vst [vmem:[%s15930_s13 + $0x3d0] sm:$0xff] %v1014_v58  ;;  %v1020_v61 = vld [vmem:[%s15925_s15 + $0x3e8] sm:$0xff]  ;;  %1017 = vst [vmem:[%s15930_s13 + $0x3d8] sm:$0xff] %v1016_v59  ;;  %v1022_v62 = vld [vmem:[%s15925_s15 + $0x3f0] sm:$0xff] }
  0x8d   : > { %1019 = vst [vmem:[%s15930_s13 + $0x3e0] sm:$0xff] %v1018_v60  ;;  %1021 = vst [vmem:[%s15930_s13 + $0x3e8] sm:$0xff] %v1020_v61  ;;  %v1024_v63 = vld [vmem:[%s15925_s15 + $0x3f8] sm:$0xff]  ;;  %v1026_v0 = vld [vmem:[%s15925_s15 + $0x800] sm:$0xff] }
  0x8e   : > { %1023 = vst [vmem:[%s15930_s13 + $0x3f0] sm:$0xff] %v1022_v62  ;;  %1025 = vst [vmem:[%s15930_s13 + $0x3f8] sm:$0xff] %v1024_v63  ;;  %v1028_v1 = vld [vmem:[%s15925_s15 + $0x808] sm:$0xff]  ;;  %v1030_v2 = vld [vmem:[%s15925_s15 + $0x810] sm:$0xff] }
  0x8f   : > { %1027 = vst [vmem:[%s15930_s13 + $0x400] sm:$0xff] %v1026_v0  ;;  %v1032_v3 = vld [vmem:[%s15925_s15 + $0x818] sm:$0xff]  ;;  %1029 = vst [vmem:[%s15930_s13 + $0x408] sm:$0xff] %v1028_v1  ;;  %v1034_v4 = vld [vmem:[%s15925_s15 + $0x820] sm:$0xff] }
  0x90   : > { %1031 = vst [vmem:[%s15930_s13 + $0x410] sm:$0xff] %v1030_v2  ;;  %1033 = vst [vmem:[%s15930_s13 + $0x418] sm:$0xff] %v1032_v3  ;;  %v1036_v5 = vld [vmem:[%s15925_s15 + $0x828] sm:$0xff]  ;;  %v1038_v6 = vld [vmem:[%s15925_s15 + $0x830] sm:$0xff] }
  0x91   : > { %1035 = vst [vmem:[%s15930_s13 + $0x420] sm:$0xff] %v1034_v4  ;;  %1037 = vst [vmem:[%s15930_s13 + $0x428] sm:$0xff] %v1036_v5  ;;  %v1040_v7 = vld [vmem:[%s15925_s15 + $0x838] sm:$0xff]  ;;  %v1042_v8 = vld [vmem:[%s15925_s15 + $0x840] sm:$0xff] }
  0x92   : > { %1039 = vst [vmem:[%s15930_s13 + $0x430] sm:$0xff] %v1038_v6  ;;  %v1044_v9 = vld [vmem:[%s15925_s15 + $0x848] sm:$0xff]  ;;  %1041 = vst [vmem:[%s15930_s13 + $0x438] sm:$0xff] %v1040_v7  ;;  %v1046_v10 = vld [vmem:[%s15925_s15 + $0x850] sm:$0xff] }
  0x93   : > { %1043 = vst [vmem:[%s15930_s13 + $0x440] sm:$0xff] %v1042_v8  ;;  %1045 = vst [vmem:[%s15930_s13 + $0x448] sm:$0xff] %v1044_v9  ;;  %v1048_v11 = vld [vmem:[%s15925_s15 + $0x858] sm:$0xff]  ;;  %v1050_v12 = vld [vmem:[%s15925_s15 + $0x860] sm:$0xff] }
  0x94   : > { %1047 = vst [vmem:[%s15930_s13 + $0x450] sm:$0xff] %v1046_v10  ;;  %1049 = vst [vmem:[%s15930_s13 + $0x458] sm:$0xff] %v1048_v11  ;;  %v1052_v13 = vld [vmem:[%s15925_s15 + $0x868] sm:$0xff]  ;;  %v1054_v14 = vld [vmem:[%s15925_s15 + $0x870] sm:$0xff] }
  0x95   : > { %1051 = vst [vmem:[%s15930_s13 + $0x460] sm:$0xff] %v1050_v12  ;;  %v1056_v15 = vld [vmem:[%s15925_s15 + $0x878] sm:$0xff]  ;;  %1053 = vst [vmem:[%s15930_s13 + $0x468] sm:$0xff] %v1052_v13  ;;  %v1058_v16 = vld [vmem:[%s15925_s15 + $0x880] sm:$0xff] }
  0x96   : > { %1055 = vst [vmem:[%s15930_s13 + $0x470] sm:$0xff] %v1054_v14  ;;  %1057 = vst [vmem:[%s15930_s13 + $0x478] sm:$0xff] %v1056_v15  ;;  %v1060_v17 = vld [vmem:[%s15925_s15 + $0x888] sm:$0xff]  ;;  %v1062_v18 = vld [vmem:[%s15925_s15 + $0x890] sm:$0xff] }
  0x97   : > { %1059 = vst [vmem:[%s15930_s13 + $0x480] sm:$0xff] %v1058_v16  ;;  %1061 = vst [vmem:[%s15930_s13 + $0x488] sm:$0xff] %v1060_v17  ;;  %v1064_v19 = vld [vmem:[%s15925_s15 + $0x898] sm:$0xff]  ;;  %v1066_v20 = vld [vmem:[%s15925_s15 + $0x8a0] sm:$0xff] }
  0x98   : > { %1063 = vst [vmem:[%s15930_s13 + $0x490] sm:$0xff] %v1062_v18  ;;  %v1068_v21 = vld [vmem:[%s15925_s15 + $0x8a8] sm:$0xff]  ;;  %1065 = vst [vmem:[%s15930_s13 + $0x498] sm:$0xff] %v1064_v19  ;;  %v1070_v22 = vld [vmem:[%s15925_s15 + $0x8b0] sm:$0xff] }
  0x99   : > { %1067 = vst [vmem:[%s15930_s13 + $0x4a0] sm:$0xff] %v1066_v20  ;;  %1069 = vst [vmem:[%s15930_s13 + $0x4a8] sm:$0xff] %v1068_v21  ;;  %v1072_v23 = vld [vmem:[%s15925_s15 + $0x8b8] sm:$0xff]  ;;  %v1074_v24 = vld [vmem:[%s15925_s15 + $0x8c0] sm:$0xff] }
  0x9a   : > { %1071 = vst [vmem:[%s15930_s13 + $0x4b0] sm:$0xff] %v1070_v22  ;;  %1073 = vst [vmem:[%s15930_s13 + $0x4b8] sm:$0xff] %v1072_v23  ;;  %v1076_v25 = vld [vmem:[%s15925_s15 + $0x8c8] sm:$0xff]  ;;  %v1078_v26 = vld [vmem:[%s15925_s15 + $0x8d0] sm:$0xff] }
  0x9b   : > { %1075 = vst [vmem:[%s15930_s13 + $0x4c0] sm:$0xff] %v1074_v24  ;;  %v1080_v27 = vld [vmem:[%s15925_s15 + $0x8d8] sm:$0xff]  ;;  %1077 = vst [vmem:[%s15930_s13 + $0x4c8] sm:$0xff] %v1076_v25  ;;  %v1082_v28 = vld [vmem:[%s15925_s15 + $0x8e0] sm:$0xff] }
  0x9c   : > { %1079 = vst [vmem:[%s15930_s13 + $0x4d0] sm:$0xff] %v1078_v26  ;;  %1081 = vst [vmem:[%s15930_s13 + $0x4d8] sm:$0xff] %v1080_v27  ;;  %v1084_v29 = vld [vmem:[%s15925_s15 + $0x8e8] sm:$0xff]  ;;  %v1086_v30 = vld [vmem:[%s15925_s15 + $0x8f0] sm:$0xff] }
  0x9d   : > { %1083 = vst [vmem:[%s15930_s13 + $0x4e0] sm:$0xff] %v1082_v28  ;;  %1085 = vst [vmem:[%s15930_s13 + $0x4e8] sm:$0xff] %v1084_v29  ;;  %v1088_v31 = vld [vmem:[%s15925_s15 + $0x8f8] sm:$0xff]  ;;  %v1090_v32 = vld [vmem:[%s15925_s15 + $0x900] sm:$0xff] }
  0x9e   : > { %1087 = vst [vmem:[%s15930_s13 + $0x4f0] sm:$0xff] %v1086_v30  ;;  %v1092_v33 = vld [vmem:[%s15925_s15 + $0x908] sm:$0xff]  ;;  %1089 = vst [vmem:[%s15930_s13 + $0x4f8] sm:$0xff] %v1088_v31  ;;  %v1094_v34 = vld [vmem:[%s15925_s15 + $0x910] sm:$0xff] }
  0x9f   : > { %1091 = vst [vmem:[%s15930_s13 + $0x500] sm:$0xff] %v1090_v32  ;;  %1093 = vst [vmem:[%s15930_s13 + $0x508] sm:$0xff] %v1092_v33  ;;  %v1096_v35 = vld [vmem:[%s15925_s15 + $0x918] sm:$0xff]  ;;  %v1098_v36 = vld [vmem:[%s15925_s15 + $0x920] sm:$0xff] }
  0xa0   : > { %1095 = vst [vmem:[%s15930_s13 + $0x510] sm:$0xff] %v1094_v34  ;;  %1097 = vst [vmem:[%s15930_s13 + $0x518] sm:$0xff] %v1096_v35  ;;  %v1100_v37 = vld [vmem:[%s15925_s15 + $0x928] sm:$0xff]  ;;  %v1102_v38 = vld [vmem:[%s15925_s15 + $0x930] sm:$0xff] }
  0xa1   : > { %1099 = vst [vmem:[%s15930_s13 + $0x520] sm:$0xff] %v1098_v36  ;;  %v1104_v39 = vld [vmem:[%s15925_s15 + $0x938] sm:$0xff]  ;;  %1101 = vst [vmem:[%s15930_s13 + $0x528] sm:$0xff] %v1100_v37  ;;  %v1106_v40 = vld [vmem:[%s15925_s15 + $0x940] sm:$0xff] }
  0xa2   : > { %1103 = vst [vmem:[%s15930_s13 + $0x530] sm:$0xff] %v1102_v38  ;;  %1105 = vst [vmem:[%s15930_s13 + $0x538] sm:$0xff] %v1104_v39  ;;  %v1108_v41 = vld [vmem:[%s15925_s15 + $0x948] sm:$0xff]  ;;  %v1110_v42 = vld [vmem:[%s15925_s15 + $0x950] sm:$0xff] }
  0xa3   : > { %1107 = vst [vmem:[%s15930_s13 + $0x540] sm:$0xff] %v1106_v40  ;;  %1109 = vst [vmem:[%s15930_s13 + $0x548] sm:$0xff] %v1108_v41  ;;  %v1112_v43 = vld [vmem:[%s15925_s15 + $0x958] sm:$0xff]  ;;  %v1114_v44 = vld [vmem:[%s15925_s15 + $0x960] sm:$0xff] }
  0xa4   : > { %1111 = vst [vmem:[%s15930_s13 + $0x550] sm:$0xff] %v1110_v42  ;;  %v1116_v45 = vld [vmem:[%s15925_s15 + $0x968] sm:$0xff]  ;;  %1113 = vst [vmem:[%s15930_s13 + $0x558] sm:$0xff] %v1112_v43  ;;  %v1118_v46 = vld [vmem:[%s15925_s15 + $0x970] sm:$0xff] }
  0xa5   : > { %1115 = vst [vmem:[%s15930_s13 + $0x560] sm:$0xff] %v1114_v44  ;;  %1117 = vst [vmem:[%s15930_s13 + $0x568] sm:$0xff] %v1116_v45  ;;  %v1120_v47 = vld [vmem:[%s15925_s15 + $0x978] sm:$0xff]  ;;  %v1122_v48 = vld [vmem:[%s15925_s15 + $0x980] sm:$0xff] }
  0xa6   : > { %1119 = vst [vmem:[%s15930_s13 + $0x570] sm:$0xff] %v1118_v46  ;;  %1121 = vst [vmem:[%s15930_s13 + $0x578] sm:$0xff] %v1120_v47  ;;  %v1124_v49 = vld [vmem:[%s15925_s15 + $0x988] sm:$0xff]  ;;  %v1126_v50 = vld [vmem:[%s15925_s15 + $0x990] sm:$0xff] }
  0xa7   : > { %1123 = vst [vmem:[%s15930_s13 + $0x580] sm:$0xff] %v1122_v48  ;;  %v1128_v51 = vld [vmem:[%s15925_s15 + $0x998] sm:$0xff]  ;;  %1125 = vst [vmem:[%s15930_s13 + $0x588] sm:$0xff] %v1124_v49  ;;  %v1130_v52 = vld [vmem:[%s15925_s15 + $0x9a0] sm:$0xff] }
  0xa8   : > { %1127 = vst [vmem:[%s15930_s13 + $0x590] sm:$0xff] %v1126_v50  ;;  %1129 = vst [vmem:[%s15930_s13 + $0x598] sm:$0xff] %v1128_v51  ;;  %v1132_v53 = vld [vmem:[%s15925_s15 + $0x9a8] sm:$0xff]  ;;  %v1134_v54 = vld [vmem:[%s15925_s15 + $0x9b0] sm:$0xff] }
  0xa9   : > { %1131 = vst [vmem:[%s15930_s13 + $0x5a0] sm:$0xff] %v1130_v52  ;;  %1133 = vst [vmem:[%s15930_s13 + $0x5a8] sm:$0xff] %v1132_v53  ;;  %v1136_v55 = vld [vmem:[%s15925_s15 + $0x9b8] sm:$0xff]  ;;  %v1138_v56 = vld [vmem:[%s15925_s15 + $0x9c0] sm:$0xff] }
  0xaa   : > { %1135 = vst [vmem:[%s15930_s13 + $0x5b0] sm:$0xff] %v1134_v54  ;;  %v1140_v57 = vld [vmem:[%s15925_s15 + $0x9c8] sm:$0xff]  ;;  %1137 = vst [vmem:[%s15930_s13 + $0x5b8] sm:$0xff] %v1136_v55  ;;  %v1142_v58 = vld [vmem:[%s15925_s15 + $0x9d0] sm:$0xff] }
  0xab   : > { %1139 = vst [vmem:[%s15930_s13 + $0x5c0] sm:$0xff] %v1138_v56  ;;  %1141 = vst [vmem:[%s15930_s13 + $0x5c8] sm:$0xff] %v1140_v57  ;;  %v1144_v59 = vld [vmem:[%s15925_s15 + $0x9d8] sm:$0xff]  ;;  %v1146_v60 = vld [vmem:[%s15925_s15 + $0x9e0] sm:$0xff] }
  0xac   : > { %1143 = vst [vmem:[%s15930_s13 + $0x5d0] sm:$0xff] %v1142_v58  ;;  %1145 = vst [vmem:[%s15930_s13 + $0x5d8] sm:$0xff] %v1144_v59  ;;  %v1148_v61 = vld [vmem:[%s15925_s15 + $0x9e8] sm:$0xff]  ;;  %v1150_v62 = vld [vmem:[%s15925_s15 + $0x9f0] sm:$0xff] }
  0xad   : > { %1147 = vst [vmem:[%s15930_s13 + $0x5e0] sm:$0xff] %v1146_v60  ;;  %v1152_v63 = vld [vmem:[%s15925_s15 + $0x9f8] sm:$0xff]  ;;  %1149 = vst [vmem:[%s15930_s13 + $0x5e8] sm:$0xff] %v1148_v61  ;;  %v1154_v0 = vld [vmem:[%s15925_s15 + $0xa00] sm:$0xff] }
  0xae   : > { %1151 = vst [vmem:[%s15930_s13 + $0x5f0] sm:$0xff] %v1150_v62  ;;  %1153 = vst [vmem:[%s15930_s13 + $0x5f8] sm:$0xff] %v1152_v63  ;;  %v1156_v1 = vld [vmem:[%s15925_s15 + $0xa08] sm:$0xff]  ;;  %v1158_v2 = vld [vmem:[%s15925_s15 + $0xa10] sm:$0xff] }
  0xaf   : > { %1155 = vst [vmem:[%s15930_s13 + $0x600] sm:$0xff] %v1154_v0  ;;  %1157 = vst [vmem:[%s15930_s13 + $0x608] sm:$0xff] %v1156_v1  ;;  %v1160_v3 = vld [vmem:[%s15925_s15 + $0xa18] sm:$0xff]  ;;  %v1162_v4 = vld [vmem:[%s15925_s15 + $0xa20] sm:$0xff] }
  0xb0   : > { %1159 = vst [vmem:[%s15930_s13 + $0x610] sm:$0xff] %v1158_v2  ;;  %v1164_v5 = vld [vmem:[%s15925_s15 + $0xa28] sm:$0xff]  ;;  %1161 = vst [vmem:[%s15930_s13 + $0x618] sm:$0xff] %v1160_v3  ;;  %v1166_v6 = vld [vmem:[%s15925_s15 + $0xa30] sm:$0xff] }
  0xb1   : > { %1163 = vst [vmem:[%s15930_s13 + $0x620] sm:$0xff] %v1162_v4  ;;  %1165 = vst [vmem:[%s15930_s13 + $0x628] sm:$0xff] %v1164_v5  ;;  %v1168_v7 = vld [vmem:[%s15925_s15 + $0xa38] sm:$0xff]  ;;  %v1170_v8 = vld [vmem:[%s15925_s15 + $0xa40] sm:$0xff] }
  0xb2   : > { %1167 = vst [vmem:[%s15930_s13 + $0x630] sm:$0xff] %v1166_v6  ;;  %1169 = vst [vmem:[%s15930_s13 + $0x638] sm:$0xff] %v1168_v7  ;;  %v1172_v9 = vld [vmem:[%s15925_s15 + $0xa48] sm:$0xff]  ;;  %v1174_v10 = vld [vmem:[%s15925_s15 + $0xa50] sm:$0xff] }
  0xb3   : > { %1171 = vst [vmem:[%s15930_s13 + $0x640] sm:$0xff] %v1170_v8  ;;  %v1176_v11 = vld [vmem:[%s15925_s15 + $0xa58] sm:$0xff]  ;;  %1173 = vst [vmem:[%s15930_s13 + $0x648] sm:$0xff] %v1172_v9  ;;  %v1178_v12 = vld [vmem:[%s15925_s15 + $0xa60] sm:$0xff] }
  0xb4   : > { %1175 = vst [vmem:[%s15930_s13 + $0x650] sm:$0xff] %v1174_v10  ;;  %1177 = vst [vmem:[%s15930_s13 + $0x658] sm:$0xff] %v1176_v11  ;;  %v1180_v13 = vld [vmem:[%s15925_s15 + $0xa68] sm:$0xff]  ;;  %v1182_v14 = vld [vmem:[%s15925_s15 + $0xa70] sm:$0xff] }
  0xb5   : > { %1179 = vst [vmem:[%s15930_s13 + $0x660] sm:$0xff] %v1178_v12  ;;  %1181 = vst [vmem:[%s15930_s13 + $0x668] sm:$0xff] %v1180_v13  ;;  %v1184_v15 = vld [vmem:[%s15925_s15 + $0xa78] sm:$0xff]  ;;  %v1186_v16 = vld [vmem:[%s15925_s15 + $0xa80] sm:$0xff] }
  0xb6   : > { %1183 = vst [vmem:[%s15930_s13 + $0x670] sm:$0xff] %v1182_v14  ;;  %v1188_v17 = vld [vmem:[%s15925_s15 + $0xa88] sm:$0xff]  ;;  %1185 = vst [vmem:[%s15930_s13 + $0x678] sm:$0xff] %v1184_v15  ;;  %v1190_v18 = vld [vmem:[%s15925_s15 + $0xa90] sm:$0xff] }
  0xb7   : > { %1187 = vst [vmem:[%s15930_s13 + $0x680] sm:$0xff] %v1186_v16  ;;  %1189 = vst [vmem:[%s15930_s13 + $0x688] sm:$0xff] %v1188_v17  ;;  %v1192_v19 = vld [vmem:[%s15925_s15 + $0xa98] sm:$0xff]  ;;  %v1194_v20 = vld [vmem:[%s15925_s15 + $0xaa0] sm:$0xff] }
  0xb8   : > { %1191 = vst [vmem:[%s15930_s13 + $0x690] sm:$0xff] %v1190_v18  ;;  %1193 = vst [vmem:[%s15930_s13 + $0x698] sm:$0xff] %v1192_v19  ;;  %v1196_v21 = vld [vmem:[%s15925_s15 + $0xaa8] sm:$0xff]  ;;  %v1198_v22 = vld [vmem:[%s15925_s15 + $0xab0] sm:$0xff] }
  0xb9   : > { %1195 = vst [vmem:[%s15930_s13 + $0x6a0] sm:$0xff] %v1194_v20  ;;  %v1200_v23 = vld [vmem:[%s15925_s15 + $0xab8] sm:$0xff]  ;;  %1197 = vst [vmem:[%s15930_s13 + $0x6a8] sm:$0xff] %v1196_v21  ;;  %v1202_v24 = vld [vmem:[%s15925_s15 + $0xac0] sm:$0xff] }
  0xba   : > { %1199 = vst [vmem:[%s15930_s13 + $0x6b0] sm:$0xff] %v1198_v22  ;;  %1201 = vst [vmem:[%s15930_s13 + $0x6b8] sm:$0xff] %v1200_v23  ;;  %v1204_v25 = vld [vmem:[%s15925_s15 + $0xac8] sm:$0xff]  ;;  %v1206_v26 = vld [vmem:[%s15925_s15 + $0xad0] sm:$0xff] }
  0xbb   : > { %1203 = vst [vmem:[%s15930_s13 + $0x6c0] sm:$0xff] %v1202_v24  ;;  %1205 = vst [vmem:[%s15930_s13 + $0x6c8] sm:$0xff] %v1204_v25  ;;  %v1208_v27 = vld [vmem:[%s15925_s15 + $0xad8] sm:$0xff]  ;;  %v1210_v28 = vld [vmem:[%s15925_s15 + $0xae0] sm:$0xff] }
  0xbc   : > { %1207 = vst [vmem:[%s15930_s13 + $0x6d0] sm:$0xff] %v1206_v26  ;;  %v1212_v29 = vld [vmem:[%s15925_s15 + $0xae8] sm:$0xff]  ;;  %1209 = vst [vmem:[%s15930_s13 + $0x6d8] sm:$0xff] %v1208_v27  ;;  %v1214_v30 = vld [vmem:[%s15925_s15 + $0xaf0] sm:$0xff] }
  0xbd   : > { %1211 = vst [vmem:[%s15930_s13 + $0x6e0] sm:$0xff] %v1210_v28  ;;  %1213 = vst [vmem:[%s15930_s13 + $0x6e8] sm:$0xff] %v1212_v29  ;;  %v1216_v31 = vld [vmem:[%s15925_s15 + $0xaf8] sm:$0xff]  ;;  %v1218_v32 = vld [vmem:[%s15925_s15 + $0xb00] sm:$0xff] }
  0xbe   : > { %1215 = vst [vmem:[%s15930_s13 + $0x6f0] sm:$0xff] %v1214_v30  ;;  %1217 = vst [vmem:[%s15930_s13 + $0x6f8] sm:$0xff] %v1216_v31  ;;  %v1220_v33 = vld [vmem:[%s15925_s15 + $0xb08] sm:$0xff]  ;;  %v1222_v34 = vld [vmem:[%s15925_s15 + $0xb10] sm:$0xff] }
  0xbf   : > { %1219 = vst [vmem:[%s15930_s13 + $0x700] sm:$0xff] %v1218_v32  ;;  %v1224_v35 = vld [vmem:[%s15925_s15 + $0xb18] sm:$0xff]  ;;  %1221 = vst [vmem:[%s15930_s13 + $0x708] sm:$0xff] %v1220_v33  ;;  %v1226_v36 = vld [vmem:[%s15925_s15 + $0xb20] sm:$0xff] }
  0xc0   : > { %1223 = vst [vmem:[%s15930_s13 + $0x710] sm:$0xff] %v1222_v34  ;;  %1225 = vst [vmem:[%s15930_s13 + $0x718] sm:$0xff] %v1224_v35  ;;  %v1228_v37 = vld [vmem:[%s15925_s15 + $0xb28] sm:$0xff]  ;;  %v1230_v38 = vld [vmem:[%s15925_s15 + $0xb30] sm:$0xff] }
  0xc1   : > { %1227 = vst [vmem:[%s15930_s13 + $0x720] sm:$0xff] %v1226_v36  ;;  %1229 = vst [vmem:[%s15930_s13 + $0x728] sm:$0xff] %v1228_v37  ;;  %v1232_v39 = vld [vmem:[%s15925_s15 + $0xb38] sm:$0xff]  ;;  %v1234_v40 = vld [vmem:[%s15925_s15 + $0xb40] sm:$0xff] }
  0xc2   : > { %1231 = vst [vmem:[%s15930_s13 + $0x730] sm:$0xff] %v1230_v38  ;;  %v1236_v41 = vld [vmem:[%s15925_s15 + $0xb48] sm:$0xff]  ;;  %1233 = vst [vmem:[%s15930_s13 + $0x738] sm:$0xff] %v1232_v39  ;;  %v1238_v42 = vld [vmem:[%s15925_s15 + $0xb50] sm:$0xff] }
  0xc3   : > { %1235 = vst [vmem:[%s15930_s13 + $0x740] sm:$0xff] %v1234_v40  ;;  %1237 = vst [vmem:[%s15930_s13 + $0x748] sm:$0xff] %v1236_v41  ;;  %v1240_v43 = vld [vmem:[%s15925_s15 + $0xb58] sm:$0xff]  ;;  %v1242_v44 = vld [vmem:[%s15925_s15 + $0xb60] sm:$0xff] }
  0xc4   : > { %1239 = vst [vmem:[%s15930_s13 + $0x750] sm:$0xff] %v1238_v42  ;;  %1241 = vst [vmem:[%s15930_s13 + $0x758] sm:$0xff] %v1240_v43  ;;  %v1244_v45 = vld [vmem:[%s15925_s15 + $0xb68] sm:$0xff]  ;;  %v1246_v46 = vld [vmem:[%s15925_s15 + $0xb70] sm:$0xff] }
  0xc5   : > { %1243 = vst [vmem:[%s15930_s13 + $0x760] sm:$0xff] %v1242_v44  ;;  %v1248_v47 = vld [vmem:[%s15925_s15 + $0xb78] sm:$0xff]  ;;  %1245 = vst [vmem:[%s15930_s13 + $0x768] sm:$0xff] %v1244_v45  ;;  %v1250_v48 = vld [vmem:[%s15925_s15 + $0xb80] sm:$0xff] }
  0xc6   : > { %1247 = vst [vmem:[%s15930_s13 + $0x770] sm:$0xff] %v1246_v46  ;;  %1249 = vst [vmem:[%s15930_s13 + $0x778] sm:$0xff] %v1248_v47  ;;  %v1252_v49 = vld [vmem:[%s15925_s15 + $0xb88] sm:$0xff]  ;;  %v1254_v50 = vld [vmem:[%s15925_s15 + $0xb90] sm:$0xff] }
  0xc7   : > { %1251 = vst [vmem:[%s15930_s13 + $0x780] sm:$0xff] %v1250_v48  ;;  %1253 = vst [vmem:[%s15930_s13 + $0x788] sm:$0xff] %v1252_v49  ;;  %v1256_v51 = vld [vmem:[%s15925_s15 + $0xb98] sm:$0xff]  ;;  %v1258_v52 = vld [vmem:[%s15925_s15 + $0xba0] sm:$0xff] }
  0xc8   : > { %1255 = vst [vmem:[%s15930_s13 + $0x790] sm:$0xff] %v1254_v50  ;;  %v1260_v53 = vld [vmem:[%s15925_s15 + $0xba8] sm:$0xff]  ;;  %1257 = vst [vmem:[%s15930_s13 + $0x798] sm:$0xff] %v1256_v51  ;;  %v1262_v54 = vld [vmem:[%s15925_s15 + $0xbb0] sm:$0xff] }
  0xc9   : > { %1259 = vst [vmem:[%s15930_s13 + $0x7a0] sm:$0xff] %v1258_v52  ;;  %1261 = vst [vmem:[%s15930_s13 + $0x7a8] sm:$0xff] %v1260_v53  ;;  %v1264_v55 = vld [vmem:[%s15925_s15 + $0xbb8] sm:$0xff]  ;;  %v1266_v56 = vld [vmem:[%s15925_s15 + $0xbc0] sm:$0xff] }
  0xca   : > { %1263 = vst [vmem:[%s15930_s13 + $0x7b0] sm:$0xff] %v1262_v54  ;;  %1265 = vst [vmem:[%s15930_s13 + $0x7b8] sm:$0xff] %v1264_v55  ;;  %v1268_v57 = vld [vmem:[%s15925_s15 + $0xbc8] sm:$0xff]  ;;  %v1270_v58 = vld [vmem:[%s15925_s15 + $0xbd0] sm:$0xff] }
  0xcb   : > { %1267 = vst [vmem:[%s15930_s13 + $0x7c0] sm:$0xff] %v1266_v56  ;;  %v1272_v59 = vld [vmem:[%s15925_s15 + $0xbd8] sm:$0xff]  ;;  %1269 = vst [vmem:[%s15930_s13 + $0x7c8] sm:$0xff] %v1268_v57  ;;  %v1274_v60 = vld [vmem:[%s15925_s15 + $0xbe0] sm:$0xff] }
  0xcc   : > { %1271 = vst [vmem:[%s15930_s13 + $0x7d0] sm:$0xff] %v1270_v58  ;;  %1273 = vst [vmem:[%s15930_s13 + $0x7d8] sm:$0xff] %v1272_v59  ;;  %v1276_v61 = vld [vmem:[%s15925_s15 + $0xbe8] sm:$0xff]  ;;  %v1278_v62 = vld [vmem:[%s15925_s15 + $0xbf0] sm:$0xff] }
  0xcd   : > { %1275 = vst [vmem:[%s15930_s13 + $0x7e0] sm:$0xff] %v1274_v60  ;;  %1277 = vst [vmem:[%s15930_s13 + $0x7e8] sm:$0xff] %v1276_v61  ;;  %v1280_v63 = vld [vmem:[%s15925_s15 + $0xbf8] sm:$0xff] }
  0xce   : > { %1279 = vst [vmem:[%s15930_s13 + $0x7f0] sm:$0xff] %v1278_v62  ;;  %1281 = vst [vmem:[%s15930_s13 + $0x7f8] sm:$0xff] %v1280_v63 }
  0xcf PF: > { %s1288_s14 = sand.u32 1, %s15751_s25   ;;  %s15091_s16 = sshll.u32 %s15755_s26, 9 }
  0xd0   : > { %s13922_s17 = sshll.u32 %s1288_s14, 13  ;;  %s16446_s19 = scalar_lea.hbm %s20358_s1, %s15091_s16 }
  0xd1   : > { %s1292_s20 = scalar_lea.vmem [#allocation4], %s13922_s17  ;;  %s16450_s22 = scalar_lea.sflag [#allocation5], %s1288_s14 }
  0xd2   : > { %s1299_s21 = sshll.u32 %s1292_s20, 4  ;;  %s15629_s23 = scalar_lea.hbm %s16446_s19, 131072  ;;  %s16448_s21 = int_to_ptr.vmem [resolvable:$true] %s1299_s21 }
  0xd3   : > { %p15630_p12 = scmp.ne.s32.totalorder %s16446_s19, %s15629_s23  ;;  %p20476_p5 = scmp.ne.s32.totalorder %s20471_s7, 0 }
  0xd4   : > { %s15633_s29 = scalar_lea.hbm %s20358_s1, 262144  ;;  %p15634_p9 = scmp.lt.u32.totalorder %s16446_s19, %s20358_s1 }
  0xd5   : > { %p15631_p8 = pnand %p15630_p12, %p20476_p5  ;;  %p15635_p10 = scmp.lt.u32.totalorder %s15633_s29, %s15629_s23 }
  0xd6   : > { %p15637_p2 = scmp.lt.u32.totalorder %s15629_s23, %s16446_s19 }
  0xd7   : > { %p15632_p4 = pneg %p15631_p8  ;;  %p15636_p1 = por %p15635_p10, %p15634_p9 }
  0xd9   : > { %p15638_p3 = por %p15637_p2, %p15636_p1 }
  0xdb   : > { %p15639_p6 = pnand %p15638_p3, %p15632_p4 }
  0xdd   : > { %15642 = shalt.err (!%p15639_p6)
}
  0xde   : > { %s15643_s15 = scalar_lea.vmem %s16448_s21, 131072  ;;  %s15761_s13 = smov [#allocation4]  }
  0xdf   : > { %p15644_p7 = scmp.ne.s32.totalorder %s16448_s21, %s15643_s15  ;;  %s15647_s14 = sshll.u32 %s15761_s13, 4  ;;  %s15648_s14 = int_to_ptr.vmem [resolvable:$false] %s15647_s14 }
  0xe0   : > { %s15649_s16 = scalar_lea.vmem %s15648_s14, 262144  ;;  %p15650_p0 = scmp.lt.s32.totalorder %s16448_s21, %s15648_s14 }
  0xe1   : > { %p15645_p11 = pnand %p15644_p7, %p20476_p5  ;;  %p15651_p12 = scmp.lt.s32.totalorder %s15649_s16, %s15643_s15 }
  0xe3   : > { %p15646_p13 = pneg %p15645_p11  ;;  %p15652_p8 = por %p15651_p12, %p15650_p0 }
  0xe5   : > { %p15653_p9 = pnand %p15652_p8, %p15646_p13 }
  0xe7   : > { %15656 = shalt.err (!%p15653_p9)
}
  0xe8   : > { %s15762_s17 = smov 1024   ;;  %s15763_s18 = smov 512  }
  0xe9   : > { %s15764_s11 = smov 32  }
  0xea   : > { %15368 = dma.hbm_to_vmem [thread:$0]  (%p20476_p5), %s16446_s19, 131072, %s16448_s21, %s16450_s22, %s15762_s17, %s15763_s18, %s15764_s11  }
  0xeb PF: > { %p20477_p4 = scmp.ne.s32.totalorder %s20473_s9, 0 }
  0xed   : > { %1311 = sbr.rel (%p20477_p4) target bundleno = 3268 (0xcc4), region = 74 }
  0xf4   : > { %s1314_s20 = sand.u32 1, %s15747_s24   ;;  %p20478_p10 = scmp.ne.s32.totalorder %s20472_s8, 0 }
  0xf5   : > { %s13926_s23 = sshll.u32 %s1314_s20, 11  ;;  %s13927_s26 = sshll.u32 %s1314_s20, 13 }
  0xf6   : > { %s16477_s28 = scalar_lea.vmem [#allocation3], %s13926_s23  ;;  %s1321_s29 = scalar_lea.sflag [#allocation5], %s1314_s20 }
  0xf7   : > { %s16479_s10 = scalar_lea.vmem [#allocation4], %s13927_s26 }
  0xf8   : > { %15726 = dma.done.wait (%p20478_p10), %s1321_s29, 131072  }
  0xf9   : > { %15728 = vsyncadd (%p20478_p10), %s1321_s29, 4294836224  ;;  %p20479_p5 = scmp.eq.s32.totalorder %s15827_s4, 0 }
  0xfb   : > { %15730 = dma.done.wait (%p20479_p5), [#allocation8], 16640   ;;  %p20480_p1 = pmov %p20479_p5 }
  0xfc   : > { %p20481_p2 = scmp.ne.s32.totalorder %s15827_s4, 0 }
  0xfd   : > { %15732 = vsyncadd (%p20480_p1), [#allocation8], 4294950656  ;;  %v15765_v0 = vmov (!%p20481_p2), 0.0  }
  0xfe   : > { %1366 = sbr.rel (%p20481_p2) target bundleno = 261 (0x105), region = 94  ;;  %1367 = vst [vmem:[#allocation10] sm:$0xff] (!%p20481_p2), %v15765_v0  ;;  %1368 = vst [vmem:[#allocation10 + $0x8] sm:$0xff] (!%p20481_p2), %v15765_v0 }
  0xff   : > { %1369 = vst [vmem:[#allocation10 + $0x10] sm:$0xff] (!%p20481_p2), %v15765_v0  ;;  %1370 = vst [vmem:[#allocation10 + $0x18] sm:$0xff] (!%p20481_p2), %v15765_v0 }
 0x105 PF: > { %v1515_v1 = vld [vmem:[%s16477_s28 + $0x480] sm:$0xff]  ;;  %vm1627_vm0 = vcmask 130048   ;;  %v1516_v3 = vld [vmem:[%s16477_s28 + $0x488] sm:$0xff]  ;;  %v1390_v13 = vld [vmem:[%s16477_s28 + $0x98] sm:$0xff]  ;;  %vm4204_vm1 = vcmask 130112   ;;  %vm4211_vm2 = vcmask 195712  }
 0x106   : > { %v1387_v2 = vld [vmem:[%s16477_s28 + $0x80] sm:$0xff]  ;;  %v2060_v4 = vsel %vm1627_vm0, %v1515_v1, 0.0  ;;  %v1388_v6 = vld [vmem:[%s16477_s28 + $0x88] sm:$0xff]  ;;  %v2063_v7 = vsel %vm1627_vm0, %v1516_v3, 0.0  ;;  %v1389_v14 = vld [vmem:[%s16477_s28 + $0x90] sm:$0xff]  ;;  %v1685_v15 = vsel %vm1627_vm0, %v1390_v13, 0.0 }
 0x107   : > { %v1676_v5 = vsel %vm1627_vm0, %v1387_v2, 0.0  ;;  %2061 = vadd.xlane.f32.xlu1 %v2060_v4  ;;  %v1679_v8 = vsel %vm1627_vm0, %v1388_v6, 0.0  ;;  %v1372_v9 = vld [vmem:[%s16477_s28 + $0x8] sm:$0xff]  ;;  %v1371_v10 = vld [vmem:[%s16477_s28] sm:$0xff]  ;;  %v1682_v16 = vsel %vm1627_vm0, %v1389_v14, 0.0  ;;  %v1518_v21 = vld [vmem:[%s16477_s28 + $0x498] sm:$0xff] }
 0x108   : > { %1677 = vadd.xlane.f32.xlu0 %v1676_v5  ;;  %v1631_v11 = vsel %vm1627_vm0, %v1372_v9, 0.0  ;;  %v1628_v12 = vsel %vm1627_vm0, %v1371_v10, 0.0  ;;  %v1500_v17 = vld [vmem:[%s16477_s28 + $0x408] sm:$0xff]  ;;  %v1499_v18 = vld [vmem:[%s16477_s28 + $0x400] sm:$0xff]  ;;  %v1517_v22 = vld [vmem:[%s16477_s28 + $0x490] sm:$0xff]  ;;  %v2069_v23 = vsel %vm1627_vm0, %v1518_v21, 0.0 }
 0x109   : > { %v2015_v19 = vsel %vm1627_vm0, %v1500_v17, 0.0  ;;  %v2012_v20 = vsel %vm1627_vm0, %v1499_v18, 0.0  ;;  %v2066_v24 = vsel %vm1627_vm0, %v1517_v22, 0.0  ;;  %v1374_v25 = vld [vmem:[%s16477_s28 + $0x18] sm:$0xff]  ;;  %v1373_v26 = vld [vmem:[%s16477_s28 + $0x10] sm:$0xff]  ;;  %v2785_v31 = vld [vmem:[%s16479_s10] sm:$0xff] }
 0x10a   : > { %v1637_v27 = vsel %vm1627_vm0, %v1374_v25, 0.0  ;;  %v1634_v28 = vsel %vm1627_vm0, %v1373_v26, 0.0  ;;  %v1502_v29 = vld [vmem:[%s16477_s28 + $0x418] sm:$0xff]  ;;  %v1501_v30 = vld [vmem:[%s16477_s28 + $0x410] sm:$0xff]  ;;  %v2789_v32 = vld [vmem:[%s16479_s10 + $0x20] sm:$0xff]  ;;  %vm4218_vm3 = vcmask 261312  }
 0x10b   : > { %2064 = vadd.xlane.f32.xlu1 %v2063_v7  ;;  %v2913_v33 = vld [vmem:[%s16479_s10 + $0x400] sm:$0xff]  ;;  %v2021_v34 = vsel %vm1627_vm0, %v1502_v29, 0.0  ;;  %v2018_v35 = vsel %vm1627_vm0, %v1501_v30, 0.0  ;;  %v13932_v36 = vcombine.high %v2785_v31, %v2789_v32  ;;  %v13931_v38 = vcombine.low %v2785_v31, %v2789_v32  ;;  %v1392_v39 = vld [vmem:[%s16477_s28 + $0xa8] sm:$0xff]  ;;  %v1393_v9 = vld [vmem:[%s16477_s28 + $0xb0] sm:$0xff]  ;;  %p14955_p3 = scmp.ne.s32.totalorder %s15827_s4, 1 }
 0x10c   : > { %1680 = vadd.xlane.f32.xlu0 %v1679_v8  ;;  %v2917_v37 = vld [vmem:[%s16479_s10 + $0x420] sm:$0xff]  ;;  %v1691_v46 = vsel %vm1627_vm0, %v1392_v39, 0.0  ;;  %v1520_v50 = vld [vmem:[%s16477_s28 + $0x4a8] sm:$0xff]  ;;  %v1394_v8 = vld [vmem:[%s16477_s28 + $0xb8] sm:$0xff]  ;;  %vm20426_vm4 = vcmask 326912   ;;  %vm20425_vm5 = vcmask 392512  }
 0x10d   : > { %v1391_v40 = vld [vmem:[%s16477_s28 + $0xa0] sm:$0xff]  ;;  %v14060_v41 = vcombine.high %v2913_v33, %v2917_v37  ;;  %v14059_v42 = vcombine.low %v2913_v33, %v2917_v37  ;;  %10634 = vmatprep.subr.bf16.mxu0 %v13932_v36  ;;  %v2075_v53 = vsel %vm1627_vm0, %v1520_v50, 0.0  ;;  %v1376_v56 = vld [vmem:[%s16477_s28 + $0x28] sm:$0xff]  ;;  %v1697_v14 = vsel %vm1627_vm0, %v1394_v8, 0.0  ;;  %v1522_v18 = vld [vmem:[%s16477_s28 + $0x4b8] sm:$0xff]  ;;  %s12346_s7 = sld [smem:[#allocation2]] (!%p14955_p3) }
 0x10e   : > { %v2793_v43 = vld [vmem:[%s16479_s10 + $0x40] sm:$0xff]  ;;  %v1688_v47 = vsel %vm1627_vm0, %v1391_v40, 0.0  ;;  %10635 = vmatpush1.bf16.xpose.msra.mxu0 %v13931_v38  ;;  %v1643_v62 = vsel %vm1627_vm0, %v1376_v56, 0.0  ;;  %v1504_v2 = vld [vmem:[%s16477_s28 + $0x428] sm:$0xff]  ;;  %v2081_v21 = vsel %vm1627_vm0, %v1522_v18, 0.0  ;;  %v1377_v25 = vld [vmem:[%s16477_s28 + $0x30] sm:$0xff] }
 0x10f   : > { %1632 = vadd.xlane.f32.xlu1 %v1631_v11  ;;  %v2797_v44 = vld [vmem:[%s16479_s10 + $0x60] sm:$0xff]  ;;  %10798 = vmatprep.subr.bf16.mxu1 %v14060_v41  ;;  %v2027_v5 = vsel %vm1627_vm0, %v1504_v2, 0.0  ;;  %v1646_v31 = vsel %vm1627_vm0, %v1377_v25, 0.0  ;;  %v1396_v40 = vld [vmem:[%s16477_s28 + $0xc8] sm:$0xff]  ;;  %v1398_v8 = vld [vmem:[%s16477_s28 + $0xd8] sm:$0xff]  ;;  %vm20424_vm6 = vcmask 458112  }
 0x110   : > { %1629 = vadd.xlane.f32.xlu0 %v1628_v12  ;;  %v2921_v45 = vld [vmem:[%s16479_s10 + $0x440] sm:$0xff]  ;;  %v13940_v48 = vcombine.high %v2793_v43, %v2797_v44  ;;  %10799 = vmatpush1.bf16.xpose.msra.mxu1 %v14059_v42  ;;  %v13939_v55 = vcombine.low %v2793_v43, %v2797_v44  ;;  %v1524_v50 = vld [vmem:[%s16477_s28 + $0x4c8] sm:$0xff]  ;;  %v1526_v18 = vld [vmem:[%s16477_s28 + $0x4d8] sm:$0xff]  ;;  %vm20423_vm7 = vcmask 523712   ;;  %vm20386_vm8 = vcmask 589312  }
 0x111   : > { %v2925_v49 = vld [vmem:[%s16479_s10 + $0x460] sm:$0xff]  ;;  %v1380_v56 = vld [vmem:[%s16477_s28 + $0x48] sm:$0xff]  ;;  %v1381_v25 = vld [vmem:[%s16477_s28 + $0x50] sm:$0xff]  ;;  %vm4260_vm9 = vcmask 654912   ;;  %vm4267_vm10 = vcmask 720512   ;;  %vm4274_vm11 = vcmask 786112  }
 0x112   : > { %v1519_v51 = vld [vmem:[%s16477_s28 + $0x4a0] sm:$0xff]  ;;  %v14068_v52 = vcombine.high %v2921_v45, %v2925_v49  ;;  %10636 = vmatprep.subr.bf16.mxu0 %v13940_v48  ;;  %v14067_v58 = vcombine.low %v2921_v45, %v2925_v49  ;;  %v1508_v2 = vld [vmem:[%s16477_s28 + $0x448] sm:$0xff]  ;;  %vm4281_vm12 = vcmask 851712   ;;  %vm4288_vm13 = vcmask 917312  }
 0x113   : > { %1686 = vadd.xlane.f32.xlu1 %v1685_v15  ;;  %v2072_v54 = vsel %vm1627_vm0, %v1519_v51, 0.0  ;;  %v1375_v57 = vld [vmem:[%s16477_s28 + $0x20] sm:$0xff]  ;;  %v1694_v15 = vsel %vm1627_vm0, %v1393_v9, 0.0  ;;  %v1397_v9 = vld [vmem:[%s16477_s28 + $0xd0] sm:$0xff]  ;;  %vm4295_vm14 = vcmask 982912   ;;  %vm4302_vm15 = vcmask 1048512  }
 0x114   : > { %1683 = vadd.xlane.f32.xlu0 %v1682_v16  ;;  %10800 = vmatprep.subr.bf16.mxu1 %v14068_v52  ;;  %v2801_v59 = vld [vmem:[%s16479_s10 + $0x80] sm:$0xff]  ;;  %v1640_v63 = vsel %vm1627_vm0, %v1375_v57, 0.0 }
 0x115   : > { %v2805_v60 = vld [vmem:[%s16479_s10 + $0xa0] sm:$0xff] }
 0x116   : > { %v2929_v61 = vld [vmem:[%s16479_s10 + $0x480] sm:$0xff]  ;;  %10637 = vmatpush1.bf16.xpose.msra.mxu0 %v13939_v55  ;;  %v13948_v0 = vcombine.high %v2801_v59, %v2805_v60  ;;  %v13947_v7 = vcombine.low %v2801_v59, %v2805_v60 }
 0x117   : > { %2016 = vadd.xlane.f32.xlu1 %v2015_v19  ;;  %v2933_v1 = vld [vmem:[%s16479_s10 + $0x4a0] sm:$0xff]  ;;  %v1521_v19 = vld [vmem:[%s16477_s28 + $0x4b0] sm:$0xff] }
 0x118   : > { %2013 = vadd.xlane.f32.xlu0 %v2012_v20  ;;  %v1503_v3 = vld [vmem:[%s16477_s28 + $0x420] sm:$0xff]  ;;  %10801 = vmatpush1.bf16.xpose.msra.mxu1 %v14067_v58  ;;  %v14076_v4 = vcombine.high %v2929_v61, %v2933_v1  ;;  %v14075_v10 = vcombine.low %v2929_v61, %v2933_v1  ;;  %v2078_v22 = vsel %vm1627_vm0, %v1521_v19, 0.0  ;;  %v1655_v61 = vsel %vm1627_vm0, %v1380_v56, 0.0  ;;  %v1525_v19 = vld [vmem:[%s16477_s28 + $0x4d0] sm:$0xff]  ;;  %v1384_v56 = vld [vmem:[%s16477_s28 + $0x68] sm:$0xff] }
 0x119   : > { %10638 = vmatprep.subr.bf16.mxu0 %v13948_v0  ;;  %v2024_v6 = vsel %vm1627_vm0, %v1503_v3, 0.0  ;;  %v2809_v11 = vld [vmem:[%s16479_s10 + $0xc0] sm:$0xff] }
 0x11a   : > { %10802 = vmatprep.subr.bf16.mxu1 %v14076_v4  ;;  %v2813_v12 = vld [vmem:[%s16479_s10 + $0xe0] sm:$0xff] }
 0x11b   : > { %2070 = vadd.xlane.f32.xlu1 %v2069_v23  ;;  %v2937_v13 = vld [vmem:[%s16479_s10 + $0x4c0] sm:$0xff]  ;;  %v13956_v16 = vcombine.high %v2809_v11, %v2813_v12  ;;  %v13955_v23 = vcombine.low %v2809_v11, %v2813_v12 }
 0x11c   : > { %2067 = vadd.xlane.f32.xlu0 %v2066_v24  ;;  %v2941_v17 = vld [vmem:[%s16479_s10 + $0x4e0] sm:$0xff]  ;;  %v1378_v24 = vld [vmem:[%s16477_s28 + $0x38] sm:$0xff] }
 0x11d   : > { %v14084_v20 = vcombine.high %v2937_v13, %v2941_v17  ;;  %v14083_v26 = vcombine.low %v2937_v13, %v2941_v17  ;;  %v2945_v29 = vld [vmem:[%s16479_s10 + $0x500] sm:$0xff]  ;;  %v1649_v30 = vsel %vm1627_vm0, %v1378_v24, 0.0  ;;  %v1382_v24 = vld [vmem:[%s16477_s28 + $0x58] sm:$0xff] }
 0x11e   : > { %10639 = vmatpush1.bf16.xpose.msra.mxu0 %v13947_v7  ;;  %v2949_v33 = vld [vmem:[%s16479_s10 + $0x520] sm:$0xff] }
 0x11f   : > { %1638 = vadd.xlane.f32.xlu1 %v1637_v27  ;;  %10640 = vmatprep.subr.bf16.mxu0 %v13956_v16  ;;  %v2817_v27 = vld [vmem:[%s16479_s10 + $0x100] sm:$0xff]  ;;  %v14092_v36 = vcombine.high %v2945_v29, %v2949_v33  ;;  %v14091_v42 = vcombine.low %v2945_v29, %v2949_v33 }
 0x120   : > { %1635 = vadd.xlane.f32.xlu0 %v1634_v28  ;;  %10803 = vmatpush1.bf16.xpose.msra.mxu1 %v14075_v10  ;;  %v2821_v28 = vld [vmem:[%s16479_s10 + $0x120] sm:$0xff] }
 0x121   : > { %10804 = vmatprep.subr.bf16.mxu1 %v14084_v20  ;;  %v13964_v32 = vcombine.high %v2817_v27, %v2821_v28  ;;  %v13963_v39 = vcombine.low %v2817_v27, %v2821_v28  ;;  %v1395_v41 = vld [vmem:[%s16477_s28 + $0xc0] sm:$0xff] }
 0x122   : > { %v2825_v43 = vld [vmem:[%s16479_s10 + $0x140] sm:$0xff] }
 0x123   : > { %2022 = vadd.xlane.f32.xlu1 %v2021_v34  ;;  %v1506_v34 = vld [vmem:[%s16477_s28 + $0x438] sm:$0xff]  ;;  %v2829_v44 = vld [vmem:[%s16479_s10 + $0x160] sm:$0xff] }
 0x124   : > { %2019 = vadd.xlane.f32.xlu0 %v2018_v35  ;;  %v1505_v35 = vld [vmem:[%s16477_s28 + $0x430] sm:$0xff]  ;;  %v2033_v37 = vsel %vm1627_vm0, %v1506_v34, 0.0  ;;  %v2953_v45 = vld [vmem:[%s16479_s10 + $0x540] sm:$0xff]  ;;  %v13972_v48 = vcombine.high %v2825_v43, %v2829_v44  ;;  %v13971_v55 = vcombine.low %v2825_v43, %v2829_v44  ;;  %v1510_v34 = vld [vmem:[%s16477_s28 + $0x458] sm:$0xff] }
 0x125   : > { %v2030_v38 = vsel %vm1627_vm0, %v1505_v35, 0.0  ;;  %v2957_v49 = vld [vmem:[%s16479_s10 + $0x560] sm:$0xff]  ;;  %v1509_v35 = vld [vmem:[%s16477_s28 + $0x450] sm:$0xff] }
 0x126   : > { %10641 = vmatpush1.bf16.xpose.msra.mxu0 %v13955_v23  ;;  %v1523_v51 = vld [vmem:[%s16477_s28 + $0x4c0] sm:$0xff]  ;;  %v14100_v52 = vcombine.high %v2953_v45, %v2957_v49  ;;  %v14099_v58 = vcombine.low %v2953_v45, %v2957_v49 }
 0x127   : > { %1692 = vadd.xlane.f32.xlu1 %v1691_v46  ;;  %10642 = vmatprep.subr.bf16.mxu0 %v13964_v32  ;;  %v1703_v46 = vsel %vm1627_vm0, %v1396_v40, 0.0  ;;  %v1379_v57 = vld [vmem:[%s16477_s28 + $0x40] sm:$0xff]  ;;  %v1400_v40 = vld [vmem:[%s16477_s28 + $0xe8] sm:$0xff] }
 0x128   : > { %1689 = vadd.xlane.f32.xlu0 %v1688_v47  ;;  %10805 = vmatpush1.bf16.xpose.msra.mxu1 %v14083_v26  ;;  %v1700_v47 = vsel %vm1627_vm0, %v1395_v41, 0.0  ;;  %v2833_v59 = vld [vmem:[%s16479_s10 + $0x180] sm:$0xff] }
 0x129   : > { %10806 = vmatprep.subr.bf16.mxu1 %v14092_v36  ;;  %v2837_v60 = vld [vmem:[%s16479_s10 + $0x1a0] sm:$0xff] }
 0x12a   : > { %v2961_v0 = vld [vmem:[%s16479_s10 + $0x580] sm:$0xff]  ;;  %v13979_v7 = vcombine.low %v2833_v59, %v2837_v60 }
 0x12b   : > { %2076 = vadd.xlane.f32.xlu1 %v2075_v53  ;;  %v2087_v53 = vsel %vm1627_vm0, %v1524_v50, 0.0  ;;  %v2965_v1 = vld [vmem:[%s16479_s10 + $0x5a0] sm:$0xff]  ;;  %v1528_v50 = vld [vmem:[%s16477_s28 + $0x4e8] sm:$0xff] }
 0x12c   : > { %2073 = vadd.xlane.f32.xlu0 %v2072_v54  ;;  %v2084_v54 = vsel %vm1627_vm0, %v1523_v51, 0.0  ;;  %v1507_v3 = vld [vmem:[%s16477_s28 + $0x440] sm:$0xff]  ;;  %v14108_v4 = vcombine.high %v2961_v0, %v2965_v1  ;;  %v14107_v10 = vcombine.low %v2961_v0, %v2965_v1 }
 0x12d   : > { %v2841_v11 = vld [vmem:[%s16479_s10 + $0x1c0] sm:$0xff] }
 0x12e   : > { %10643 = vmatpush1.bf16.xpose.msra.mxu0 %v13963_v39  ;;  %v2845_v12 = vld [vmem:[%s16479_s10 + $0x1e0] sm:$0xff] }
 0x12f   : > { %1644 = vadd.xlane.f32.xlu1 %v1643_v62  ;;  %10644 = vmatprep.subr.bf16.mxu0 %v13972_v48  ;;  %v1652_v62 = vsel %vm1627_vm0, %v1379_v57, 0.0  ;;  %v2969_v13 = vld [vmem:[%s16479_s10 + $0x5c0] sm:$0xff]  ;;  %v13988_v16 = vcombine.high %v2841_v11, %v2845_v12  ;;  %v13987_v23 = vcombine.low %v2841_v11, %v2845_v12 }
 0x130   : > { %1641 = vadd.xlane.f32.xlu0 %v1640_v63  ;;  %10807 = vmatpush1.bf16.xpose.msra.mxu1 %v14091_v42  ;;  %v13980_v63 = vcombine.high %v2833_v59, %v2837_v60  ;;  %v2973_v17 = vld [vmem:[%s16479_s10 + $0x5e0] sm:$0xff] }
 0x131   : > { %10808 = vmatprep.subr.bf16.mxu1 %v14100_v52  ;;  %v14116_v20 = vcombine.high %v2969_v13, %v2973_v17  ;;  %v14115_v26 = vcombine.low %v2969_v13, %v2973_v17  ;;  %v2849_v27 = vld [vmem:[%s16479_s10 + $0x200] sm:$0xff] }
 0x132   : > { %v2853_v28 = vld [vmem:[%s16479_s10 + $0x220] sm:$0xff] }
 0x133   : > { %2028 = vadd.xlane.f32.xlu1 %v2027_v5  ;;  %v2039_v5 = vsel %vm1627_vm0, %v1508_v2, 0.0  ;;  %v2977_v29 = vld [vmem:[%s16479_s10 + $0x600] sm:$0xff]  ;;  %v13996_v32 = vcombine.high %v2849_v27, %v2853_v28  ;;  %v13995_v39 = vcombine.low %v2849_v27, %v2853_v28  ;;  %v1512_v2 = vld [vmem:[%s16477_s28 + $0x468] sm:$0xff] }
 0x134   : > { %2025 = vadd.xlane.f32.xlu0 %v2024_v6  ;;  %v2036_v6 = vsel %vm1627_vm0, %v1507_v3, 0.0  ;;  %v2981_v33 = vld [vmem:[%s16479_s10 + $0x620] sm:$0xff] }
 0x135   : > { %v14124_v36 = vcombine.high %v2977_v29, %v2981_v33  ;;  %v1399_v41 = vld [vmem:[%s16477_s28 + $0xe0] sm:$0xff]  ;;  %v14123_v42 = vcombine.low %v2977_v29, %v2981_v33 }
 0x136   : > { %10645 = vmatpush1.bf16.xpose.msra.mxu0 %v13971_v55  ;;  %v2857_v43 = vld [vmem:[%s16479_s10 + $0x240] sm:$0xff] }
 0x137   : > { %1698 = vadd.xlane.f32.xlu1 %v1697_v14  ;;  %10646 = vmatprep.subr.bf16.mxu0 %v13980_v63  ;;  %v1709_v14 = vsel %vm1627_vm0, %v1398_v8, 0.0  ;;  %v2861_v44 = vld [vmem:[%s16479_s10 + $0x260] sm:$0xff]  ;;  %v1402_v8 = vld [vmem:[%s16477_s28 + $0xf8] sm:$0xff] }
 0x138   : > { %1695 = vadd.xlane.f32.xlu0 %v1694_v15  ;;  %10809 = vmatpush1.bf16.xpose.msra.mxu1 %v14099_v58  ;;  %v1706_v15 = vsel %vm1627_vm0, %v1397_v9, 0.0  ;;  %v2985_v45 = vld [vmem:[%s16479_s10 + $0x640] sm:$0xff]  ;;  %v14004_v48 = vcombine.high %v2857_v43, %v2861_v44  ;;  %v14003_v55 = vcombine.low %v2857_v43, %v2861_v44  ;;  %v1401_v9 = vld [vmem:[%s16477_s28 + $0xf0] sm:$0xff] }
 0x139   : > { %10810 = vmatprep.subr.bf16.mxu1 %v14108_v4  ;;  %v2989_v49 = vld [vmem:[%s16479_s10 + $0x660] sm:$0xff] }
 0x13a   : > { %v1527_v51 = vld [vmem:[%s16477_s28 + $0x4e0] sm:$0xff]  ;;  %v14132_v52 = vcombine.high %v2985_v45, %v2989_v49  ;;  %v14131_v58 = vcombine.low %v2985_v45, %v2989_v49 }
 0x13b   : > { %2082 = vadd.xlane.f32.xlu1 %v2081_v21  ;;  %v2093_v21 = vsel %vm1627_vm0, %v1526_v18, 0.0  ;;  %v1383_v57 = vld [vmem:[%s16477_s28 + $0x60] sm:$0xff]  ;;  %v1530_v18 = vld [vmem:[%s16477_s28 + $0x4f8] sm:$0xff] }
 0x13c   : > { %2079 = vadd.xlane.f32.xlu0 %v2078_v22  ;;  %v2090_v22 = vsel %vm1627_vm0, %v1525_v19, 0.0  ;;  %v2865_v59 = vld [vmem:[%s16479_s10 + $0x280] sm:$0xff]  ;;  %v1664_v63 = vsel %vm1627_vm0, %v1383_v57, 0.0  ;;  %v1529_v19 = vld [vmem:[%s16477_s28 + $0x4f0] sm:$0xff] }
 0x13d   : > { %v2869_v60 = vld [vmem:[%s16479_s10 + $0x2a0] sm:$0xff] }
 0x13e   : > { %10647 = vmatpush1.bf16.xpose.msra.mxu0 %v13979_v7  ;;  %v14012_v0 = vcombine.high %v2865_v59, %v2869_v60  ;;  %v2997_v1 = vld [vmem:[%s16479_s10 + $0x6a0] sm:$0xff]  ;;  %v14011_v7 = vcombine.low %v2865_v59, %v2869_v60 }
 0x13f   : > { %1650 = vadd.xlane.f32.xlu1 %v1649_v30  ;;  %10648 = vmatprep.subr.bf16.mxu0 %v13988_v16  ;;  %v1661_v30 = vsel %vm1627_vm0, %v1382_v24, 0.0  ;;  %v1511_v3 = vld [vmem:[%s16477_s28 + $0x460] sm:$0xff]  ;;  %v1386_v24 = vld [vmem:[%s16477_s28 + $0x78] sm:$0xff] }
 0x140   : > { %1647 = vadd.xlane.f32.xlu0 %v1646_v31  ;;  %10811 = vmatpush1.bf16.xpose.msra.mxu1 %v14107_v10  ;;  %v1658_v31 = vsel %vm1627_vm0, %v1381_v25, 0.0  ;;  %v2873_v11 = vld [vmem:[%s16479_s10 + $0x2c0] sm:$0xff]  ;;  %v1385_v25 = vld [vmem:[%s16477_s28 + $0x70] sm:$0xff]  ;;  %v1673_v29 = vsel %vm1627_vm0, %v1386_v24, 0.0 }
 0x141   : > { %10812 = vmatprep.subr.bf16.mxu1 %v14116_v20  ;;  %v2877_v12 = vld [vmem:[%s16479_s10 + $0x2e0] sm:$0xff] }
 0x142   : > { %v3001_v13 = vld [vmem:[%s16479_s10 + $0x6c0] sm:$0xff]  ;;  %v14020_v16 = vcombine.high %v2873_v11, %v2877_v12 }
 0x143   : > { %2034 = vadd.xlane.f32.xlu1 %v2033_v37  ;;  %v2045_v37 = vsel %vm1627_vm0, %v1510_v34, 0.0  ;;  %v3005_v17 = vld [vmem:[%s16479_s10 + $0x6e0] sm:$0xff]  ;;  %v1514_v34 = vld [vmem:[%s16477_s28 + $0x478] sm:$0xff] }
 0x144   : > { %2031 = vadd.xlane.f32.xlu0 %v2030_v38  ;;  %v2042_v38 = vsel %vm1627_vm0, %v1509_v35, 0.0  ;;  %v14148_v20 = vcombine.high %v3001_v13, %v3005_v17  ;;  %v2881_v27 = vld [vmem:[%s16479_s10 + $0x300] sm:$0xff]  ;;  %v1513_v35 = vld [vmem:[%s16477_s28 + $0x470] sm:$0xff] }
 0x145   : > { %v2885_v28 = vld [vmem:[%s16479_s10 + $0x320] sm:$0xff] }
 0x146   : > { %10649 = vmatpush1.bf16.xpose.msra.mxu0 %v13987_v23  ;;  %v14019_v23 = vcombine.low %v2873_v11, %v2877_v12  ;;  %v3013_v33 = vld [vmem:[%s16479_s10 + $0x720] sm:$0xff]  ;;  %v4193_v11 = vlaneseq }
 0x147   : > { %1704 = vadd.xlane.f32.xlu1 %v1703_v46  ;;  %10650 = vmatprep.subr.bf16.mxu0 %v13996_v32  ;;  %v1715_v46 = vsel %vm1627_vm0, %v1400_v40, 0.0  ;;  %v3009_v32 = vld [vmem:[%s16479_s10 + $0x700] sm:$0xff]  ;;  %v1420_v40 = vld [vmem:[%s16477_s28 + $0x188] sm:$0xff] }
 0x148   : > { %1701 = vadd.xlane.f32.xlu0 %v1700_v47  ;;  %10813 = vmatpush1.bf16.xpose.msra.mxu1 %v14115_v26  ;;  %v1712_v47 = vsel %vm1627_vm0, %v1399_v41, 0.0  ;;  %v14147_v26 = vcombine.low %v3001_v13, %v3005_v17  ;;  %v1419_v41 = vld [vmem:[%s16477_s28 + $0x180] sm:$0xff]  ;;  %v16705_v24 = vand.u32 127, %v4193_v11 }
 0x149   : > { %10814 = vmatprep.subr.bf16.mxu1 %v14124_v36  ;;  %v14156_v36 = vcombine.high %v3009_v32, %v3013_v33  ;;  %v2889_v43 = vld [vmem:[%s16479_s10 + $0x340] sm:$0xff] }
 0x14a   : > { %v2893_v44 = vld [vmem:[%s16479_s10 + $0x360] sm:$0xff] }
 0x14b   : > { %2088 = vadd.xlane.f32.xlu1 %v2087_v53  ;;  %v2099_v53 = vsel %vm1627_vm0, %v1528_v50, 0.0  ;;  %v3017_v45 = vld [vmem:[%s16479_s10 + $0x740] sm:$0xff]  ;;  %v1548_v50 = vld [vmem:[%s16477_s28 + $0x588] sm:$0xff] }
 0x14c   : > { %2085 = vadd.xlane.f32.xlu0 %v2084_v54  ;;  %v2096_v54 = vsel %vm1627_vm0, %v1527_v51, 0.0  ;;  %v3021_v49 = vld [vmem:[%s16479_s10 + $0x760] sm:$0xff] }
 0x14d   : > { %v1547_v51 = vld [vmem:[%s16477_s28 + $0x580] sm:$0xff] }
 0x14e   : > { %10651 = vmatpush1.bf16.xpose.msra.mxu0 %v13995_v39  ;;  %v14027_v39 = vcombine.low %v2881_v27, %v2885_v28  ;;  %v1403_v57 = vld [vmem:[%s16477_s28 + $0x100] sm:$0xff] }
 0x14f   : > { %1656 = vadd.xlane.f32.xlu1 %v1655_v61  ;;  %10652 = vmatprep.subr.bf16.mxu0 %v14004_v48  ;;  %v2993_v61 = vld [vmem:[%s16479_s10 + $0x680] sm:$0xff]  ;;  %v14036_v48 = vcombine.high %v2889_v43, %v2893_v44 }
 0x150   : > { %1653 = vadd.xlane.f32.xlu0 %v1652_v62  ;;  %10815 = vmatpush1.bf16.xpose.msra.mxu1 %v14123_v42  ;;  %v1667_v62 = vsel %vm1627_vm0, %v1384_v56, 0.0  ;;  %v14140_v4 = vcombine.high %v2993_v61, %v2997_v1  ;;  %v14139_v10 = vcombine.low %v2993_v61, %v2997_v1  ;;  %v14155_v42 = vcombine.low %v3009_v32, %v3013_v33  ;;  %v1404_v56 = vld [vmem:[%s16477_s28 + $0x108] sm:$0xff]  ;;  %v2897_v59 = vld [vmem:[%s16479_s10 + $0x380] sm:$0xff] }
 0x151   : > { %10816 = vmatprep.subr.bf16.mxu1 %v14132_v52  ;;  %v14164_v52 = vcombine.high %v3017_v45, %v3021_v49  ;;  %v2901_v60 = vld [vmem:[%s16479_s10 + $0x3a0] sm:$0xff] }
 0x152   : > { %v3025_v61 = vld [vmem:[%s16479_s10 + $0x780] sm:$0xff] }
 0x153   : > { %2040 = vadd.xlane.f32.xlu1 %v2039_v5  ;;  %v2051_v5 = vsel %vm1627_vm0, %v1512_v2, 0.0  ;;  %v3029_v1 = vld [vmem:[%s16479_s10 + $0x7a0] sm:$0xff]  ;;  %v1422_v2 = vld [vmem:[%s16477_s28 + $0x198] sm:$0xff] }
 0x154   : > { %2037 = vadd.xlane.f32.xlu0 %v2036_v6  ;;  %v2048_v6 = vsel %vm1627_vm0, %v1511_v3, 0.0  ;;  %v1421_v3 = vld [vmem:[%s16477_s28 + $0x190] sm:$0xff]  ;;  %v2905_v12 = vld [vmem:[%s16479_s10 + $0x3c0] sm:$0xff] }
 0x155   : > { %v2909_v13 = vld [vmem:[%s16479_s10 + $0x3e0] sm:$0xff] }
 0x156   : > { %10653 = vmatpush1.bf16.xpose.msra.mxu0 %v14003_v55  ;;  %v14035_v55 = vcombine.low %v2889_v43, %v2893_v44  ;;  %v16723_v43 = vld [vmem:[%s16479_s10 + $0x408] sm:$0xff] }
 0x157   : > { %1710 = vadd.xlane.f32.xlu1 %v1709_v14  ;;  %10654 = vmatprep.subr.bf16.mxu0 %v14012_v0  ;;  %v1721_v14 = vsel %vm1627_vm0, %v1402_v8, 0.0  ;;  %v14044_v0 = vcombine.high %v2897_v59, %v2901_v60  ;;  %v1532_v8 = vld [vmem:[%s16477_s28 + $0x508] sm:$0xff]  ;;  %20485 = vst [vmem:[#allocation20_spill] sm:$0xff] %v16723_v43 }
 0x158   : > { %1707 = vadd.xlane.f32.xlu0 %v1706_v15  ;;  %10817 = vmatpush1.bf16.xpose.msra.mxu1 %v14131_v58  ;;  %v1718_v15 = vsel %vm1627_vm0, %v1401_v9, 0.0  ;;  %v14163_v58 = vcombine.low %v3017_v45, %v3021_v49  ;;  %v1531_v9 = vld [vmem:[%s16477_s28 + $0x500] sm:$0xff]  ;;  %v2111_v17 = vsel %vm1627_vm0, %v1532_v8, 0.0  ;;  %v16730_v49 = vld [vmem:[%s16479_s10 + $0x428] sm:$0xff] }
 0x159   : > { %10818 = vmatprep.subr.bf16.mxu1 %v14140_v4  ;;  %v14172_v4 = vcombine.high %v3025_v61, %v3029_v1  ;;  %20486 = vst [vmem:[#allocation21_spill] sm:$0xff] %v16730_v49 }
 0x15b   : > { %2094 = vadd.xlane.f32.xlu1 %v2093_v21  ;;  %v2105_v21 = vsel %vm1627_vm0, %v1530_v18, 0.0  ;;  %v2108_v18 = vsel %vm1627_vm0, %v1531_v9, 0.0 }
 0x15c   : > { %2091 = vadd.xlane.f32.xlu0 %v2090_v22  ;;  %v2102_v22 = vsel %vm1627_vm0, %v1529_v19, 0.0  ;;  %v14052_v19 = vcombine.high %v2905_v12, %v2909_v13 }
 0x15e   : > { %10655 = vmatpush1.bf16.xpose.msra.mxu0 %v14011_v7  ;;  %v14043_v7 = vcombine.low %v2897_v59, %v2901_v60  ;;  %v4213_v59 = vadd.s32 4294967272, %v16705_v24 }
 0x15f   : > { %1662 = vadd.xlane.f32.xlu1 %v1661_v30  ;;  %10656 = vmatprep.subr.bf16.mxu0 %v14020_v16  ;;  %v1670_v30 = vsel %vm1627_vm0, %v1385_v25, 0.0  ;;  %v16707_v25 = vshrl.u32 %v4193_v11, 7 }
 0x160   : > { %1659 = vadd.xlane.f32.xlu0 %v1658_v31  ;;  %10819 = vmatpush1.bf16.xpose.msra.mxu1 %v14139_v10  ;;  %v14028_v31 = vcombine.high %v2881_v27, %v2885_v28  ;;  %v14171_v10 = vcombine.low %v3025_v61, %v3029_v1 }
 0x161   : > { %10820 = vmatprep.subr.bf16.mxu1 %v14148_v20  ;;  %v3037_v20 = vld [vmem:[%s16479_s10 + $0x7e0] sm:$0xff]  ;;  %20482 = vst [vmem:[#allocation17_spill] sm:$0xff] %v16707_v25  ;;  %v16759_v9 = vsub.s32 %v4213_v59, %v16707_v25 }
 0x163   : > { %2046 = vadd.xlane.f32.xlu1 %v2045_v37  ;;  %v2057_v37 = vsel %vm1627_vm0, %v1514_v34, 0.0  ;;  %20490 = vst [vmem:[#allocation25_spill] sm:$0xff] %v16759_v9 }
 0x164   : > { %2043 = vadd.xlane.f32.xlu0 %v2042_v38  ;;  %v2054_v38 = vsel %vm1627_vm0, %v1513_v35, 0.0  ;;  %v1406_v35 = vld [vmem:[%s16477_s28 + $0x118] sm:$0xff] }
 0x166   : > { %10657 = vmatpush1.bf16.xpose.msra.mxu0 %v14019_v23 }
 0x167   : > { %1716 = vadd.xlane.f32.xlu1 %v1715_v46  ;;  %10658 = vmatprep.subr.bf16.mxu0 %v14028_v31  ;;  %v1775_v46 = vsel %vm1627_vm0, %v1420_v40, 0.0  ;;  %v14051_v31 = vcombine.low %v2905_v12, %v2909_v13 }
 0x168   : > { %1713 = vadd.xlane.f32.xlu0 %v1712_v47  ;;  %10821 = vmatpush1.bf16.xpose.msra.mxu1 %v14147_v26  ;;  %v1772_v47 = vsel %vm1627_vm0, %v1419_v41, 0.0  ;;  %v16717_v41 = vld [vmem:[%s16479_s10 + $0x8] sm:$0xff] }
 0x169   : > { %10822 = vmatprep.subr.bf16.mxu1 %v14156_v36  ;;  %20483 = vst [vmem:[#allocation18_spill] sm:$0xff] %v16717_v41 }
 0x16b   : > { %2100 = vadd.xlane.f32.xlu1 %v2099_v53  ;;  %v2159_v53 = vsel %vm1627_vm0, %v1548_v50, 0.0  ;;  %v16734_v50 = vsub.s32 %v16705_v24, %v16707_v25 }
 0x16c   : > { %2097 = vadd.xlane.f32.xlu0 %v2096_v54  ;;  %v2156_v54 = vsel %vm1627_vm0, %v1547_v51, 0.0 }
 0x16d   : > { %20487 = vst [vmem:[#allocation22_spill] sm:$0xff] %v16734_v50 }
 0x16e   : > { %10659 = vmatpush1.bf16.xpose.msra.mxu0 %v14027_v39 }
 0x16f   : > { %1668 = vadd.xlane.f32.xlu1 %v1667_v62  ;;  %10660 = vmatprep.subr.bf16.mxu0 %v14036_v48  ;;  %v1727_v62 = vsel %vm1627_vm0, %v1404_v56, 0.0 }
 0x170   : > { %1665 = vadd.xlane.f32.xlu0 %v1664_v63  ;;  %10823 = vmatpush1.bf16.xpose.msra.mxu1 %v14155_v42  ;;  %v1724_v63 = vsel %vm1627_vm0, %v1403_v57, 0.0  ;;  %v16720_v42 = vld [vmem:[%s16479_s10 + $0x28] sm:$0xff] }
 0x171   : > { %10824 = vmatprep.subr.bf16.mxu1 %v14164_v52  ;;  %20484 = vst [vmem:[#allocation19_spill] sm:$0xff] %v16720_v42  ;;  %v13934_v48 = vcombine.high %v16717_v41, %v16720_v42 }
 0x173   : > { %2052 = vadd.xlane.f32.xlu1 %v2051_v5  ;;  %v1781_v5 = vsel %vm1627_vm0, %v1422_v2, 0.0  ;;  %v14062_v2 = vcombine.high %v16723_v43, %v16730_v49  ;;  %v1454_v43 = vld [vmem:[%s16477_s28 + $0x298] sm:$0xff] }
 0x174   : > { %2049 = vadd.xlane.f32.xlu0 %v2048_v6  ;;  %v1778_v6 = vsel %vm1627_vm0, %v1421_v3, 0.0 }
 0x176   : > { %10661 = vmatpush1.bf16.xpose.msra.mxu0 %v14035_v55 }
 0x177   : > { %1722 = vadd.xlane.f32.xlu1 %v1721_v14  ;;  %10662 = vmatprep.subr.bf16.mxu0 %v14044_v0  ;;  %v3033_v14 = vld [vmem:[%s16479_s10 + $0x7c0] sm:$0xff] }
 0x178   : > { %1719 = vadd.xlane.f32.xlu0 %v1718_v15  ;;  %10825 = vmatpush1.bf16.xpose.msra.mxu1 %v14163_v58  ;;  %v14180_v23 = vcombine.high %v3033_v14, %v3037_v20  ;;  %v14179_v36 = vcombine.low %v3033_v14, %v3037_v20  ;;  %v4206_v58 = vadd.s32 4294967280, %v16705_v24 }
 0x179   : > { %10826 = vmatprep.subr.bf16.mxu1 %v14172_v4 }
 0x17a   : > { %v16756_v8 = vsub.s32 %v4206_v58, %v16707_v25 }
 0x17b   : > { %2106 = vadd.xlane.f32.xlu1 %v2105_v21  ;;  %v1550_v21 = vld [vmem:[%s16477_s28 + $0x598] sm:$0xff] }
 0x17c   : > { %2103 = vadd.xlane.f32.xlu0 %v2102_v22  ;;  %v1549_v22 = vld [vmem:[%s16477_s28 + $0x590] sm:$0xff]  ;;  %20489 = vst [vmem:[#allocation24_spill] sm:$0xff] %v16756_v8 }
 0x17e   : > { %10663 = vmatpush1.bf16.xpose.msra.mxu0 %v14043_v7  ;;  %v1423_v7 = vld [vmem:[%s16477_s28 + $0x1a0] sm:$0xff] }
 0x17f   : > { %1674 = vadd.xlane.f32.xlu1 %v1673_v29  ;;  %10664 = vmatprep.subr.bf16.mxu0 %v14052_v19  ;;  %v2165_v29 = vsel %vm1627_vm0, %v1550_v21, 0.0  ;;  %v1552_v21 = vld [vmem:[%s16477_s28 + $0x5a8] sm:$0xff] }
 0x180   : > { %1671 = vadd.xlane.f32.xlu0 %v1670_v30  ;;  %10827 = vmatpush1.bf16.xpose.msra.mxu1 %v14171_v10  ;;  %v2162_v30 = vsel %vm1627_vm0, %v1549_v22, 0.0 }
 0x181   : > { %10828 = vmatprep.subr.bf16.mxu1 %v14180_v23  ;;  %v1551_v23 = vld [vmem:[%s16477_s28 + $0x5a0] sm:$0xff] }
 0x183   : > { %2058 = vadd.xlane.f32.xlu1 %v2057_v37  ;;  %v1405_v37 = vld [vmem:[%s16477_s28 + $0x110] sm:$0xff] }
 0x184   : > { %2055 = vadd.xlane.f32.xlu0 %v2054_v38  ;;  %v4199_v38 = vadd.s32 4294967288, %v16705_v24  ;;  %v1730_v51 = vsel %vm1627_vm0, %v1405_v37, 0.0  ;;  %v1408_v37 = vld [vmem:[%s16477_s28 + $0x128] sm:$0xff] }
 0x185   : > { %v1739_v58 = vsel %vm1627_vm0, %v1408_v37, 0.0 }
 0x186   : > { %10665 = vmatpush1.bf16.xpose.msra.mxu0 %v14051_v31  ;;  %v16743_v57 = vsub.s32 %v4199_v38, %v16707_v25 }
 0x187   : > { %1776 = vadd.xlane.f32.xlu1 %v1775_v46  ;;  %v1733_v46 = vsel %vm1627_vm0, %v1406_v35, 0.0  ;;  %10675 = vmatprep.subr.bf16.mxu0 %v13934_v48  ;;  %v1536_v48 = vld [vmem:[%s16477_s28 + $0x528] sm:$0xff] }
 0x188   : > { %1773 = vadd.xlane.f32.xlu0 %v1772_v47  ;;  %v1534_v47 = vld [vmem:[%s16477_s28 + $0x518] sm:$0xff]  ;;  %10829 = vmatpush1.bf16.xpose.msra.mxu1 %v14179_v36  ;;  %20488 = vst [vmem:[#allocation23_spill] sm:$0xff] %v16743_v57  ;;  %v2168_v36 = vsel %vm1627_vm0, %v1551_v23, 0.0 }
 0x189   : > { %v2117_v60 = vsel %vm1627_vm0, %v1534_v47, 0.0  ;;  %10839 = vmatprep.subr.bf16.mxu1 %v14062_v2 }
 0x18b   : > { %2160 = vadd.xlane.f32.xlu1 %v2159_v53 }
 0x18c   : > { %2157 = vadd.xlane.f32.xlu0 %v2156_v54  ;;  %v1533_v54 = vld [vmem:[%s16477_s28 + $0x510] sm:$0xff] }
 0x18f   : > { %1728 = vadd.xlane.f32.xlu1 %v1727_v62 }
 0x190   : > { %1725 = vadd.xlane.f32.xlu0 %v1724_v63 }
 0x193   : > { %1782 = vadd.xlane.f32.xlu1 %v1781_v5  ;;  %v2114_v5 = vsel %vm1627_vm0, %v1533_v54, 0.0 }
 0x194   : > { %1779 = vadd.xlane.f32.xlu0 %v1778_v6  ;;  %v2062_v15 = vpop.xlane.xlu1 %2061  ;;  %v1424_v6 = vld [vmem:[%s16477_s28 + $0x1a8] sm:$0xff] }
 0x195   : > { %v1678_v16 = vpop.xlane.xlu0 %1677  ;;  %v2541_v26 = vmul.f32 0.0625, %v2062_v15  ;;  %v1787_v15 = vsel %vm1627_vm0, %v1424_v6, 0.0  ;;  %v1426_v6 = vld [vmem:[%s16477_s28 + $0x1b8] sm:$0xff] }
 0x196   : > { %v2413_v32 = vmul.f32 0.0625, %v1678_v16  ;;  %v1784_v16 = vsel %vm1627_vm0, %v1423_v7, 0.0  ;;  %v1425_v7 = vld [vmem:[%s16477_s28 + $0x1b0] sm:$0xff] }
 0x197   : > { %2112 = vadd.xlane.f32.xlu1 %v2111_v17  ;;  %v1790_v23 = vsel %vm1627_vm0, %v1425_v7, 0.0 }
 0x198   : > { %2109 = vadd.xlane.f32.xlu0 %v2108_v18  ;;  %v2065_v27 = vpop.xlane.xlu1 %2064 }
 0x199   : > { %v1681_v28 = vpop.xlane.xlu0 %1680  ;;  %v2542_v33 = vmul.f32 0.0625, %v2065_v27 }
 0x19a   : > { %v2414_v34 = vmul.f32 0.0625, %v1681_v28 }
 0x19b   : > { %v16714_v39 = vpack.c.bf16 %v2542_v33, %v2541_v26  ;;  %2166 = vadd.xlane.f32.xlu1 %v2165_v29  ;;  %v2171_v33 = vsel %vm1627_vm0, %v1552_v21, 0.0  ;;  %v4220_v21 = vadd.s32 4294967264, %v16705_v24 }
 0x19c   : > { %v2665_v40 = vpack.c.bf16 %v2414_v34, %v2413_v32  ;;  %2163 = vadd.xlane.f32.xlu0 %v2162_v30  ;;  %v1633_v44 = vpop.xlane.xlu1 %1632 }
 0x19d   : > { %v1630_v45 = vpop.xlane.xlu0 %1629  ;;  %v2398_v52 = vmul.f32 0.0625, %v1633_v44  ;;  %v4081_v22 = vunpack.c.l.b16 %v16714_v39  ;;  %v4082_v26 = vunpack.c.h.b16 %v16714_v39 }
 0x19e   : > { %v2397_v53 = vmul.f32 0.0625, %v1630_v45  ;;  %v3953_v61 = vunpack.c.l.b16 %v2665_v40  ;;  %v3954_v62 = vunpack.c.h.b16 %v2665_v40  ;;  %v1407_v40 = vld [vmem:[%s16477_s28 + $0x120] sm:$0xff] }
 0x19f   : > { %1734 = vadd.xlane.f32.xlu1 %v1733_v46  ;;  %v4939_v44 = vrot.slane %v4081_v22, %v16734_v50  ;;  %v4943_v45 = vrot.slane %v4082_v26, %v16743_v57  ;;  %v1793_v22 = vsel %vm1627_vm0, %v1426_v6, 0.0 }
 0x1a0   : > { %v16748_v63 = vpack.c.bf16 %v2398_v52, %v2397_v53  ;;  %1731 = vadd.xlane.f32.xlu0 %v1730_v51  ;;  %v1687_v0 = vpop.xlane.xlu1 %1686  ;;  %v4307_v11 = vrot.slane %v3953_v61, %v16734_v50  ;;  %v4311_v12 = vrot.slane %v3954_v62, %v16743_v57  ;;  %v1535_v51 = vld [vmem:[%s16477_s28 + $0x520] sm:$0xff]  ;;  %v1736_v61 = vsel %vm1627_vm0, %v1407_v40, 0.0 }
 0x1a1   : > { %v1684_v1 = vpop.xlane.xlu0 %1683  ;;  %v2416_v3 = vmul.f32 0.0625, %v1687_v0  ;;  %v4944_v2 = vsel %vm4204_vm1, %v4943_v45, %v4939_v44  ;;  %v1554_v44 = vld [vmem:[%s16477_s28 + $0x5b8] sm:$0xff] }
 0x1a2   : > { %v2415_v4 = vmul.f32 0.0625, %v1684_v1  ;;  %v4312_v30 = vsel %vm4204_vm1, %v4311_v12, %v4307_v11  ;;  %v3937_v46 = vunpack.c.l.b16 %v16748_v63  ;;  %v3938_v47 = vunpack.c.h.b16 %v16748_v63 }
 0x1a3   : > { %2118 = vadd.xlane.f32.xlu1 %v2117_v60  ;;  %v2123_v1 = vsel %vm1627_vm0, %v1536_v48, 0.0  ;;  %v2120_v63 = vsel %vm1627_vm0, %v1535_v51, 0.0 }
 0x1a4   : > { %v2666_v10 = vpack.c.bf16 %v2416_v3, %v2415_v4  ;;  %2115 = vadd.xlane.f32.xlu0 %v2114_v5  ;;  %v2017_v13 = vpop.xlane.xlu1 %2016  ;;  %v4198_v3 = vrot.slane %v3937_v46, %v16734_v50  ;;  %v4203_v4 = vrot.slane %v3938_v47, %v16743_v57  ;;  %v1553_v47 = vld [vmem:[%s16477_s28 + $0x5b0] sm:$0xff] }
 0x1a5   : > { %v2014_v14 = vpop.xlane.xlu0 %2013  ;;  %v2526_v19 = vmul.f32 0.0625, %v2017_v13 }
 0x1a6   : > { %v3955_v17 = vunpack.c.l.b16 %v2666_v10  ;;  %v3956_v18 = vunpack.c.h.b16 %v2666_v10  ;;  %v2525_v20 = vmul.f32 0.0625, %v2014_v14 }
 0x1a7   : > { %1788 = vadd.xlane.f32.xlu1 %v1787_v15 }
 0x1a8   : > { %v4316_v27 = vrot.slane %v3955_v17, %v16756_v8  ;;  %v4321_v28 = vrot.slane %v3956_v18, %v16759_v9  ;;  %v16771_v29 = vpack.c.bf16 %v2526_v19, %v2525_v20  ;;  %1785 = vadd.xlane.f32.xlu0 %v1784_v16  ;;  %v2071_v31 = vpop.xlane.xlu1 %2070 }
 0x1a9   : > { %v2068_v32 = vpop.xlane.xlu0 %2067  ;;  %v2544_v35 = vmul.f32 0.0625, %v2071_v31 }
 0x1aa   : > { %v4317_v34 = vsel %vm4211_vm2, %v4316_v27, %v4312_v30  ;;  %v2543_v39 = vmul.f32 0.0625, %v2068_v32  ;;  %v4065_v10 = vunpack.c.l.b16 %v16771_v29  ;;  %v4066_v11 = vunpack.c.h.b16 %v16771_v29 }
 0x1ab   : > { %v16779_v38 = vsel %vm4218_vm3, %v4321_v28, %v4317_v34  ;;  %2172 = vadd.xlane.f32.xlu1 %v2171_v33  ;;  %v4205_v30 = vsel %vm4204_vm1, %v4203_v4, %v4198_v3  ;;  %v4227_v34 = vadd.s32 4294967256, %v16705_v24  ;;  %v1409_v3 = vld [vmem:[%s16477_s28 + $0x130] sm:$0xff] }
 0x1ac   : > { %v2730_v52 = vpack.c.bf16 %v2544_v35, %v2543_v39  ;;  %2169 = vadd.xlane.f32.xlu0 %v2168_v36  ;;  %v1639_v53 = vpop.xlane.xlu1 %1638  ;;  %v4860_v31 = vrot.slane %v4065_v10, %v16734_v50  ;;  %v4864_v32 = vrot.slane %v4066_v11, %v16743_v57 }
 0x1ad   : > { %v1636_v54 = vpop.xlane.xlu0 %1635  ;;  %v2400_v59 = vmul.f32 0.0625, %v1639_v53 }
 0x1ae   : > { %v2399_v60 = vmul.f32 0.0625, %v1636_v54  ;;  %v4083_v62 = vunpack.c.l.b16 %v2730_v52  ;;  %v4084_v0 = vunpack.c.h.b16 %v2730_v52  ;;  %v16823_v52 = vsub.s32 %v4220_v21, %v16707_v25  ;;  %v1537_v21 = vld [vmem:[%s16477_s28 + $0x530] sm:$0xff] }
 0x1af   : > { %1740 = vadd.xlane.f32.xlu1 %v1739_v58  ;;  %v4865_v53 = vsel %vm4204_vm1, %v4864_v32, %v4860_v31  ;;  %v16827_v54 = vsub.s32 %v4227_v34, %v16707_v25 }
 0x1b0   : > { %v2658_v5 = vpack.c.bf16 %v2400_v59, %v2399_v60  ;;  %v4948_v12 = vrot.slane %v4083_v62, %v16756_v8  ;;  %v4953_v13 = vrot.slane %v4084_v0, %v16759_v9  ;;  %1737 = vadd.xlane.f32.xlu0 %v1736_v61  ;;  %v2023_v14 = vpop.xlane.xlu1 %2022  ;;  %20491 = vst [vmem:[#allocation26_spill] sm:$0xff] %v16823_v52  ;;  %v2177_v61 = vsel %vm1627_vm0, %v1554_v44, 0.0  ;;  %v1427_v44 = vld [vmem:[%s16477_s28 + $0x1c0] sm:$0xff] }
 0x1b1   : > { %v2020_v15 = vpop.xlane.xlu0 %2019  ;;  %v2528_v18 = vmul.f32 0.0625, %v2023_v14  ;;  %20492 = vst [vmem:[#allocation27_spill] sm:$0xff] %v16827_v54 }
 0x1b2   : > { %v3939_v16 = vunpack.c.l.b16 %v2658_v5  ;;  %v3940_v17 = vunpack.c.h.b16 %v2658_v5  ;;  %v2527_v19 = vmul.f32 0.0625, %v2020_v15  ;;  %v4949_v20 = vsel %vm4211_vm2, %v4948_v12, %v4944_v2  ;;  %v1410_v2 = vld [vmem:[%s16477_s28 + $0x138] sm:$0xff] }
 0x1b3   : > { %v16806_v26 = vsel %vm4218_vm3, %v4953_v13, %v4949_v20  ;;  %2124 = vadd.xlane.f32.xlu1 %v2123_v1  ;;  %v1745_v14 = vsel %vm1627_vm0, %v1410_v2, 0.0  ;;  %v1742_v15 = vsel %vm1627_vm0, %v1409_v3, 0.0  ;;  %v1538_v20 = vld [vmem:[%s16477_s28 + $0x538] sm:$0xff] }
 0x1b4   : > { %v4210_v27 = vrot.slane %v3939_v16, %v16756_v8  ;;  %v4217_v28 = vrot.slane %v3940_v17, %v16759_v9  ;;  %v2722_v29 = vpack.c.bf16 %v2528_v18, %v2527_v19  ;;  %2121 = vadd.xlane.f32.xlu0 %v2120_v63  ;;  %v1693_v33 = vpop.xlane.xlu1 %1692  ;;  %v2174_v63 = vsel %vm1627_vm0, %v1553_v47, 0.0 }
 0x1b5   : > { %v1690_v35 = vpop.xlane.xlu0 %1689  ;;  %v2418_v40 = vmul.f32 0.0625, %v1693_v33  ;;  %v2129_v32 = vsel %vm1627_vm0, %v1538_v20, 0.0  ;;  %v2126_v33 = vsel %vm1627_vm0, %v1537_v21, 0.0 }
 0x1b6   : > { %v4212_v36 = vsel %vm4211_vm2, %v4210_v27, %v4205_v30  ;;  %v4067_v37 = vunpack.c.l.b16 %v2722_v29  ;;  %v4068_v39 = vunpack.c.h.b16 %v2722_v29  ;;  %v2417_v46 = vmul.f32 0.0625, %v1690_v35 }
 0x1b7   : > { %v16817_v45 = vsel %vm4218_vm3, %v4217_v28, %v4212_v36  ;;  %1794 = vadd.xlane.f32.xlu1 %v1793_v22 }
 0x1b8   : > { %v4869_v48 = vrot.slane %v4067_v37, %v16756_v8  ;;  %v4874_v51 = vrot.slane %v4068_v39, %v16759_v9  ;;  %v2667_v58 = vpack.c.bf16 %v2418_v40, %v2417_v46  ;;  %1791 = vadd.xlane.f32.xlu0 %v1790_v23  ;;  %v2077_v59 = vpop.xlane.xlu1 %2076  ;;  %v1428_v37 = vld [vmem:[%s16477_s28 + $0x1c8] sm:$0xff]  ;;  %v1435_v8 = vld [vmem:[%s16477_s28 + $0x200] sm:$0xff] }
 0x1b9   : > { %v2074_v60 = vpop.xlane.xlu0 %2073  ;;  %v2546_v0 = vmul.f32 0.0625, %v2077_v59  ;;  %v1796_v59 = vsel %vm1627_vm0, %v1427_v44, 0.0  ;;  %v4234_v44 = vadd.s32 4294967248, %v16705_v24 }
 0x1ba   : > { %v4870_v62 = vsel %vm4211_vm2, %v4869_v48, %v4865_v53  ;;  %v2545_v1 = vmul.f32 0.0625, %v2074_v60  ;;  %v3957_v5 = vunpack.c.l.b16 %v2667_v58  ;;  %v3958_v6 = vunpack.c.h.b16 %v2667_v58  ;;  %v1556_v60 = vld [vmem:[%s16477_s28 + $0x5c8] sm:$0xff] }
 0x1bb   : > { %v16835_v4 = vsel %vm4218_vm3, %v4874_v51, %v4870_v62  ;;  %2178 = vadd.xlane.f32.xlu1 %v2177_v61  ;;  %v1799_v53 = vsel %vm1627_vm0, %v1428_v37, 0.0  ;;  %v1414_v37 = vld [vmem:[%s16477_s28 + $0x158] sm:$0xff] }
 0x1bc   : > { %v2731_v7 = vpack.c.bf16 %v2546_v0, %v2545_v1  ;;  %v4326_v10 = vrot.slane %v3957_v5, %v16823_v52  ;;  %v4331_v11 = vrot.slane %v3958_v6, %v16827_v54  ;;  %2175 = vadd.xlane.f32.xlu0 %v2174_v63  ;;  %v1645_v12 = vpop.xlane.xlu1 %1644  ;;  %v1555_v1 = vld [vmem:[%s16477_s28 + $0x5c0] sm:$0xff]  ;;  %v2183_v5 = vsel %vm1627_vm0, %v1556_v60, 0.0 }
 0x1bd   : > { %v1642_v13 = vpop.xlane.xlu0 %1641  ;;  %v2402_v18 = vmul.f32 0.0625, %v1645_v12  ;;  %v2180_v6 = vsel %vm1627_vm0, %v1555_v1, 0.0  ;;  %v1432_v1 = vld [vmem:[%s16477_s28 + $0x1e8] sm:$0xff] }
 0x1be   : > { %v4085_v16 = vunpack.c.l.b16 %v2731_v7  ;;  %v4086_v17 = vunpack.c.h.b16 %v2731_v7  ;;  %v2401_v19 = vmul.f32 0.0625, %v1642_v13  ;;  %v4327_v22 = vsel %vm20426_vm4, %v4326_v10, %v16779_v38  ;;  %v1412_v7 = vld [vmem:[%s16477_s28 + $0x148] sm:$0xff] }
 0x1bf   : > { %v16846_v23 = vsel %vm20425_vm5, %v4331_v11, %v4327_v22  ;;  %1746 = vadd.xlane.f32.xlu1 %v1745_v14  ;;  %v1411_v11 = vld [vmem:[%s16477_s28 + $0x140] sm:$0xff]  ;;  %v1430_v22 = vld [vmem:[%s16477_s28 + $0x1d8] sm:$0xff] }
 0x1c0   : > { %v4958_v27 = vrot.slane %v4085_v16, %v16823_v52  ;;  %v4963_v28 = vrot.slane %v4086_v17, %v16827_v54  ;;  %v2659_v29 = vpack.c.bf16 %v2402_v18, %v2401_v19  ;;  %1743 = vadd.xlane.f32.xlu0 %v1742_v15  ;;  %v2029_v30 = vpop.xlane.xlu1 %2028  ;;  %v1751_v15 = vsel %vm1627_vm0, %v1412_v7, 0.0  ;;  %v1540_v17 = vld [vmem:[%s16477_s28 + $0x548] sm:$0xff]  ;;  %v1539_v18 = vld [vmem:[%s16477_s28 + $0x540] sm:$0xff] }
 0x1c1   : > { %v2026_v31 = vpop.xlane.xlu0 %2025  ;;  %v2530_v36 = vmul.f32 0.0625, %v2029_v30  ;;  %v1748_v16 = vsel %vm1627_vm0, %v1411_v11, 0.0  ;;  %v2135_v20 = vsel %vm1627_vm0, %v1540_v17, 0.0  ;;  %v2132_v21 = vsel %vm1627_vm0, %v1539_v18, 0.0 }
 0x1c2   : > { %v4959_v38 = vsel %vm20426_vm4, %v4958_v27, %v16806_v26  ;;  %v3941_v34 = vunpack.c.l.b16 %v2659_v29  ;;  %v3942_v35 = vunpack.c.h.b16 %v2659_v29  ;;  %v2529_v40 = vmul.f32 0.0625, %v2026_v31  ;;  %v1429_v27 = vld [vmem:[%s16477_s28 + $0x1d0] sm:$0xff] }
 0x1c3   : > { %v16856_v39 = vsel %vm20425_vm5, %v4963_v28, %v4959_v38  ;;  %2130 = vadd.xlane.f32.xlu1 %v2129_v32  ;;  %v1805_v30 = vsel %vm1627_vm0, %v1430_v22, 0.0  ;;  %v1802_v31 = vsel %vm1627_vm0, %v1429_v27, 0.0  ;;  %v1558_v32 = vld [vmem:[%s16477_s28 + $0x5d8] sm:$0xff]  ;;  %v16939_v7 = vsub.s32 %v4234_v44, %v16707_v25 }
 0x1c4   : > { %v4224_v46 = vrot.slane %v3941_v34, %v16823_v52  ;;  %v4231_v47 = vrot.slane %v3942_v35, %v16827_v54  ;;  %v2723_v48 = vpack.c.bf16 %v2530_v36, %v2529_v40  ;;  %2127 = vadd.xlane.f32.xlu0 %v2126_v33  ;;  %v16861_v51 = vpop.xlane.xlu1 %1698  ;;  %v1557_v33 = vld [vmem:[%s16477_s28 + $0x5d0] sm:$0xff]  ;;  %v2189_v35 = vsel %vm1627_vm0, %v1558_v32, 0.0  ;;  %v1415_v32 = vld [vmem:[%s16477_s28 + $0x160] sm:$0xff] }
 0x1c5   : > { %v16863_v26 = vpop.xlane.xlu0 %1695  ;;  %v2186_v36 = vsel %vm1627_vm0, %v1557_v33, 0.0  ;;  %v1413_v40 = vld [vmem:[%s16477_s28 + $0x150] sm:$0xff]  ;;  %v4262_v22 = vadd.s32 4294967216, %v16705_v24  ;;  %v4269_v27 = vadd.s32 4294967208, %v16705_v24  ;;  %v4276_v44 = vadd.s32 4294967200, %v16705_v24 }
 0x1c6   : > { %v4226_v58 = vsel %vm20426_vm4, %v4224_v46, %v16817_v45  ;;  %v4069_v62 = vunpack.c.l.b16 %v2723_v48  ;;  %v4070_v0 = vunpack.c.h.b16 %v2723_v48  ;;  %v4241_v46 = vadd.s32 4294967240, %v16705_v24 }
 0x1c7   : > { %v16871_v61 = vsel %vm20425_vm5, %v4231_v47, %v4226_v58  ;;  %1800 = vadd.xlane.f32.xlu1 %v1799_v53  ;;  %v1757_v53 = vsel %vm1627_vm0, %v1414_v37, 0.0  ;;  %v4248_v58 = vadd.s32 4294967232, %v16705_v24  ;;  %v1754_v60 = vsel %vm1627_vm0, %v1413_v40, 0.0  ;;  %v1544_v37 = vld [vmem:[%s16477_s28 + $0x568] sm:$0xff]  ;;  %v1543_v40 = vld [vmem:[%s16477_s28 + $0x560] sm:$0xff] }
 0x1c8   : > { %v4879_v63 = vrot.slane %v4069_v62, %v16823_v52  ;;  %v4884_v2 = vrot.slane %v4070_v0, %v16827_v54  ;;  %1797 = vadd.xlane.f32.xlu0 %v1796_v59  ;;  %v16876_v3 = vpop.xlane.xlu1 %2082  ;;  %v4255_v59 = vadd.s32 4294967224, %v16705_v24  ;;  %v1542_v62 = vld [vmem:[%s16477_s28 + $0x558] sm:$0xff]  ;;  %v1541_v0 = vld [vmem:[%s16477_s28 + $0x550] sm:$0xff]  ;;  %v1451_v52 = vld [vmem:[%s16477_s28 + $0x280] sm:$0xff] }
 0x1c9   : > { %v16878_v45 = vpop.xlane.xlu0 %2079  ;;  %v16952_v17 = vsub.s32 %v4248_v58, %v16707_v25 }
 0x1ca   : > { %v4880_v10 = vsel %vm20426_vm4, %v4879_v63, %v16835_v4  ;;  %v2420_v63 = vmul.f32 0.0625, %v16861_v51  ;;  %v1559_v51 = vld [vmem:[%s16477_s28 + $0x5e0] sm:$0xff]  ;;  %v16955_v18 = vsub.s32 %v4255_v59, %v16707_v25  ;;  %v2547_v58 = vmul.f32 0.0625, %v16878_v45 }
 0x1cb   : > { %v16887_v12 = vsel %vm20425_vm5, %v4884_v2, %v4880_v10  ;;  %2184 = vadd.xlane.f32.xlu1 %v2183_v5  ;;  %v2419_v2 = vmul.f32 0.0625, %v16863_v26  ;;  %v1431_v5 = vld [vmem:[%s16477_s28 + $0x1e0] sm:$0xff]  ;;  %v16942_v10 = vsub.s32 %v4241_v46, %v16707_v25  ;;  %v1416_v26 = vld [vmem:[%s16477_s28 + $0x168] sm:$0xff]  ;;  %v1434_v46 = vld [vmem:[%s16477_s28 + $0x1f8] sm:$0xff]  ;;  %v16986_v45 = vsel %vm1627_vm0, %v1415_v32, 0.0 }
 0x1cc   : > { %2181 = vadd.xlane.f32.xlu0 %v2180_v6  ;;  %v16889_v13 = vpop.xlane.xlu1 %1650  ;;  %v1560_v6 = vld [vmem:[%s16477_s28 + $0x5e8] sm:$0xff]  ;;  %20493 = vst [vmem:[#allocation28_spill] sm:$0xff] %v16955_v18  ;;  %v1545_v32 = vld [vmem:[%s16477_s28 + $0x570] sm:$0xff] }
 0x1cd   : > { %v16891_v14 = vpop.xlane.xlu0 %1647  ;;  %v16964_v33 = vpack.c.bf16 %v2420_v63, %v2419_v2  ;;  %v2404_v59 = vmul.f32 0.0625, %v16889_v13  ;;  %v4283_v13 = vadd.s32 4294967192, %v16705_v24  ;;  %v16993_v2 = vsel %vm1627_vm0, %v1544_v37, 0.0 }
 0x1ce   : > { %v4290_v37 = vadd.s32 4294967184, %v16705_v24 }
 0x1cf   : > { %1752 = vadd.xlane.f32.xlu1 %v1751_v15 }
 0x1d0   : > { %1749 = vadd.xlane.f32.xlu0 %v1748_v16  ;;  %v16897_v4 = vpop.xlane.xlu1 %2034  ;;  %v2141_v16 = vsel %vm1627_vm0, %v1542_v62, 0.0 }
 0x1d1   : > { %v16899_v19 = vpop.xlane.xlu0 %2031  ;;  %v2532_v63 = vmul.f32 0.0625, %v16897_v4  ;;  %v16999_v4 = vsel %vm1627_vm0, %v1434_v46, 0.0  ;;  %v3959_v46 = vunpack.c.l.b16 %v16964_v33 }
 0x1d3   : > { %2136 = vadd.xlane.f32.xlu1 %v2135_v20  ;;  %v2138_v20 = vsel %vm1627_vm0, %v1541_v0, 0.0 }
 0x1d4   : > { %2133 = vadd.xlane.f32.xlu0 %v2132_v21  ;;  %v16905_v28 = vpop.xlane.xlu1 %1704  ;;  %v1811_v21 = vsel %vm1627_vm0, %v1432_v1, 0.0  ;;  %v1433_v1 = vld [vmem:[%s16477_s28 + $0x1f0] sm:$0xff] }
 0x1d5   : > { %v16907_v29 = vpop.xlane.xlu0 %1701  ;;  %v2422_v57 = vmul.f32 0.0625, %v16905_v28 }
 0x1d7   : > { %1806 = vadd.xlane.f32.xlu1 %v1805_v30  ;;  %v1808_v30 = vsel %vm1627_vm0, %v1431_v5, 0.0  ;;  %v16996_v5 = vsel %vm1627_vm0, %v1543_v40, 0.0  ;;  %v4297_v40 = vadd.s32 4294967176, %v16705_v24  ;;  %v17030_v24 = vsub.s32 %v4283_v13, %v16707_v25 }
 0x1d8   : > { %1803 = vadd.xlane.f32.xlu0 %v1802_v31  ;;  %v16913_v38 = vpop.xlane.xlu1 %2088  ;;  %v2195_v31 = vsel %vm1627_vm0, %v1560_v6, 0.0  ;;  %v1562_v6 = vld [vmem:[%s16477_s28 + $0x5f8] sm:$0xff] }
 0x1d9   : > { %v16915_v34 = vpop.xlane.xlu0 %2085  ;;  %20497 = vst [vmem:[#allocation32_spill] sm:$0xff] %v17030_v24 }
 0x1da   : > { %v2549_v50 = vmul.f32 0.0625, %v16915_v34 }
 0x1db   : > { %2190 = vadd.xlane.f32.xlu1 %v2189_v35  ;;  %v2192_v35 = vsel %vm1627_vm0, %v1559_v51, 0.0  ;;  %v17005_v51 = vsub.s32 %v4269_v27, %v16707_v25 }
 0x1dc   : > { %2187 = vadd.xlane.f32.xlu0 %v2186_v36  ;;  %v16923_v47 = vpop.xlane.xlu1 %1656  ;;  %v16968_v36 = vsel %vm1627_vm0, %v1416_v26, 0.0  ;;  %v17008_v26 = vsel %vm1627_vm0, %v1433_v1, 0.0  ;;  %v1452_v1 = vld [vmem:[%s16477_s28 + $0x288] sm:$0xff] }
 0x1dd   : > { %v16925_v48 = vpop.xlane.xlu0 %1653  ;;  %20495 = vst [vmem:[#allocation30_spill] sm:$0xff] %v17005_v51  ;;  %v17057_v13 = vsel %vm1627_vm0, %v1452_v1, 0.0  ;;  %v2406_v49 = vmul.f32 0.0625, %v16923_v47 }
 0x1df   : > { %1758 = vadd.xlane.f32.xlu1 %v1757_v53  ;;  %v2548_v53 = vmul.f32 0.0625, %v16876_v3  ;;  %v2531_v3 = vmul.f32 0.0625, %v16899_v19  ;;  %v1561_v19 = vld [vmem:[%s16477_s28 + $0x5f0] sm:$0xff] }
 0x1e0   : > { %1755 = vadd.xlane.f32.xlu0 %v1754_v60  ;;  %v16944_v11 = vpop.xlane.xlu1 %2040  ;;  %v2403_v60 = vmul.f32 0.0625, %v16891_v14  ;;  %v16990_v14 = vsub.s32 %v4262_v22, %v16707_v25  ;;  %v1546_v22 = vld [vmem:[%s16477_s28 + $0x578] sm:$0xff] }
 0x1e1   : > { %v16946_v15 = vpop.xlane.xlu0 %2037  ;;  %v2732_v56 = vpack.c.bf16 %v2548_v53, %v2547_v58  ;;  %v17027_v9 = vpack.c.bf16 %v2532_v63, %v2531_v3  ;;  %v17033_v53 = vsel %vm1627_vm0, %v1562_v6, 0.0  ;;  %v17051_v63 = vsub.s32 %v4290_v37, %v16707_v25 }
 0x1e2   : > { %20494 = vst [vmem:[#allocation29_spill] sm:$0xff] %v16990_v14  ;;  %v17016_v55 = vpack.c.bf16 %v2404_v59, %v2403_v60  ;;  %v17045_v59 = vsel %vm1627_vm0, %v1546_v22, 0.0  ;;  %v17048_v60 = vsel %vm1627_vm0, %v1545_v32, 0.0  ;;  %v17054_v3 = vsub.s32 %v4297_v40, %v16707_v25  ;;  %v1579_v40 = vld [vmem:[%s16477_s28 + $0x680] sm:$0xff] }
 0x1e3   : > { %2142 = vadd.xlane.f32.xlu1 %v2141_v16  ;;  %v1418_v16 = vld [vmem:[%s16477_s28 + $0x178] sm:$0xff]  ;;  %20498 = vst [vmem:[#allocation33_spill] sm:$0xff] %v17051_v63  ;;  %v17060_v6 = vsel %vm1627_vm0, %v1451_v52, 0.0  ;;  %v4087_v22 = vunpack.c.l.b16 %v2732_v56  ;;  %v4088_v1 = vunpack.c.h.b16 %v2732_v56  ;;  %v4071_v52 = vunpack.c.l.b16 %v17027_v9 }
 0x1e4   : > { %2139 = vadd.xlane.f32.xlu0 %v2138_v20  ;;  %v16978_v62 = vpop.xlane.xlu1 %1710  ;;  %v1417_v20 = vld [vmem:[%s16477_s28 + $0x170] sm:$0xff]  ;;  %v17039_v58 = vsel %vm1627_vm0, %v1418_v16, 0.0  ;;  %20499 = vst [vmem:[#allocation34_spill] sm:$0xff] %v17054_v3  ;;  %v3960_v16 = vunpack.c.h.b16 %v16964_v33  ;;  %v2421_v33 = vmul.f32 0.0625, %v16907_v29  ;;  %v17082_v56 = vsel %vm1627_vm0, %v1579_v40, 0.0 }
 0x1e5   : > { %v16980_v0 = vpop.xlane.xlu0 %1707  ;;  %v17088_v29 = vsel %vm1627_vm0, %v1435_v8, 0.0  ;;  %v3944_v34 = vunpack.c.h.b16 %v17016_v55  ;;  %v17100_v8 = vsel %vm1627_vm0, %v1454_v43, 0.0 }
 0x1e6   : > { %v4341_v40 = vrot.slane %v3960_v16, %v16942_v10  ;;  %v17097_v41 = vpack.c.bf16 %v2422_v57, %v2421_v33  ;;  %v2533_v16 = vmul.f32 0.0625, %v16946_v15  ;;  %v2424_v57 = vmul.f32 0.0625, %v16978_v62  ;;  %v1564_v62 = vld [vmem:[%s16477_s28 + $0x608] sm:$0xff] }
 0x1e7   : > { %1812 = vadd.xlane.f32.xlu1 %v1811_v21  ;;  %v17023_v21 = vsub.s32 %v4276_v44, %v16707_v25  ;;  %v17042_v44 = vsel %vm1627_vm0, %v1417_v20, 0.0  ;;  %v4336_v20 = vrot.slane %v3959_v46, %v16939_v7  ;;  %v1436_v25 = vld [vmem:[%s16477_s28 + $0x208] sm:$0xff]  ;;  %v2550_v46 = vmul.f32 0.0625, %v16913_v38 }
 0x1e8   : > { %1809 = vadd.xlane.f32.xlu0 %v1808_v30  ;;  %v17018_v27 = vpop.xlane.xlu1 %2094  ;;  %v17036_v30 = vsel %vm1627_vm0, %v1561_v19, 0.0  ;;  %v1580_v19 = vld [vmem:[%s16477_s28 + $0x688] sm:$0xff]  ;;  %v17085_v28 = vsel %vm1627_vm0, %v1436_v25, 0.0  ;;  %v4968_v38 = vrot.slane %v4087_v22, %v16939_v7  ;;  %v4889_v25 = vrot.slane %v4071_v52, %v16939_v7 }
 0x1e9   : > { %v17020_v54 = vpop.xlane.xlu0 %2091  ;;  %20496 = vst [vmem:[#allocation31_spill] sm:$0xff] %v17023_v21  ;;  %v17079_v42 = vsel %vm1627_vm0, %v1580_v19, 0.0  ;;  %v4973_v22 = vrot.slane %v4088_v1, %v16942_v10  ;;  %v2423_v52 = vmul.f32 0.0625, %v16980_v0 }
 0x1ea   : > { %v4969_v43 = vsel %vm20424_vm6, %v4968_v38, %v16856_v39  ;;  %v4890_v0 = vsel %vm20424_vm6, %v4889_v25, %v16887_v12  ;;  %v2552_v39 = vmul.f32 0.0625, %v17018_v27  ;;  %v2551_v1 = vmul.f32 0.0625, %v17020_v54 }
 0x1eb   : > { %2196 = vadd.xlane.f32.xlu1 %v2195_v31  ;;  %v3943_v31 = vunpack.c.l.b16 %v17016_v55  ;;  %v4337_v55 = vsel %vm20424_vm6, %v4336_v20, %v16846_v23  ;;  %v1453_v20 = vld [vmem:[%s16477_s28 + $0x290] sm:$0xff]  ;;  %v17133_v12 = vsel %vm1627_vm0, %v1564_v62, 0.0  ;;  %v4974_v54 = vsel %vm20423_vm7, %v4973_v22, %v4969_v43 }
 0x1ec   : > { %2193 = vadd.xlane.f32.xlu0 %v2192_v35  ;;  %v1663_v32 = vpop.xlane.xlu1 %1662  ;;  %v2405_v35 = vmul.f32 0.0625, %v16925_v48  ;;  %v4072_v48 = vunpack.c.h.b16 %v17027_v9  ;;  %v2733_v9 = vpack.c.bf16 %v2550_v46, %v2549_v50  ;;  %v4245_v50 = vrot.slane %v3944_v34, %v16942_v10 }
 0x1ed   : > { %v1660_v37 = vpop.xlane.xlu0 %1659  ;;  %v4238_v47 = vrot.slane %v3943_v31, %v16939_v7  ;;  %v2534_v31 = vmul.f32 0.0625, %v16944_v11  ;;  %v2408_v46 = vmul.f32 0.0625, %v1663_v32  ;;  %v17130_v34 = vsel %vm1627_vm0, %v1453_v20, 0.0 }
 0x1ee   : > { %v4342_v27 = vsel %vm20423_vm7, %v4341_v40, %v4337_v55  ;;  %v3962_v32 = vunpack.c.h.b16 %v17097_v41  ;;  %v4090_v25 = vunpack.c.h.b16 %v2733_v9 }
 0x1ef   : > { %1764 = vadd.xlane.f32.xlu1 %v16968_v36  ;;  %v4240_v23 = vsel %vm20424_vm6, %v4238_v47, %v16871_v61  ;;  %v4089_v61 = vunpack.c.l.b16 %v2733_v9  ;;  %v17124_v38 = vpack.c.bf16 %v2534_v31, %v2533_v16  ;;  %v2734_v16 = vpack.c.bf16 %v2552_v39, %v2551_v1 }
 0x1f0   : > { %1761 = vadd.xlane.f32.xlu0 %v16986_v45  ;;  %v2047_v36 = vpop.xlane.xlu1 %2046  ;;  %v2661_v45 = vpack.c.bf16 %v2406_v49, %v2405_v35  ;;  %v4894_v49 = vrot.slane %v4072_v48, %v16942_v10  ;;  %v2407_v35 = vmul.f32 0.0625, %v1660_v37  ;;  %v4247_v47 = vsel %vm20423_vm7, %v4245_v50, %v4240_v23 }
 0x1f1   : > { %v2044_v19 = vpop.xlane.xlu0 %2043  ;;  %v4978_v40 = vrot.slane %v4089_v61, %v16952_v17  ;;  %v4351_v62 = vrot.slane %v3962_v32, %v16955_v18  ;;  %v4091_v39 = vunpack.c.l.b16 %v2734_v16 }
 0x1f2   : > { %v3945_v33 = vunpack.c.l.b16 %v2661_v45  ;;  %v3946_v31 = vunpack.c.h.b16 %v2661_v45  ;;  %v17144_v22 = vpack.c.bf16 %v2408_v46, %v2407_v35  ;;  %v2535_v43 = vmul.f32 0.0625, %v2044_v19 }
 0x1f3   : > { %2148 = vadd.xlane.f32.xlu1 %v16993_v2  ;;  %v3961_v2 = vunpack.c.l.b16 %v17097_v41  ;;  %v4073_v41 = vunpack.c.l.b16 %v17124_v38 }
 0x1f4   : > { %2145 = vadd.xlane.f32.xlu0 %v16996_v5  ;;  %v1717_v11 = vpop.xlane.xlu1 %1716  ;;  %v17126_v5 = vpack.c.bf16 %v2424_v57, %v2423_v52  ;;  %v4252_v55 = vrot.slane %v3945_v33, %v16952_v17  ;;  %v4092_v33 = vunpack.c.h.b16 %v2734_v16 }
 0x1f5   : > { %v1714_v15 = vpop.xlane.xlu0 %1713  ;;  %v4346_v57 = vrot.slane %v3961_v2, %v16952_v17  ;;  %v2426_v23 = vmul.f32 0.0625, %v1717_v11  ;;  %v4259_v2 = vrot.slane %v3946_v31, %v16955_v18  ;;  %v3947_v11 = vunpack.c.l.b16 %v17144_v22 }
 0x1f6   : > { %v3963_v52 = vunpack.c.l.b16 %v17126_v5  ;;  %v2425_v9 = vmul.f32 0.0625, %v1714_v15  ;;  %v4254_v19 = vsel %vm20386_vm8, %v4252_v55, %v4247_v47  ;;  %v4899_v15 = vrot.slane %v4073_v41, %v16952_v17 }
 0x1f7   : > { %1818 = vadd.xlane.f32.xlu1 %v16999_v4  ;;  %v4895_v4 = vsel %vm20423_vm7, %v4894_v49, %v4890_v0  ;;  %v4983_v0 = vrot.slane %v4090_v25, %v16955_v18  ;;  %v3964_v1 = vunpack.c.h.b16 %v17126_v5  ;;  %v4988_v5 = vrot.slane %v4091_v39, %v16990_v14 }
 0x1f8   : > { %1815 = vadd.xlane.f32.xlu0 %v17008_v26  ;;  %v2101_v37 = vpop.xlane.xlu1 %2100  ;;  %v2536_v26 = vmul.f32 0.0625, %v2047_v36  ;;  %v4347_v36 = vsel %vm20386_vm8, %v4346_v57, %v4342_v27  ;;  %v4356_v61 = vrot.slane %v3963_v52, %v16990_v14  ;;  %v2671_v35 = vpack.c.bf16 %v2426_v23, %v2425_v9 }
 0x1f9   : > { %v2098_v48 = vpop.xlane.xlu0 %2097  ;;  %v2554_v45 = vmul.f32 0.0625, %v2101_v37  ;;  %v4352_v32 = vsel %vm4260_vm9, %v4351_v62, %v4347_v36  ;;  %v4261_v37 = vsel %vm4260_vm9, %v4259_v2, %v4254_v19  ;;  %v4900_v16 = vsel %vm20386_vm8, %v4899_v15, %v4895_v4 }
 0x1fa   : > { %v2553_v50 = vmul.f32 0.0625, %v2098_v48  ;;  %v2726_v46 = vpack.c.bf16 %v2536_v26, %v2535_v43  ;;  %v3948_v48 = vunpack.c.h.b16 %v17144_v22  ;;  %v4357_v57 = vsel %vm4267_vm10, %v4356_v61, %v4352_v32 }
 0x1fb   : > { %2202 = vadd.xlane.f32.xlu1 %v17033_v53  ;;  %v4979_v53 = vsel %vm20386_vm8, %v4978_v40, %v4974_v54  ;;  %v4361_v40 = vrot.slane %v3964_v1, %v17005_v51  ;;  %v4993_v55 = vrot.slane %v4092_v33, %v17005_v51  ;;  %v3965_v52 = vunpack.c.l.b16 %v2671_v35 }
 0x1fc   : > { %2199 = vadd.xlane.f32.xlu0 %v17036_v30  ;;  %v1669_v49 = vpop.xlane.xlu1 %1668  ;;  %v4074_v30 = vunpack.c.h.b16 %v17124_v38  ;;  %v2735_v27 = vpack.c.bf16 %v2554_v45, %v2553_v50  ;;  %v4984_v38 = vsel %vm4260_vm9, %v4983_v0, %v4979_v53  ;;  %v4075_v41 = vunpack.c.l.b16 %v2726_v46 }
 0x1fd   : > { %v1666_v20 = vpop.xlane.xlu0 %1665  ;;  %v2410_v25 = vmul.f32 0.0625, %v1669_v49  ;;  %v4989_v50 = vsel %vm4267_vm10, %v4988_v5, %v4984_v38  ;;  %v4076_v62 = vunpack.c.h.b16 %v2726_v46  ;;  %v3966_v0 = vunpack.c.h.b16 %v2671_v35 }
 0x1fe   : > { %v2409_v31 = vmul.f32 0.0625, %v1666_v20  ;;  %v4093_v22 = vunpack.c.l.b16 %v2735_v27  ;;  %v4094_v2 = vunpack.c.h.b16 %v2735_v27  ;;  %v4362_v36 = vsel %vm4274_vm11, %v4361_v40, %v4357_v57 }
 0x1ff   : > { %1770 = vadd.xlane.f32.xlu1 %v17039_v58  ;;  %v4266_v58 = vrot.slane %v3947_v11, %v16990_v14  ;;  %v4366_v53 = vrot.slane %v3965_v52, %v17023_v21  ;;  %v4909_v15 = vrot.slane %v4075_v41, %v16990_v14  ;;  %vm5489_vm8 = vcmask 1041409   ;;  %v1483_v14 = vld [vmem:[%s16477_s28 + $0x380] sm:$0xff] }
 0x200   : > { %1767 = vadd.xlane.f32.xlu0 %v17042_v44  ;;  %v2053_v54 = vpop.xlane.xlu1 %2052  ;;  %v4904_v44 = vrot.slane %v4074_v30, %v16955_v18  ;;  %v2663_v20 = vpack.c.bf16 %v2410_v25, %v2409_v31  ;;  %v4998_v19 = vrot.slane %v4093_v22, %v17023_v21  ;;  %v1484_v18 = vld [vmem:[%s16477_s28 + $0x388] sm:$0xff] }
 0x201   : > { %v2050_v47 = vpop.xlane.xlu0 %2049  ;;  %v2538_v23 = vmul.f32 0.0625, %v2053_v54  ;;  %v4268_v49 = vsel %vm4267_vm10, %v4266_v58, %v4261_v37  ;;  %v4914_v54 = vrot.slane %v4076_v62, %v17005_v51  ;;  %v4367_v38 = vsel %vm4281_vm12, %v4366_v53, %v4362_v36 }
 0x202   : > { %v2537_v4 = vmul.f32 0.0625, %v2050_v47  ;;  %v3949_v35 = vunpack.c.l.b16 %v2663_v20  ;;  %v4371_v47 = vrot.slane %v3966_v0, %v17030_v24  ;;  %v3950_v40 = vunpack.c.h.b16 %v2663_v20  ;;  %v1563_v0 = vld [vmem:[%s16477_s28 + $0x600] sm:$0xff] }
 0x203   : > { %2154 = vadd.xlane.f32.xlu1 %v17045_v59  ;;  %v4273_v59 = vrot.slane %v3948_v48, %v17005_v51 }
 0x204   : > { %2151 = vadd.xlane.f32.xlu0 %v17048_v60  ;;  %v1723_v26 = vpop.xlane.xlu1 %1722  ;;  %v4905_v60 = vsel %vm4260_vm9, %v4904_v44, %v4900_v16  ;;  %v2727_v1 = vpack.c.bf16 %v2538_v23, %v2537_v4  ;;  %v4372_v52 = vsel %vm4288_vm13, %v4371_v47, %v4367_v38  ;;  %v1581_v38 = vld [vmem:[%s16477_s28 + $0x690] sm:$0xff] }
 0x205   : > { %v1720_v43 = vpop.xlane.xlu0 %1719  ;;  %v2428_v9 = vmul.f32 0.0625, %v1723_v26  ;;  %v4275_v46 = vsel %vm4274_vm11, %v4273_v59, %v4268_v49  ;;  %v4910_v31 = vsel %vm4267_vm10, %v4909_v15, %v4905_v60 }
 0x206   : > { %v2427_v45 = vmul.f32 0.0625, %v1720_v43  ;;  %v4077_v16 = vunpack.c.l.b16 %v2727_v1  ;;  %v4078_v43 = vunpack.c.h.b16 %v2727_v1 }
 0x207   : > { %1872 = vadd.xlane.f32.xlu1 %v17057_v13  ;;  %v4994_v13 = vsel %vm4274_vm11, %v4993_v55, %v4989_v50  ;;  %v4280_v55 = vrot.slane %v3949_v35, %v17023_v21 }
 0x208   : > { %v2672_v39 = vpack.c.bf16 %v2428_v9, %v2427_v45  ;;  %1869 = vadd.xlane.f32.xlu0 %v17060_v6  ;;  %v2107_v11 = vpop.xlane.xlu1 %2106  ;;  %v5003_v6 = vrot.slane %v4094_v2, %v17030_v24  ;;  %v4999_v37 = vsel %vm4281_vm12, %v4998_v19, %v4994_v13  ;;  %v4919_v49 = vrot.slane %v4077_v16, %v17023_v21 }
 0x209   : > { %v2104_v30 = vpop.xlane.xlu0 %2103  ;;  %v2556_v33 = vmul.f32 0.0625, %v2107_v11  ;;  %v4282_v2 = vsel %vm4281_vm12, %v4280_v55, %v4275_v46  ;;  %v4915_v11 = vsel %vm4274_vm11, %v4914_v54, %v4910_v31  ;;  %v2258_v55 = vsel %vm1627_vm0, %v1581_v38, 0.0  ;;  %v17291_v38 = vld [vmem:[%s16479_s10 + $0x4a8] sm:$0xff] }
 0x20a   : > { %v3967_v61 = vunpack.c.l.b16 %v2672_v39  ;;  %v2555_v27 = vmul.f32 0.0625, %v2104_v30  ;;  %v3968_v32 = vunpack.c.h.b16 %v2672_v39  ;;  %v5004_v22 = vsel %vm4288_vm13, %v5003_v6, %v4999_v37 }
 0x20b   : > { %2256 = vadd.xlane.f32.xlu1 %v17079_v42  ;;  %v4924_v30 = vrot.slane %v4078_v43, %v17030_v24  ;;  %v4920_v13 = vsel %vm4281_vm12, %v4919_v49, %v4915_v11  ;;  %v2926_v43 = vld [vmem:[%s16479_s10 + $0x468] sm:$0xff]  ;;  %v20506_v11 = vld [vmem:[#allocation21_spill] sm:$0xff] }
 0x20c   : > { %v4376_v5 = vrot.slane %v3967_v61, %v17051_v63  ;;  %v2736_v48 = vpack.c.bf16 %v2556_v33, %v2555_v27  ;;  %2253 = vadd.xlane.f32.xlu0 %v17082_v56  ;;  %v1675_v58 = vpop.xlane.xlu1 %1674  ;;  %v4381_v26 = vrot.slane %v3968_v32, %v17054_v3  ;;  %v2204_v33 = vsel %vm1627_vm0, %v1563_v0, 0.0  ;;  %v1566_v0 = vld [vmem:[%s16477_s28 + $0x618] sm:$0xff] }
 0x20d   : > { %v1672_v25 = vpop.xlane.xlu0 %1671  ;;  %v2412_v44 = vmul.f32 0.0625, %v1675_v58 }
 0x20e   : > { %v2411_v57 = vmul.f32 0.0625, %v1672_v25  ;;  %v4095_v42 = vunpack.c.l.b16 %v2736_v48  ;;  %v4096_v41 = vunpack.c.h.b16 %v2736_v48  ;;  %v4377_v23 = vsel %vm4295_vm14, %v4376_v5, %v4372_v52  ;;  %v17242_v52 = vld [vmem:[%s16479_s10 + $0x48] sm:$0xff] }
 0x20f   : > { %1824 = vadd.xlane.f32.xlu1 %v17085_v28  ;;  %v4287_v28 = vrot.slane %v3950_v40, %v17030_v24  ;;  %v4382_v36 = vsel %vm4302_vm15, %v4381_v26, %v4377_v23  ;;  %v4925_v48 = vsel %vm4288_vm13, %v4924_v30, %v4920_v13  ;;  %v17247_v26 = vld [vmem:[%s16479_s10 + $0x68] sm:$0xff]  ;;  %v1455_v13 = vld [vmem:[%s16477_s28 + $0x2a0] sm:$0xff]  ;;  %v1578_v24 = vld [vmem:[%s16477_s28 + $0x678] sm:$0xff] }
 0x210   : > { %v2664_v56 = vpack.c.bf16 %v2412_v44, %v2411_v57  ;;  %v5008_v4 = vrot.slane %v4095_v42, %v17051_v63  ;;  %v5013_v9 = vrot.slane %v4096_v41, %v17054_v3  ;;  %1821 = vadd.xlane.f32.xlu0 %v17088_v29  ;;  %v2059_v45 = vpop.xlane.xlu1 %2058  ;;  %v1438_v42 = vld [vmem:[%s16477_s28 + $0x218] sm:$0xff]  ;;  %v1437_v41 = vld [vmem:[%s16477_s28 + $0x210] sm:$0xff] }
 0x211   : > { %v2056_v50 = vpop.xlane.xlu0 %2055  ;;  %v2540_v20 = vmul.f32 0.0625, %v2059_v45  ;;  %v4289_v54 = vsel %vm4288_vm13, %v4287_v28, %v4282_v2  ;;  %v1829_v49 = vsel %vm1627_vm0, %v1438_v42, 0.0  ;;  %v13942_v2 = vcombine.high %v17242_v52, %v17247_v26  ;;  %v20509_v42 = vld [vmem:[#allocation23_spill] sm:$0xff] }
 0x212   : > { %v3951_v59 = vunpack.c.l.b16 %v2664_v56  ;;  %v2539_v62 = vmul.f32 0.0625, %v2056_v50  ;;  %v5009_v39 = vsel %vm4295_vm14, %v5008_v4, %v5004_v22  ;;  %v3952_v60 = vunpack.c.h.b16 %v2664_v56  ;;  %v17250_v56 = vld [vmem:[%s16479_s10 + $0x448] sm:$0xff] }
 0x213   : > { %v5014_v29 = vsel %vm4302_vm15, %v5013_v9, %v5009_v39  ;;  %1878 = vadd.xlane.f32.xlu1 %v17100_v8  ;;  %v1582_v8 = vld [vmem:[%s16477_s28 + $0x698] sm:$0xff]  ;;  %v14070_v28 = vcombine.high %v17250_v56, %v2926_v43  ;;  %v1565_v39 = vld [vmem:[%s16477_s28 + $0x610] sm:$0xff] }
 0x214   : > { %v4294_v53 = vrot.slane %v3951_v59, %v17051_v63  ;;  %v2728_v19 = vpack.c.bf16 %v2540_v20, %v2539_v62  ;;  %v5491_v15 = vsel %vm5489_vm8, %v5014_v29, %v4382_v36  ;;  %1875 = vadd.xlane.f32.xlu0 %v17130_v34  ;;  %v1777_v1 = vpop.xlane.xlu1 %1776  ;;  %v4301_v47 = vrot.slane %v3952_v60, %v17054_v3  ;;  %v20502_v36 = vld [vmem:[#allocation18_spill] sm:$0xff]  ;;  %v20503_v29 = vld [vmem:[#allocation19_spill] sm:$0xff] }
 0x215   : > { %v1774_v61 = vpop.xlane.xlu0 %1773  ;;  %v17221_v46 = vpack.c.b16 %v5491_v15, %v5491_v15  ;;  %v2446_v6 = vmul.f32 0.0625, %v1777_v1  ;;  %v2261_v16 = vsel %vm1627_vm0, %v1582_v8, 0.0  ;;  %v1826_v59 = vsel %vm1627_vm0, %v1437_v41, 0.0 }
 0x216   : > { %v4079_v35 = vunpack.c.l.b16 %v2728_v19  ;;  %v4080_v27 = vunpack.c.h.b16 %v2728_v19  ;;  %v2445_v32 = vmul.f32 0.0625, %v1774_v61  ;;  %v4296_v34 = vsel %vm4295_vm14, %v4294_v53, %v4289_v54  ;;  %v20505_v19 = vld [vmem:[#allocation20_spill] sm:$0xff] }
 0x217   : > { %20500 = vst [vmem:[#allocation35_spill] sm:$0xff] %v17221_v46  ;;  %10666 = vmatprep.mubr.bf16.mxu0 %v17221_v46  ;;  %10830 = vmatprep.mubr.bf16.mxu1 %v17221_v46  ;;  %v4303_v22 = vsel %vm4302_vm15, %v4301_v47, %v4296_v34  ;;  %v20504_v53 = vcombine.low %v20502_v36, %v20503_v29  ;;  %v2213_v61 = vsel %vm1627_vm0, %v1566_v0, 0.0  ;;  %v2210_v47 = vsel %vm1627_vm0, %v1565_v39, 0.0  ;;  %v17609_v46 = vld [vmem:[%s16479_s10 + $0x2e8] sm:$0xff] }
 0x218   : > { %v4929_v37 = vrot.slane %v4079_v35, %v17051_v63  ;;  %v4934_v5 = vrot.slane %v4080_v27, %v17054_v3  ;;  %v17233_v58 = vpack.c.bf16 %v2446_v6, %v2445_v32  ;;  %2208 = vadd.xlane.f32.xlu1 %v17133_v12  ;;  %2205 = vadd.xlane.f32.xlu0 %v2204_v33  ;;  %v2161_v25 = vpop.xlane.xlu1 %2160  ;;  %v1456_v33 = vld [vmem:[%s16477_s28 + $0x2a8] sm:$0xff] }
 0x219   : > { %v2158_v31 = vpop.xlane.xlu0 %2157  ;;  %v2574_v57 = vmul.f32 0.0625, %v2161_v25  ;;  %v20507_v30 = vcombine.low %v20505_v19, %v20506_v11  ;;  %v17279_v35 = vld [vmem:[%s16479_s10 + $0x88] sm:$0xff]  ;;  %v1439_v19 = vld [vmem:[%s16477_s28 + $0x220] sm:$0xff] }
 0x21a   : > { %v4930_v44 = vsel %vm4295_vm14, %v4929_v37, %v4925_v48  ;;  %v2573_v40 = vmul.f32 0.0625, %v2158_v31  ;;  %v3985_v27 = vunpack.c.l.b16 %v17233_v58  ;;  %v3986_v8 = vunpack.c.h.b16 %v17233_v58  ;;  %v17285_v6 = vld [vmem:[%s16479_s10 + $0xa8] sm:$0xff] }
 0x21b   : > { %v4935_v12 = vsel %vm4302_vm15, %v4934_v5, %v4930_v44  ;;  %v17288_v32 = vld [vmem:[%s16479_s10 + $0x488] sm:$0xff]  ;;  %v13941_v37 = vcombine.low %v17242_v52, %v17247_v26  ;;  %v14069_v5 = vcombine.low %v17250_v56, %v2926_v43  ;;  %v1883_v48 = vsel %vm1627_vm0, %v1456_v33, 0.0  ;;  %v1583_v43 = vld [vmem:[%s16477_s28 + $0x6a0] sm:$0xff] }
 0x21c   : > { %v5490_v23 = vsel %vm5489_vm8, %v4935_v12, %v4303_v22  ;;  %v17254_v4 = vpack.c.bf16 %v2574_v57, %v2573_v40  ;;  %2262 = vadd.xlane.f32.xlu1 %v2261_v16  ;;  %2259 = vadd.xlane.f32.xlu0 %v2258_v55  ;;  %v1729_v45 = vpop.xlane.xlu1 %1728  ;;  %v1880_v16 = vsel %vm1627_vm0, %v1455_v13, 0.0  ;;  %v13950_v44 = vcombine.high %v17279_v35, %v17285_v6  ;;  %v20508_v40 = vld [vmem:[#allocation22_spill] sm:$0xff]  ;;  %v1584_v12 = vld [vmem:[%s16477_s28 + $0x6a8] sm:$0xff] }
 0x21d   : > { %v17256_v9 = vpack.c.b16 %v5490_v23, %v5490_v23  ;;  %v1726_v50 = vpop.xlane.xlu0 %1725  ;;  %v2430_v20 = vmul.f32 0.0625, %v1729_v45  ;;  %v14078_v57 = vcombine.high %v17288_v32, %v17291_v38  ;;  %v4465_v55 = vrot.slane %v3985_v27, %v20508_v40  ;;  %v17318_v11 = vld [vmem:[%s16479_s10 + $0xc8] sm:$0xff] }
 0x21e   : > { %v2429_v62 = vmul.f32 0.0625, %v1726_v50  ;;  %v4469_v41 = vrot.slane %v3986_v8, %v20509_v42  ;;  %v4113_v23 = vunpack.c.l.b16 %v17254_v4  ;;  %v4114_v45 = vunpack.c.h.b16 %v17254_v4  ;;  %v17330_v13 = vld [vmem:[%s16479_s10 + $0x4c8] sm:$0xff] }
 0x21f   : > { %20501 = vst [vmem:[#allocation36_spill] sm:$0xff] %v17256_v9  ;;  %10667 = vmatmul.mubr.bf16.vlgmr.msra.gmra.mrb[0].mxu0 %v17256_v9  ;;  %10831 = vmatmul.mubr.bf16.vlgmr.msra.gmra.mrb[0].mxu1 %v17256_v9  ;;  %v2267_v4 = vsel %vm1627_vm0, %v1584_v12, 0.0  ;;  %v17333_v27 = vld [vmem:[%s16479_s10 + $0x4e8] sm:$0xff]  ;;  %v1458_v12 = vld [vmem:[%s16477_s28 + $0x2b8] sm:$0xff] }
 0x220   : > { %v17267_v60 = vpack.c.bf16 %v2430_v20, %v2429_v62  ;;  %10676 = vmatpush1.bf16.xpose.msra.mxu0 %v20504_v53  ;;  %10840 = vmatpush1.bf16.xpose.msra.mxu1 %v20507_v30  ;;  %v1783_v15 = vpop.xlane.xlu1 %1782  ;;  %v20511_v62 = vld [vmem:[#allocation25_spill] sm:$0xff]  ;;  %v4470_v39 = vsel %vm4204_vm1, %v4469_v41, %v4465_v55  ;;  %v2264_v53 = vsel %vm1627_vm0, %v1583_v43, 0.0  ;;  %v17321_v30 = vld [vmem:[%s16479_s10 + $0xe8] sm:$0xff]  ;;  %v5097_v8 = vrot.slane %v4113_v23, %v20508_v40 }
 0x221   : > { %1830 = vadd.xlane.f32.xlu1 %v1829_v49  ;;  %1827 = vadd.xlane.f32.xlu0 %v1826_v59  ;;  %v1780_v1 = vpop.xlane.xlu0 %1779  ;;  %v2448_v54 = vmul.f32 0.0625, %v1783_v15  ;;  %v1440_v49 = vld [vmem:[%s16477_s28 + $0x228] sm:$0xff] }
 0x222   : > { %10677 = vmatprep.subr.bf16.mxu0 %v13942_v2  ;;  %10841 = vmatprep.subr.bf16.mxu1 %v14070_v28  ;;  %v2447_v34 = vmul.f32 0.0625, %v1780_v1  ;;  %v20510_v59 = vld [vmem:[#allocation24_spill] sm:$0xff]  ;;  %v13949_v1 = vcombine.low %v17279_v35, %v17285_v6  ;;  %v1835_v33 = vsel %vm1627_vm0, %v1440_v49, 0.0  ;;  %v3969_v35 = vunpack.c.l.b16 %v17267_v60 }
 0x223   : > { %v3970_v6 = vunpack.c.h.b16 %v17267_v60  ;;  %v17606_v9 = vld [vmem:[%s16479_s10 + $0x2c8] sm:$0xff] }
 0x224   : > { %v2682_v58 = vpack.c.bf16 %v2448_v54, %v2447_v34  ;;  %v2113_v25 = vpop.xlane.xlu1 %2112  ;;  %v5101_v54 = vrot.slane %v4114_v45, %v20509_v42 }
 0x225   : > { %2214 = vadd.xlane.f32.xlu1 %v2213_v61  ;;  %2211 = vadd.xlane.f32.xlu0 %v2210_v47  ;;  %v2110_v31 = vpop.xlane.xlu0 %2109  ;;  %v2558_v52 = vmul.f32 0.0625, %v2113_v25  ;;  %v14077_v61 = vcombine.low %v17288_v32, %v17291_v38  ;;  %v1832_v38 = vsel %vm1627_vm0, %v1439_v19, 0.0  ;;  %v4390_v43 = vrot.slane %v3970_v6, %v20509_v42 }
 0x226   : > { %v2557_v22 = vmul.f32 0.0625, %v2110_v31  ;;  %v3987_v26 = vunpack.c.l.b16 %v2682_v58  ;;  %v3988_v56 = vunpack.c.h.b16 %v2682_v58  ;;  %v5102_v55 = vsel %vm4204_vm1, %v5101_v54, %v5097_v8 }
 0x228   : > { %v17308_v50 = vpack.c.bf16 %v2558_v52, %v2557_v22  ;;  %10678 = vmatpush1.bf16.xpose.msra.mxu0 %v13941_v37  ;;  %10842 = vmatpush1.bf16.xpose.msra.mxu1 %v14069_v5  ;;  %v4474_v20 = vrot.slane %v3987_v26, %v20510_v59  ;;  %v4479_v0 = vrot.slane %v3988_v56, %v20511_v62  ;;  %v2167_v2 = vpop.xlane.xlu1 %2166  ;;  %v1568_v37 = vld [vmem:[%s16477_s28 + $0x628] sm:$0xff] }
 0x229   : > { %1884 = vadd.xlane.f32.xlu1 %v1883_v48  ;;  %1881 = vadd.xlane.f32.xlu0 %v1880_v16  ;;  %v2164_v28 = vpop.xlane.xlu0 %2163  ;;  %v2576_v36 = vmul.f32 0.0625, %v2167_v2  ;;  %v13958_v5 = vcombine.high %v17318_v11, %v17321_v30  ;;  %v1567_v16 = vld [vmem:[%s16477_s28 + $0x620] sm:$0xff]  ;;  %v2219_v22 = vsel %vm1627_vm0, %v1568_v37, 0.0  ;;  %v17357_v26 = vld [vmem:[%s16479_s10 + $0x108] sm:$0xff]  ;;  %v4386_v56 = vrot.slane %v3969_v35, %v20508_v40 }
 0x22a   : > { %v2575_v29 = vmul.f32 0.0625, %v2164_v28  ;;  %10679 = vmatprep.subr.bf16.mxu0 %v13950_v44  ;;  %10843 = vmatprep.subr.bf16.mxu1 %v14078_v57  ;;  %v4475_v15 = vsel %vm4211_vm2, %v4474_v20, %v4470_v39  ;;  %v14086_v44 = vcombine.high %v17330_v13, %v17333_v27  ;;  %v13957_v57 = vcombine.low %v17318_v11, %v17321_v30  ;;  %v17363_v20 = vld [vmem:[%s16479_s10 + $0x128] sm:$0xff] }
 0x22b   : > { %v17338_v47 = vsel %vm4218_vm3, %v4479_v0, %v4475_v15  ;;  %v2216_v49 = vsel %vm1627_vm0, %v1567_v16, 0.0  ;;  %v17366_v0 = vld [vmem:[%s16479_s10 + $0x508] sm:$0xff]  ;;  %v4097_v28 = vunpack.c.l.b16 %v17308_v50  ;;  %v1585_v16 = vld [vmem:[%s16477_s28 + $0x6b0] sm:$0xff] }
 0x22c   : > { %v2746_v34 = vpack.c.bf16 %v2576_v36, %v2575_v29  ;;  %v1735_v32 = vpop.xlane.xlu1 %1734  ;;  %v17369_v2 = vld [vmem:[%s16479_s10 + $0x528] sm:$0xff] }
 0x22d   : > { %2268 = vadd.xlane.f32.xlu1 %v2267_v4  ;;  %2265 = vadd.xlane.f32.xlu0 %v2264_v53  ;;  %v2432_v25 = vmul.f32 0.0625, %v1735_v32  ;;  %v1732_v31 = vpop.xlane.xlu0 %1731  ;;  %v4098_v4 = vunpack.c.h.b16 %v17308_v50  ;;  %v1457_v53 = vld [vmem:[%s16477_s28 + $0x2b0] sm:$0xff]  ;;  %v13966_v50 = vcombine.high %v17357_v26, %v17363_v20  ;;  %v5018_v6 = vrot.slane %v4097_v28, %v20508_v40 }
 0x22e   : > { %v4115_v48 = vunpack.c.l.b16 %v2746_v34  ;;  %v4116_v58 = vunpack.c.h.b16 %v2746_v34  ;;  %v2431_v60 = vmul.f32 0.0625, %v1732_v31  ;;  %v1586_v31 = vld [vmem:[%s16477_s28 + $0x6b8] sm:$0xff] }
 0x22f   : > { %v5022_v32 = vrot.slane %v4098_v4, %v20509_v42  ;;  %v17653_v42 = vld [vmem:[%s16479_s10 + $0x308] sm:$0xff] }
 0x230   : > { %v5106_v41 = vrot.slane %v4115_v48, %v20510_v59  ;;  %v5111_v52 = vrot.slane %v4116_v58, %v20511_v62  ;;  %10680 = vmatpush1.bf16.xpose.msra.mxu0 %v13949_v1  ;;  %10844 = vmatpush1.bf16.xpose.msra.mxu1 %v14077_v61  ;;  %v2674_v23 = vpack.c.bf16 %v2432_v25, %v2431_v60  ;;  %v2119_v45 = vpop.xlane.xlu1 %2118  ;;  %v1889_v61 = vsel %vm1627_vm0, %v1458_v12, 0.0 }
 0x231   : > { %1836 = vadd.xlane.f32.xlu1 %v1835_v33  ;;  %1833 = vadd.xlane.f32.xlu0 %v1832_v38  ;;  %v2560_v36 = vmul.f32 0.0625, %v2119_v45  ;;  %v2116_v29 = vpop.xlane.xlu0 %2115  ;;  %v14085_v1 = vcombine.low %v17330_v13, %v17333_v27  ;;  %v14094_v33 = vcombine.high %v17366_v0, %v17369_v2  ;;  %v1886_v13 = vsel %vm1627_vm0, %v1457_v53, 0.0  ;;  %v1441_v45 = vld [vmem:[%s16477_s28 + $0x230] sm:$0xff]  ;;  %v17412_v53 = vld [vmem:[%s16479_s10 + $0x548] sm:$0xff]  ;;  %20514 = vst [vmem:[#allocation18_spill] sm:$0xff] %v17653_v42 }
 0x232   : > { %v5107_v39 = vsel %vm4211_vm2, %v5106_v41, %v5102_v55  ;;  %10681 = vmatprep.subr.bf16.mxu0 %v13958_v5  ;;  %10845 = vmatprep.subr.bf16.mxu1 %v14086_v44  ;;  %v3971_v11 = vunpack.c.l.b16 %v2674_v23  ;;  %v3972_v30 = vunpack.c.h.b16 %v2674_v23  ;;  %v2559_v15 = vmul.f32 0.0625, %v2116_v29  ;;  %v1442_v23 = vld [vmem:[%s16477_s28 + $0x238] sm:$0xff]  ;;  %v17409_v29 = vld [vmem:[%s16479_s10 + $0x168] sm:$0xff] }
 0x233   : > { %v17376_v19 = vsel %vm4218_vm3, %v5111_v52, %v5107_v39  ;;  %v4391_v27 = vsel %vm4204_vm1, %v4390_v43, %v4386_v56  ;;  %v2270_v43 = vsel %vm1627_vm0, %v1585_v16, 0.0 }
 0x234   : > { %v4395_v8 = vrot.slane %v3971_v11, %v20510_v59  ;;  %v4400_v54 = vrot.slane %v3972_v30, %v20511_v62  ;;  %v2738_v34 = vpack.c.bf16 %v2560_v36, %v2559_v15  ;;  %v1789_v35 = vpop.xlane.xlu1 %1788  ;;  %v17415_v11 = vld [vmem:[%s16479_s10 + $0x568] sm:$0xff]  ;;  %v13965_v15 = vcombine.low %v17357_v26, %v17363_v20 }
 0x235   : > { %2220 = vadd.xlane.f32.xlu1 %v2219_v22  ;;  %2217 = vadd.xlane.f32.xlu0 %v2216_v49  ;;  %v2450_v38 = vmul.f32 0.0625, %v1789_v35  ;;  %v1786_v37 = vpop.xlane.xlu0 %1785  ;;  %v5023_v22 = vsel %vm4204_vm1, %v5022_v32, %v5018_v6  ;;  %v17405_v49 = vld [vmem:[%s16479_s10 + $0x148] sm:$0xff]  ;;  %v1841_v35 = vsel %vm1627_vm0, %v1442_v23, 0.0  ;;  %v1838_v6 = vsel %vm1627_vm0, %v1441_v45, 0.0 }
 0x236   : > { %v4396_v5 = vsel %vm4211_vm2, %v4395_v8, %v4391_v27  ;;  %v4099_v48 = vunpack.c.l.b16 %v2738_v34  ;;  %v4100_v58 = vunpack.c.h.b16 %v2738_v34  ;;  %v2449_v25 = vmul.f32 0.0625, %v1786_v37  ;;  %v1570_v37 = vld [vmem:[%s16477_s28 + $0x638] sm:$0xff]  ;;  %v2838_v45 = vld [vmem:[%s16479_s10 + $0x1a8] sm:$0xff] }
 0x237   : > { %v17395_v44 = vsel %vm4218_vm3, %v4400_v54, %v4396_v5  ;;  %v13974_v26 = vcombine.high %v17405_v49, %v17409_v29  ;;  %v14102_v20 = vcombine.high %v17412_v53, %v17415_v11  ;;  %v1569_v5 = vld [vmem:[%s16477_s28 + $0x630] sm:$0xff] }
 0x238   : > { %10682 = vmatpush1.bf16.xpose.msra.mxu0 %v13957_v57  ;;  %10846 = vmatpush1.bf16.xpose.msra.mxu1 %v14085_v1  ;;  %v5027_v60 = vrot.slane %v4099_v48, %v20510_v59  ;;  %v5032_v55 = vrot.slane %v4100_v58, %v20511_v62  ;;  %v2683_v41 = vpack.c.bf16 %v2450_v38, %v2449_v25  ;;  %v2173_v52 = vpop.xlane.xlu1 %2172  ;;  %v2273_v57 = vsel %vm1627_vm0, %v1586_v31, 0.0  ;;  %v1465_v62 = vld [vmem:[%s16477_s28 + $0x2f0] sm:$0xff]  ;;  %v1594_v59 = vld [vmem:[%s16477_s28 + $0x6f8] sm:$0xff] }
 0x239   : > { %1890 = vadd.xlane.f32.xlu1 %v1889_v61  ;;  %1887 = vadd.xlane.f32.xlu0 %v1886_v13  ;;  %v2578_v12 = vmul.f32 0.0625, %v2173_v52  ;;  %v2170_v56 = vpop.xlane.xlu0 %2169  ;;  %v14093_v1 = vcombine.low %v17366_v0, %v17369_v2  ;;  %v20512_v61 = vld [vmem:[#allocation26_spill] sm:$0xff]  ;;  %v1460_v52 = vld [vmem:[%s16477_s28 + $0x2c8] sm:$0xff] }
 0x23a   : > { %10683 = vmatprep.subr.bf16.mxu0 %v13966_v50  ;;  %10847 = vmatprep.subr.bf16.mxu1 %v14094_v33  ;;  %v5028_v28 = vsel %vm4211_vm2, %v5027_v60, %v5023_v22  ;;  %v3989_v4 = vunpack.c.l.b16 %v2683_v41  ;;  %v3990_v39 = vunpack.c.h.b16 %v2683_v41  ;;  %v2577_v36 = vmul.f32 0.0625, %v2170_v56  ;;  %v20513_v33 = vld [vmem:[#allocation27_spill] sm:$0xff] }
 0x23b   : > { %v17418_v30 = vsel %vm4218_vm3, %v5032_v55, %v5028_v28  ;;  %v2225_v55 = vsel %vm1627_vm0, %v1570_v37, 0.0  ;;  %v2222_v41 = vsel %vm1627_vm0, %v1569_v5, 0.0  ;;  %v1459_v22 = vld [vmem:[%s16477_s28 + $0x2c0] sm:$0xff]  ;;  %v2962_v28 = vld [vmem:[%s16479_s10 + $0x588] sm:$0xff] }
 0x23c   : > { %v4484_v50 = vrot.slane %v3989_v4, %v20512_v61  ;;  %v4489_v8 = vrot.slane %v3990_v39, %v20513_v33  ;;  %v2747_v54 = vpack.c.bf16 %v2578_v12, %v2577_v36  ;;  %v1741_v34 = vpop.xlane.xlu1 %1740  ;;  %v2834_v12 = vld [vmem:[%s16479_s10 + $0x188] sm:$0xff]  ;;  %v13973_v36 = vcombine.low %v17405_v49, %v17409_v29  ;;  %v1443_v5 = vld [vmem:[%s16477_s28 + $0x240] sm:$0xff] }
 0x23d   : > { %2274 = vadd.xlane.f32.xlu1 %v2273_v57  ;;  %2271 = vadd.xlane.f32.xlu0 %v2270_v43  ;;  %v2434_v13 = vmul.f32 0.0625, %v1741_v34  ;;  %v1738_v27 = vpop.xlane.xlu0 %1737  ;;  %v2966_v4 = vld [vmem:[%s16479_s10 + $0x5a8] sm:$0xff]  ;;  %v1895_v34 = vsel %vm1627_vm0, %v1460_v52, 0.0  ;;  %v1892_v49 = vsel %vm1627_vm0, %v1459_v22, 0.0  ;;  %v13982_v29 = vcombine.high %v2834_v12, %v2838_v45 }
 0x23e   : > { %v4485_v0 = vsel %vm20426_vm4, %v4484_v50, %v17338_v47  ;;  %v4117_v2 = vunpack.c.l.b16 %v2747_v54  ;;  %v4118_v32 = vunpack.c.h.b16 %v2747_v54  ;;  %v2433_v38 = vmul.f32 0.0625, %v1738_v27  ;;  %v1588_v27 = vld [vmem:[%s16477_s28 + $0x6c8] sm:$0xff] }
 0x23f   : > { %v17437_v48 = vsel %vm20425_vm5, %v4489_v8, %v4485_v0  ;;  %v1444_v37 = vld [vmem:[%s16477_s28 + $0x248] sm:$0xff] }
 0x240   : > { %10684 = vmatpush1.bf16.xpose.msra.mxu0 %v13965_v15  ;;  %10848 = vmatpush1.bf16.xpose.msra.mxu1 %v14093_v1  ;;  %v5116_v58 = vrot.slane %v4117_v2, %v20512_v61  ;;  %v5121_v25 = vrot.slane %v4118_v32, %v20513_v33  ;;  %v2675_v31 = vpack.c.bf16 %v2434_v13, %v2433_v38  ;;  %v2125_v47 = vpop.xlane.xlu1 %2124  ;;  %v2279_v32 = vsel %vm1627_vm0, %v1588_v27, 0.0 }
 0x241   : > { %1842 = vadd.xlane.f32.xlu1 %v1841_v35  ;;  %1839 = vadd.xlane.f32.xlu0 %v1838_v6  ;;  %v2562_v16 = vmul.f32 0.0625, %v2125_v47  ;;  %v2122_v60 = vpop.xlane.xlu0 %2121  ;;  %v14101_v15 = vcombine.low %v17412_v53, %v17415_v11  ;;  %v14110_v35 = vcombine.high %v2962_v28, %v2966_v4  ;;  %v1587_v6 = vld [vmem:[%s16477_s28 + $0x6c0] sm:$0xff]  ;;  %v2970_v47 = vld [vmem:[%s16479_s10 + $0x5c8] sm:$0xff] }
 0x242   : > { %10685 = vmatprep.subr.bf16.mxu0 %v13974_v26  ;;  %10849 = vmatprep.subr.bf16.mxu1 %v14102_v20  ;;  %v5117_v56 = vsel %vm20426_vm4, %v5116_v58, %v17376_v19  ;;  %v3973_v57 = vunpack.c.l.b16 %v2675_v31  ;;  %v3974_v43 = vunpack.c.h.b16 %v2675_v31  ;;  %v2561_v23 = vmul.f32 0.0625, %v2122_v60  ;;  %v2842_v58 = vld [vmem:[%s16479_s10 + $0x1c8] sm:$0xff] }
 0x243   : > { %v17452_v39 = vsel %vm20425_vm5, %v5121_v25, %v5117_v56  ;;  %v2276_v38 = vsel %vm1627_vm0, %v1587_v6, 0.0  ;;  %v2846_v31 = vld [vmem:[%s16479_s10 + $0x1e8] sm:$0xff]  ;;  %v1847_v56 = vsel %vm1627_vm0, %v1444_v37, 0.0 }
 0x244   : > { %v4405_v1 = vrot.slane %v3973_v57, %v20512_v61  ;;  %v4410_v19 = vrot.slane %v3974_v43, %v20513_v33  ;;  %v2739_v50 = vpack.c.bf16 %v2562_v16, %v2561_v23  ;;  %v17460_v8 = vpop.xlane.xlu1 %1794  ;;  %v2974_v16 = vld [vmem:[%s16479_s10 + $0x5e8] sm:$0xff]  ;;  %v13990_v57 = vcombine.high %v2842_v58, %v2846_v31 }
 0x245   : > { %2226 = vadd.xlane.f32.xlu1 %v2225_v55  ;;  %2223 = vadd.xlane.f32.xlu0 %v2222_v41  ;;  %v17462_v54 = vpop.xlane.xlu0 %1791  ;;  %v13981_v55 = vcombine.low %v2834_v12, %v2838_v45  ;;  %v14109_v41 = vcombine.low %v2962_v28, %v2966_v4  ;;  %v14118_v43 = vcombine.high %v2970_v47, %v2974_v16  ;;  %v1572_v23 = vld [vmem:[%s16477_s28 + $0x648] sm:$0xff]  ;;  %v1571_v12 = vld [vmem:[%s16477_s28 + $0x640] sm:$0xff] }
 0x246   : > { %v4406_v53 = vsel %vm20426_vm4, %v4405_v1, %v17395_v44  ;;  %v4101_v11 = vunpack.c.l.b16 %v2739_v50  ;;  %v4102_v13 = vunpack.c.h.b16 %v2739_v50  ;;  %v2231_v4 = vsel %vm1627_vm0, %v1572_v23, 0.0  ;;  %v1461_v1 = vld [vmem:[%s16477_s28 + $0x2d0] sm:$0xff]  ;;  %v17512_v50 = vld [vmem:[%s16479_s10 + $0x228] sm:$0xff] }
 0x247   : > { %v17471_v26 = vsel %vm20425_vm5, %v4410_v19, %v4406_v53  ;;  %v17509_v19 = vld [vmem:[%s16479_s10 + $0x208] sm:$0xff]  ;;  %v1898_v27 = vsel %vm1627_vm0, %v1461_v1, 0.0 }
 0x248   : > { %10686 = vmatpush1.bf16.xpose.msra.mxu0 %v13973_v36  ;;  %10850 = vmatpush1.bf16.xpose.msra.mxu1 %v14101_v15  ;;  %v5037_v20 = vrot.slane %v4101_v11, %v20512_v61  ;;  %v5042_v0 = vrot.slane %v4102_v13, %v20513_v33  ;;  %v17475_v44 = vpop.xlane.xlu1 %2178  ;;  %v2228_v36 = vsel %vm1627_vm0, %v1571_v12, 0.0  ;;  %v1462_v15 = vld [vmem:[%s16477_s28 + $0x2d8] sm:$0xff]  ;;  %v13998_v6 = vcombine.high %v17509_v19, %v17512_v50  ;;  %v17566_v1 = vld [vmem:[%s16479_s10 + $0x2a8] sm:$0xff] }
 0x249   : > { %1896 = vadd.xlane.f32.xlu1 %v1895_v34  ;;  %1893 = vadd.xlane.f32.xlu0 %v1892_v49  ;;  %v17477_v2 = vpop.xlane.xlu0 %2175  ;;  %v17515_v34 = vld [vmem:[%s16479_s10 + $0x608] sm:$0xff]  ;;  %v1901_v13 = vsel %vm1627_vm0, %v1462_v15, 0.0  ;;  %v13997_v23 = vcombine.low %v17509_v19, %v17512_v50 }
 0x24a   : > { %10687 = vmatprep.subr.bf16.mxu0 %v13982_v29  ;;  %10851 = vmatprep.subr.bf16.mxu1 %v14110_v35  ;;  %v5038_v25 = vsel %vm20426_vm4, %v5037_v20, %v17418_v30  ;;  %v1844_v30 = vsel %vm1627_vm0, %v1443_v5, 0.0  ;;  %v17518_v49 = vld [vmem:[%s16479_s10 + $0x628] sm:$0xff]  ;;  %v13989_v29 = vcombine.low %v2842_v58, %v2846_v31  ;;  %v14117_v35 = vcombine.low %v2970_v47, %v2974_v16  ;;  %v1445_v5 = vld [vmem:[%s16477_s28 + $0x250] sm:$0xff]  ;;  %v1574_v58 = vld [vmem:[%s16477_s28 + $0x658] sm:$0xff] }
 0x24b   : > { %v17490_v60 = vsel %vm20425_vm5, %v5042_v0, %v5038_v25  ;;  %v14126_v20 = vcombine.high %v17515_v34, %v17518_v49  ;;  %v1590_v0 = vld [vmem:[%s16477_s28 + $0x6d8] sm:$0xff]  ;;  %v1573_v25 = vld [vmem:[%s16477_s28 + $0x650] sm:$0xff]  ;;  %v14125_v12 = vcombine.low %v17515_v34, %v17518_v49  ;;  %v17563_v15 = vld [vmem:[%s16479_s10 + $0x288] sm:$0xff]  ;;  %v2237_v19 = vsel %vm1627_vm0, %v1574_v58, 0.0 }
 0x24c   : > { %v17492_v52 = vpop.xlane.xlu1 %1746  ;;  %v2285_v47 = vsel %vm1627_vm0, %v1590_v0, 0.0  ;;  %v2234_v50 = vsel %vm1627_vm0, %v1573_v25, 0.0  ;;  %v1591_v34 = vld [vmem:[%s16477_s28 + $0x6e0] sm:$0xff]  ;;  %v17575_v49 = vld [vmem:[%s16479_s10 + $0x688] sm:$0xff] }
 0x24d   : > { %2280 = vadd.xlane.f32.xlu1 %v2279_v32  ;;  %2277 = vadd.xlane.f32.xlu0 %v2276_v38  ;;  %v17494_v22 = vpop.xlane.xlu0 %1743  ;;  %v1589_v32 = vld [vmem:[%s16477_s28 + $0x6d0] sm:$0xff]  ;;  %v1446_v38 = vld [vmem:[%s16477_s28 + $0x258] sm:$0xff]  ;;  %v1576_v58 = vld [vmem:[%s16477_s28 + $0x668] sm:$0xff]  ;;  %v2436_v3 = vmul.f32 0.0625, %v17492_v52  ;;  %v17686_v52 = vsel %vm1627_vm0, %v1594_v59, 0.0 }
 0x24e   : > { %v2282_v16 = vsel %vm1627_vm0, %v1589_v32, 0.0  ;;  %v17621_v33 = vld [vmem:[%s16479_s10 + $0x6c8] sm:$0xff]  ;;  %v2435_v63 = vmul.f32 0.0625, %v17494_v22  ;;  %20517 = vst [vmem:[#allocation21_spill] sm:$0xff] %v17686_v52 }
 0x24f   : > { %v17624_v61 = vld [vmem:[%s16479_s10 + $0x6e8] sm:$0xff] }
 0x250   : > { %10688 = vmatpush1.bf16.xpose.msra.mxu0 %v13981_v55  ;;  %10852 = vmatpush1.bf16.xpose.msra.mxu1 %v14109_v41  ;;  %v17500_v45 = vpop.xlane.xlu1 %2130  ;;  %v17543_v55 = vld [vmem:[%s16479_s10 + $0x248] sm:$0xff]  ;;  %v17727_v42 = vpack.c.bf16 %v2436_v3, %v2435_v63  ;;  %v1611_v3 = vld [vmem:[%s16477_s28 + $0x780] sm:$0xff] }
 0x251   : > { %1848 = vadd.xlane.f32.xlu1 %v1847_v56  ;;  %1845 = vadd.xlane.f32.xlu0 %v1844_v30  ;;  %v17502_v28 = vpop.xlane.xlu0 %2127  ;;  %v17546_v41 = vld [vmem:[%s16479_s10 + $0x268] sm:$0xff] }
 0x252   : > { %10689 = vmatprep.subr.bf16.mxu0 %v13990_v57  ;;  %10853 = vmatprep.subr.bf16.mxu1 %v14118_v43  ;;  %v17549_v56 = vld [vmem:[%s16479_s10 + $0x648] sm:$0xff]  ;;  %v1463_v43 = vld [vmem:[%s16477_s28 + $0x2e0] sm:$0xff] }
 0x253   : > { %v17552_v30 = vld [vmem:[%s16479_s10 + $0x668] sm:$0xff] }
 0x254   : > { %v17520_v53 = vpop.xlane.xlu1 %1800  ;;  %v1464_v57 = vld [vmem:[%s16477_s28 + $0x2e8] sm:$0xff]  ;;  %v14134_v32 = vcombine.high %v17549_v56, %v17552_v30 }
 0x255   : > { %2232 = vadd.xlane.f32.xlu1 %v2231_v4  ;;  %2229 = vadd.xlane.f32.xlu0 %v2228_v36  ;;  %v17522_v11 = vpop.xlane.xlu0 %1797  ;;  %v1853_v4 = vsel %vm1627_vm0, %v1446_v38, 0.0  ;;  %v1592_v36 = vld [vmem:[%s16477_s28 + $0x6e8] sm:$0xff]  ;;  %v17594_v25 = vsel %vm1627_vm0, %v1464_v57, 0.0  ;;  %v17612_v57 = vsel %vm1627_vm0, %v1591_v34, 0.0  ;;  %v2451_v34 = vmul.f32 0.0625, %v17462_v54 }
 0x256   : > { %v1448_v38 = vld [vmem:[%s16477_s28 + $0x268] sm:$0xff]  ;;  %v17642_v54 = vsel %vm1627_vm0, %v1576_v58, 0.0  ;;  %v2579_v58 = vmul.f32 0.0625, %v17477_v2  ;;  %v17676_v2 = vsel %vm1627_vm0, %v1465_v62, 0.0 }
 0x257   : > { %20516 = vst [vmem:[#allocation20_spill] sm:$0xff] %v17676_v2  ;;  %v17709_v62 = vld [vmem:[%s16479_s10 + $0x748] sm:$0xff]  ;;  %v20519_v2 = vcombine.low %v17543_v55, %v17546_v41 }
 0x258   : > { %10690 = vmatpush1.bf16.xpose.msra.mxu0 %v13989_v29  ;;  %10854 = vmatpush1.bf16.xpose.msra.mxu1 %v14117_v35  ;;  %v17533_v37 = vpop.xlane.xlu1 %2184  ;;  %v1850_v35 = vsel %vm1627_vm0, %v1445_v5, 0.0  ;;  %v1447_v5 = vld [vmem:[%s16477_s28 + $0x260] sm:$0xff]  ;;  %v1468_v63 = vld [vmem:[%s16477_s28 + $0x308] sm:$0xff] }
 0x259   : > { %1902 = vadd.xlane.f32.xlu1 %v1901_v13  ;;  %1899 = vadd.xlane.f32.xlu0 %v1898_v27  ;;  %v17538_v31 = vpop.xlane.xlu0 %2181  ;;  %v17578_v13 = vld [vmem:[%s16479_s10 + $0x6a8] sm:$0xff]  ;;  %v17635_v0 = vsel %vm1627_vm0, %v1447_v5, 0.0  ;;  %v1593_v5 = vld [vmem:[%s16477_s28 + $0x6f0] sm:$0xff] }
 0x25a   : > { %10691 = vmatprep.subr.bf16.mxu0 %v13998_v6  ;;  %10855 = vmatprep.subr.bf16.mxu1 %v14126_v20  ;;  %v14006_v20 = vcombine.high %v17543_v55, %v17546_v41  ;;  %v1575_v6 = vld [vmem:[%s16477_s28 + $0x660] sm:$0xff]  ;;  %v17689_v22 = vsel %vm1627_vm0, %v1593_v5, 0.0  ;;  %v17748_v55 = vld [vmem:[%s16479_s10 + $0x3a8] sm:$0xff] }
 0x25b   : > { %20518 = vst [vmem:[#allocation37_spill] sm:$0xff] %v17689_v22  ;;  %v17712_v22 = vld [vmem:[%s16479_s10 + $0x768] sm:$0xff]  ;;  %20523 = vst [vmem:[#allocation40_spill] sm:$0xff] %v17748_v55 }
 0x25c   : > { %v17568_v29 = vpop.xlane.xlu1 %1752  ;;  %v17810_v55 = vld [vmem:[%s16479_s10 + $0x3c8] sm:$0xff] }
 0x25d   : > { %2286 = vadd.xlane.f32.xlu1 %v2285_v47  ;;  %2283 = vadd.xlane.f32.xlu0 %v2282_v16  ;;  %v17580_v27 = vpop.xlane.xlu0 %1749  ;;  %v17597_v47 = vsel %vm1627_vm0, %v1463_v43, 0.0  ;;  %v17600_v16 = vsel %vm1627_vm0, %v1592_v36, 0.0  ;;  %v17632_v36 = vsel %vm1627_vm0, %v1448_v38, 0.0  ;;  %v17669_v38 = vld [vmem:[%s16479_s10 + $0x728] sm:$0xff] }
 0x260   : > { %10692 = vmatpush1.bf16.xpose.msra.mxu0 %v13997_v23  ;;  %10856 = vmatpush1.bf16.xpose.msra.mxu1 %v14125_v12  ;;  %v1466_v23 = vld [vmem:[%s16477_s28 + $0x2f8] sm:$0xff]  ;;  %v2452_v12 = vmul.f32 0.0625, %v17460_v8  ;;  %v17629_v43 = vpop.xlane.xlu1 %2136 }
 0x261   : > { %1854 = vadd.xlane.f32.xlu1 %v1853_v4  ;;  %1851 = vadd.xlane.f32.xlu0 %v1850_v35  ;;  %v17639_v8 = vpop.xlane.xlu0 %2133  ;;  %v17645_v4 = vsel %vm1627_vm0, %v1575_v6, 0.0  ;;  %v17663_v40 = vsel %vm1627_vm0, %v1466_v23, 0.0  ;;  %v17666_v35 = vld [vmem:[%s16479_s10 + $0x708] sm:$0xff]  ;;  %v1450_v6 = vld [vmem:[%s16477_s28 + $0x278] sm:$0xff]  ;;  %v1449_v23 = vld [vmem:[%s16477_s28 + $0x270] sm:$0xff] }
 0x262   : > { %10693 = vmatprep.subr.bf16.mxu0 %v14006_v20  ;;  %10857 = vmatprep.subr.bf16.mxu1 %v14134_v32  ;;  %v17656_v20 = vld [vmem:[%s16479_s10 + $0x328] sm:$0xff]  ;;  %v2580_v32 = vmul.f32 0.0625, %v17475_v44  ;;  %v17681_v21 = vpack.c.bf16 %v2452_v12, %v2451_v34  ;;  %v1577_v44 = vld [vmem:[%s16477_s28 + $0x670] sm:$0xff]  ;;  %v17722_v5 = vsel %vm1627_vm0, %v1449_v23, 0.0 }
 0x263   : > { %20515 = vst [vmem:[#allocation19_spill] sm:$0xff] %v17656_v20  ;;  %v17695_v12 = vld [vmem:[%s16479_s10 + $0x348] sm:$0xff] }
 0x264   : > { %v17683_v51 = vpop.xlane.xlu1 %1806  ;;  %v17698_v34 = vld [vmem:[%s16479_s10 + $0x368] sm:$0xff]  ;;  %v17714_v52 = vpack.c.bf16 %v2580_v32, %v2579_v58  ;;  %v20520_v32 = vcombine.low %v17549_v56, %v17552_v30  ;;  %v17736_v58 = vsel %vm1627_vm0, %v1578_v24, 0.0  ;;  %v3991_v41 = vunpack.c.l.b16 %v17681_v21 }
 0x265   : > { %2238 = vadd.xlane.f32.xlu1 %v2237_v19  ;;  %2235 = vadd.xlane.f32.xlu0 %v2234_v50  ;;  %v2564_v19 = vmul.f32 0.0625, %v17500_v45  ;;  %v2563_v50 = vmul.f32 0.0625, %v17502_v28  ;;  %v17702_v59 = vpop.xlane.xlu0 %1803  ;;  %v17719_v28 = vsel %vm1627_vm0, %v1450_v6, 0.0  ;;  %v1612_v20 = vld [vmem:[%s16477_s28 + $0x788] sm:$0xff]  ;;  %v17739_v6 = vsel %vm1627_vm0, %v1577_v44, 0.0 }
 0x266   : > { %20521 = vst [vmem:[#allocation38_spill] sm:$0xff] %v17739_v6  ;;  %v17745_v23 = vld [vmem:[%s16479_s10 + $0x388] sm:$0xff]  ;;  %v20527_v24 = vcombine.high %v17575_v49, %v17578_v13  ;;  %v17779_v30 = vsel %vm1627_vm0, %v1484_v18, 0.0  ;;  %v17782_v44 = vsel %vm1627_vm0, %v1483_v14, 0.0  ;;  %v17785_v6 = vsel %vm1627_vm0, %v1612_v20, 0.0 }
 0x267   : > { %20522 = vst [vmem:[#allocation39_spill] sm:$0xff] %v17745_v23  ;;  %v17768_v45 = vpack.c.bf16 %v2564_v19, %v2563_v50  ;;  %20528 = vst [vmem:[#allocation43_spill] sm:$0xff] %v17782_v44  ;;  %v4119_v19 = vunpack.c.l.b16 %v17714_v52  ;;  %v17789_v50 = vsel %vm1627_vm0, %v1611_v3, 0.0  ;;  %v3992_v3 = vunpack.c.h.b16 %v17681_v21  ;;  %v17813_v20 = vld [vmem:[%s16479_s10 + $0x3e8] sm:$0xff] }
 0x268   : > { %10694 = vmatpush1.bf16.xpose.msra.mxu0 %v20519_v2  ;;  %10858 = vmatpush1.bf16.xpose.msra.mxu1 %v20520_v32  ;;  %v17753_v56 = vpop.xlane.xlu1 %2190  ;;  %v17762_v2 = vld [vmem:[%s16479_s10 + $0x788] sm:$0xff]  ;;  %20529 = vst [vmem:[#allocation44_spill] sm:$0xff] %v17785_v6  ;;  %20530 = vst [vmem:[#allocation45_spill] sm:$0xff] %v17789_v50  ;;  %v17801_v6 = vsel %vm1627_vm0, %v1468_v63, 0.0  ;;  %v4494_v50 = vrot.slane %v3991_v41, %v16939_v7  ;;  %v2453_v18 = vmul.f32 0.0625, %v17522_v11  ;;  %v4120_v63 = vunpack.c.h.b16 %v17714_v52 }
 0x269   : > { %1908 = vadd.xlane.f32.xlu1 %v17594_v25  ;;  %1905 = vadd.xlane.f32.xlu0 %v17597_v47  ;;  %20524 = vst [vmem:[#allocation41_spill] sm:$0xff] %v17762_v2  ;;  %v17765_v32 = vld [vmem:[%s16479_s10 + $0x7a8] sm:$0xff]  ;;  %v17770_v25 = vpop.xlane.xlu0 %2187  ;;  %v20526_v47 = vcombine.high %v17563_v15, %v17566_v1  ;;  %20531 = vst [vmem:[#allocation46_spill] sm:$0xff] %v17801_v6  ;;  %v4103_v21 = vunpack.c.l.b16 %v17768_v45  ;;  %v2582_v41 = vmul.f32 0.0625, %v17533_v37  ;;  %v1467_v2 = vld [vmem:[%s16477_s28 + $0x300] sm:$0xff]  ;;  %v2566_v52 = vmul.f32 0.0625, %v17629_v43 }
 0x26a   : > { %20525 = vst [vmem:[#allocation42_spill] sm:$0xff] %v17765_v32  ;;  %10859 = vmatprep.subr.bf16.mxu1 %v20527_v24  ;;  %v3975_v24 = vunpack.c.l.b16 %v17727_v42  ;;  %v5126_v11 = vrot.slane %v4119_v19, %v16939_v7  ;;  %v2437_v32 = vmul.f32 0.0625, %v17580_v27  ;;  %v2565_v44 = vmul.f32 0.0625, %v17639_v8 }
 0x26b   : > { %10695 = vmatprep.subr.bf16.mxu0 %v20526_v47  ;;  %v2454_v47 = vmul.f32 0.0625, %v17520_v53  ;;  %v2581_v53 = vmul.f32 0.0625, %v17538_v31  ;;  %v20532_v37 = vcombine.low %v17563_v15, %v17566_v1  ;;  %v20533_v31 = vcombine.low %v17575_v49, %v17578_v13 }
 0x26c   : > { %v1759_v14 = vpop.xlane.xlu1 %1758  ;;  %v4415_v23 = vrot.slane %v3975_v24, %v16939_v7  ;;  %v4104_v27 = vunpack.c.h.b16 %v17768_v45  ;;  %v14054_v15 = vcombine.high %v17810_v55, %v17813_v20  ;;  %v4495_v1 = vsel %vm20424_vm6, %v4494_v50, %v17437_v48 }
 0x26d   : > { %2292 = vadd.xlane.f32.xlu1 %v17600_v16  ;;  %2289 = vadd.xlane.f32.xlu0 %v17612_v57  ;;  %v1756_v6 = vpop.xlane.xlu0 %1755  ;;  %v3976_v16 = vunpack.c.h.b16 %v17727_v42  ;;  %v2438_v57 = vmul.f32 0.0625, %v17568_v29  ;;  %v14053_v42 = vcombine.low %v17810_v55, %v17813_v20  ;;  %v4499_v29 = vrot.slane %v3992_v3, %v16942_v10 }
 0x26e   : > { %v17837_v19 = vpack.c.bf16 %v2454_v47, %v2453_v18  ;;  %v5047_v49 = vrot.slane %v4103_v21, %v16939_v7  ;;  %v17846_v13 = vpack.c.bf16 %v2582_v41, %v2581_v53  ;;  %v20534_v45 = vcombine.high %v17606_v9, %v17609_v46  ;;  %v17873_v53 = vld [vmem:[%s16479_s10 + $0x7e8] sm:$0xff] }
 0x26f   : > { %v5127_v48 = vsel %vm20424_vm6, %v5126_v11, %v17452_v39  ;;  %v5131_v50 = vrot.slane %v4120_v63, %v16942_v10  ;;  %v4420_v47 = vrot.slane %v3976_v16, %v16942_v10  ;;  %v17861_v18 = vpack.c.bf16 %v2438_v57, %v2437_v32 }
 0x270   : > { %10696 = vmatpush1.bf16.xpose.msra.mxu0 %v20532_v37  ;;  %10860 = vmatpush1.bf16.xpose.msra.mxu1 %v20533_v31  ;;  %v2143_v43 = vpop.xlane.xlu1 %2142  ;;  %v4416_v24 = vsel %vm20424_vm6, %v4415_v23, %v17471_v26  ;;  %v17865_v3 = vpack.c.bf16 %v2566_v52, %v2565_v44  ;;  %v2456_v21 = vmul.f32 0.0625, %v17683_v51  ;;  %v2455_v41 = vmul.f32 0.0625, %v17702_v59 }
 0x271   : > { %1860 = vadd.xlane.f32.xlu1 %v17632_v36  ;;  %1857 = vadd.xlane.f32.xlu0 %v17635_v0  ;;  %v2140_v8 = vpop.xlane.xlu0 %2139  ;;  %v20535_v0 = vcombine.high %v17621_v33, %v17624_v61  ;;  %v17855_v36 = vsel %vm1627_vm0, %v1467_v2, 0.0  ;;  %v17870_v2 = vld [vmem:[%s16479_s10 + $0x7c8] sm:$0xff]  ;;  %v5052_v39 = vrot.slane %v4104_v27, %v16942_v10  ;;  %v3993_v63 = vunpack.c.l.b16 %v17837_v19 }
 0x272   : > { %10697 = vmatprep.subr.bf16.mxu0 %v20534_v45  ;;  %v2584_v32 = vmul.f32 0.0625, %v17753_v56  ;;  %v2583_v11 = vmul.f32 0.0625, %v17770_v25  ;;  %v5048_v51 = vsel %vm20424_vm6, %v5047_v49, %v17490_v60  ;;  %v4121_v59 = vunpack.c.l.b16 %v17846_v13  ;;  %v20538_v49 = vld [vmem:[#allocation20_spill] sm:$0xff] }
 0x273   : > { %10861 = vmatprep.subr.bf16.mxu1 %v20535_v0  ;;  %v2440_v23 = vmul.f32 0.0625, %v1759_v14  ;;  %v2439_v44 = vmul.f32 0.0625, %v1756_v6  ;;  %v4500_v57 = vsel %vm20423_vm7, %v4499_v29, %v4495_v1  ;;  %v3977_v52 = vunpack.c.l.b16 %v17861_v18 }
 0x274   : > { %v1813_v26 = vpop.xlane.xlu1 %1812  ;;  %v14181_v56 = vcombine.low %v17870_v2, %v17873_v53  ;;  %v4421_v25 = vsel %vm20423_vm7, %v4420_v47, %v4416_v24  ;;  %v4105_v60 = vunpack.c.l.b16 %v17865_v3  ;;  %v17893_v37 = vpack.c.bf16 %v2456_v21, %v2455_v41 }
 0x275   : > { %2244 = vadd.xlane.f32.xlu1 %v17642_v54  ;;  %2241 = vadd.xlane.f32.xlu0 %v17645_v4  ;;  %v1810_v16 = vpop.xlane.xlu0 %1809  ;;  %v14182_v54 = vcombine.high %v17870_v2, %v17873_v53  ;;  %v5132_v4 = vsel %vm20423_vm7, %v5131_v50, %v5127_v48  ;;  %v20536_v6 = vcombine.low %v17606_v9, %v17609_v46  ;;  %v3994_v29 = vunpack.c.h.b16 %v17837_v19  ;;  %v20539_v48 = vld [vmem:[#allocation18_spill] sm:$0xff]  ;;  %v20540_v50 = vld [vmem:[#allocation19_spill] sm:$0xff] }
 0x276   : > { %v20537_v14 = vcombine.low %v17621_v33, %v17624_v61  ;;  %v5053_v31 = vsel %vm20423_vm7, %v5052_v39, %v5048_v51  ;;  %v4504_v27 = vrot.slane %v3993_v63, %v16952_v17  ;;  %v17904_v1 = vpack.c.bf16 %v2584_v32, %v2583_v11  ;;  %v20543_v32 = vld [vmem:[#allocation28_spill] sm:$0xff] }
 0x277   : > { %v4122_v46 = vunpack.c.h.b16 %v17846_v13  ;;  %v5136_v9 = vrot.slane %v4121_v59, %v16952_v17  ;;  %v3978_v61 = vunpack.c.h.b16 %v17861_v18  ;;  %v2678_v33 = vpack.c.bf16 %v2440_v23, %v2439_v44  ;;  %v20544_v44 = vld [vmem:[#allocation21_spill] sm:$0xff] }
 0x278   : > { %10698 = vmatpush1.bf16.xpose.msra.mxu0 %v20536_v6  ;;  %10862 = vmatpush1.bf16.xpose.msra.mxu1 %v20537_v14  ;;  %v2197_v45 = vpop.xlane.xlu1 %2196  ;;  %v20541_v19 = vcombine.high %v20539_v48, %v20540_v50  ;;  %v20542_v47 = vcombine.high %v17666_v35, %v17669_v38  ;;  %v4106_v24 = vunpack.c.h.b16 %v17865_v3  ;;  %v2458_v21 = vmul.f32 0.0625, %v1813_v26 }
 0x279   : > { %1914 = vadd.xlane.f32.xlu1 %v17663_v40  ;;  %1911 = vadd.xlane.f32.xlu0 %v20538_v49  ;;  %v2194_v0 = vpop.xlane.xlu0 %2193  ;;  %v4425_v40 = vrot.slane %v3977_v52, %v16952_v17  ;;  %v2457_v13 = vmul.f32 0.0625, %v1810_v16  ;;  %v5057_v41 = vrot.slane %v4105_v60, %v16952_v17  ;;  %v3995_v18 = vunpack.c.l.b16 %v17893_v37  ;;  %v20545_v52 = vld [vmem:[#allocation37_spill] sm:$0xff] }
 0x27a   : > { %10699 = vmatprep.subr.bf16.mxu0 %v20541_v19  ;;  %10863 = vmatprep.subr.bf16.mxu1 %v20542_v47  ;;  %v2568_v39 = vmul.f32 0.0625, %v2143_v43  ;;  %v2567_v63 = vmul.f32 0.0625, %v2140_v8  ;;  %v4509_v11 = vrot.slane %v3994_v29, %v20543_v32  ;;  %v4123_v51 = vunpack.c.l.b16 %v17904_v1 }
 0x27b   : > { %v2586_v59 = vmul.f32 0.0625, %v2197_v45  ;;  %v2585_v23 = vmul.f32 0.0625, %v2194_v0  ;;  %vm20546_vm7 = vcmask 589312   ;;  %v5141_v43 = vrot.slane %v4122_v46, %v20543_v32  ;;  %v17934_v45 = vld [vmem:[%s16479_s10 + $0x10] sm:$0xff] }
 0x27c   : > { %v1765_v3 = vpop.xlane.xlu1 %1764  ;;  %v4505_v26 = vsel %vm20546_vm7, %v4504_v27, %v4500_v57  ;;  %vm20547_vm6 = vmmov %vm20546_vm7  ;;  %v3979_v8 = vunpack.c.l.b16 %v2678_v33  ;;  %v4430_v14 = vrot.slane %v3978_v61, %v20543_v32  ;;  %v5062_v29 = vrot.slane %v4106_v24, %v20543_v32  ;;  %v17937_v0 = vld [vmem:[%s16479_s10 + $0x30] sm:$0xff] }
 0x27d   : > { %2298 = vadd.xlane.f32.xlu1 %v20544_v44  ;;  %2295 = vadd.xlane.f32.xlu0 %v20545_v52  ;;  %v5137_v16 = vsel %vm20547_vm6, %v5136_v9, %v5132_v4  ;;  %v1762_v60 = vpop.xlane.xlu0 %1761  ;;  %vm20548_vm5 = vmmov %vm20547_vm6  ;;  %v17931_v49 = vpack.c.bf16 %v2458_v21, %v2457_v13  ;;  %v3996_v4 = vunpack.c.h.b16 %v17893_v37  ;;  %v20550_v27 = vld [vmem:[#allocation29_spill] sm:$0xff]  ;;  %v17942_v9 = vpack.c.bf16 %v2568_v39, %v2567_v63  ;;  %v20555_v39 = vld [vmem:[#allocation30_spill] sm:$0xff] }
 0x27e   : > { %v4426_v6 = vsel %vm20548_vm5, %v4425_v40, %v4421_v25  ;;  %vm20549_vm4 = vmmov %vm20548_vm5  ;;  %v4514_v46 = vrot.slane %v3995_v18, %v20550_v27  ;;  %v20551_v25 = vcombine.low %v20539_v48, %v20540_v50  ;;  %v20552_v61 = vcombine.low %v17666_v35, %v17669_v38  ;;  %v20556_v52 = vld [vmem:[#allocation38_spill] sm:$0xff] }
 0x27f   : > { %v5058_v57 = vsel %vm20549_vm4, %v5057_v41, %v5053_v31  ;;  %v4124_v19 = vunpack.c.h.b16 %v17904_v1  ;;  %v5146_v47 = vrot.slane %v4123_v51, %v20550_v27  ;;  %v3980_v40 = vunpack.c.h.b16 %v2678_v33 }
 0x280   : > { %10700 = vmatpush1.bf16.xpose.msra.mxu0 %v20551_v25  ;;  %10864 = vmatpush1.bf16.xpose.msra.mxu1 %v20552_v61  ;;  %v17952_v31 = vpack.c.bf16 %v2586_v59, %v2585_v23  ;;  %v2149_v37 = vpop.xlane.xlu1 %2148  ;;  %v4435_v24 = vrot.slane %v3979_v8, %v20550_v27  ;;  %v2442_v48 = vmul.f32 0.0625, %v1765_v3  ;;  %v2441_v50 = vmul.f32 0.0625, %v1762_v60 }
 0x281   : > { %1866 = vadd.xlane.f32.xlu1 %v17719_v28  ;;  %1863 = vadd.xlane.f32.xlu0 %v17722_v5  ;;  %v2146_v21 = vpop.xlane.xlu0 %2145  ;;  %v20553_v35 = vcombine.high %v17695_v12, %v17698_v34  ;;  %v20554_v38 = vcombine.high %v17709_v62, %v17712_v22  ;;  %v13936_v1 = vcombine.high %v17934_v45, %v17937_v0  ;;  %v3997_v13 = vunpack.c.l.b16 %v17931_v49 }
 0x282   : > { %v4510_v28 = vsel %vm4260_vm9, %v4509_v11, %v4505_v26  ;;  %v5142_v5 = vsel %vm4260_vm9, %v5141_v43, %v5137_v16  ;;  %v4431_v33 = vsel %vm4260_vm9, %v4430_v14, %v4426_v6  ;;  %v5063_v41 = vsel %vm4260_vm9, %v5062_v29, %v5058_v57  ;;  %v1486_v6 = vld [vmem:[%s16477_s28 + $0x398] sm:$0xff]  ;;  %v20557_v14 = vld [vmem:[#allocation31_spill] sm:$0xff] }
 0x283   : > { %10701 = vmatprep.subr.bf16.mxu0 %v20553_v35  ;;  %10865 = vmatprep.subr.bf16.mxu1 %v20554_v38  ;;  %v4515_v18 = vsel %vm4267_vm10, %v4514_v46, %v4510_v28  ;;  %v4519_v63 = vrot.slane %v3996_v4, %v20555_v39  ;;  %v4107_v51 = vunpack.c.l.b16 %v17942_v9  ;;  %v5147_v59 = vsel %vm4267_vm10, %v5146_v47, %v5142_v5  ;;  %v20562_v35 = vld [vmem:[#allocation39_spill] sm:$0xff]  ;;  %v20563_v38 = vld [vmem:[#allocation40_spill] sm:$0xff]  ;;  %v20565_v5 = vld [vmem:[#allocation41_spill] sm:$0xff] }
 0x284   : > { %v5151_v23 = vrot.slane %v4124_v19, %v20555_v39  ;;  %v4440_v11 = vrot.slane %v3980_v40, %v20555_v39  ;;  %v4125_v44 = vunpack.c.l.b16 %v17952_v31  ;;  %v1819_v3 = vpop.xlane.xlu1 %1818  ;;  %v4436_v26 = vsel %vm4267_vm10, %v4435_v24, %v4431_v33 }
 0x285   : > { %2250 = vadd.xlane.f32.xlu1 %v17736_v58  ;;  %2247 = vadd.xlane.f32.xlu0 %v20556_v52  ;;  %v3998_v16 = vunpack.c.h.b16 %v17931_v49  ;;  %v17981_v43 = vpack.c.bf16 %v2442_v48, %v2441_v50  ;;  %v2460_v8 = vmul.f32 0.0625, %v1819_v3  ;;  %v1816_v60 = vpop.xlane.xlu0 %1815  ;;  %v4524_v29 = vrot.slane %v3997_v13, %v20557_v14  ;;  %v1485_v13 = vld [vmem:[%s16477_s28 + $0x390] sm:$0xff] }
 0x286   : > { %v2570_v57 = vmul.f32 0.0625, %v2149_v37  ;;  %v2569_v4 = vmul.f32 0.0625, %v2146_v21  ;;  %v2459_v46 = vmul.f32 0.0625, %v1816_v60  ;;  %v4520_v25 = vsel %vm4274_vm11, %v4519_v63, %v4515_v18  ;;  %v20569_v60 = vld [vmem:[#allocation44_spill] sm:$0xff] }
 0x287   : > { %v4108_v58 = vunpack.c.h.b16 %v17942_v9  ;;  %v5067_v61 = vrot.slane %v4107_v51, %v20550_v27  ;;  %v4126_v19 = vunpack.c.h.b16 %v17952_v31  ;;  %v20558_v49 = vcombine.low %v17695_v12, %v17698_v34  ;;  %v20560_v9 = vld [vmem:[#allocation43_spill] sm:$0xff]  ;;  %v20561_v34 = vld [vmem:[#allocation32_spill] sm:$0xff] }
 0x288   : > { %v20559_v47 = vcombine.low %v17709_v62, %v17712_v22  ;;  %v5152_v40 = vsel %vm4274_vm11, %v5151_v23, %v5147_v59  ;;  %v5156_v37 = vrot.slane %v4125_v44, %v20557_v14  ;;  %v2688_v24 = vpack.c.bf16 %v2460_v8, %v2459_v46  ;;  %v2203_v48 = vpop.xlane.xlu1 %2202 }
 0x289   : > { %10702 = vmatpush1.bf16.xpose.msra.mxu0 %v20558_v49  ;;  %1968 = vadd.xlane.f32.xlu1 %v17779_v30  ;;  %v18000_v31 = vsel %vm1627_vm0, %v1486_v6, 0.0  ;;  %v4441_v12 = vsel %vm4274_vm11, %v4440_v11, %v4436_v26  ;;  %v4529_v50 = vrot.slane %v3998_v16, %v20561_v34  ;;  %v3981_v22 = vunpack.c.l.b16 %v17981_v43  ;;  %v2200_v21 = vpop.xlane.xlu0 %2199  ;;  %v20566_v30 = vld [vmem:[#allocation42_spill] sm:$0xff]  ;;  %v20568_v26 = vld [vmem:[#allocation33_spill] sm:$0xff] }
 0x28a   : > { %10866 = vmatpush1.bf16.xpose.msra.mxu1 %v20559_v47  ;;  %1965 = vadd.xlane.f32.xlu0 %v20560_v9  ;;  %v2588_v62 = vmul.f32 0.0625, %v2203_v48  ;;  %v20564_v28 = vcombine.high %v20562_v35, %v20563_v38  ;;  %v20567_v33 = vcombine.high %v20565_v5, %v20566_v30  ;;  %v4525_v18 = vsel %vm4281_vm12, %v4524_v29, %v4520_v25  ;;  %v20570_v6 = vld [vmem:[#allocation45_spill] sm:$0xff]  ;;  %v20571_v48 = vld [vmem:[#allocation34_spill] sm:$0xff] }
 0x28b   : > { %v18013_v63 = vpack.c.bf16 %v2570_v57, %v2569_v4  ;;  %v3999_v51 = vunpack.c.l.b16 %v2688_v24  ;;  %v2587_v59 = vmul.f32 0.0625, %v2200_v21  ;;  %v5068_v23 = vsel %vm4267_vm10, %v5067_v61, %v5063_v41  ;;  %v1596_v4 = vld [vmem:[%s16477_s28 + $0x708] sm:$0xff] }
 0x28c   : > { %10703 = vmatprep.subr.bf16.mxu0 %v20564_v28  ;;  %10867 = vmatprep.subr.bf16.mxu1 %v20567_v33  ;;  %v5072_v11 = vrot.slane %v4108_v58, %v20555_v39  ;;  %v5161_v44 = vrot.slane %v4126_v19, %v20561_v34  ;;  %v4000_v52 = vunpack.c.h.b16 %v2688_v24  ;;  %v5157_v3 = vsel %vm4281_vm12, %v5156_v37, %v5152_v40  ;;  %v1771_v29 = vpop.xlane.xlu1 %1770  ;;  %v1595_v19 = vld [vmem:[%s16477_s28 + $0x700] sm:$0xff] }
 0x28d   : > { %v4534_v16 = vrot.slane %v3999_v51, %v20568_v26  ;;  %v2752_v8 = vpack.c.bf16 %v2588_v62, %v2587_v59  ;;  %2352 = vadd.xlane.f32.xlu1 %v20569_v60  ;;  %v1970_v57 = vsel %vm1627_vm0, %v1485_v13, 0.0  ;;  %v4530_v41 = vsel %vm4288_vm13, %v4529_v50, %v4525_v18  ;;  %v1768_v61 = vpop.xlane.xlu0 %1767  ;;  %v20574_v13 = vld [vmem:[#allocation46_spill] sm:$0xff] }
 0x28e   : > { %2349 = vadd.xlane.f32.xlu0 %v20570_v6  ;;  %v3982_v46 = vunpack.c.h.b16 %v17981_v43  ;;  %v4445_v25 = vrot.slane %v3981_v22, %v20557_v14  ;;  %v2444_v58 = vmul.f32 0.0625, %v1771_v29  ;;  %v4109_v49 = vunpack.c.l.b16 %v18013_v63 }
 0x28f   : > { %v4127_v47 = vunpack.c.l.b16 %v2752_v8  ;;  %v4128_v40 = vunpack.c.h.b16 %v2752_v8  ;;  %v2443_v37 = vmul.f32 0.0625, %v1768_v61  ;;  %v5162_v24 = vsel %vm4288_vm13, %v5161_v44, %v5157_v3 }
 0x290   : > { %v4535_v9 = vsel %vm4295_vm14, %v4534_v16, %v4530_v41  ;;  %v4539_v50 = vrot.slane %v4000_v52, %v20571_v48  ;;  %v20572_v43 = vcombine.low %v20562_v35, %v20563_v38  ;;  %v20573_v22 = vcombine.low %v20565_v5, %v20566_v30  ;;  %v2155_v18 = vpop.xlane.xlu1 %2154  ;;  %v18045_v35 = vld [vmem:[%s16479_s10 + $0x410] sm:$0xff] }
 0x291   : > { %v2303_v62 = vsel %vm1627_vm0, %v1596_v4, 0.0  ;;  %v5166_v21 = vrot.slane %v4127_v47, %v20568_v26  ;;  %v5171_v28 = vrot.slane %v4128_v40, %v20571_v48  ;;  %v2680_v33 = vpack.c.bf16 %v2444_v58, %v2443_v37  ;;  %1920 = vadd.xlane.f32.xlu1 %v20574_v13  ;;  %v18048_v38 = vld [vmem:[%s16479_s10 + $0x430] sm:$0xff]  ;;  %v2152_v52 = vpop.xlane.xlu0 %2151  ;;  %v1614_v37 = vld [vmem:[%s16477_s28 + $0x798] sm:$0xff] }
 0x292   : > { %10704 = vmatpush1.bf16.xpose.msra.mxu0 %v20572_v43  ;;  %10868 = vmatpush1.bf16.xpose.msra.mxu1 %v20573_v22  ;;  %v2300_v51 = vsel %vm1627_vm0, %v1595_v19, 0.0  ;;  %v4446_v5 = vsel %vm4281_vm12, %v4445_v25, %v4441_v12  ;;  %v4450_v30 = vrot.slane %v3982_v46, %v20561_v34  ;;  %v4110_v59 = vunpack.c.h.b16 %v18013_v63 }
 0x293   : > { %1917 = vadd.xlane.f32.xlu0 %v17855_v36  ;;  %v2572_v44 = vmul.f32 0.0625, %v2155_v18  ;;  %10705 = vmatprep.subr.bf16.mxu0 %v14054_v15  ;;  %v5077_v36 = vrot.slane %v4109_v49, %v20557_v14  ;;  %v5167_v3 = vsel %vm4295_vm14, %v5166_v21, %v5162_v24  ;;  %v3983_v16 = vunpack.c.l.b16 %v2680_v33  ;;  %v1613_v24 = vld [vmem:[%s16477_s28 + $0x790] sm:$0xff] }
 0x294   : > { %10869 = vmatprep.subr.bf16.mxu1 %v14182_v54  ;;  %v2571_v12 = vmul.f32 0.0625, %v2152_v52  ;;  %v4540_v8 = vsel %vm4302_vm15, %v4539_v50, %v4535_v9  ;;  %v5172_v63 = vsel %vm4302_vm15, %v5171_v28, %v5167_v3  ;;  %v3984_v60 = vunpack.c.h.b16 %v2680_v33  ;;  %v1873_v41 = vpop.xlane.xlu1 %1872  ;;  %v1469_v28 = vld [vmem:[%s16477_s28 + $0x310] sm:$0xff] }
 0x295   : > { %v14064_v6 = vcombine.high %v18045_v35, %v18048_v38  ;;  %v5073_v15 = vsel %vm4274_vm11, %v5072_v11, %v5068_v23  ;;  %v5493_v29 = vsel %vm5489_vm8, %v5172_v63, %v4540_v8  ;;  %v4455_v54 = vrot.slane %v3983_v16, %v20568_v26  ;;  %1974 = vadd.xlane.f32.xlu1 %v18000_v31  ;;  %v1870_v19 = vpop.xlane.xlu0 %1869  ;;  %v18105_v18 = vld [vmem:[%s16479_s10 + $0x70] sm:$0xff] }
 0x296   : > { %v2744_v4 = vpack.c.bf16 %v2572_v44, %v2571_v12  ;;  %v4451_v46 = vsel %vm4288_vm13, %v4450_v30, %v4446_v5  ;;  %v5082_v25 = vrot.slane %v4110_v59, %v20561_v34  ;;  %v18071_v58 = vpack.c.b16 %v5493_v29, %v5493_v29  ;;  %v18111_v5 = vld [vmem:[%s16479_s10 + $0x470] sm:$0xff] }
 0x297   : > { %1971 = vadd.xlane.f32.xlu0 %v1970_v57  ;;  %v2478_v61 = vmul.f32 0.0625, %v1873_v41  ;;  %v5078_v23 = vsel %vm4281_vm12, %v5077_v36, %v5073_v15  ;;  %v2477_v47 = vmul.f32 0.0625, %v1870_v19  ;;  %v4456_v40 = vsel %vm4295_vm14, %v4455_v54, %v4451_v46  ;;  %v1488_v41 = vld [vmem:[%s16477_s28 + $0x3a8] sm:$0xff]  ;;  %v1487_v19 = vld [vmem:[%s16477_s28 + $0x3a0] sm:$0xff]  ;;  %v18550_v14 = vld [vmem:[%s16479_s10 + $0x770] sm:$0xff] }
 0x298   : > { %20575 = vst [vmem:[#allocation20_spill] sm:$0xff] %v18071_v58  ;;  %v4111_v11 = vunpack.c.l.b16 %v2744_v4  ;;  %v4112_v49 = vunpack.c.h.b16 %v2744_v4  ;;  %v4460_v31 = vrot.slane %v3984_v60, %v20571_v48  ;;  %10707 = vmatprep.mubr.bf16.mxu0 %v18071_v58  ;;  %10871 = vmatprep.mubr.bf16.mxu1 %v18071_v58  ;;  %v2257_v55 = vpop.xlane.xlu1 %2256  ;;  %v5083_v20 = vsel %vm4288_vm13, %v5082_v25, %v5078_v23  ;;  %v18141_v23 = vld [vmem:[%s16479_s10 + $0x90] sm:$0xff] }
 0x299   : > { %v18084_v50 = vpack.c.bf16 %v2478_v61, %v2477_v47  ;;  %2304 = vadd.xlane.f32.xlu1 %v2303_v62  ;;  %v2254_v43 = vpop.xlane.xlu0 %2253  ;;  %v2357_v2 = vsel %vm1627_vm0, %v1614_v37, 0.0  ;;  %v2354_v53 = vsel %vm1627_vm0, %v1613_v24, 0.0  ;;  %v18100_v62 = vld [vmem:[%s16479_s10 + $0x50] sm:$0xff]  ;;  %v13935_v44 = vcombine.low %v17934_v45, %v17937_v0  ;;  %v1598_v0 = vld [vmem:[%s16477_s28 + $0x718] sm:$0xff]  ;;  %20592 = vst [vmem:[#allocation37_spill] sm:$0xff] %v18550_v14 }
 0x29a   : > { %10706 = vmatpush1.bf16.xpose.msra.mxu0 %v14053_v42  ;;  %v5087_v57 = vrot.slane %v4111_v11, %v20568_v26  ;;  %v5092_v9 = vrot.slane %v4112_v49, %v20571_v48  ;;  %10870 = vmatpush1.bf16.xpose.msra.mxu1 %v14181_v56  ;;  %v2606_v42 = vmul.f32 0.0625, %v2257_v55  ;;  %v2605_v21 = vmul.f32 0.0625, %v2254_v43  ;;  %v1470_v56 = vld [vmem:[%s16477_s28 + $0x318] sm:$0xff]  ;;  %v18144_v11 = vld [vmem:[%s16479_s10 + $0xb0] sm:$0xff] }
 0x29b   : > { %2301 = vadd.xlane.f32.xlu0 %v2300_v51  ;;  %10716 = vmatprep.subr.bf16.mxu0 %v13936_v1  ;;  %v4461_v33 = vsel %vm4302_vm15, %v4460_v31, %v4456_v40  ;;  %v18108_v51 = vld [vmem:[%s16479_s10 + $0x450] sm:$0xff]  ;;  %v14063_v52 = vcombine.low %v18045_v35, %v18048_v38  ;;  %v1925_v12 = vsel %vm1627_vm0, %v1470_v56, 0.0  ;;  %v1922_v63 = vsel %vm1627_vm0, %v1469_v28, 0.0  ;;  %v1482_v26 = vld [vmem:[%s16477_s28 + $0x378] sm:$0xff] }
 0x29c   : > { %v5088_v22 = vsel %vm4295_vm14, %v5087_v57, %v5083_v20  ;;  %10880 = vmatprep.subr.bf16.mxu1 %v14064_v6  ;;  %v18114_v59 = vpack.c.bf16 %v2606_v42, %v2605_v21  ;;  %v1825_v1 = vpop.xlane.xlu1 %1824  ;;  %v13944_v60 = vcombine.high %v18100_v62, %v18105_v18  ;;  %v14072_v45 = vcombine.high %v18108_v51, %v18111_v5  ;;  %v1597_v35 = vld [vmem:[%s16477_s28 + $0x710] sm:$0xff]  ;;  %v20577_v57 = vld [vmem:[#allocation22_spill] sm:$0xff] }
 0x29d   : > { %v5093_v13 = vsel %vm4302_vm15, %v5092_v9, %v5088_v22  ;;  %2358 = vadd.xlane.f32.xlu1 %v2357_v2  ;;  %v2462_v3 = vmul.f32 0.0625, %v1825_v1  ;;  %v1822_v16 = vpop.xlane.xlu0 %1821  ;;  %v4017_v15 = vunpack.c.l.b16 %v18084_v50  ;;  %v4018_v29 = vunpack.c.h.b16 %v18084_v50  ;;  %v18147_v49 = vld [vmem:[%s16479_s10 + $0x490] sm:$0xff]  ;;  %v20578_v50 = vld [vmem:[#allocation23_spill] sm:$0xff] }
 0x29e   : > { %v5492_v30 = vsel %vm5489_vm8, %v5093_v13, %v4461_v33  ;;  %v2461_v8 = vmul.f32 0.0625, %v1822_v16  ;;  %v2309_v25 = vsel %vm1627_vm0, %v1598_v0, 0.0  ;;  %v2306_v61 = vsel %vm1627_vm0, %v1597_v35, 0.0  ;;  %v18150_v47 = vld [vmem:[%s16479_s10 + $0x4b0] sm:$0xff]  ;;  %v1616_v22 = vld [vmem:[%s16477_s28 + $0x7a8] sm:$0xff]  ;;  %v1615_v33 = vld [vmem:[%s16477_s28 + $0x7a0] sm:$0xff] }
 0x29f   : > { %v18120_v36 = vpack.c.b16 %v5492_v30, %v5492_v30  ;;  %2355 = vadd.xlane.f32.xlu0 %v2354_v53  ;;  %v13943_v31 = vcombine.low %v18100_v62, %v18105_v18  ;;  %v14071_v37 = vcombine.low %v18108_v51, %v18111_v5  ;;  %v1979_v24 = vsel %vm1627_vm0, %v1488_v41, 0.0  ;;  %v20579_v13 = vld [vmem:[#allocation24_spill] sm:$0xff]  ;;  %v20580_v51 = vld [vmem:[#allocation25_spill] sm:$0xff] }
 0x2a0   : > { %v18132_v38 = vpack.c.bf16 %v2462_v3, %v2461_v8  ;;  %v1879_v6 = vpop.xlane.xlu1 %1878  ;;  %v4623_v9 = vrot.slane %v4017_v15, %v20577_v57  ;;  %v4627_v55 = vrot.slane %v4018_v29, %v20578_v50  ;;  %v1976_v43 = vsel %vm1627_vm0, %v1487_v19, 0.0  ;;  %v1472_v8 = vld [vmem:[%s16477_s28 + $0x328] sm:$0xff]  ;;  %v18185_v15 = vld [vmem:[%s16479_s10 + $0x4d0] sm:$0xff] }
 0x2a1   : > { %20576 = vst [vmem:[#allocation18_spill] sm:$0xff] %v18120_v36  ;;  %10708 = vmatmul.mubr.bf16.vlgmr.msra.gmra.mrb[0].mxu0 %v18120_v36  ;;  %10872 = vmatmul.mubr.bf16.vlgmr.msra.gmra.mrb[0].mxu1 %v18120_v36  ;;  %v2480_v54 = vmul.f32 0.0625, %v1879_v6  ;;  %v1876_v4 = vpop.xlane.xlu0 %1875  ;;  %v13952_v21 = vcombine.high %v18141_v23, %v18144_v11  ;;  %v14080_v28 = vcombine.high %v18147_v49, %v18150_v47  ;;  %v2363_v30 = vsel %vm1627_vm0, %v1616_v22, 0.0  ;;  %v1471_v6 = vld [vmem:[%s16477_s28 + $0x320] sm:$0xff]  ;;  %v18188_v29 = vld [vmem:[%s16479_s10 + $0x4f0] sm:$0xff] }
 0x2a2   : > { %10717 = vmatpush1.bf16.xpose.msra.mxu0 %v13935_v44  ;;  %10881 = vmatpush1.bf16.xpose.msra.mxu1 %v14063_v52  ;;  %v2479_v46 = vmul.f32 0.0625, %v1876_v4  ;;  %v4628_v1 = vsel %vm4204_vm1, %v4627_v55, %v4623_v9  ;;  %v4145_v44 = vunpack.c.l.b16 %v18114_v59  ;;  %v4146_v52 = vunpack.c.h.b16 %v18114_v59 }
 0x2a3   : > { %1926 = vadd.xlane.f32.xlu1 %v1925_v12  ;;  %1923 = vadd.xlane.f32.xlu0 %v1922_v63  ;;  %v18176_v63 = vld [vmem:[%s16479_s10 + $0xd0] sm:$0xff]  ;;  %v2360_v59 = vsel %vm1627_vm0, %v1615_v33, 0.0  ;;  %v4002_v4 = vunpack.c.h.b16 %v18132_v38  ;;  %v1931_v19 = vsel %vm1627_vm0, %v1472_v8, 0.0  ;;  %vm20583_vm4 = vcmask 326912  }
 0x2a4   : > { %10718 = vmatprep.subr.bf16.mxu0 %v13944_v60  ;;  %10882 = vmatprep.subr.bf16.mxu1 %v14072_v45  ;;  %v2698_v40 = vpack.c.bf16 %v2480_v54, %v2479_v46  ;;  %v18179_v60 = vld [vmem:[%s16479_s10 + $0xf0] sm:$0xff]  ;;  %v4001_v54 = vunpack.c.l.b16 %v18132_v38  ;;  %v13951_v46 = vcombine.low %v18141_v23, %v18144_v11  ;;  %v5259_v38 = vrot.slane %v4146_v52, %v20578_v50  ;;  %v1599_v11 = vld [vmem:[%s16477_s28 + $0x720] sm:$0xff]  ;;  %vm20585_vm6 = vmmov %vm20583_vm4 }
 0x2a5   : > { %v2209_v20 = vpop.xlane.xlu1 %2208  ;;  %v2206_v42 = vpop.xlane.xlu0 %2205  ;;  %v1928_v23 = vsel %vm1627_vm0, %v1471_v6, 0.0  ;;  %v4548_v22 = vrot.slane %v4002_v4, %v20578_v50  ;;  %v18222_v52 = vld [vmem:[%s16479_s10 + $0x110] sm:$0xff]  ;;  %v14087_v6 = vcombine.low %v18185_v15, %v18188_v29  ;;  %vm20584_vm5 = vcmask 392512  }
 0x2a6   : > { %v4019_v2 = vunpack.c.l.b16 %v2698_v40  ;;  %v4020_v53 = vunpack.c.h.b16 %v2698_v40  ;;  %v2590_v56 = vmul.f32 0.0625, %v2209_v20  ;;  %v2589_v62 = vmul.f32 0.0625, %v2206_v42  ;;  %v1600_v40 = vld [vmem:[%s16477_s28 + $0x728] sm:$0xff]  ;;  %vm20586_vm7 = vmmov %vm20584_vm5 }
 0x2a7   : > { %2310 = vadd.xlane.f32.xlu1 %v2309_v25  ;;  %2307 = vadd.xlane.f32.xlu0 %v2306_v61  ;;  %v14079_v61 = vcombine.low %v18147_v49, %v18150_v47  ;;  %v14088_v49 = vcombine.high %v18185_v15, %v18188_v29 }
 0x2a8   : > { %v4632_v18 = vrot.slane %v4019_v2, %v20579_v13  ;;  %v4637_v5 = vrot.slane %v4020_v53, %v20580_v51  ;;  %v18172_v3 = vpack.c.bf16 %v2590_v56, %v2589_v62  ;;  %v1490_v62 = vld [vmem:[%s16477_s28 + $0x3b8] sm:$0xff] }
 0x2a9   : > { %v2263_v16 = vpop.xlane.xlu1 %2262  ;;  %v2260_v12 = vpop.xlane.xlu0 %2259 }
 0x2aa   : > { %10719 = vmatpush1.bf16.xpose.msra.mxu0 %v13943_v31  ;;  %10883 = vmatpush1.bf16.xpose.msra.mxu1 %v14071_v37  ;;  %v4633_v45 = vsel %vm4211_vm2, %v4632_v18, %v4628_v1  ;;  %v2608_v0 = vmul.f32 0.0625, %v2263_v16  ;;  %v2607_v35 = vmul.f32 0.0625, %v2260_v12  ;;  %v13960_v31 = vcombine.high %v18176_v63, %v18179_v60  ;;  %v18225_v16 = vld [vmem:[%s16479_s10 + $0x130] sm:$0xff] }
 0x2ab   : > { %1980 = vadd.xlane.f32.xlu1 %v1979_v24  ;;  %1977 = vadd.xlane.f32.xlu0 %v1976_v43  ;;  %v18193_v41 = vsel %vm4218_vm3, %v4637_v5, %v4633_v45  ;;  %v5255_v37 = vrot.slane %v4145_v44, %v20577_v57  ;;  %v4544_v43 = vrot.slane %v4001_v54, %v20577_v57  ;;  %v4129_v18 = vunpack.c.l.b16 %v18172_v3  ;;  %v18239_v54 = vld [vmem:[%s16479_s10 + $0x530] sm:$0xff] }
 0x2ac   : > { %10720 = vmatprep.subr.bf16.mxu0 %v13952_v21  ;;  %10884 = vmatprep.subr.bf16.mxu1 %v14080_v28  ;;  %v2762_v25 = vpack.c.bf16 %v2608_v0, %v2607_v35  ;;  %v2315_v21 = vsel %vm1627_vm0, %v1600_v40, 0.0  ;;  %v2312_v28 = vsel %vm1627_vm0, %v1599_v11, 0.0  ;;  %v4130_v5 = vunpack.c.h.b16 %v18172_v3  ;;  %v1489_v3 = vld [vmem:[%s16477_s28 + $0x3b0] sm:$0xff] }
 0x2ad   : > { %v5260_v33 = vsel %vm4204_vm1, %v5259_v38, %v5255_v37  ;;  %v13959_v44 = vcombine.low %v18176_v63, %v18179_v60  ;;  %v1985_v63 = vsel %vm1627_vm0, %v1490_v62, 0.0  ;;  %v18236_v60 = vld [vmem:[%s16479_s10 + $0x510] sm:$0xff]  ;;  %v4549_v4 = vsel %vm4204_vm1, %v4548_v22, %v4544_v43  ;;  %v1618_v38 = vld [vmem:[%s16477_s28 + $0x7b8] sm:$0xff] }
 0x2ae   : > { %v1831_v24 = vpop.xlane.xlu1 %1830  ;;  %v1828_v9 = vpop.xlane.xlu0 %1827  ;;  %v4147_v47 = vunpack.c.l.b16 %v2762_v25  ;;  %v4148_v55 = vunpack.c.h.b16 %v2762_v25  ;;  %v5180_v15 = vrot.slane %v4130_v5, %v20578_v50  ;;  %v1982_v37 = vsel %vm1627_vm0, %v1489_v3, 0.0  ;;  %v1617_v11 = vld [vmem:[%s16477_s28 + $0x7b0] sm:$0xff]  ;;  %v1474_v62 = vld [vmem:[%s16477_s28 + $0x338] sm:$0xff] }
 0x2af   : > { %2364 = vadd.xlane.f32.xlu1 %v2363_v30  ;;  %2361 = vadd.xlane.f32.xlu0 %v2360_v59  ;;  %v2464_v20 = vmul.f32 0.0625, %v1831_v24  ;;  %v2463_v42 = vmul.f32 0.0625, %v1828_v9  ;;  %v2369_v43 = vsel %vm1627_vm0, %v1618_v38, 0.0  ;;  %v13967_v3 = vcombine.low %v18222_v52, %v18225_v16  ;;  %v1602_v38 = vld [vmem:[%s16477_s28 + $0x738] sm:$0xff]  ;;  %v18506_v50 = vld [vmem:[%s16479_s10 + $0x330] sm:$0xff] }
 0x2b0   : > { %v5264_v2 = vrot.slane %v4147_v47, %v20579_v13  ;;  %v5269_v53 = vrot.slane %v4148_v55, %v20580_v51 }
 0x2b1   : > { %v2690_v56 = vpack.c.bf16 %v2464_v20, %v2463_v42 }
 0x2b2   : > { %10721 = vmatpush1.bf16.xpose.msra.mxu0 %v13951_v46  ;;  %10885 = vmatpush1.bf16.xpose.msra.mxu1 %v14079_v61  ;;  %v2215_v30 = vpop.xlane.xlu1 %2214  ;;  %v2212_v1 = vpop.xlane.xlu0 %2211  ;;  %v5265_v12 = vsel %vm4211_vm2, %v5264_v2, %v5260_v33  ;;  %v13968_v61 = vcombine.high %v18222_v52, %v18225_v16  ;;  %v1473_v33 = vld [vmem:[%s16477_s28 + $0x330] sm:$0xff] }
 0x2b3   : > { %1932 = vadd.xlane.f32.xlu1 %v1931_v19  ;;  %1929 = vadd.xlane.f32.xlu0 %v1928_v23  ;;  %v4003_v8 = vunpack.c.l.b16 %v2690_v56  ;;  %v4004_v45 = vunpack.c.h.b16 %v2690_v56  ;;  %v2592_v0 = vmul.f32 0.0625, %v2215_v30  ;;  %v18230_v35 = vsel %vm4218_vm3, %v5269_v53, %v5265_v12  ;;  %v18268_v12 = vld [vmem:[%s16479_s10 + $0x170] sm:$0xff] }
 0x2b4   : > { %10722 = vmatprep.subr.bf16.mxu0 %v13960_v31  ;;  %10886 = vmatprep.subr.bf16.mxu1 %v14088_v49  ;;  %v2591_v59 = vmul.f32 0.0625, %v2212_v1  ;;  %v5176_v19 = vrot.slane %v4129_v18, %v20577_v57  ;;  %v14096_v49 = vcombine.high %v18236_v60, %v18239_v54  ;;  %v18265_v18 = vld [vmem:[%s16479_s10 + $0x150] sm:$0xff]  ;;  %v1934_v52 = vsel %vm1627_vm0, %v1473_v33, 0.0 }
 0x2b5   : > { %v4553_v46 = vrot.slane %v4003_v8, %v20579_v13  ;;  %v4558_v25 = vrot.slane %v4004_v45, %v20580_v51  ;;  %v18271_v8 = vld [vmem:[%s16479_s10 + $0x550] sm:$0xff]  ;;  %v13976_v16 = vcombine.high %v18265_v18, %v18268_v12 }
 0x2b6   : > { %v2754_v29 = vpack.c.bf16 %v2592_v0, %v2591_v59  ;;  %v1885_v40 = vpop.xlane.xlu1 %1884  ;;  %v1882_v31 = vpop.xlane.xlu0 %1881  ;;  %v5181_v22 = vsel %vm4204_vm1, %v5180_v15, %v5176_v19  ;;  %v18274_v45 = vld [vmem:[%s16479_s10 + $0x570] sm:$0xff]  ;;  %v14095_v59 = vcombine.low %v18236_v60, %v18239_v54 }
 0x2b7   : > { %2316 = vadd.xlane.f32.xlu1 %v2315_v21  ;;  %2313 = vadd.xlane.f32.xlu0 %v2312_v28  ;;  %v4554_v24 = vsel %vm4211_vm2, %v4553_v46, %v4549_v4  ;;  %v2482_v9 = vmul.f32 0.0625, %v1885_v40  ;;  %v2481_v23 = vmul.f32 0.0625, %v1882_v31  ;;  %v2366_v28 = vsel %vm1627_vm0, %v1617_v11, 0.0  ;;  %v20582_v46 = vld [vmem:[#allocation27_spill] sm:$0xff]  ;;  %v2835_v33 = vld [vmem:[%s16479_s10 + $0x190] sm:$0xff] }
 0x2b8   : > { %v18255_v47 = vsel %vm4218_vm3, %v4558_v25, %v4554_v24  ;;  %v4131_v55 = vunpack.c.l.b16 %v2754_v29  ;;  %v4132_v20 = vunpack.c.h.b16 %v2754_v29  ;;  %v1937_v29 = vsel %vm1627_vm0, %v1474_v62, 0.0  ;;  %v1492_v62 = vld [vmem:[%s16477_s28 + $0x3c8] sm:$0xff]  ;;  %v18509_v57 = vld [vmem:[%s16479_s10 + $0x710] sm:$0xff] }
 0x2b9   : > { %v2699_v42 = vpack.c.bf16 %v2482_v9, %v2481_v23  ;;  %v14104_v60 = vcombine.high %v18271_v8, %v18274_v45  ;;  %v1601_v23 = vld [vmem:[%s16477_s28 + $0x730] sm:$0xff] }
 0x2ba   : > { %10723 = vmatpush1.bf16.xpose.msra.mxu0 %v13959_v44  ;;  %10887 = vmatpush1.bf16.xpose.msra.mxu1 %v14087_v6  ;;  %v5185_v21 = vrot.slane %v4131_v55, %v20579_v13  ;;  %v5190_v2 = vrot.slane %v4132_v20, %v20580_v51  ;;  %v2269_v53 = vpop.xlane.xlu1 %2268  ;;  %v2266_v56 = vpop.xlane.xlu0 %2265  ;;  %v18516_v13 = vld [vmem:[%s16479_s10 + $0x730] sm:$0xff] }
 0x2bb   : > { %1986 = vadd.xlane.f32.xlu1 %v1985_v63  ;;  %1983 = vadd.xlane.f32.xlu0 %v1982_v37  ;;  %v4021_v5 = vunpack.c.l.b16 %v2699_v42  ;;  %v4022_v30 = vunpack.c.h.b16 %v2699_v42  ;;  %v2610_v1 = vmul.f32 0.0625, %v2269_v53  ;;  %v2609_v44 = vmul.f32 0.0625, %v2266_v56  ;;  %v20581_v63 = vld [vmem:[#allocation26_spill] sm:$0xff] }
 0x2bc   : > { %10724 = vmatprep.subr.bf16.mxu0 %v13968_v61  ;;  %10888 = vmatprep.subr.bf16.mxu1 %v14096_v49  ;;  %v5186_v0 = vsel %vm4211_vm2, %v5185_v21, %v5181_v22  ;;  %v2321_v42 = vsel %vm1627_vm0, %v1602_v38, 0.0 }
 0x2bd   : > { %v18282_v6 = vsel %vm4218_vm3, %v5190_v2, %v5186_v0  ;;  %v4642_v4 = vrot.slane %v4021_v5, %v20581_v63  ;;  %v4647_v25 = vrot.slane %v4022_v30, %v20582_v46  ;;  %v2763_v61 = vpack.c.bf16 %v2610_v1, %v2609_v44  ;;  %v2839_v5 = vld [vmem:[%s16479_s10 + $0x1b0] sm:$0xff] }
 0x2be   : > { %v1837_v19 = vpop.xlane.xlu1 %1836  ;;  %v1834_v15 = vpop.xlane.xlu0 %1833  ;;  %v2318_v2 = vsel %vm1627_vm0, %v1601_v23, 0.0  ;;  %v13975_v1 = vcombine.low %v18265_v18, %v18268_v12  ;;  %v2963_v44 = vld [vmem:[%s16479_s10 + $0x590] sm:$0xff]  ;;  %v1991_v12 = vsel %vm1627_vm0, %v1492_v62, 0.0  ;;  %v1604_v62 = vld [vmem:[%s16477_s28 + $0x748] sm:$0xff] }
 0x2bf   : > { %2370 = vadd.xlane.f32.xlu1 %v2369_v43  ;;  %2367 = vadd.xlane.f32.xlu0 %v2366_v28  ;;  %v4643_v54 = vsel %vm20583_vm4, %v4642_v4, %v18193_v41  ;;  %v4149_v40 = vunpack.c.l.b16 %v2763_v61  ;;  %v4150_v31 = vunpack.c.h.b16 %v2763_v61  ;;  %v2466_v37 = vmul.f32 0.0625, %v1837_v19  ;;  %v2967_v0 = vld [vmem:[%s16479_s10 + $0x5b0] sm:$0xff] }
 0x2c0   : > { %v18296_v24 = vsel %vm20584_vm5, %v4647_v25, %v4643_v54  ;;  %v2465_v9 = vmul.f32 0.0625, %v1834_v15  ;;  %v14103_v61 = vcombine.low %v18271_v8, %v18274_v45  ;;  %v13984_v15 = vcombine.high %v2835_v33, %v2839_v5  ;;  %v1619_v45 = vld [vmem:[%s16477_s28 + $0x7c0] sm:$0xff] }
 0x2c1   : > { %v5274_v11 = vrot.slane %v4149_v40, %v20581_v63  ;;  %v5279_v49 = vrot.slane %v4150_v31, %v20582_v46  ;;  %v2372_v23 = vsel %vm1627_vm0, %v1619_v45, 0.0 }
 0x2c2   : > { %10725 = vmatpush1.bf16.xpose.msra.mxu0 %v13967_v3  ;;  %10889 = vmatpush1.bf16.xpose.msra.mxu1 %v14095_v59  ;;  %v2691_v55 = vpack.c.bf16 %v2466_v37, %v2465_v9  ;;  %v2221_v41 = vpop.xlane.xlu1 %2220  ;;  %v2218_v20 = vpop.xlane.xlu0 %2217 }
 0x2c3   : > { %1938 = vadd.xlane.f32.xlu1 %v1937_v29  ;;  %1935 = vadd.xlane.f32.xlu0 %v1934_v52  ;;  %v5275_v43 = vsel %vm20585_vm6, %v5274_v11, %v18230_v35  ;;  %v2594_v22 = vmul.f32 0.0625, %v2221_v41  ;;  %v2593_v21 = vmul.f32 0.0625, %v2218_v20  ;;  %v1491_v35 = vld [vmem:[%s16477_s28 + $0x3c0] sm:$0xff]  ;;  %vm20587_vm6 = vmmov %vm20583_vm4  ;;  %v1476_v11 = vld [vmem:[%s16477_s28 + $0x348] sm:$0xff]  ;;  %v13983_v41 = vcombine.low %v2835_v33, %v2839_v5 }
 0x2c4   : > { %10726 = vmatprep.subr.bf16.mxu0 %v13976_v16  ;;  %10890 = vmatprep.subr.bf16.mxu1 %v14104_v60  ;;  %v18306_v53 = vsel %vm20586_vm7, %v5279_v49, %v5275_v43  ;;  %v4005_v56 = vunpack.c.l.b16 %v2691_v55  ;;  %v4006_v28 = vunpack.c.h.b16 %v2691_v55  ;;  %v1988_v52 = vsel %vm1627_vm0, %v1491_v35, 0.0  ;;  %v1620_v16 = vld [vmem:[%s16477_s28 + $0x7c8] sm:$0xff]  ;;  %vm20588_vm7 = vmmov %vm20584_vm5  ;;  %v2843_v49 = vld [vmem:[%s16479_s10 + $0x1d0] sm:$0xff] }
 0x2c5   : > { %v2755_v30 = vpack.c.bf16 %v2594_v22, %v2593_v21  ;;  %v14112_v60 = vcombine.high %v2963_v44, %v2967_v0  ;;  %v2375_v38 = vsel %vm1627_vm0, %v1620_v16, 0.0  ;;  %v2847_v55 = vld [vmem:[%s16479_s10 + $0x1f0] sm:$0xff]  ;;  %v1475_v20 = vld [vmem:[%s16477_s28 + $0x340] sm:$0xff]  ;;  %v14111_v21 = vcombine.low %v2963_v44, %v2967_v0  ;;  %v1494_v0 = vld [vmem:[%s16477_s28 + $0x3d8] sm:$0xff] }
 0x2c6   : > { %v4563_v3 = vrot.slane %v4005_v56, %v20581_v63  ;;  %v4568_v59 = vrot.slane %v4006_v28, %v20582_v46  ;;  %v18318_v4 = vpop.xlane.xlu1 %1890  ;;  %v18320_v25 = vpop.xlane.xlu0 %1887  ;;  %v2975_v43 = vld [vmem:[%s16479_s10 + $0x5f0] sm:$0xff]  ;;  %v13992_v56 = vcombine.high %v2843_v49, %v2847_v55  ;;  %v1940_v28 = vsel %vm1627_vm0, %v1475_v20, 0.0  ;;  %v1603_v5 = vld [vmem:[%s16477_s28 + $0x740] sm:$0xff] }
 0x2c7   : > { %2322 = vadd.xlane.f32.xlu1 %v2321_v42  ;;  %2319 = vadd.xlane.f32.xlu0 %v2318_v2  ;;  %v4133_v19 = vunpack.c.l.b16 %v2755_v30  ;;  %v4134_v18 = vunpack.c.h.b16 %v2755_v30  ;;  %v2971_v42 = vld [vmem:[%s16479_s10 + $0x5d0] sm:$0xff]  ;;  %v1943_v2 = vsel %vm1627_vm0, %v1476_v11, 0.0  ;;  %v2327_v35 = vsel %vm1627_vm0, %v1604_v62, 0.0 }
 0x2c8   : > { %v4564_v29 = vsel %vm20583_vm4, %v4563_v3, %v18255_v47  ;;  %v14120_v33 = vcombine.high %v2971_v42, %v2975_v43  ;;  %v2324_v44 = vsel %vm1627_vm0, %v1603_v5, 0.0  ;;  %v2851_v3 = vld [vmem:[%s16479_s10 + $0x210] sm:$0xff]  ;;  %v1997_v16 = vsel %vm1627_vm0, %v1494_v0, 0.0 }
 0x2c9   : > { %v18330_v54 = vsel %vm20584_vm5, %v4568_v59, %v4564_v29  ;;  %v5195_v40 = vrot.slane %v4133_v19, %v20581_v63  ;;  %v5200_v8 = vrot.slane %v4134_v18, %v20582_v46  ;;  %v2855_v59 = vld [vmem:[%s16479_s10 + $0x230] sm:$0xff]  ;;  %vm20601_vm4 = vcmask 458112  }
 0x2ca   : > { %10727 = vmatpush1.bf16.xpose.msra.mxu0 %v13975_v1  ;;  %10891 = vmatpush1.bf16.xpose.msra.mxu1 %v14103_v61  ;;  %v18335_v47 = vpop.xlane.xlu1 %2274  ;;  %v18337_v31 = vpop.xlane.xlu0 %2271  ;;  %v13991_v61 = vcombine.low %v2843_v49, %v2847_v55  ;;  %v1493_v19 = vld [vmem:[%s16477_s28 + $0x3d0] sm:$0xff]  ;;  %v1478_v49 = vld [vmem:[%s16477_s28 + $0x358] sm:$0xff]  ;;  %vm20603_vm5 = vmmov %vm20601_vm4 }
 0x2cb   : > { %1992 = vadd.xlane.f32.xlu1 %v1991_v12  ;;  %v5196_v37 = vsel %vm20587_vm6, %v5195_v40, %v18282_v6  ;;  %1989 = vadd.xlane.f32.xlu0 %v1988_v52  ;;  %v2979_v18 = vld [vmem:[%s16479_s10 + $0x610] sm:$0xff]  ;;  %v14119_v52 = vcombine.low %v2971_v42, %v2975_v43  ;;  %v1994_v40 = vsel %vm1627_vm0, %v1493_v19, 0.0  ;;  %v13999_v43 = vcombine.low %v2851_v3, %v2855_v59  ;;  %vm20604_vm6 = vmmov %vm20601_vm4 }
 0x2cc   : > { %10728 = vmatprep.subr.bf16.mxu0 %v13984_v15  ;;  %v18343_v9 = vsel %vm20588_vm7, %v5200_v8, %v5196_v37  ;;  %10892 = vmatprep.subr.bf16.mxu1 %v14112_v60  ;;  %v2983_v12 = vld [vmem:[%s16479_s10 + $0x630] sm:$0xff]  ;;  %v14000_v60 = vcombine.high %v2851_v3, %v2855_v59  ;;  %v1622_v8 = vld [vmem:[%s16477_s28 + $0x7d8] sm:$0xff]  ;;  %v1949_v0 = vsel %vm1627_vm0, %v1478_v49, 0.0  ;;  %v1624_v59 = vld [vmem:[%s16477_s28 + $0x7e8] sm:$0xff]  ;;  %v2612_v58 = vmul.f32 0.0625, %v18335_v47 }
 0x2cd   : > { %v14128_v45 = vcombine.high %v2979_v18, %v2983_v12  ;;  %v1621_v37 = vld [vmem:[%s16477_s28 + $0x7d0] sm:$0xff]  ;;  %v2381_v11 = vsel %vm1627_vm0, %v1622_v8, 0.0  ;;  %v2611_v46 = vmul.f32 0.0625, %v18337_v31  ;;  %vm20605_vm7 = vmmov %vm20601_vm4 }
 0x2ce   : > { %v18352_v6 = vpop.xlane.xlu1 %1842  ;;  %v18354_v22 = vpop.xlane.xlu0 %1839  ;;  %v2378_v55 = vsel %vm1627_vm0, %v1621_v37, 0.0  ;;  %v18389_v20 = vld [vmem:[%s16479_s10 + $0x250] sm:$0xff]  ;;  %v1480_v37 = vld [vmem:[%s16477_s28 + $0x368] sm:$0xff] }
 0x2cf   : > { %2376 = vadd.xlane.f32.xlu1 %v2375_v38  ;;  %2373 = vadd.xlane.f32.xlu0 %v2372_v23  ;;  %v18392_v42 = vld [vmem:[%s16479_s10 + $0x270] sm:$0xff]  ;;  %v2467_v48 = vmul.f32 0.0625, %v18354_v22 }
 0x2d0   : > { %v1605_v5 = vld [vmem:[%s16477_s28 + $0x750] sm:$0xff]  ;;  %v14008_v3 = vcombine.high %v18389_v20, %v18392_v42 }
 0x2d1   : > { %v18414_v19 = vld [vmem:[%s16479_s10 + $0x290] sm:$0xff]  ;;  %v2330_v8 = vsel %vm1627_vm0, %v1605_v5, 0.0 }
 0x2d2   : > { %10729 = vmatpush1.bf16.xpose.msra.mxu0 %v13983_v41  ;;  %10893 = vmatpush1.bf16.xpose.msra.mxu1 %v14111_v21  ;;  %v18360_v30 = vpop.xlane.xlu1 %2226  ;;  %v18362_v1 = vpop.xlane.xlu0 %2223  ;;  %v1477_v41 = vld [vmem:[%s16477_s28 + $0x350] sm:$0xff]  ;;  %v1606_v21 = vld [vmem:[%s16477_s28 + $0x758] sm:$0xff] }
 0x2d3   : > { %1944 = vadd.xlane.f32.xlu1 %v1943_v2  ;;  %1941 = vadd.xlane.f32.xlu0 %v1940_v28  ;;  %v18396_v2 = vld [vmem:[%s16479_s10 + $0x650] sm:$0xff]  ;;  %v2596_v31 = vmul.f32 0.0625, %v18360_v30 }
 0x2d4   : > { %10730 = vmatprep.subr.bf16.mxu0 %v13992_v56  ;;  %10894 = vmatprep.subr.bf16.mxu1 %v14120_v33  ;;  %v18399_v56 = vld [vmem:[%s16479_s10 + $0x670] sm:$0xff]  ;;  %v14127_v33 = vcombine.low %v2979_v18, %v2983_v12 }
 0x2d5   : > { %v14136_v18 = vcombine.high %v18396_v2, %v18399_v56  ;;  %v18420_v12 = vld [vmem:[%s16479_s10 + $0x2b0] sm:$0xff] }
 0x2d6   : > { %v18372_v15 = vpop.xlane.xlu1 %1896  ;;  %v18374_v29 = vpop.xlane.xlu0 %1893  ;;  %v18450_v5 = vld [vmem:[%s16479_s10 + $0x2d0] sm:$0xff] }
 0x2d7   : > { %2328 = vadd.xlane.f32.xlu1 %v2327_v35  ;;  %2325 = vadd.xlane.f32.xlu0 %v2324_v44  ;;  %v1496_v35 = vld [vmem:[%s16477_s28 + $0x3e8] sm:$0xff]  ;;  %v1495_v44 = vld [vmem:[%s16477_s28 + $0x3e0] sm:$0xff]  ;;  %v1625_v63 = vld [vmem:[%s16477_s28 + $0x7f0] sm:$0xff] }
 0x2d8   : > { %v1481_v22 = vld [vmem:[%s16477_s28 + $0x370] sm:$0xff] }
 0x2d9   : > { %v18531_v30 = vld [vmem:[%s16479_s10 + $0x350] sm:$0xff] }
 0x2da   : > { %10731 = vmatpush1.bf16.xpose.msra.mxu0 %v13991_v61  ;;  %10895 = vmatpush1.bf16.xpose.msra.mxu1 %v14119_v52  ;;  %v18380_v38 = vpop.xlane.xlu1 %2280  ;;  %v18382_v23 = vpop.xlane.xlu0 %2277  ;;  %v1623_v61 = vld [vmem:[%s16477_s28 + $0x7e0] sm:$0xff]  ;;  %v1946_v52 = vsel %vm1627_vm0, %v1477_v41, 0.0  ;;  %v14135_v41 = vcombine.low %v18396_v2, %v18399_v56  ;;  %v14016_v56 = vcombine.high %v18414_v19, %v18420_v12  ;;  %v18473_v2 = vsel %vm1627_vm0, %v1480_v37, 0.0  ;;  %v1626_v37 = vld [vmem:[%s16477_s28 + $0x7f8] sm:$0xff] }
 0x2db   : > { %1998 = vadd.xlane.f32.xlu1 %v1997_v16  ;;  %1995 = vadd.xlane.f32.xlu0 %v1994_v40  ;;  %v18423_v16 = vld [vmem:[%s16479_s10 + $0x690] sm:$0xff]  ;;  %v2333_v40 = vsel %vm1627_vm0, %v1606_v21, 0.0  ;;  %v18442_v21 = vsel %vm1627_vm0, %v1495_v44, 0.0 }
 0x2dc   : > { %10732 = vmatprep.subr.bf16.mxu0 %v14000_v60  ;;  %10896 = vmatprep.subr.bf16.mxu1 %v14128_v45  ;;  %v18426_v60 = vld [vmem:[%s16479_s10 + $0x6b0] sm:$0xff]  ;;  %v14007_v45 = vcombine.low %v18389_v20, %v18392_v42  ;;  %v18445_v20 = vsel %vm1627_vm0, %v1624_v59, 0.0  ;;  %v1608_v42 = vld [vmem:[%s16477_s28 + $0x768] sm:$0xff] }
 0x2dd   : > { %v18462_v44 = vld [vmem:[%s16479_s10 + $0x2f0] sm:$0xff] }
 0x2de   : > { %v18401_v28 = vpop.xlane.xlu1 %1848  ;;  %v18403_v62 = vpop.xlane.xlu0 %1845  ;;  %v18465_v59 = vld [vmem:[%s16479_s10 + $0x6d0] sm:$0xff] }
 0x2df   : > { %2382 = vadd.xlane.f32.xlu1 %v2381_v11  ;;  %2379 = vadd.xlane.f32.xlu0 %v2378_v55  ;;  %v1479_v11 = vld [vmem:[%s16477_s28 + $0x360] sm:$0xff] }
 0x2e0   : > { %v18476_v36 = vsel %vm1627_vm0, %v1479_v11, 0.0 }
 0x2e2   : > { %10733 = vmatpush1.bf16.xpose.msra.mxu0 %v13999_v43  ;;  %10897 = vmatpush1.bf16.xpose.msra.mxu1 %v14127_v33  ;;  %v18434_v49 = vpop.xlane.xlu1 %2232  ;;  %v18436_v55 = vpop.xlane.xlu0 %2229  ;;  %v2003_v43 = vsel %vm1627_vm0, %v1496_v35, 0.0  ;;  %v1607_v33 = vld [vmem:[%s16477_s28 + $0x760] sm:$0xff]  ;;  %v1498_v35 = vld [vmem:[%s16477_s28 + $0x3f8] sm:$0xff] }
 0x2e3   : > { %1950 = vadd.xlane.f32.xlu1 %v1949_v0  ;;  %1947 = vadd.xlane.f32.xlu0 %v1946_v52  ;;  %v18453_v0 = vsel %vm1627_vm0, %v1623_v61, 0.0  ;;  %v2484_v61 = vmul.f32 0.0625, %v18318_v4  ;;  %v2483_v52 = vmul.f32 0.0625, %v18320_v25  ;;  %v14144_v4 = vcombine.high %v18423_v16, %v18426_v60 }
 0x2e4   : > { %10734 = vmatprep.subr.bf16.mxu0 %v14008_v3  ;;  %v18468_v3 = vld [vmem:[%s16479_s10 + $0x6f0] sm:$0xff]  ;;  %10898 = vmatprep.subr.bf16.mxu1 %v14136_v18  ;;  %v18484_v25 = vsel %vm1627_vm0, %v1608_v42, 0.0  ;;  %v18494_v47 = vsel %vm1627_vm0, %v1607_v33, 0.0  ;;  %v2468_v33 = vmul.f32 0.0625, %v18352_v6  ;;  %v2595_v42 = vmul.f32 0.0625, %v18362_v1 }
 0x2e5   : > { %v1497_v18 = vld [vmem:[%s16477_s28 + $0x3f0] sm:$0xff]  ;;  %v18519_v34 = vpack.c.bf16 %v2484_v61, %v2483_v52  ;;  %v18524_v39 = vsel %vm1627_vm0, %v1498_v35, 0.0  ;;  %v18539_v61 = vsel %vm1627_vm0, %v1626_v37, 0.0  ;;  %v18542_v52 = vsel %vm1627_vm0, %v1625_v63, 0.0 }
 0x2e6   : > { %v18489_v11 = vpop.xlane.xlu1 %1902  ;;  %v18491_v51 = vpop.xlane.xlu0 %1899  ;;  %v18527_v6 = vsel %vm1627_vm0, %v1497_v18, 0.0  ;;  %v18534_v1 = vld [vmem:[%s16479_s10 + $0x370] sm:$0xff]  ;;  %20590 = vst [vmem:[#allocation28_spill] sm:$0xff] %v18542_v52  ;;  %v18563_v35 = vsel %vm1627_vm0, %v1482_v26, 0.0  ;;  %v18571_v27 = vpack.c.bf16 %v2468_v33, %v2467_v48  ;;  %v18573_v52 = vpack.c.bf16 %v2596_v31, %v2595_v42 }
 0x2e7   : > { %2334 = vadd.xlane.f32.xlu1 %v2333_v40  ;;  %v18503_v40 = vld [vmem:[%s16479_s10 + $0x310] sm:$0xff]  ;;  %2331 = vadd.xlane.f32.xlu0 %v2330_v8  ;;  %20589 = vst [vmem:[#allocation19_spill] sm:$0xff] %v18534_v1  ;;  %v18536_v8 = vpack.c.bf16 %v2612_v58, %v2611_v46  ;;  %v18577_v63 = vsel %vm1627_vm0, %v1481_v22, 0.0  ;;  %v4023_v48 = vunpack.c.l.b16 %v18519_v34  ;;  %v2486_v33 = vmul.f32 0.0625, %v18372_v15 }
 0x2e8   : > { %v18547_v18 = vld [vmem:[%s16479_s10 + $0x750] sm:$0xff]  ;;  %20595 = vst [vmem:[#allocation39_spill] sm:$0xff] %v18577_v63  ;;  %v2485_v22 = vmul.f32 0.0625, %v18374_v29  ;;  %v4024_v31 = vunpack.c.h.b16 %v18519_v34  ;;  %v4007_v14 = vunpack.c.l.b16 %v18571_v27  ;;  %v2614_v34 = vmul.f32 0.0625, %v18380_v38  ;;  %v1610_v29 = vld [vmem:[%s16477_s28 + $0x778] sm:$0xff] }
 0x2e9   : > { %20591 = vst [vmem:[#allocation21_spill] sm:$0xff] %v18547_v18  ;;  %v18582_v37 = vld [vmem:[%s16479_s10 + $0x790] sm:$0xff]  ;;  %v4151_v42 = vunpack.c.l.b16 %v18536_v8  ;;  %v4135_v18 = vunpack.c.l.b16 %v18573_v52  ;;  %v4652_v1 = vrot.slane %v4023_v48, %v16939_v7  ;;  %v2470_v15 = vmul.f32 0.0625, %v18401_v28 }
 0x2ea   : > { %10735 = vmatpush1.bf16.xpose.msra.mxu0 %v14007_v45  ;;  %10899 = vmatpush1.bf16.xpose.msra.mxu1 %v14135_v41  ;;  %v18552_v58 = vpop.xlane.xlu1 %2286  ;;  %v18554_v46 = vpop.xlane.xlu0 %2283  ;;  %v18566_v41 = vld [vmem:[%s16479_s10 + $0x390] sm:$0xff]  ;;  %20596 = vst [vmem:[#allocation40_spill] sm:$0xff] %v18582_v37  ;;  %v4008_v38 = vunpack.c.h.b16 %v18571_v27  ;;  %v4657_v28 = vrot.slane %v4024_v31, %v16942_v10  ;;  %v2597_v48 = vmul.f32 0.0625, %v18436_v55 }
 0x2eb   : > { %2004 = vadd.xlane.f32.xlu1 %v2003_v43  ;;  %20593 = vst [vmem:[#allocation38_spill] sm:$0xff] %v18566_v41  ;;  %v18569_v43 = vld [vmem:[%s16479_s10 + $0x3b0] sm:$0xff]  ;;  %2001 = vadd.xlane.f32.xlu0 %v18442_v21  ;;  %v5284_v37 = vrot.slane %v4151_v42, %v16939_v7  ;;  %v18631_v41 = vpack.c.bf16 %v2486_v33, %v2485_v22 }
 0x2ec   : > { %20594 = vst [vmem:[#allocation43_spill] sm:$0xff] %v18569_v43  ;;  %10736 = vmatprep.subr.bf16.mxu0 %v14016_v56  ;;  %v18585_v45 = vld [vmem:[%s16479_s10 + $0x7b0] sm:$0xff]  ;;  %10900 = vmatprep.subr.bf16.mxu1 %v14144_v4  ;;  %v2469_v43 = vmul.f32 0.0625, %v18403_v62  ;;  %v4136_v62 = vunpack.c.h.b16 %v18573_v52  ;;  %v4578_v33 = vrot.slane %v4008_v38, %v16942_v10 }
 0x2ed   : > { %20597 = vst [vmem:[#allocation41_spill] sm:$0xff] %v18585_v45  ;;  %v18600_v63 = vld [vmem:[%s16479_s10 + $0x3d0] sm:$0xff]  ;;  %v4152_v45 = vunpack.c.h.b16 %v18536_v8  ;;  %v20599_v8 = vcombine.low %v18423_v16, %v18426_v60  ;;  %v20600_v16 = vcombine.high %v18450_v5, %v18462_v44  ;;  %v18657_v60 = vsel %vm1627_vm0, %v1610_v29, 0.0 }
 0x2ee   : > { %v18603_v4 = vld [vmem:[%s16479_s10 + $0x3f0] sm:$0xff]  ;;  %v18607_v21 = vpop.xlane.xlu1 %1854  ;;  %v18609_v56 = vpop.xlane.xlu0 %1851  ;;  %v18661_v55 = vpack.c.bf16 %v2470_v15, %v2469_v43  ;;  %v4025_v22 = vunpack.c.l.b16 %v18631_v41  ;;  %v2616_v43 = vmul.f32 0.0625, %v18552_v58  ;;  %v2615_v15 = vmul.f32 0.0625, %v18554_v46 }
 0x2ef   : > { %2388 = vadd.xlane.f32.xlu1 %v18445_v20  ;;  %v2613_v20 = vmul.f32 0.0625, %v18382_v23  ;;  %2385 = vadd.xlane.f32.xlu0 %v18453_v0  ;;  %v14055_v26 = vcombine.low %v18600_v63, %v18603_v4  ;;  %v20598_v23 = vcombine.low %v18414_v19, %v18420_v12  ;;  %v2598_v0 = vmul.f32 0.0625, %v18434_v49 }
 0x2f0   : > { %v4573_v19 = vrot.slane %v4007_v14, %v16939_v7  ;;  %v5205_v12 = vrot.slane %v4135_v18, %v16939_v7  ;;  %v4653_v49 = vsel %vm20601_vm4, %v4652_v1, %v18296_v24  ;;  %v2488_v14 = vmul.f32 0.0625, %v18489_v11  ;;  %v18674_v24 = vld [vmem:[%s16479_s10 + $0x7d0] sm:$0xff] }
 0x2f1   : > { %v18650_v52 = vpack.c.bf16 %v2614_v34, %v2613_v20  ;;  %v20602_v18 = vcombine.high %v18465_v59, %v18468_v3  ;;  %v5289_v31 = vrot.slane %v4152_v45, %v16942_v10  ;;  %v18677_v1 = vld [vmem:[%s16479_s10 + $0x7f0] sm:$0xff]  ;;  %v5210_v11 = vrot.slane %v4136_v62, %v16942_v10 }
 0x2f2   : > { %10737 = vmatpush1.bf16.xpose.msra.mxu0 %v20598_v23  ;;  %10901 = vmatpush1.bf16.xpose.msra.mxu1 %v20599_v8  ;;  %v18644_v27 = vpop.xlane.xlu1 %2238  ;;  %v18646_v42 = vpop.xlane.xlu0 %2235  ;;  %v4574_v45 = vsel %vm20604_vm6, %v4573_v19, %v18330_v54  ;;  %v5206_v29 = vsel %vm20605_vm7, %v5205_v12, %v18343_v9  ;;  %v14056_v20 = vcombine.high %v18600_v63, %v18603_v4  ;;  %v4009_v58 = vunpack.c.l.b16 %v18661_v55 }
 0x2f3   : > { %1956 = vadd.xlane.f32.xlu1 %v18473_v2  ;;  %1953 = vadd.xlane.f32.xlu0 %v18476_v36  ;;  %v2487_v2 = vmul.f32 0.0625, %v18491_v51  ;;  %v5285_v36 = vsel %vm20603_vm5, %v5284_v37, %v18306_v53  ;;  %v2757_v51 = vpack.c.bf16 %v2598_v0, %v2597_v48  ;;  %v4153_v34 = vunpack.c.l.b16 %v18650_v52 }
 0x2f4   : > { %10738 = vmatprep.subr.bf16.mxu0 %v20600_v16  ;;  %10902 = vmatprep.subr.bf16.mxu1 %v20602_v18  ;;  %v14184_v54 = vcombine.high %v18674_v24, %v18677_v1  ;;  %vm20606_vm4 = vcmask 523712   ;;  %v4026_v23 = vunpack.c.h.b16 %v18631_v41  ;;  %v20608_v62 = vcombine.low %v18450_v5, %v18462_v44 }
 0x2f5   : > { %v18692_v46 = vpack.c.bf16 %v2488_v14, %v2487_v2  ;;  %v4658_v38 = vsel %vm20606_vm4, %v4657_v28, %v4653_v49  ;;  %vm20607_vm5 = vmmov %vm20606_vm4  ;;  %v4137_v8 = vunpack.c.l.b16 %v2757_v51  ;;  %v18707_v19 = vpack.c.bf16 %v2616_v43, %v2615_v15 }
 0x2f6   : > { %v1909_v53 = vpop.xlane.xlu1 %1908  ;;  %v1906_v37 = vpop.xlane.xlu0 %1905  ;;  %v5290_v9 = vsel %vm20607_vm5, %v5289_v31, %v5285_v36  ;;  %vm20609_vm6 = vmmov %vm20606_vm4  ;;  %v20611_v28 = vcombine.low %v18465_v59, %v18468_v3  ;;  %v4154_v16 = vunpack.c.h.b16 %v18650_v52  ;;  %v5294_v5 = vrot.slane %v4153_v34, %v16952_v17 }
 0x2f7   : > { %2340 = vadd.xlane.f32.xlu1 %v18484_v25  ;;  %2337 = vadd.xlane.f32.xlu0 %v18494_v47  ;;  %v14183_v25 = vcombine.low %v18674_v24, %v18677_v1  ;;  %v4662_v47 = vrot.slane %v4025_v22, %v16952_v17  ;;  %v4579_v0 = vsel %vm20609_vm6, %v4578_v33, %v4574_v45  ;;  %vm20610_vm7 = vmmov %vm20606_vm4  ;;  %v2472_v44 = vmul.f32 0.0625, %v18607_v21  ;;  %v1609_v45 = vld [vmem:[%s16477_s28 + $0x770] sm:$0xff]  ;;  %v2924_v24 = vld [vmem:[%s16479_s10 + $0x458] sm:$0xff] }
 0x2f8   : > { %v5211_v48 = vsel %vm20610_vm7, %v5210_v11, %v5206_v29  ;;  %v2471_v49 = vmul.f32 0.0625, %v18609_v56  ;;  %v20612_v14 = vcombine.high %v18503_v40, %v18506_v50  ;;  %v4010_v59 = vunpack.c.h.b16 %v18661_v55  ;;  %v2928_v1 = vld [vmem:[%s16479_s10 + $0x478] sm:$0xff] }
 0x2f9   : > { %v4138_v3 = vunpack.c.h.b16 %v2757_v51  ;;  %v4027_v2 = vunpack.c.l.b16 %v18692_v46  ;;  %v20613_v52 = vcombine.high %v18509_v57, %v18516_v13  ;;  %vm20614_vm4 = vcmask 589312  }
 0x2fa   : > { %10739 = vmatpush1.bf16.xpose.msra.mxu0 %v20608_v62  ;;  %10903 = vmatpush1.bf16.xpose.msra.mxu1 %v20611_v28  ;;  %v2293_v41 = vpop.xlane.xlu1 %2292  ;;  %v2290_v12 = vpop.xlane.xlu0 %2289  ;;  %v4663_v21 = vsel %vm20614_vm4, %v4662_v47, %v4658_v38  ;;  %v2490_v56 = vmul.f32 0.0625, %v1909_v53  ;;  %v2489_v18 = vmul.f32 0.0625, %v1906_v37  ;;  %v5215_v36 = vrot.slane %v4137_v8, %v16952_v17  ;;  %vm20615_vm5 = vmmov %vm20614_vm4  ;;  %v20616_v37 = vld [vmem:[#allocation28_spill] sm:$0xff]  ;;  %v18756_v28 = vld [vmem:[%s16479_s10 + $0x418] sm:$0xff] }
 0x2fb   : > { %2010 = vadd.xlane.f32.xlu1 %v18524_v39  ;;  %2007 = vadd.xlane.f32.xlu0 %v18527_v6  ;;  %v4583_v39 = vrot.slane %v4009_v58, %v16952_v17  ;;  %v4667_v6 = vrot.slane %v4026_v23, %v20543_v32  ;;  %v4155_v55 = vunpack.c.l.b16 %v18707_v19  ;;  %v2618_v31 = vmul.f32 0.0625, %v2293_v41  ;;  %vm20617_vm6 = vmmov %vm20614_vm4  ;;  %v20618_v58 = vld [vmem:[#allocation29_spill] sm:$0xff] }
 0x2fc   : > { %10740 = vmatprep.subr.bf16.mxu0 %v20612_v14  ;;  %10904 = vmatprep.subr.bf16.mxu1 %v20613_v52  ;;  %v2617_v33 = vmul.f32 0.0625, %v2290_v12  ;;  %v5295_v51 = vsel %vm20615_vm5, %v5294_v5, %v5290_v9  ;;  %v5299_v43 = vrot.slane %v4154_v16, %v20543_v32  ;;  %v4028_v15 = vunpack.c.h.b16 %v18692_v46  ;;  %v18744_v9 = vld [vmem:[%s16479_s10 + $0x18] sm:$0xff]  ;;  %vm20620_vm7 = vmmov %vm20614_vm4  ;;  %v20623_v14 = vld [vmem:[#allocation39_spill] sm:$0xff] }
 0x2fd   : > { %v18735_v53 = vpack.c.bf16 %v2472_v44, %v2471_v49  ;;  %v4584_v29 = vsel %vm20617_vm6, %v4583_v39, %v4579_v0  ;;  %v4588_v34 = vrot.slane %v4010_v59, %v20543_v32  ;;  %v4672_v38 = vrot.slane %v4027_v2, %v20618_v58  ;;  %v18747_v23 = vld [vmem:[%s16479_s10 + $0x38] sm:$0xff]  ;;  %v20624_v59 = vld [vmem:[#allocation19_spill] sm:$0xff] }
 0x2fe   : > { %v1861_v22 = vpop.xlane.xlu1 %1860  ;;  %v1858_v11 = vpop.xlane.xlu0 %1857  ;;  %v4156_v46 = vunpack.c.h.b16 %v18707_v19  ;;  %v2600_v47 = vmul.f32 0.0625, %v18644_v27  ;;  %v2599_v62 = vmul.f32 0.0625, %v18646_v42  ;;  %v2703_v8 = vpack.c.bf16 %v2490_v56, %v2489_v18  ;;  %v18759_v41 = vld [vmem:[%s16479_s10 + $0x438] sm:$0xff] }
 0x2ff   : > { %2394 = vadd.xlane.f32.xlu1 %v18539_v61  ;;  %2391 = vadd.xlane.f32.xlu0 %v20616_v37  ;;  %v5220_v61 = vrot.slane %v4138_v3, %v20543_v32  ;;  %v20619_v0 = vcombine.low %v18503_v40, %v18506_v50  ;;  %v5216_v12 = vsel %vm20620_vm7, %v5215_v36, %v5211_v48  ;;  %v2342_v50 = vsel %vm1627_vm0, %v1609_v45, 0.0  ;;  %v20622_v44 = vld [vmem:[#allocation30_spill] sm:$0xff]  ;;  %v20626_v2 = vld [vmem:[#allocation21_spill] sm:$0xff] }
 0x300   : > { %v5304_v16 = vrot.slane %v4155_v55, %v20618_v58  ;;  %v18763_v5 = vpack.c.bf16 %v2618_v31, %v2617_v33  ;;  %v20621_v27 = vcombine.low %v18509_v57, %v18516_v13  ;;  %v4668_v40 = vsel %vm4260_vm9, %v4667_v6, %v4663_v21  ;;  %v20627_v52 = vld [vmem:[#allocation37_spill] sm:$0xff] }
 0x301   : > { %v4677_v49 = vrot.slane %v4028_v15, %v20622_v44  ;;  %v4011_v48 = vunpack.c.l.b16 %v18735_v53  ;;  %v20625_v39 = vcombine.high %v18531_v30, %v20624_v59  ;;  %v13938_v57 = vcombine.high %v18744_v9, %v18747_v23 }
 0x302   : > { %10741 = vmatpush1.bf16.xpose.msra.mxu0 %v20619_v0  ;;  %10905 = vmatpush1.bf16.xpose.msra.mxu1 %v20621_v27  ;;  %v2245_v42 = vpop.xlane.xlu1 %2244  ;;  %v2242_v19 = vpop.xlane.xlu0 %2241  ;;  %v5300_v13 = vsel %vm4260_vm9, %v5299_v43, %v5295_v51  ;;  %v4673_v3 = vsel %vm4267_vm10, %v4672_v38, %v4668_v40  ;;  %v20628_v21 = vcombine.high %v20626_v2, %v20627_v52  ;;  %v4029_v55 = vunpack.c.l.b16 %v2703_v8 }
 0x303   : > { %1962 = vadd.xlane.f32.xlu1 %v18563_v35  ;;  %1959 = vadd.xlane.f32.xlu0 %v20623_v14  ;;  %v4589_v35 = vsel %vm4260_vm9, %v4588_v34, %v4584_v29  ;;  %v14066_v6 = vcombine.high %v18756_v28, %v18759_v41  ;;  %v18788_v56 = vsel %vm4260_vm9, %v5220_v61, %v5216_v12  ;;  %v4157_v33 = vunpack.c.l.b16 %v18763_v5  ;;  %v20629_v12 = vld [vmem:[#allocation31_spill] sm:$0xff] }
 0x304   : > { %10742 = vmatprep.subr.bf16.mxu0 %v20625_v39  ;;  %10906 = vmatprep.subr.bf16.mxu1 %v20628_v21  ;;  %v5309_v18 = vrot.slane %v4156_v46, %v20622_v44  ;;  %v2758_v36 = vpack.c.bf16 %v2600_v47, %v2599_v62  ;;  %v5305_v31 = vsel %vm4267_vm10, %v5304_v16, %v5300_v13  ;;  %v2474_v51 = vmul.f32 0.0625, %v1861_v22  ;;  %v20635_v13 = vld [vmem:[#allocation40_spill] sm:$0xff] }
 0x305   : > { %v2473_v43 = vmul.f32 0.0625, %v1858_v11  ;;  %v4678_v45 = vsel %vm4274_vm11, %v4677_v49, %v4673_v3  ;;  %v4012_v29 = vunpack.c.h.b16 %v18735_v53  ;;  %v4593_v34 = vrot.slane %v4011_v48, %v20618_v58  ;;  %v20632_v49 = vld [vmem:[#allocation38_spill] sm:$0xff]  ;;  %v20633_v48 = vld [vmem:[#allocation43_spill] sm:$0xff]  ;;  %v20636_v3 = vld [vmem:[#allocation41_spill] sm:$0xff] }
 0x306   : > { %v1915_v15 = vpop.xlane.xlu1 %1914  ;;  %v1912_v37 = vpop.xlane.xlu0 %1911  ;;  %v4030_v38 = vunpack.c.h.b16 %v2703_v8  ;;  %v2602_v46 = vmul.f32 0.0625, %v2245_v42  ;;  %v2601_v47 = vmul.f32 0.0625, %v2242_v19  ;;  %v5310_v0 = vsel %vm4274_vm11, %v5309_v18, %v5305_v31  ;;  %v20638_v18 = vld [vmem:[#allocation32_spill] sm:$0xff] }
 0x307   : > { %2346 = vadd.xlane.f32.xlu1 %v18657_v60  ;;  %2343 = vadd.xlane.f32.xlu0 %v2342_v50  ;;  %v2492_v61 = vmul.f32 0.0625, %v1915_v15  ;;  %v2491_v62 = vmul.f32 0.0625, %v1912_v37  ;;  %v4139_v22 = vunpack.c.l.b16 %v2758_v36  ;;  %v4140_v11 = vunpack.c.h.b16 %v2758_v36 }
 0x308   : > { %v4682_v60 = vrot.slane %v4029_v55, %v20629_v12  ;;  %v20630_v16 = vcombine.low %v18531_v30, %v20624_v59  ;;  %v4158_v53 = vunpack.c.h.b16 %v18763_v5  ;;  %v5314_v27 = vrot.slane %v4157_v33, %v20629_v12 }
 0x309   : > { %v2695_v50 = vpack.c.bf16 %v2474_v51, %v2473_v43  ;;  %v2704_v40 = vpack.c.bf16 %v2492_v61, %v2491_v62  ;;  %v20631_v8 = vcombine.low %v20626_v2, %v20627_v52  ;;  %v20634_v14 = vcombine.high %v20632_v49, %v20633_v48 }
 0x30a   : > { %10743 = vmatpush1.bf16.xpose.msra.mxu0 %v20630_v16  ;;  %v2299_v42 = vpop.xlane.xlu1 %2298  ;;  %v2296_v19 = vpop.xlane.xlu0 %2295  ;;  %v4594_v39 = vsel %vm4267_vm10, %v4593_v34, %v4589_v35  ;;  %v4598_v30 = vrot.slane %v4012_v29, %v20622_v44  ;;  %v20637_v21 = vcombine.high %v20635_v13, %v20636_v3  ;;  %v4687_v36 = vrot.slane %v4030_v38, %v20638_v18  ;;  %v20639_v29 = vld [vmem:[#allocation33_spill] sm:$0xff] }
 0x30b   : > { %10907 = vmatpush1.bf16.xpose.msra.mxu1 %v20631_v8  ;;  %10744 = vmatprep.subr.bf16.mxu0 %v20634_v14  ;;  %v2620_v59 = vmul.f32 0.0625, %v2299_v42  ;;  %v2619_v5 = vmul.f32 0.0625, %v2296_v19  ;;  %v2759_v2 = vpack.c.bf16 %v2602_v46, %v2601_v47  ;;  %v4031_v52 = vunpack.c.l.b16 %v2704_v40  ;;  %v20640_v8 = vld [vmem:[#allocation34_spill] sm:$0xff] }
 0x30c   : > { %10908 = vmatprep.subr.bf16.mxu1 %v20637_v21  ;;  %v4032_v55 = vunpack.c.h.b16 %v2704_v40  ;;  %v5225_v31 = vrot.slane %v4139_v22, %v20618_v58  ;;  %v5230_v33 = vrot.slane %v4140_v11, %v20622_v44  ;;  %v4683_v51 = vsel %vm4281_vm12, %v4682_v60, %v4678_v45 }
 0x30d   : > { %v2768_v35 = vpack.c.bf16 %v2620_v59, %v2619_v5  ;;  %v5315_v43 = vsel %vm4281_vm12, %v5314_v27, %v5310_v0  ;;  %v5319_v15 = vrot.slane %v4158_v53, %v20638_v18  ;;  %v4013_v37 = vunpack.c.l.b16 %v2695_v50 }
 0x30e   : > { %v4692_v34 = vrot.slane %v4031_v52, %v20639_v29  ;;  %v1867_v61 = vpop.xlane.xlu1 %1866  ;;  %v1864_v62 = vpop.xlane.xlu0 %1863  ;;  %v4688_v22 = vsel %vm4288_vm13, %v4687_v36, %v4683_v51  ;;  %v4014_v40 = vunpack.c.h.b16 %v2695_v50  ;;  %v4141_v11 = vunpack.c.l.b16 %v2759_v2 }
 0x30f   : > { %v4159_v38 = vunpack.c.l.b16 %v2768_v35  ;;  %v4160_v46 = vunpack.c.h.b16 %v2768_v35  ;;  %v2476_v47 = vmul.f32 0.0625, %v1867_v61  ;;  %v2475_v16 = vmul.f32 0.0625, %v1864_v62 }
 0x310   : > { %v4697_v45 = vrot.slane %v4032_v55, %v20640_v8  ;;  %v4693_v60 = vsel %vm4295_vm14, %v4692_v34, %v4688_v22  ;;  %v20641_v42 = vcombine.low %v20632_v49, %v20633_v48  ;;  %v5226_v19 = vsel %vm4267_vm10, %v5225_v31, %v18788_v56 }
 0x311   : > { %v5324_v0 = vrot.slane %v4159_v38, %v20639_v29  ;;  %v5329_v53 = vrot.slane %v4160_v46, %v20640_v8  ;;  %v2696_v27 = vpack.c.bf16 %v2476_v47, %v2475_v16  ;;  %v5320_v14 = vsel %vm4288_vm13, %v5319_v15, %v5315_v43 }
 0x312   : > { %10745 = vmatpush1.bf16.xpose.msra.mxu0 %v20641_v42  ;;  %v4603_v50 = vrot.slane %v4013_v37, %v20629_v12  ;;  %v20642_v59 = vcombine.low %v20635_v13, %v20636_v3  ;;  %v2251_v5 = vpop.xlane.xlu1 %2250  ;;  %v2248_v21 = vpop.xlane.xlu0 %2247  ;;  %v4142_v36 = vunpack.c.h.b16 %v2759_v2  ;;  %v5235_v56 = vrot.slane %v4141_v11, %v20629_v12  ;;  %v2800_v42 = vld [vmem:[%s16479_s10 + $0x78] sm:$0xff] }
 0x313   : > { %10746 = vmatprep.subr.bf16.mxu0 %v14056_v20  ;;  %v5325_v49 = vsel %vm4295_vm14, %v5324_v0, %v5320_v14  ;;  %v4015_v48 = vunpack.c.l.b16 %v2696_v27  ;;  %v2604_v52 = vmul.f32 0.0625, %v2251_v5  ;;  %v4698_v13 = vsel %vm4302_vm15, %v4697_v45, %v4693_v60 }
 0x314   : > { %10909 = vmatpush1.bf16.xpose.msra.mxu1 %v20642_v59  ;;  %v5330_v3 = vsel %vm4302_vm15, %v5329_v53, %v5325_v49  ;;  %v2603_v55 = vmul.f32 0.0625, %v2248_v21  ;;  %v4599_v31 = vsel %vm4274_vm11, %v4598_v30, %v4594_v39  ;;  %v4608_v20 = vrot.slane %v4014_v40, %v20638_v18  ;;  %v2796_v53 = vld [vmem:[%s16479_s10 + $0x58] sm:$0xff] }
 0x315   : > { %10910 = vmatprep.subr.bf16.mxu1 %v14184_v54  ;;  %v5495_v2 = vsel %vm5489_vm8, %v5330_v3, %v4698_v13  ;;  %v4016_v51 = vunpack.c.h.b16 %v2696_v27  ;;  %v4604_v35 = vsel %vm4281_vm12, %v4603_v50, %v4599_v31  ;;  %v4613_v54 = vrot.slane %v4015_v48, %v20639_v29  ;;  %v2804_v3 = vld [vmem:[%s16479_s10 + $0x98] sm:$0xff] }
 0x316   : > { %v18851_v43 = vpack.c.b16 %v5495_v2, %v5495_v2  ;;  %v2760_v15 = vpack.c.bf16 %v2604_v52, %v2603_v55  ;;  %v1969_v37 = vpop.xlane.xlu1 %1968  ;;  %v5231_v61 = vsel %vm4274_vm11, %v5230_v33, %v5226_v19  ;;  %v5240_v62 = vrot.slane %v4142_v36, %v20638_v18  ;;  %v2808_v31 = vld [vmem:[%s16479_s10 + $0xb8] sm:$0xff] }
 0x317   : > { %v1966_v34 = vpop.xlane.xlu0 %1965  ;;  %v2510_v38 = vmul.f32 0.0625, %v1969_v37  ;;  %v5236_v30 = vsel %vm4281_vm12, %v5235_v56, %v5231_v61  ;;  %v4609_v16 = vsel %vm4288_vm13, %v4608_v20, %v4604_v35  ;;  %v4618_v22 = vrot.slane %v4016_v51, %v20640_v8  ;;  %v2932_v20 = vld [vmem:[%s16479_s10 + $0x498] sm:$0xff] }
 0x318   : > { %20643 = vst [vmem:[#allocation42_spill] sm:$0xff] %v18851_v43  ;;  %v2509_v39 = vmul.f32 0.0625, %v1966_v34  ;;  %v4143_v46 = vunpack.c.l.b16 %v2760_v15  ;;  %v4144_v47 = vunpack.c.h.b16 %v2760_v15  ;;  %10748 = vmatprep.mubr.bf16.mxu0 %v18851_v43  ;;  %10912 = vmatprep.mubr.bf16.mxu1 %v18851_v43  ;;  %v4614_v33 = vsel %vm4295_vm14, %v4613_v54, %v4609_v16  ;;  %v2936_v2 = vld [vmem:[%s16479_s10 + $0x4b8] sm:$0xff]  ;;  %v20646_v34 = vld [vmem:[#allocation23_spill] sm:$0xff] }
 0x319   : > { %v5241_v63 = vsel %vm4288_vm13, %v5240_v62, %v5236_v30  ;;  %v13937_v5 = vcombine.low %v18744_v9, %v18747_v23  ;;  %v13946_v36 = vcombine.high %v2796_v53, %v2800_v42  ;;  %v14074_v49 = vcombine.high %v2924_v24, %v2928_v1  ;;  %v20645_v15 = vld [vmem:[#allocation22_spill] sm:$0xff] }
 0x31a   : > { %v2713_v40 = vpack.c.bf16 %v2510_v38, %v2509_v39  ;;  %10747 = vmatpush1.bf16.xpose.msra.mxu0 %v14055_v26  ;;  %v5245_v11 = vrot.slane %v4143_v46, %v20639_v29  ;;  %v5250_v45 = vrot.slane %v4144_v47, %v20640_v8  ;;  %v2353_v60 = vpop.xlane.xlu1 %2352  ;;  %v13945_v35 = vcombine.low %v2796_v53, %v2800_v42 }
 0x31b   : > { %v2350_v0 = vpop.xlane.xlu0 %2349  ;;  %10757 = vmatprep.subr.bf16.mxu0 %v13938_v57  ;;  %v2638_v26 = vmul.f32 0.0625, %v2353_v60  ;;  %v14073_v54 = vcombine.low %v2924_v24, %v2928_v1  ;;  %v13954_v39 = vcombine.high %v2804_v3, %v2808_v31  ;;  %v14082_v30 = vcombine.high %v2932_v20, %v2936_v2  ;;  %v20648_v60 = vld [vmem:[#allocation25_spill] sm:$0xff] }
 0x31c   : > { %10911 = vmatpush1.bf16.xpose.msra.mxu1 %v14183_v25  ;;  %v2637_v4 = vmul.f32 0.0625, %v2350_v0  ;;  %v5246_v27 = vsel %vm4295_vm14, %v5245_v11, %v5241_v63  ;;  %v4619_v25 = vsel %vm4302_vm15, %v4618_v22, %v4614_v33  ;;  %v4049_v23 = vunpack.c.l.b16 %v2713_v40  ;;  %v20647_v11 = vld [vmem:[#allocation24_spill] sm:$0xff] }
 0x31d   : > { %10921 = vmatprep.subr.bf16.mxu1 %v14066_v6  ;;  %v5251_v19 = vsel %vm4302_vm15, %v5250_v45, %v5246_v27  ;;  %v14065_v6 = vcombine.low %v18756_v28, %v18759_v41  ;;  %v4050_v28 = vunpack.c.h.b16 %v2713_v40  ;;  %v18905_v27 = vld [vmem:[%s16479_s10 + $0xd8] sm:$0xff]  ;;  %vm20651_vm0 = vcmask 326912  }
 0x31e   : > { %v2777_v14 = vpack.c.bf16 %v2638_v26, %v2637_v4  ;;  %v5494_v57 = vsel %vm5489_vm8, %v5251_v19, %v4619_v25  ;;  %v1921_v50 = vpop.xlane.xlu1 %1920  ;;  %v4781_v37 = vrot.slane %v4049_v23, %v20645_v15  ;;  %v2816_v25 = vld [vmem:[%s16479_s10 + $0xf8] sm:$0xff]  ;;  %vm20655_vm4 = vmmov %vm20651_vm0 }
 0x31f   : > { %v18889_v21 = vpack.c.b16 %v5494_v57, %v5494_v57  ;;  %v2494_v48 = vmul.f32 0.0625, %v1921_v50  ;;  %v4785_v61 = vrot.slane %v4050_v28, %v20646_v34  ;;  %v2940_v19 = vld [vmem:[%s16479_s10 + $0x4d8] sm:$0xff]  ;;  %v13962_v23 = vcombine.high %v18905_v27, %v2816_v25  ;;  %vm20657_vm6 = vmmov %vm20651_vm0 }
 0x320   : > { %v1918_v59 = vpop.xlane.xlu0 %1917  ;;  %v4177_v22 = vunpack.c.l.b16 %v2777_v14  ;;  %v4178_v40 = vunpack.c.h.b16 %v2777_v14  ;;  %v2944_v14 = vld [vmem:[%s16479_s10 + $0x4f8] sm:$0xff] }
 0x321   : > { %20644 = vst [vmem:[#allocation44_spill] sm:$0xff] %v18889_v21  ;;  %v2493_v52 = vmul.f32 0.0625, %v1918_v59  ;;  %10749 = vmatmul.mubr.bf16.vlgmr.msra.gmra.mrb[0].mxu0 %v18889_v21  ;;  %v4786_v63 = vsel %vm4204_vm1, %v4785_v61, %v4781_v37  ;;  %v14090_v28 = vcombine.high %v2940_v19, %v2944_v14 }
 0x322   : > { %10758 = vmatpush1.bf16.xpose.msra.mxu0 %v13937_v5  ;;  %v1975_v9 = vpop.xlane.xlu1 %1974  ;;  %v5413_v57 = vrot.slane %v4177_v22, %v20645_v15  ;;  %v5417_v50 = vrot.slane %v4178_v40, %v20646_v34 }
 0x323   : > { %10913 = vmatmul.mubr.bf16.vlgmr.msra.gmra.mrb[0].mxu1 %v18889_v21  ;;  %v18893_v56 = vpack.c.bf16 %v2494_v48, %v2493_v52  ;;  %v2512_v41 = vmul.f32 0.0625, %v1975_v9  ;;  %10759 = vmatprep.subr.bf16.mxu0 %v13946_v36  ;;  %v14081_v36 = vcombine.low %v2932_v20, %v2936_v2 }
 0x324   : > { %10922 = vmatpush1.bf16.xpose.msra.mxu1 %v14065_v6  ;;  %v1972_v13 = vpop.xlane.xlu0 %1971  ;;  %v13953_v6 = vcombine.low %v2804_v3, %v2808_v31 }
 0x325   : > { %10923 = vmatprep.subr.bf16.mxu1 %v14074_v49  ;;  %v2511_v55 = vmul.f32 0.0625, %v1972_v13  ;;  %v4033_v49 = vunpack.c.l.b16 %v18893_v56  ;;  %v4034_v48 = vunpack.c.h.b16 %v18893_v56  ;;  %v18923_v56 = vld [vmem:[%s16479_s10 + $0x118] sm:$0xff] }
 0x326   : > { %v2305_v62 = vpop.xlane.xlu1 %2304 }
 0x327   : > { %v2714_v51 = vpack.c.bf16 %v2512_v41, %v2511_v55  ;;  %v2622_v16 = vmul.f32 0.0625, %v2305_v62  ;;  %v4702_v2 = vrot.slane %v4033_v49, %v20645_v15 }
 0x328   : > { %v2302_v38 = vpop.xlane.xlu0 %2301 }
 0x329   : > { %v4051_v46 = vunpack.c.l.b16 %v2714_v51  ;;  %v4052_v47 = vunpack.c.h.b16 %v2714_v51  ;;  %v2621_v33 = vmul.f32 0.0625, %v2302_v38 }
 0x32a   : > { %10760 = vmatpush1.bf16.xpose.msra.mxu0 %v13945_v35  ;;  %v2359_v4 = vpop.xlane.xlu1 %2358  ;;  %v5418_v35 = vsel %vm4204_vm1, %v5417_v50, %v5413_v57 }
 0x32b   : > { %v4790_v45 = vrot.slane %v4051_v46, %v20647_v11  ;;  %v4795_v0 = vrot.slane %v4052_v47, %v20648_v60  ;;  %v2769_v26 = vpack.c.bf16 %v2622_v16, %v2621_v33  ;;  %10761 = vmatprep.subr.bf16.mxu0 %v13954_v39  ;;  %v2640_v24 = vmul.f32 0.0625, %v2359_v4  ;;  %v18928_v39 = vld [vmem:[%s16479_s10 + $0x138] sm:$0xff] }
 0x32c   : > { %10924 = vmatpush1.bf16.xpose.msra.mxu1 %v14073_v54  ;;  %v2356_v53 = vpop.xlane.xlu0 %2355  ;;  %v4706_v54 = vrot.slane %v4034_v48, %v20646_v34  ;;  %v18934_v46 = vld [vmem:[%s16479_s10 + $0x538] sm:$0xff] }
 0x32d   : > { %10925 = vmatprep.subr.bf16.mxu1 %v14082_v30  ;;  %v4791_v42 = vsel %vm4211_vm2, %v4790_v45, %v4786_v63  ;;  %v2639_v1 = vmul.f32 0.0625, %v2356_v53  ;;  %v4161_v37 = vunpack.c.l.b16 %v2769_v26  ;;  %v4162_v61 = vunpack.c.h.b16 %v2769_v26  ;;  %v18931_v30 = vld [vmem:[%s16479_s10 + $0x518] sm:$0xff] }
 0x32e   : > { %v18914_v59 = vsel %vm4218_vm3, %v4795_v0, %v4791_v42  ;;  %v13961_v0 = vcombine.low %v18905_v27, %v2816_v25  ;;  %v14089_v63 = vcombine.low %v2940_v19, %v2944_v14  ;;  %v13970_v53 = vcombine.high %v18923_v56, %v18928_v39 }
 0x32f   : > { %v2778_v5 = vpack.c.bf16 %v2640_v24, %v2639_v1  ;;  %v14098_v42 = vcombine.high %v18931_v30, %v18934_v46  ;;  %v4707_v24 = vsel %vm4204_vm1, %v4706_v54, %v4702_v2  ;;  %v5334_v1 = vrot.slane %v4161_v37, %v20645_v15  ;;  %v20649_v54 = vld [vmem:[#allocation26_spill] sm:$0xff] }
 0x330   : > { %v1927_v52 = vpop.xlane.xlu1 %1926  ;;  %v1924_v9 = vpop.xlane.xlu0 %1923  ;;  %v5338_v57 = vrot.slane %v4162_v61, %v20646_v34  ;;  %v13969_v2 = vcombine.low %v18923_v56, %v18928_v39  ;;  %v20650_v61 = vld [vmem:[#allocation27_spill] sm:$0xff] }
 0x331   : > { %v4179_v41 = vunpack.c.l.b16 %v2778_v5  ;;  %v4180_v13 = vunpack.c.h.b16 %v2778_v5  ;;  %v2496_v55 = vmul.f32 0.0625, %v1927_v52  ;;  %v2495_v51 = vmul.f32 0.0625, %v1924_v9 }
 0x332   : > { %10762 = vmatpush1.bf16.xpose.msra.mxu0 %v13953_v6  ;;  %v5339_v15 = vsel %vm4204_vm1, %v5338_v57, %v5334_v1  ;;  %vm20652_vm1 = vcmask 392512   ;;  %v2836_v57 = vld [vmem:[%s16479_s10 + $0x198] sm:$0xff] }
 0x333   : > { %v5422_v3 = vrot.slane %v4179_v41, %v20647_v11  ;;  %v5427_v31 = vrot.slane %v4180_v13, %v20648_v60  ;;  %v2706_v20 = vpack.c.bf16 %v2496_v55, %v2495_v51  ;;  %10763 = vmatprep.subr.bf16.mxu0 %v13962_v23  ;;  %vm20656_vm5 = vmmov %vm20652_vm1 }
 0x334   : > { %10926 = vmatpush1.bf16.xpose.msra.mxu1 %v14081_v36  ;;  %v2311_v62 = vpop.xlane.xlu1 %2310  ;;  %v2308_v38 = vpop.xlane.xlu0 %2307  ;;  %vm20658_vm7 = vmmov %vm20652_vm1 }
 0x335   : > { %10927 = vmatprep.subr.bf16.mxu1 %v14090_v28  ;;  %v5423_v47 = vsel %vm4211_vm2, %v5422_v3, %v5418_v35  ;;  %v4035_v16 = vunpack.c.l.b16 %v2706_v20  ;;  %v4036_v22 = vunpack.c.h.b16 %v2706_v20  ;;  %v2624_v40 = vmul.f32 0.0625, %v2311_v62  ;;  %v2828_v28 = vld [vmem:[%s16479_s10 + $0x158] sm:$0xff] }
 0x336   : > { %v18938_v33 = vsel %vm4218_vm3, %v5427_v31, %v5423_v47  ;;  %v2623_v45 = vmul.f32 0.0625, %v2308_v38  ;;  %v2832_v35 = vld [vmem:[%s16479_s10 + $0x178] sm:$0xff] }
 0x337   : > { %v4711_v26 = vrot.slane %v4035_v16, %v20647_v11  ;;  %v4716_v4 = vrot.slane %v4036_v22, %v20648_v60  ;;  %v2956_v3 = vld [vmem:[%s16479_s10 + $0x558] sm:$0xff]  ;;  %v13978_v22 = vcombine.high %v2828_v28, %v2832_v35 }
 0x338   : > { %v2770_v50 = vpack.c.bf16 %v2624_v40, %v2623_v45  ;;  %v1981_v5 = vpop.xlane.xlu1 %1980  ;;  %v1978_v27 = vpop.xlane.xlu0 %1977  ;;  %v2960_v31 = vld [vmem:[%s16479_s10 + $0x578] sm:$0xff] }
 0x339   : > { %v4712_v25 = vsel %vm4211_vm2, %v4711_v26, %v4707_v24  ;;  %v2514_v19 = vmul.f32 0.0625, %v1981_v5  ;;  %v2513_v14 = vmul.f32 0.0625, %v1978_v27  ;;  %v14106_v40 = vcombine.high %v2956_v3, %v2960_v31 }
 0x33a   : > { %v18952_v6 = vsel %vm4218_vm3, %v4716_v4, %v4712_v25  ;;  %v4163_v36 = vunpack.c.l.b16 %v2770_v50  ;;  %v4164_v49 = vunpack.c.h.b16 %v2770_v50  ;;  %10764 = vmatpush1.bf16.xpose.msra.mxu0 %v13961_v0  ;;  %v2840_v50 = vld [vmem:[%s16479_s10 + $0x1b8] sm:$0xff] }
 0x33b   : > { %v2715_v48 = vpack.c.bf16 %v2514_v19, %v2513_v14  ;;  %10765 = vmatprep.subr.bf16.mxu0 %v13970_v53  ;;  %v2964_v19 = vld [vmem:[%s16479_s10 + $0x598] sm:$0xff] }
 0x33c   : > { %10928 = vmatpush1.bf16.xpose.msra.mxu1 %v14089_v63  ;;  %v5343_v34 = vrot.slane %v4163_v36, %v20647_v11  ;;  %v5348_v52 = vrot.slane %v4164_v49, %v20648_v60  ;;  %v2365_v9 = vpop.xlane.xlu1 %2364  ;;  %v2362_v23 = vpop.xlane.xlu0 %2361  ;;  %v14097_v11 = vcombine.low %v18931_v30, %v18934_v46  ;;  %v2968_v14 = vld [vmem:[%s16479_s10 + $0x5b8] sm:$0xff]  ;;  %v13977_v49 = vcombine.low %v2828_v28, %v2832_v35 }
 0x33d   : > { %10929 = vmatprep.subr.bf16.mxu1 %v14098_v42  ;;  %v4053_v41 = vunpack.c.l.b16 %v2715_v48  ;;  %v4054_v13 = vunpack.c.h.b16 %v2715_v48  ;;  %v2642_v55 = vmul.f32 0.0625, %v2365_v9  ;;  %v2641_v51 = vmul.f32 0.0625, %v2362_v23 }
 0x33e   : > { %v5344_v20 = vsel %vm4211_vm2, %v5343_v34, %v5339_v15  ;;  %vm20653_vm2 = vmmov %vm20651_vm0  ;;  %v13986_v9 = vcombine.high %v2836_v57, %v2840_v50 }
 0x33f   : > { %v5349_v60 = vsel %vm4218_vm3, %v5348_v52, %v5344_v20  ;;  %v4800_v37 = vrot.slane %v4053_v41, %v20649_v54  ;;  %v4805_v62 = vrot.slane %v4054_v13, %v20650_v61  ;;  %v2779_v38 = vpack.c.bf16 %v2642_v55, %v2641_v51  ;;  %vm20654_vm3 = vmmov %vm20652_vm1 }
 0x340   : > { %v1933_v47 = vpop.xlane.xlu1 %1932  ;;  %v1930_v16 = vpop.xlane.xlu0 %1929  ;;  %v14105_v52 = vcombine.low %v2956_v3, %v2960_v31  ;;  %v14114_v13 = vcombine.high %v2964_v19, %v2968_v14 }
 0x341   : > { %v4801_v45 = vsel %vm20651_vm0, %v4800_v37, %v18914_v59  ;;  %v4181_v0 = vunpack.c.l.b16 %v2779_v38  ;;  %v4182_v63 = vunpack.c.h.b16 %v2779_v38  ;;  %v2498_v56 = vmul.f32 0.0625, %v1933_v47  ;;  %v2972_v37 = vld [vmem:[%s16479_s10 + $0x5d8] sm:$0xff] }
 0x342   : > { %v18972_v39 = vsel %vm20652_vm1, %v4805_v62, %v4801_v45  ;;  %v2497_v30 = vmul.f32 0.0625, %v1930_v16  ;;  %10766 = vmatpush1.bf16.xpose.msra.mxu0 %v13969_v2  ;;  %v2844_v2 = vld [vmem:[%s16479_s10 + $0x1d8] sm:$0xff]  ;;  %v14113_v47 = vcombine.low %v2964_v19, %v2968_v14  ;;  %vm20663_vm0 = vcmask 458112  }
 0x343   : > { %v5432_v46 = vrot.slane %v4181_v0, %v20649_v54  ;;  %v5437_v26 = vrot.slane %v4182_v63, %v20650_v61  ;;  %10767 = vmatprep.subr.bf16.mxu0 %v13978_v22  ;;  %v2852_v45 = vld [vmem:[%s16479_s10 + $0x218] sm:$0xff]  ;;  %vm20664_vm1 = vmmov %vm20663_vm0 }
 0x344   : > { %10930 = vmatpush1.bf16.xpose.msra.mxu1 %v14097_v11  ;;  %v2707_v4 = vpack.c.bf16 %v2498_v56, %v2497_v30  ;;  %v2317_v53 = vpop.xlane.xlu1 %2316  ;;  %v2314_v59 = vpop.xlane.xlu0 %2313  ;;  %v2848_v11 = vld [vmem:[%s16479_s10 + $0x1f8] sm:$0xff] }
 0x345   : > { %10931 = vmatprep.subr.bf16.mxu1 %v14106_v40  ;;  %v5433_v42 = vsel %vm20653_vm2, %v5432_v46, %v18938_v33  ;;  %v2626_v24 = vmul.f32 0.0625, %v2317_v53  ;;  %v2625_v1 = vmul.f32 0.0625, %v2314_v59  ;;  %v13994_v16 = vcombine.high %v2844_v2, %v2848_v11  ;;  %v2856_v0 = vld [vmem:[%s16479_s10 + $0x238] sm:$0xff] }
 0x346   : > { %v18981_v5 = vsel %vm20654_vm3, %v5437_v26, %v5433_v42  ;;  %v4037_v27 = vunpack.c.l.b16 %v2707_v4  ;;  %v4038_v25 = vunpack.c.h.b16 %v2707_v4  ;;  %v2980_v63 = vld [vmem:[%s16479_s10 + $0x618] sm:$0xff]  ;;  %v13993_v30 = vcombine.low %v2844_v2, %v2848_v11 }
 0x347   : > { %v2771_v36 = vpack.c.bf16 %v2626_v24, %v2625_v1  ;;  %v2984_v56 = vld [vmem:[%s16479_s10 + $0x638] sm:$0xff]  ;;  %v14002_v4 = vcombine.high %v2852_v45, %v2856_v0  ;;  %vm20665_vm2 = vcmask 523712  }
 0x348   : > { %v4721_v48 = vrot.slane %v4037_v27, %v20649_v54  ;;  %v4726_v15 = vrot.slane %v4038_v25, %v20650_v61  ;;  %v18987_v34 = vpop.xlane.xlu1 %1986  ;;  %v18989_v33 = vpop.xlane.xlu0 %1983  ;;  %v14130_v59 = vcombine.high %v2980_v63, %v2984_v56  ;;  %v2860_v1 = vld [vmem:[%s16479_s10 + $0x258] sm:$0xff]  ;;  %v14001_v25 = vcombine.low %v2852_v45, %v2856_v0  ;;  %vm20666_vm3 = vmmov %vm20665_vm2 }
 0x349   : > { %v4165_v23 = vunpack.c.l.b16 %v2771_v36  ;;  %v4166_v41 = vunpack.c.h.b16 %v2771_v36  ;;  %v2992_v27 = vld [vmem:[%s16479_s10 + $0x678] sm:$0xff]  ;;  %v14129_v14 = vcombine.low %v2980_v63, %v2984_v56 }
 0x34a   : > { %v4722_v28 = vsel %vm20655_vm4, %v4721_v48, %v18952_v6  ;;  %10768 = vmatpush1.bf16.xpose.msra.mxu0 %v13977_v49  ;;  %vm20667_vm4 = vmmov %vm20663_vm0 }
 0x34b   : > { %v18994_v55 = vsel %vm20656_vm5, %v4726_v15, %v4722_v28  ;;  %v5353_v51 = vrot.slane %v4165_v23, %v20649_v54  ;;  %v5358_v35 = vrot.slane %v4166_v41, %v20650_v61  ;;  %10769 = vmatprep.subr.bf16.mxu0 %v13986_v9  ;;  %v2976_v54 = vld [vmem:[%s16479_s10 + $0x5f8] sm:$0xff]  ;;  %v13985_v61 = vcombine.low %v2836_v57, %v2840_v50  ;;  %vm20671_vm5 = vmmov %vm20665_vm2 }
 0x34c   : > { %10932 = vmatpush1.bf16.xpose.msra.mxu1 %v14105_v52  ;;  %v2371_v3 = vpop.xlane.xlu1 %2370  ;;  %v2368_v31 = vpop.xlane.xlu0 %2367  ;;  %v14122_v22 = vcombine.high %v2972_v37, %v2976_v54  ;;  %v14121_v26 = vcombine.low %v2972_v37, %v2976_v54  ;;  %v2864_v57 = vld [vmem:[%s16479_s10 + $0x278] sm:$0xff] }
 0x34d   : > { %v5354_v20 = vsel %vm20657_vm6, %v5353_v51, %v5349_v60  ;;  %10933 = vmatprep.subr.bf16.mxu1 %v14114_v13  ;;  %v2988_v50 = vld [vmem:[%s16479_s10 + $0x658] sm:$0xff]  ;;  %v14010_v36 = vcombine.high %v2860_v1, %v2864_v57  ;;  %v14009_v41 = vcombine.low %v2860_v1, %v2864_v57  ;;  %v2516_v51 = vmul.f32 0.0625, %v18987_v34  ;;  %vm20672_vm6 = vmmov %vm20663_vm0 }
 0x34e   : > { %v19002_v6 = vsel %vm20658_vm7, %v5358_v35, %v5354_v20  ;;  %v14138_v48 = vcombine.high %v2988_v50, %v2992_v27  ;;  %v19035_v9 = vld [vmem:[%s16479_s10 + $0x298] sm:$0xff]  ;;  %v2515_v35 = vmul.f32 0.0625, %v18989_v33  ;;  %v2644_v20 = vmul.f32 0.0625, %v2371_v3 }
 0x34f   : > { %v19038_v23 = vld [vmem:[%s16479_s10 + $0x2b8] sm:$0xff]  ;;  %v2643_v2 = vmul.f32 0.0625, %v2368_v31  ;;  %v14137_v37 = vcombine.low %v2988_v50, %v2992_v27  ;;  %vm20674_vm7 = vcmask 589312  }
 0x350   : > { %v1939_v62 = vpop.xlane.xlu1 %1938  ;;  %v1936_v38 = vpop.xlane.xlu0 %1935  ;;  %v19041_v13 = vld [vmem:[%s16479_s10 + $0x698] sm:$0xff]  ;;  %v14018_v54 = vcombine.high %v19035_v9, %v19038_v23  ;;  %v14017_v63 = vcombine.low %v19035_v9, %v19038_v23 }
 0x351   : > { %v19044_v28 = vld [vmem:[%s16479_s10 + $0x6b8] sm:$0xff]  ;;  %v2500_v45 = vmul.f32 0.0625, %v1939_v62  ;;  %v2499_v0 = vmul.f32 0.0625, %v1936_v38 }
 0x352   : > { %10770 = vmatpush1.bf16.xpose.msra.mxu0 %v13985_v61  ;;  %v19053_v61 = vld [vmem:[%s16479_s10 + $0x2d8] sm:$0xff]  ;;  %v14146_v34 = vcombine.high %v19041_v13, %v19044_v28  ;;  %v14145_v56 = vcombine.low %v19041_v13, %v19044_v28 }
 0x353   : > { %10771 = vmatprep.subr.bf16.mxu0 %v13994_v16  ;;  %v19059_v16 = vld [vmem:[%s16479_s10 + $0x6d8] sm:$0xff] }
 0x354   : > { %10934 = vmatpush1.bf16.xpose.msra.mxu1 %v14113_v47  ;;  %v19006_v60 = vpop.xlane.xlu1 %2322  ;;  %v19008_v40 = vpop.xlane.xlu0 %2319  ;;  %v19056_v47 = vld [vmem:[%s16479_s10 + $0x2f8] sm:$0xff] }
 0x355   : > { %10935 = vmatprep.subr.bf16.mxu1 %v14122_v22  ;;  %v19066_v33 = vld [vmem:[%s16479_s10 + $0x6f8] sm:$0xff]  ;;  %v14026_v38 = vcombine.high %v19053_v61, %v19056_v47  ;;  %v2628_v9 = vmul.f32 0.0625, %v19006_v60  ;;  %v2627_v23 = vmul.f32 0.0625, %v19008_v40 }
 0x356   : > { %v19069_v3 = vld [vmem:[%s16479_s10 + $0x318] sm:$0xff] }
 0x357   : > { %v19072_v31 = vld [vmem:[%s16479_s10 + $0x338] sm:$0xff]  ;;  %v19151_v21 = vpack.c.bf16 %v2628_v9, %v2627_v23 }
 0x358   : > { %v19014_v46 = vpop.xlane.xlu1 %1992  ;;  %v19016_v53 = vpop.xlane.xlu0 %1989  ;;  %v19091_v1 = vld [vmem:[%s16479_s10 + $0x358] sm:$0xff] }
 0x359   : > { %v19094_v57 = vld [vmem:[%s16479_s10 + $0x378] sm:$0xff] }
 0x35a   : > { %10772 = vmatpush1.bf16.xpose.msra.mxu0 %v13993_v30  ;;  %v19079_v30 = vld [vmem:[%s16479_s10 + $0x718] sm:$0xff] }
 0x35b   : > { %10773 = vmatprep.subr.bf16.mxu0 %v14002_v4  ;;  %v2716_v4 = vpack.c.bf16 %v2516_v51, %v2515_v35  ;;  %v19119_v51 = vld [vmem:[%s16479_s10 + $0x398] sm:$0xff] }
 0x35c   : > { %10936 = vmatpush1.bf16.xpose.msra.mxu1 %v14121_v26  ;;  %v19018_v42 = vpop.xlane.xlu1 %2376  ;;  %v19020_v24 = vpop.xlane.xlu0 %2373  ;;  %v19082_v26 = vld [vmem:[%s16479_s10 + $0x738] sm:$0xff] }
 0x35d   : > { %10937 = vmatprep.subr.bf16.mxu1 %v14130_v59  ;;  %v19084_v59 = vpack.c.bf16 %v2644_v20, %v2643_v2  ;;  %v19122_v35 = vld [vmem:[%s16479_s10 + $0x3b8] sm:$0xff]  ;;  %v2708_v20 = vpack.c.bf16 %v2500_v45, %v2499_v0  ;;  %v4056_v40 = vunpack.c.h.b16 %v2716_v4  ;;  %v2518_v2 = vmul.f32 0.0625, %v19014_v46 }
 0x35e   : > { %v19142_v0 = vld [vmem:[%s16479_s10 + $0x3d8] sm:$0xff]  ;;  %v2646_v45 = vmul.f32 0.0625, %v19018_v42  ;;  %v2645_v8 = vmul.f32 0.0625, %v19020_v24  ;;  %v4167_v24 = vunpack.c.l.b16 %v19151_v21 }
 0x35f   : > { %v4183_v28 = vunpack.c.l.b16 %v19084_v59  ;;  %20661 = vst [vmem:[#allocation28_spill] sm:$0xff] %v19142_v0  ;;  %v19145_v60 = vld [vmem:[%s16479_s10 + $0x3f8] sm:$0xff]  ;;  %v4184_v46 = vunpack.c.h.b16 %v19084_v59  ;;  %v4815_v59 = vrot.slane %v4056_v40, %v16942_v10  ;;  %v4040_v42 = vunpack.c.h.b16 %v2708_v20 }
 0x360   : > { %v19026_v19 = vpop.xlane.xlu1 %1944  ;;  %v19028_v49 = vpop.xlane.xlu0 %1941  ;;  %20662 = vst [vmem:[#allocation29_spill] sm:$0xff] %v19145_v60  ;;  %v2781_v60 = vpack.c.bf16 %v2646_v45, %v2645_v8 }
 0x361   : > { %v5442_v13 = vrot.slane %v4183_v28, %v16939_v7  ;;  %v2502_v29 = vmul.f32 0.0625, %v19026_v19  ;;  %v2501_v62 = vmul.f32 0.0625, %v19028_v49  ;;  %v19177_v28 = vld [vmem:[%s16479_s10 + $0x7f8] sm:$0xff]  ;;  %v19185_v19 = vld [vmem:[%s16479_s10 + $0x800] sm:$0xff] }
 0x362   : > { %10774 = vmatpush1.bf16.xpose.msra.mxu0 %v14001_v25  ;;  %v14154_v25 = vcombine.high %v19059_v16, %v19066_v33  ;;  %v19188_v49 = vld [vmem:[%s16479_s10 + $0x820] sm:$0xff] }
 0x363   : > { %10775 = vmatprep.subr.bf16.mxu0 %v14010_v36  ;;  %v19105_v36 = vld [vmem:[%s16479_s10 + $0x758] sm:$0xff] }
 0x364   : > { %10938 = vmatpush1.bf16.xpose.msra.mxu1 %v14129_v14  ;;  %v19030_v15 = vpop.xlane.xlu1 %2328  ;;  %v19032_v52 = vpop.xlane.xlu0 %2325  ;;  %v2517_v14 = vmul.f32 0.0625, %v19016_v53  ;;  %v4039_v53 = vunpack.c.l.b16 %v2708_v20 }
 0x365   : > { %10939 = vmatprep.subr.bf16.mxu1 %v14138_v48  ;;  %v19108_v48 = vld [vmem:[%s16479_s10 + $0x778] sm:$0xff]  ;;  %v2629_v40 = vmul.f32 0.0625, %v19032_v52  ;;  %v5443_v52 = vsel %vm20664_vm1, %v5442_v13, %v18981_v5  ;;  %vm20676_vm1 = vmmov %vm20674_vm7 }
 0x368   : > { %v19048_v11 = vpop.xlane.xlu1 %1998  ;;  %v19061_v22 = vpop.xlane.xlu0 %1995 }
 0x369   : > { %v2519_v20 = vmul.f32 0.0625, %v19061_v22  ;;  %v4736_v22 = vrot.slane %v4040_v42, %v16942_v10 }
 0x36a   : > { %10776 = vmatpush1.bf16.xpose.msra.mxu0 %v14009_v41 }
 0x36b   : > { %10777 = vmatprep.subr.bf16.mxu0 %v14018_v54  ;;  %v19134_v54 = vld [vmem:[%s16479_s10 + $0x7b8] sm:$0xff] }
 0x36c   : > { %10940 = vmatpush1.bf16.xpose.msra.mxu1 %v14137_v37  ;;  %v19096_v50 = vpop.xlane.xlu1 %2382  ;;  %v19112_v41 = vpop.xlane.xlu0 %2379  ;;  %v19131_v37 = vld [vmem:[%s16479_s10 + $0x798] sm:$0xff]  ;;  %20660 = vst [vmem:[#allocation46_spill] sm:$0xff] %v19134_v54  ;;  %v2709_v54 = vpack.c.bf16 %v2502_v29, %v2501_v62 }
 0x36d   : > { %10941 = vmatprep.subr.bf16.mxu1 %v14146_v34  ;;  %20659 = vst [vmem:[#allocation45_spill] sm:$0xff] %v19131_v37  ;;  %v4055_v34 = vunpack.c.l.b16 %v2716_v4  ;;  %v2717_v4 = vpack.c.bf16 %v2518_v2, %v2517_v14  ;;  %v2520_v2 = vmul.f32 0.0625, %v19048_v11  ;;  %v2648_v11 = vmul.f32 0.0625, %v19096_v50 }
 0x36e   : > { %v2647_v42 = vmul.f32 0.0625, %v19112_v41 }
 0x36f   : > { %v4810_v23 = vrot.slane %v4055_v34, %v16939_v7  ;;  %v19174_v34 = vld [vmem:[%s16479_s10 + $0x7d8] sm:$0xff]  ;;  %v4057_v0 = vunpack.c.l.b16 %v2717_v4  ;;  %v2718_v62 = vpack.c.bf16 %v2520_v2, %v2519_v20  ;;  %v4042_v20 = vunpack.c.h.b16 %v2709_v54 }
 0x370   : > { %v1951_v27 = vpop.xlane.xlu1 %1950  ;;  %v1948_v43 = vpop.xlane.xlu0 %1947 }
 0x372   : > { %10778 = vmatpush1.bf16.xpose.msra.mxu0 %v14017_v63  ;;  %v2630_v63 = vmul.f32 0.0625, %v19030_v15  ;;  %v4811_v15 = vsel %vm20663_vm0, %v4810_v23, %v18972_v39  ;;  %v4168_v39 = vunpack.c.h.b16 %v19151_v21  ;;  %v4058_v23 = vunpack.c.h.b16 %v2717_v4  ;;  %vm20675_vm0 = vmmov %vm20665_vm2 }
 0x373   : > { %10779 = vmatprep.subr.bf16.mxu0 %v14026_v38  ;;  %v4731_v38 = vrot.slane %v4039_v53, %v16939_v7  ;;  %v5363_v53 = vrot.slane %v4167_v24, %v16939_v7  ;;  %v4816_v13 = vsel %vm20665_vm2, %v4815_v59, %v4811_v15  ;;  %v20668_v21 = vcombine.low %v19053_v61, %v19056_v47  ;;  %vm20680_vm2 = vmmov %vm20676_vm1 }
 0x374   : > { %10942 = vmatpush1.bf16.xpose.msra.mxu1 %v14145_v56  ;;  %v19171_v9 = vpop.xlane.xlu1 %2334  ;;  %v19182_v14 = vpop.xlane.xlu0 %2331  ;;  %v5447_v56 = vrot.slane %v4184_v46, %v16942_v10  ;;  %v14186_v46 = vcombine.high %v19174_v34, %v19177_v28  ;;  %v2773_v5 = vpack.c.bf16 %v2630_v63, %v2629_v40  ;;  %v4820_v7 = vrot.slane %v4057_v0, %v16952_v17 }
 0x375   : > { %10943 = vmatprep.subr.bf16.mxu1 %v14154_v25  ;;  %v4732_v29 = vsel %vm20667_vm4, %v4731_v38, %v18994_v55  ;;  %v4185_v25 = vunpack.c.l.b16 %v2781_v60  ;;  %v4041_v24 = vunpack.c.l.b16 %v2709_v54  ;;  %v2504_v59 = vmul.f32 0.0625, %v1951_v27 }
 0x376   : > { %v5448_v45 = vsel %vm20666_vm3, %v5447_v56, %v5443_v52  ;;  %v2503_v63 = vmul.f32 0.0625, %v1948_v43  ;;  %v20669_v40 = vcombine.low %v19059_v16, %v19066_v33  ;;  %v20670_v4 = vcombine.high %v19069_v3, %v19072_v31  ;;  %vm20681_vm3 = vmmov %vm20676_vm1 }
 0x377   : > { %v4737_v50 = vsel %vm20671_vm5, %v4736_v22, %v4732_v29  ;;  %v5364_v61 = vsel %vm20672_vm6, %v5363_v53, %v19002_v6  ;;  %v5368_v47 = vrot.slane %v4168_v39, %v16942_v10  ;;  %v4169_v41 = vunpack.c.l.b16 %v2773_v5 }
 0x378   : > { %v2005_v37 = vpop.xlane.xlu1 %2004  ;;  %v2002_v8 = vpop.xlane.xlu0 %2001  ;;  %v20673_v43 = vcombine.high %v19079_v30, %v19082_v26  ;;  %v4186_v16 = vunpack.c.h.b16 %v2781_v60  ;;  %v4059_v33 = vunpack.c.l.b16 %v2718_v62  ;;  %v4825_v38 = vrot.slane %v4058_v23, %v20543_v32 }
 0x379   : > { %v2522_v27 = vmul.f32 0.0625, %v2005_v37  ;;  %v2521_v56 = vmul.f32 0.0625, %v2002_v8  ;;  %v5452_v2 = vrot.slane %v4185_v25, %v16952_v17  ;;  %v2782_v15 = vpack.c.bf16 %v2648_v11, %v2647_v42 }
 0x37a   : > { %10780 = vmatpush1.bf16.xpose.msra.mxu0 %v20668_v21  ;;  %v4821_v6 = vsel %vm20674_vm7, %v4820_v7, %v4816_v13  ;;  %v4741_v10 = vrot.slane %v4041_v24, %v16952_v17  ;;  %v4170_v52 = vunpack.c.h.b16 %v2773_v5  ;;  %v2710_v22 = vpack.c.bf16 %v2504_v59, %v2503_v63 }
 0x37b   : > { %10781 = vmatprep.subr.bf16.mxu0 %v20670_v4  ;;  %v5373_v53 = vrot.slane %v4169_v41, %v16952_v17  ;;  %v4060_v29 = vunpack.c.h.b16 %v2718_v62  ;;  %v5369_v8 = vsel %vm20675_vm0, %v5368_v47, %v5364_v61  ;;  %v5457_v23 = vrot.slane %v4186_v16, %v20543_v32 }
 0x37c   : > { %10944 = vmatpush1.bf16.xpose.msra.mxu1 %v20669_v40  ;;  %v2389_v55 = vpop.xlane.xlu1 %2388  ;;  %v2386_v0 = vpop.xlane.xlu0 %2385  ;;  %v4830_v54 = vrot.slane %v4059_v33, %v20618_v58  ;;  %v2719_v25 = vpack.c.bf16 %v2522_v27, %v2521_v56  ;;  %v4826_v11 = vsel %vm4260_vm9, %v4825_v38, %v4821_v6  ;;  %v5453_v13 = vsel %vm20676_vm1, %v5452_v2, %v5448_v45 }
 0x37d   : > { %10945 = vmatprep.subr.bf16.mxu1 %v20673_v43  ;;  %v2650_v60 = vmul.f32 0.0625, %v2389_v55  ;;  %v2649_v21 = vmul.f32 0.0625, %v2386_v0  ;;  %v4746_v5 = vrot.slane %v4042_v20, %v20543_v32  ;;  %v4187_v42 = vunpack.c.l.b16 %v2782_v15 }
 0x37e   : > { %v20677_v17 = vcombine.low %v19069_v3, %v19072_v31  ;;  %v5378_v62 = vrot.slane %v4170_v52, %v20543_v32  ;;  %v4043_v7 = vunpack.c.l.b16 %v2710_v22  ;;  %v2632_v24 = vmul.f32 0.0625, %v19171_v9 }
 0x37f   : > { %v2631_v59 = vmul.f32 0.0625, %v19182_v14  ;;  %v20678_v63 = vcombine.low %v19079_v30, %v19082_v26  ;;  %v20679_v45 = vcombine.high %v19091_v1, %v19094_v57  ;;  %v4742_v55 = vsel %vm20680_vm2, %v4741_v10, %v4737_v50 }
 0x380   : > { %v1957_v39 = vpop.xlane.xlu1 %1956  ;;  %v1954_v37 = vpop.xlane.xlu0 %1953  ;;  %v5374_v3 = vsel %vm20681_vm3, %v5373_v53, %v5369_v8  ;;  %v4835_v32 = vrot.slane %v4060_v29, %v20622_v44  ;;  %v2783_v31 = vpack.c.bf16 %v2650_v60, %v2649_v21  ;;  %v20682_v9 = vcombine.high %v19105_v36, %v19108_v48 }
 0x381   : > { %v5458_v30 = vsel %vm4260_vm9, %v5457_v23, %v5453_v13  ;;  %v4831_v26 = vsel %vm4267_vm10, %v4830_v54, %v4826_v11  ;;  %v4188_v14 = vunpack.c.h.b16 %v2782_v15  ;;  %v4061_v61 = vunpack.c.l.b16 %v2719_v25 }
 0x382   : > { %10782 = vmatpush1.bf16.xpose.msra.mxu0 %v20677_v17  ;;  %v5462_v47 = vrot.slane %v4187_v42, %v20618_v58  ;;  %v4044_v41 = vunpack.c.h.b16 %v2710_v22  ;;  %v2506_v50 = vmul.f32 0.0625, %v1957_v39  ;;  %v2505_v0 = vmul.f32 0.0625, %v1954_v37 }
 0x383   : > { %10783 = vmatprep.subr.bf16.mxu0 %v20679_v45  ;;  %v4747_v43 = vsel %vm4260_vm9, %v4746_v5, %v4742_v55  ;;  %v19264_v16 = vsel %vm4260_vm9, %v5378_v62, %v5374_v3  ;;  %v4751_v33 = vrot.slane %v4043_v7, %v20618_v58  ;;  %v2774_v27 = vpack.c.bf16 %v2632_v24, %v2631_v59  ;;  %v20686_v7 = vld [vmem:[#allocation45_spill] sm:$0xff]  ;;  %v20687_v24 = vld [vmem:[#allocation46_spill] sm:$0xff] }
 0x384   : > { %10946 = vmatpush1.bf16.xpose.msra.mxu1 %v20678_v63  ;;  %v2341_v40 = vpop.xlane.xlu1 %2340  ;;  %v2338_v4 = vpop.xlane.xlu0 %2337  ;;  %v4836_v38 = vsel %vm4274_vm11, %v4835_v32, %v4831_v26  ;;  %v4062_v2 = vunpack.c.h.b16 %v2719_v25  ;;  %v4189_v20 = vunpack.c.l.b16 %v2783_v31  ;;  %v4840_v10 = vrot.slane %v4061_v61, %v20629_v12 }
 0x385   : > { %10947 = vmatprep.subr.bf16.mxu1 %v20682_v9  ;;  %v2634_v52 = vmul.f32 0.0625, %v2341_v40  ;;  %v2633_v22 = vmul.f32 0.0625, %v2338_v4  ;;  %v5463_v53 = vsel %vm4267_vm10, %v5462_v47, %v5458_v30  ;;  %v5467_v29 = vrot.slane %v4188_v14, %v20622_v44  ;;  %v20689_v9 = vld [vmem:[#allocation33_spill] sm:$0xff] }
 0x386   : > { %v4756_v60 = vrot.slane %v4044_v41, %v20622_v44  ;;  %v2711_v21 = vpack.c.bf16 %v2506_v50, %v2505_v0  ;;  %v20683_v37 = vcombine.low %v19091_v1, %v19094_v57  ;;  %v4752_v8 = vsel %vm4267_vm10, %v4751_v33, %v4747_v43 }
 0x387   : > { %v4171_v23 = vunpack.c.l.b16 %v2774_v27  ;;  %v4172_v54 = vunpack.c.h.b16 %v2774_v27  ;;  %v20684_v11 = vcombine.low %v19105_v36, %v19108_v48  ;;  %v20685_v5 = vcombine.high %v19119_v51, %v19122_v35 }
 0x388   : > { %v2011_v56 = vpop.xlane.xlu1 %2010  ;;  %v2008_v6 = vpop.xlane.xlu0 %2007  ;;  %v4845_v42 = vrot.slane %v4062_v2, %v20638_v18  ;;  %v4190_v17 = vunpack.c.h.b16 %v2783_v31  ;;  %v5472_v1 = vrot.slane %v4189_v20, %v20629_v12  ;;  %v20688_v59 = vcombine.high %v20686_v7, %v20687_v24  ;;  %v20690_v2 = vld [vmem:[#allocation34_spill] sm:$0xff] }
 0x389   : > { %v2524_v15 = vmul.f32 0.0625, %v2011_v56  ;;  %v2523_v39 = vmul.f32 0.0625, %v2008_v6  ;;  %v4841_v63 = vsel %vm4281_vm12, %v4840_v10, %v4836_v38  ;;  %v2775_v36 = vpack.c.bf16 %v2634_v52, %v2633_v22 }
 0x38a   : > { %10784 = vmatpush1.bf16.xpose.msra.mxu0 %v20683_v37  ;;  %v5468_v45 = vsel %vm4274_vm11, %v5467_v29, %v5463_v53  ;;  %v4757_v55 = vsel %vm4274_vm11, %v4756_v60, %v4752_v8  ;;  %v4045_v3 = vunpack.c.l.b16 %v2711_v21  ;;  %v5383_v31 = vrot.slane %v4171_v23, %v20618_v58  ;;  %v20693_v53 = vld [vmem:[#allocation28_spill] sm:$0xff]  ;;  %v20694_v29 = vld [vmem:[#allocation29_spill] sm:$0xff] }
 0x38b   : > { %v2720_v25 = vpack.c.bf16 %v2524_v15, %v2523_v39  ;;  %10785 = vmatprep.subr.bf16.mxu0 %v20685_v5  ;;  %v5388_v4 = vrot.slane %v4172_v54, %v20622_v44  ;;  %v4846_v61 = vsel %vm4288_vm13, %v4845_v42, %v4841_v63  ;;  %v5473_v47 = vsel %vm4281_vm12, %v5472_v1, %v5468_v45  ;;  %v3173_v5 = vld [vmem:[%s16479_s10 + $0xc20] sm:$0xff] }
 0x38c   : > { %10948 = vmatpush1.bf16.xpose.msra.mxu1 %v20684_v11  ;;  %v2395_v13 = vpop.xlane.xlu1 %2394  ;;  %v2392_v62 = vpop.xlane.xlu0 %2391  ;;  %v5477_v41 = vrot.slane %v4190_v17, %v20638_v18  ;;  %v4173_v43 = vunpack.c.l.b16 %v2775_v36  ;;  %v4046_v38 = vunpack.c.h.b16 %v2711_v21  ;;  %v4761_v58 = vrot.slane %v4045_v3, %v20629_v12 }
 0x38d   : > { %v2652_v57 = vmul.f32 0.0625, %v2395_v13  ;;  %10949 = vmatprep.subr.bf16.mxu1 %v20688_v59  ;;  %v4063_v48 = vunpack.c.l.b16 %v2720_v25  ;;  %v2651_v40 = vmul.f32 0.0625, %v2392_v62  ;;  %v4064_v32 = vunpack.c.h.b16 %v2720_v25  ;;  %v3169_v13 = vld [vmem:[%s16479_s10 + $0xc00] sm:$0xff] }
 0x38e   : > { %v20691_v15 = vcombine.low %v19119_v51, %v19122_v35  ;;  %v20692_v22 = vcombine.low %v20686_v7, %v20687_v24  ;;  %v20695_v60 = vcombine.high %v20693_v53, %v20694_v29  ;;  %v5384_v51 = vsel %vm4267_vm10, %v5383_v31, %v19264_v16 }
 0x38f   : > { %v4850_v30 = vrot.slane %v4063_v48, %v20689_v9  ;;  %v2784_v26 = vpack.c.bf16 %v2652_v57, %v2651_v40  ;;  %v4855_v20 = vrot.slane %v4064_v32, %v20690_v2  ;;  %v5478_v35 = vsel %vm4288_vm13, %v5477_v41, %v5473_v47  ;;  %v3053_v41 = vld [vmem:[%s16479_s10 + $0x860] sm:$0xff] }
 0x390   : > { %v1963_v14 = vpop.xlane.xlu1 %1962  ;;  %v1960_v0 = vpop.xlane.xlu0 %1959  ;;  %v4174_v21 = vunpack.c.h.b16 %v2775_v36  ;;  %v5393_v23 = vrot.slane %v4173_v43, %v20629_v12  ;;  %v4766_v42 = vrot.slane %v4046_v38, %v20638_v18  ;;  %v4762_v57 = vsel %vm4281_vm12, %v4761_v58, %v4757_v55  ;;  %v20699_v38 = vld [vmem:[#allocation35_spill] sm:$0xff] }
 0x391   : > { %v2508_v50 = vmul.f32 0.0625, %v1963_v14  ;;  %v4191_v33 = vunpack.c.l.b16 %v2784_v26  ;;  %v4192_v27 = vunpack.c.h.b16 %v2784_v26  ;;  %v2507_v56 = vmul.f32 0.0625, %v1960_v0  ;;  %v3057_v58 = vld [vmem:[%s16479_s10 + $0x880] sm:$0xff] }
 0x392   : > { %v4851_v44 = vsel %vm4295_vm14, %v4850_v30, %v4846_v61  ;;  %10786 = vmatpush1.bf16.xpose.msra.mxu0 %v20691_v15  ;;  %v5389_v7 = vsel %vm4274_vm11, %v5388_v4, %v5384_v51  ;;  %v5398_v24 = vrot.slane %v4174_v21, %v20638_v18  ;;  %v14316_v63 = vcombine.high %v3169_v13, %v3173_v5  ;;  %v3049_v61 = vld [vmem:[%s16479_s10 + $0x840] sm:$0xff] }
 0x393   : > { %v5482_v6 = vrot.slane %v4191_v33, %v20689_v9  ;;  %v5487_v10 = vrot.slane %v4192_v27, %v20690_v2  ;;  %v2712_v52 = vpack.c.bf16 %v2508_v50, %v2507_v56  ;;  %10787 = vmatprep.subr.bf16.mxu0 %v20695_v60  ;;  %v4856_v16 = vsel %vm4302_vm15, %v4855_v20, %v4851_v44  ;;  %v3189_v44 = vld [vmem:[%s16479_s10 + $0xca0] sm:$0xff] }
 0x394   : > { %10950 = vmatpush1.bf16.xpose.msra.mxu1 %v20692_v22  ;;  %v2347_v39 = vpop.xlane.xlu1 %2346  ;;  %v2344_v8 = vpop.xlane.xlu0 %2343  ;;  %v5394_v36 = vsel %vm4281_vm12, %v5393_v23, %v5389_v7  ;;  %v4767_v45 = vsel %vm4288_vm13, %v4766_v42, %v4762_v57  ;;  %v20696_v3 = vcombine.low %v20693_v53, %v20694_v29  ;;  %v20697_v4 = vcombine.low %v19174_v34, %v19177_v28  ;;  %v3177_v34 = vld [vmem:[%s16479_s10 + $0xc40] sm:$0xff] }
 0x395   : > { %v2636_v37 = vmul.f32 0.0625, %v2347_v39  ;;  %10951 = vmatprep.subr.bf16.mxu1 %v14186_v46  ;;  %v5483_v54 = vsel %vm4295_vm14, %v5482_v6, %v5478_v35  ;;  %v4047_v25 = vunpack.c.l.b16 %v2712_v52  ;;  %v2635_v11 = vmul.f32 0.0625, %v2344_v8  ;;  %v3181_v28 = vld [vmem:[%s16479_s10 + $0xc60] sm:$0xff] }
 0x396   : > { %v5488_v17 = vsel %vm4302_vm15, %v5487_v10, %v5483_v54  ;;  %v4048_v1 = vunpack.c.h.b16 %v2712_v52  ;;  %v5399_v30 = vsel %vm4288_vm13, %v5398_v24, %v5394_v36  ;;  %v20698_v26 = vcombine.high %v19185_v19, %v19188_v49  ;;  %v3065_v10 = vld [vmem:[%s16479_s10 + $0x8c0] sm:$0xff] }
 0x397   : > { %v5497_v62 = vsel %vm5489_vm8, %v5488_v17, %v4856_v16  ;;  %v4771_v46 = vrot.slane %v4047_v25, %v20689_v9  ;;  %v2776_v12 = vpack.c.bf16 %v2636_v37, %v2635_v11  ;;  %v14187_v0 = vcombine.low %v19185_v19, %v19188_v49  ;;  %v3061_v19 = vld [vmem:[%s16479_s10 + $0x8a0] sm:$0xff] }
 0x398   : > { %v19328_v59 = vpack.c.b16 %v5497_v62, %v5497_v62  ;;  %v4776_v55 = vrot.slane %v4048_v1, %v20690_v2  ;;  %v14315_v43 = vcombine.low %v3169_v13, %v3173_v5  ;;  %v14196_v27 = vcombine.high %v3049_v61, %v3053_v41  ;;  %v3185_v49 = vld [vmem:[%s16479_s10 + $0xc80] sm:$0xff] }
 0x399   : > { %v4175_v48 = vunpack.c.l.b16 %v2776_v12  ;;  %v4176_v40 = vunpack.c.h.b16 %v2776_v12  ;;  %v4772_v18 = vsel %vm4295_vm14, %v4771_v46, %v4767_v45  ;;  %v14324_v56 = vcombine.high %v3177_v34, %v3181_v28  ;;  %v3069_v52 = vld [vmem:[%s16479_s10 + $0x8e0] sm:$0xff] }
 0x39a   : > { %10788 = vmatpush1.bf16.xpose.msra.mxu0 %v20696_v3  ;;  %10789 = vmatprep.mubr.bf16.mxu0 %v19328_v59  ;;  %v14323_v20 = vcombine.low %v3177_v34, %v3181_v28  ;;  %v14204_v15 = vcombine.high %v3057_v58, %v3061_v19  ;;  %v14332_v6 = vcombine.high %v3185_v49, %v3189_v44  ;;  %v3193_v22 = vld [vmem:[%s16479_s10 + $0xcc0] sm:$0xff] }
 0x39b   : > { %v5403_v32 = vrot.slane %v4175_v48, %v20689_v9  ;;  %v5408_v31 = vrot.slane %v4176_v40, %v20690_v2  ;;  %10953 = vmatprep.mubr.bf16.mxu1 %v19328_v59  ;;  %10962 = vmatprep.subr.bf16.mxu0 %v20698_v26  ;;  %v4777_v9 = vsel %vm4302_vm15, %v4776_v55, %v4772_v18  ;;  %v3197_v39 = vld [vmem:[%s16479_s10 + $0xce0] sm:$0xff] }
 0x39c   : > { %10952 = vmatpush1.bf16.xpose.msra.mxu1 %v20697_v4  ;;  %v14195_v2 = vcombine.low %v3049_v61, %v3053_v41  ;;  %v14203_v53 = vcombine.low %v3057_v58, %v3061_v19  ;;  %v14331_v29 = vcombine.low %v3185_v49, %v3189_v44  ;;  %v14212_v60 = vcombine.high %v3065_v10, %v3069_v52  ;;  %v3073_v35 = vld [vmem:[%s16479_s10 + $0x900] sm:$0xff] }
 0x39d   : > { %11126 = vmatprep.subr.bf16.mxu1 %v14316_v63  ;;  %v5404_v14 = vsel %vm4295_vm14, %v5403_v32, %v5399_v30  ;;  %v14340_v51 = vcombine.high %v3193_v22, %v3197_v39  ;;  %v3077_v21 = vld [vmem:[%s16479_s10 + $0x920] sm:$0xff]  ;;  %v14211_v23 = vcombine.low %v3065_v10, %v3069_v52  ;;  %v14339_v54 = vcombine.low %v3193_v22, %v3197_v39 }
 0x39e   : > { %v5409_v47 = vsel %vm4302_vm15, %v5408_v31, %v5404_v14  ;;  %v3201_v37 = vld [vmem:[%s16479_s10 + $0xd00] sm:$0xff]  ;;  %v14220_v25 = vcombine.high %v3073_v35, %v3077_v21  ;;  %v14219_v17 = vcombine.low %v3073_v35, %v3077_v21 }
 0x39f   : > { %v5496_v50 = vsel %vm5489_vm8, %v5409_v47, %v4777_v9  ;;  %v3205_v8 = vld [vmem:[%s16479_s10 + $0xd20] sm:$0xff]  ;;  %vm12286_vm8 = vcmask (!%p14955_p3), 1041408  }
 0x3a0   : > { %v19358_v33 = vpack.c.b16 %v5496_v50, %v5496_v50  ;;  %v14348_v11 = vcombine.high %v3201_v37, %v3205_v8  ;;  %v3081_v13 = vld [vmem:[%s16479_s10 + $0x940] sm:$0xff]  ;;  %v14347_v1 = vcombine.low %v3201_v37, %v3205_v8 }
 0x3a1   : > { %v3085_v5 = vld [vmem:[%s16479_s10 + $0x960] sm:$0xff] }
 0x3a2   : > { %10790 = vmatmul.mubr.bf16.vlgmr.msra.gmra.mrb[0].mxu0 %v19358_v33  ;;  %v3209_v42 = vld [vmem:[%s16479_s10 + $0xd40] sm:$0xff]  ;;  %v14228_v57 = vcombine.high %v3081_v13, %v3085_v5  ;;  %v14227_v63 = vcombine.low %v3081_v13, %v3085_v5 }
 0x3a3   : > { %10954 = vmatmul.mubr.bf16.vlgmr.msra.gmra.mrb[0].mxu1 %v19358_v33  ;;  %10963 = vmatpush1.bf16.xpose.msra.mxu0 %v14187_v0  ;;  %v3213_v16 = vld [vmem:[%s16479_s10 + $0xd60] sm:$0xff] }
 0x3a4   : > { %11127 = vmatpush1.bf16.xpose.msra.mxu1 %v14315_v43  ;;  %10994 = vmatprep.mubr.bf16.mxu0 %v20699_v38  ;;  %v14356_v62 = vcombine.high %v3209_v42, %v3213_v16  ;;  %v3089_v46 = vld [vmem:[%s16479_s10 + $0x980] sm:$0xff]  ;;  %v14355_v36 = vcombine.low %v3209_v42, %v3213_v16 }
 0x3a5   : > { %11158 = vmatprep.mubr.bf16.mxu1 %v20699_v38  ;;  %10964 = vmatprep.subr.bf16.mxu0 %v14196_v27  ;;  %v3093_v12 = vld [vmem:[%s16479_s10 + $0x9a0] sm:$0xff] }
 0x3a6   : > { %11128 = vmatprep.subr.bf16.mxu1 %v14324_v56  ;;  %v3217_v7 = vld [vmem:[%s16479_s10 + $0xd80] sm:$0xff]  ;;  %v14236_v48 = vcombine.high %v3089_v46, %v3093_v12  ;;  %v14235_v32 = vcombine.low %v3089_v46, %v3093_v12 }
 0x3a7   : > { %v3221_v24 = vld [vmem:[%s16479_s10 + $0xda0] sm:$0xff] }
 0x3a8   : > { %v14364_v40 = vcombine.high %v3217_v7, %v3221_v24  ;;  %v3097_v45 = vld [vmem:[%s16479_s10 + $0x9c0] sm:$0xff]  ;;  %v14363_v31 = vcombine.low %v3217_v7, %v3221_v24 }
 0x3a9   : > { %v3101_v55 = vld [vmem:[%s16479_s10 + $0x9e0] sm:$0xff] }
 0x3aa   : > { %v3225_v3 = vld [vmem:[%s16479_s10 + $0xdc0] sm:$0xff]  ;;  %v14244_v4 = vcombine.high %v3097_v45, %v3101_v55  ;;  %v14243_v47 = vcombine.low %v3097_v45, %v3101_v55 }
 0x3ab   : > { %10965 = vmatpush1.bf16.xpose.msra.mxu0 %v14195_v2  ;;  %v3229_v18 = vld [vmem:[%s16479_s10 + $0xde0] sm:$0xff] }
 0x3ac   : > { %11129 = vmatpush1.bf16.xpose.msra.mxu1 %v14323_v20  ;;  %10966 = vmatprep.subr.bf16.mxu0 %v14204_v15  ;;  %v14372_v30 = vcombine.high %v3225_v3, %v3229_v18  ;;  %v3105_v26 = vld [vmem:[%s16479_s10 + $0xa00] sm:$0xff]  ;;  %v14371_v41 = vcombine.low %v3225_v3, %v3229_v18 }
 0x3ad   : > { %11130 = vmatprep.subr.bf16.mxu1 %v14332_v6  ;;  %v3109_v14 = vld [vmem:[%s16479_s10 + $0xa20] sm:$0xff] }
 0x3ae   : > { %v3233_v61 = vld [vmem:[%s16479_s10 + $0xe00] sm:$0xff]  ;;  %v14252_v34 = vcombine.high %v3105_v26, %v3109_v14  ;;  %v14251_v56 = vcombine.low %v3105_v26, %v3109_v14 }
 0x3af   : > { %v3237_v9 = vld [vmem:[%s16479_s10 + $0xe20] sm:$0xff] }
 0x3b0   : > { %v14380_v28 = vcombine.high %v3233_v61, %v3237_v9  ;;  %v3113_v50 = vld [vmem:[%s16479_s10 + $0xa40] sm:$0xff]  ;;  %v14379_v58 = vcombine.low %v3233_v61, %v3237_v9  ;;  %v3042_v9 = vld [vmem:[%s16479_s10 + $0x808] sm:$0xff] }
 0x3b1   : > { %v3117_v0 = vld [vmem:[%s16479_s10 + $0xa60] sm:$0xff] }
 0x3b2   : > { %v3241_v43 = vld [vmem:[%s16479_s10 + $0xe40] sm:$0xff]  ;;  %v14260_v19 = vcombine.high %v3113_v50, %v3117_v0  ;;  %v14259_v6 = vcombine.low %v3113_v50, %v3117_v0 }
 0x3b3   : > { %10967 = vmatpush1.bf16.xpose.msra.mxu0 %v14203_v53  ;;  %v3245_v27 = vld [vmem:[%s16479_s10 + $0xe60] sm:$0xff] }
 0x3b4   : > { %11131 = vmatpush1.bf16.xpose.msra.mxu1 %v14331_v29  ;;  %10968 = vmatprep.subr.bf16.mxu0 %v14212_v60  ;;  %v14388_v49 = vcombine.high %v3241_v43, %v3245_v27  ;;  %v3121_v44 = vld [vmem:[%s16479_s10 + $0xa80] sm:$0xff]  ;;  %v14387_v10 = vcombine.low %v3241_v43, %v3245_v27  ;;  %v3050_v27 = vld [vmem:[%s16479_s10 + $0x848] sm:$0xff] }
 0x3b5   : > { %11132 = vmatprep.subr.bf16.mxu1 %v14340_v51  ;;  %v3125_v2 = vld [vmem:[%s16479_s10 + $0xaa0] sm:$0xff] }
 0x3b6   : > { %v3249_v20 = vld [vmem:[%s16479_s10 + $0xe80] sm:$0xff]  ;;  %v14268_v52 = vcombine.high %v3121_v44, %v3125_v2  ;;  %v14267_v51 = vcombine.low %v3121_v44, %v3125_v2 }
 0x3b7   : > { %v3253_v15 = vld [vmem:[%s16479_s10 + $0xea0] sm:$0xff] }
 0x3b8   : > { %v14396_v22 = vcombine.high %v3249_v20, %v3253_v15  ;;  %v3129_v39 = vld [vmem:[%s16479_s10 + $0xac0] sm:$0xff]  ;;  %v14395_v35 = vcombine.low %v3249_v20, %v3253_v15  ;;  %v20700_v15 = vld [vmem:[#allocation36_spill] sm:$0xff] }
 0x3b9   : > { %v3133_v53 = vld [vmem:[%s16479_s10 + $0xae0] sm:$0xff] }
 0x3ba   : > { %v3257_v29 = vld [vmem:[%s16479_s10 + $0xec0] sm:$0xff]  ;;  %v14276_v21 = vcombine.high %v3129_v39, %v3133_v53 }
 0x3bb   : > { %10969 = vmatpush1.bf16.xpose.msra.mxu0 %v14211_v23  ;;  %v3261_v60 = vld [vmem:[%s16479_s10 + $0xee0] sm:$0xff] }
 0x3bc   : > { %11133 = vmatpush1.bf16.xpose.msra.mxu1 %v14339_v54  ;;  %10970 = vmatprep.subr.bf16.mxu0 %v14220_v25  ;;  %v14404_v37 = vcombine.high %v3257_v29, %v3261_v60  ;;  %v3137_v8 = vld [vmem:[%s16479_s10 + $0xb00] sm:$0xff]  ;;  %v14403_v13 = vcombine.low %v3257_v29, %v3261_v60 }
 0x3bd   : > { %11134 = vmatprep.subr.bf16.mxu1 %v14348_v11  ;;  %v3141_v23 = vld [vmem:[%s16479_s10 + $0xb20] sm:$0xff]  ;;  %v14275_v11 = vcombine.low %v3129_v39, %v3133_v53  ;;  %v3190_v39 = vld [vmem:[%s16479_s10 + $0xca8] sm:$0xff] }
 0x3be   : > { %v3265_v54 = vld [vmem:[%s16479_s10 + $0xf00] sm:$0xff]  ;;  %v14284_v5 = vcombine.high %v3137_v8, %v3141_v23 }
 0x3bf   : > { %v3269_v25 = vld [vmem:[%s16479_s10 + $0xf20] sm:$0xff] }
 0x3c0   : > { %v14412_v42 = vcombine.high %v3265_v54, %v3269_v25  ;;  %v3145_v16 = vld [vmem:[%s16479_s10 + $0xb40] sm:$0xff]  ;;  %v14411_v46 = vcombine.low %v3265_v54, %v3269_v25 }
 0x3c1   : > { %v3153_v24 = vld [vmem:[%s16479_s10 + $0xb80] sm:$0xff] }
 0x3c2   : > { %v3161_v18 = vld [vmem:[%s16479_s10 + $0xbc0] sm:$0xff] }
 0x3c3   : > { %10971 = vmatpush1.bf16.xpose.msra.mxu0 %v14219_v17  ;;  %v3149_v17 = vld [vmem:[%s16479_s10 + $0xb60] sm:$0xff] }
 0x3c4   : > { %11135 = vmatpush1.bf16.xpose.msra.mxu1 %v14347_v1  ;;  %10972 = vmatprep.subr.bf16.mxu0 %v14228_v57  ;;  %v3273_v1 = vld [vmem:[%s16479_s10 + $0xf40] sm:$0xff]  ;;  %v14292_v12 = vcombine.high %v3145_v16, %v3149_v17 }
 0x3c5   : > { %11136 = vmatprep.subr.bf16.mxu1 %v14356_v62  ;;  %v3277_v57 = vld [vmem:[%s16479_s10 + $0xf60] sm:$0xff]  ;;  %v14283_v62 = vcombine.low %v3137_v8, %v3141_v23  ;;  %v3198_v8 = vld [vmem:[%s16479_s10 + $0xce8] sm:$0xff] }
 0x3c6   : > { %v14420_v7 = vcombine.high %v3273_v1, %v3277_v57  ;;  %v14419_v45 = vcombine.low %v3273_v1, %v3277_v57 }
 0x3cb   : > { %10973 = vmatpush1.bf16.xpose.msra.mxu0 %v14227_v63  ;;  %v3157_v63 = vld [vmem:[%s16479_s10 + $0xba0] sm:$0xff] }
 0x3cc   : > { %11137 = vmatpush1.bf16.xpose.msra.mxu1 %v14355_v36  ;;  %10974 = vmatprep.subr.bf16.mxu0 %v14236_v48  ;;  %v3281_v36 = vld [vmem:[%s16479_s10 + $0xf80] sm:$0xff]  ;;  %v14300_v55 = vcombine.high %v3153_v24, %v3157_v63 }
 0x3cd   : > { %11138 = vmatprep.subr.bf16.mxu1 %v14364_v40  ;;  %v3285_v48 = vld [vmem:[%s16479_s10 + $0xfa0] sm:$0xff]  ;;  %v14291_v40 = vcombine.low %v3145_v16, %v3149_v17  ;;  %v3206_v16 = vld [vmem:[%s16479_s10 + $0xd28] sm:$0xff] }
 0x3ce   : > { %v14428_v3 = vcombine.high %v3281_v36, %v3285_v48  ;;  %v14427_v26 = vcombine.low %v3281_v36, %v3285_v48 }
 0x3d3   : > { %10975 = vmatpush1.bf16.xpose.msra.mxu0 %v14235_v32  ;;  %v3165_v32 = vld [vmem:[%s16479_s10 + $0xbe0] sm:$0xff] }
 0x3d4   : > { %11139 = vmatpush1.bf16.xpose.msra.mxu1 %v14363_v31  ;;  %10976 = vmatprep.subr.bf16.mxu0 %v14244_v4  ;;  %v3289_v31 = vld [vmem:[%s16479_s10 + $0xfc0] sm:$0xff]  ;;  %v14308_v14 = vcombine.high %v3161_v18, %v3165_v32 }
 0x3d5   : > { %11140 = vmatprep.subr.bf16.mxu1 %v14372_v30  ;;  %v3293_v4 = vld [vmem:[%s16479_s10 + $0xfe0] sm:$0xff]  ;;  %v14299_v30 = vcombine.low %v3153_v24, %v3157_v63  ;;  %v3214_v24 = vld [vmem:[%s16479_s10 + $0xd68] sm:$0xff] }
 0x3d6   : > { %v14436_v61 = vcombine.high %v3289_v31, %v3293_v4  ;;  %v14435_v50 = vcombine.low %v3289_v31, %v3293_v4 }
 0x3db   : > { %10977 = vmatpush1.bf16.xpose.msra.mxu0 %v14243_v47  ;;  %v3046_v47 = vld [vmem:[%s16479_s10 + $0x828] sm:$0xff] }
 0x3dc   : > { %11141 = vmatpush1.bf16.xpose.msra.mxu1 %v14371_v41  ;;  %10978 = vmatprep.subr.bf16.mxu0 %v14252_v34  ;;  %v3170_v41 = vld [vmem:[%s16479_s10 + $0xc08] sm:$0xff]  ;;  %v14190_v0 = vcombine.high %v3042_v9, %v3046_v47 }
 0x3dd   : > { %11142 = vmatprep.subr.bf16.mxu1 %v14380_v28  ;;  %v3174_v34 = vld [vmem:[%s16479_s10 + $0xc28] sm:$0xff]  ;;  %v14307_v28 = vcombine.low %v3161_v18, %v3165_v32 }
 0x3de   : > { %v14318_v43 = vcombine.high %v3170_v41, %v3174_v34  ;;  %v14317_v44 = vcombine.low %v3170_v41, %v3174_v34  ;;  %v3222_v18 = vld [vmem:[%s16479_s10 + $0xda8] sm:$0xff] }
 0x3e3   : > { %10979 = vmatpush1.bf16.xpose.msra.mxu0 %v14251_v56  ;;  %v3054_v56 = vld [vmem:[%s16479_s10 + $0x868] sm:$0xff] }
 0x3e4   : > { %11143 = vmatpush1.bf16.xpose.msra.mxu1 %v14379_v58  ;;  %10980 = vmatprep.subr.bf16.mxu0 %v14260_v19  ;;  %v3178_v58 = vld [vmem:[%s16479_s10 + $0xc48] sm:$0xff]  ;;  %v14198_v2 = vcombine.high %v3050_v27, %v3054_v56  ;;  %v14197_v53 = vcombine.low %v3050_v27, %v3054_v56 }
 0x3e5   : > { %11144 = vmatprep.subr.bf16.mxu1 %v14388_v49  ;;  %v3182_v19 = vld [vmem:[%s16479_s10 + $0xc68] sm:$0xff]  ;;  %v14189_v49 = vcombine.low %v3042_v9, %v3046_v47 }
 0x3e6   : > { %v14326_v20 = vcombine.high %v3178_v58, %v3182_v19  ;;  %v14325_v29 = vcombine.low %v3178_v58, %v3182_v19  ;;  %v3230_v9 = vld [vmem:[%s16479_s10 + $0xde8] sm:$0xff] }
 0x3e7   : > { %v3238_v27 = vld [vmem:[%s16479_s10 + $0xe28] sm:$0xff] }
 0x3eb   : > { %10981 = vmatpush1.bf16.xpose.msra.mxu0 %v14259_v6  ;;  %v20701_v6 = vld [vmem:[#allocation20_spill] sm:$0xff] }
 0x3ec   : > { %11145 = vmatpush1.bf16.xpose.msra.mxu1 %v14387_v10  ;;  %10982 = vmatprep.subr.bf16.mxu0 %v14268_v52  ;;  %v3058_v10 = vld [vmem:[%s16479_s10 + $0x888] sm:$0xff] }
 0x3ed   : > { %11146 = vmatprep.subr.bf16.mxu1 %v14396_v22  ;;  %v3062_v52 = vld [vmem:[%s16479_s10 + $0x8a8] sm:$0xff] }
 0x3ee   : > { %v3186_v22 = vld [vmem:[%s16479_s10 + $0xc88] sm:$0xff]  ;;  %v14206_v60 = vcombine.high %v3058_v10, %v3062_v52  ;;  %v14205_v23 = vcombine.low %v3058_v10, %v3062_v52 }
 0x3ef   : > { %v14333_v54 = vcombine.low %v3186_v22, %v3190_v39  ;;  %v3246_v10 = vld [vmem:[%s16479_s10 + $0xe68] sm:$0xff] }
 0x3f3   : > { %10983 = vmatpush1.bf16.xpose.msra.mxu0 %v14267_v51  ;;  %v14334_v51 = vcombine.high %v3186_v22, %v3190_v39 }
 0x3f4   : > { %11147 = vmatpush1.bf16.xpose.msra.mxu1 %v14395_v35  ;;  %10984 = vmatprep.subr.bf16.mxu0 %v14276_v21  ;;  %v3066_v35 = vld [vmem:[%s16479_s10 + $0x8c8] sm:$0xff] }
 0x3f5   : > { %11148 = vmatprep.subr.bf16.mxu1 %v14404_v37  ;;  %v3070_v21 = vld [vmem:[%s16479_s10 + $0x8e8] sm:$0xff] }
 0x3f6   : > { %v3194_v37 = vld [vmem:[%s16479_s10 + $0xcc8] sm:$0xff]  ;;  %v14214_v25 = vcombine.high %v3066_v35, %v3070_v21  ;;  %v14213_v17 = vcombine.low %v3066_v35, %v3070_v21 }
 0x3f7   : > { %v14341_v1 = vcombine.low %v3194_v37, %v3198_v8  ;;  %v3254_v35 = vld [vmem:[%s16479_s10 + $0xea8] sm:$0xff] }
 0x3fb   : > { %10985 = vmatpush1.bf16.xpose.msra.mxu0 %v14275_v11  ;;  %v14342_v11 = vcombine.high %v3194_v37, %v3198_v8 }
 0x3fc   : > { %11149 = vmatpush1.bf16.xpose.msra.mxu1 %v14403_v13  ;;  %10986 = vmatprep.subr.bf16.mxu0 %v14284_v5  ;;  %v3074_v13 = vld [vmem:[%s16479_s10 + $0x908] sm:$0xff] }
 0x3fd   : > { %11150 = vmatprep.subr.bf16.mxu1 %v14412_v42  ;;  %v3078_v5 = vld [vmem:[%s16479_s10 + $0x928] sm:$0xff] }
 0x3fe   : > { %v3202_v42 = vld [vmem:[%s16479_s10 + $0xd08] sm:$0xff]  ;;  %v14222_v57 = vcombine.high %v3074_v13, %v3078_v5  ;;  %v14221_v63 = vcombine.low %v3074_v13, %v3078_v5 }
 0x3ff   : > { %v14349_v36 = vcombine.low %v3202_v42, %v3206_v16  ;;  %v3134_v13 = vld [vmem:[%s16479_s10 + $0xae8] sm:$0xff] }
 0x400   : > { %v3258_v5 = vld [vmem:[%s16479_s10 + $0xec8] sm:$0xff] }
 0x403   : > { %10987 = vmatpush1.bf16.xpose.msra.mxu0 %v14283_v62  ;;  %v14350_v62 = vcombine.high %v3202_v42, %v3206_v16  ;;  %v3262_v42 = vld [vmem:[%s16479_s10 + $0xee8] sm:$0xff] }
 0x404   : > { %11151 = vmatpush1.bf16.xpose.msra.mxu1 %v14411_v46  ;;  %10988 = vmatprep.subr.bf16.mxu0 %v14292_v12  ;;  %v3082_v46 = vld [vmem:[%s16479_s10 + $0x948] sm:$0xff] }
 0x405   : > { %11152 = vmatprep.subr.bf16.mxu1 %v14420_v7  ;;  %v3086_v12 = vld [vmem:[%s16479_s10 + $0x968] sm:$0xff] }
 0x406   : > { %v3210_v7 = vld [vmem:[%s16479_s10 + $0xd48] sm:$0xff]  ;;  %v14230_v48 = vcombine.high %v3082_v46, %v3086_v12  ;;  %v14229_v32 = vcombine.low %v3082_v46, %v3086_v12 }
 0x407   : > { %v14357_v31 = vcombine.low %v3210_v7, %v3214_v24 }
 0x40b   : > { %10989 = vmatpush1.bf16.xpose.msra.mxu0 %v14291_v40  ;;  %v14358_v40 = vcombine.high %v3210_v7, %v3214_v24  ;;  %v20702_v7 = vld [vmem:[#allocation17_spill] sm:$0xff] }
 0x40c   : > { %11153 = vmatpush1.bf16.xpose.msra.mxu1 %v14419_v45  ;;  %10990 = vmatprep.subr.bf16.mxu0 %v14300_v55  ;;  %v3090_v45 = vld [vmem:[%s16479_s10 + $0x988] sm:$0xff] }
 0x40d   : > { %11154 = vmatprep.subr.bf16.mxu1 %v14428_v3  ;;  %v3094_v55 = vld [vmem:[%s16479_s10 + $0x9a8] sm:$0xff] }
 0x40e   : > { %v3218_v3 = vld [vmem:[%s16479_s10 + $0xd88] sm:$0xff]  ;;  %v14238_v4 = vcombine.high %v3090_v45, %v3094_v55  ;;  %v14237_v47 = vcombine.low %v3090_v45, %v3094_v55 }
 0x40f   : > { %v14365_v41 = vcombine.low %v3218_v3, %v3222_v18  ;;  %v3266_v45 = vld [vmem:[%s16479_s10 + $0xf08] sm:$0xff] }
 0x410   : > { %v3270_v55 = vld [vmem:[%s16479_s10 + $0xf28] sm:$0xff] }
 0x413   : > { %10991 = vmatpush1.bf16.xpose.msra.mxu0 %v14299_v30  ;;  %v14366_v30 = vcombine.high %v3218_v3, %v3222_v18 }
 0x414   : > { %11155 = vmatpush1.bf16.xpose.msra.mxu1 %v14427_v26  ;;  %10992 = vmatprep.subr.bf16.mxu0 %v14308_v14  ;;  %v3098_v26 = vld [vmem:[%s16479_s10 + $0x9c8] sm:$0xff] }
 0x415   : > { %11156 = vmatprep.subr.bf16.mxu1 %v14436_v61  ;;  %v3102_v14 = vld [vmem:[%s16479_s10 + $0x9e8] sm:$0xff] }
 0x416   : > { %v3226_v61 = vld [vmem:[%s16479_s10 + $0xdc8] sm:$0xff]  ;;  %v14246_v34 = vcombine.high %v3098_v26, %v3102_v14  ;;  %v14245_v56 = vcombine.low %v3098_v26, %v3102_v14  ;;  %v14405_v14 = vcombine.low %v3258_v5, %v3262_v42 }
 0x417   : > { %v14373_v58 = vcombine.low %v3226_v61, %v3230_v9 }
 0x41b   : > { %10993 = vmatpush1.bf16.xpose.msra.mxu0 %v14307_v28  ;;  %v14374_v28 = vcombine.high %v3226_v61, %v3230_v9 }
 0x41c   : > { %11157 = vmatpush1.bf16.xpose.msra.mxu1 %v14435_v50  ;;  %11003 = vmatprep.subr.bf16.mxu0 %v14190_v0  ;;  %v3106_v50 = vld [vmem:[%s16479_s10 + $0xa08] sm:$0xff] }
 0x41d   : > { %11167 = vmatprep.subr.bf16.mxu1 %v14318_v43  ;;  %v3110_v0 = vld [vmem:[%s16479_s10 + $0xa28] sm:$0xff] }
 0x41e   : > { %v3234_v43 = vld [vmem:[%s16479_s10 + $0xe08] sm:$0xff]  ;;  %v14254_v19 = vcombine.high %v3106_v50, %v3110_v0  ;;  %v14253_v52 = vcombine.low %v3106_v50, %v3110_v0 }
 0x41f   : > { %v14381_v22 = vcombine.low %v3234_v43, %v3238_v27  ;;  %v3146_v0 = vld [vmem:[%s16479_s10 + $0xb48] sm:$0xff] }
 0x422   : > { %10995 = vmatmul.mubr.bf16.vlgmr.msra.gmra.mrb[4].mxu0 %v20700_v15 }
 0x423   : > { %11159 = vmatmul.mubr.bf16.vlgmr.msra.gmra.mrb[4].mxu1 %v20700_v15  ;;  %11004 = vmatpush1.bf16.xpose.msra.mxu0 %v14189_v49  ;;  %v14382_v49 = vcombine.high %v3234_v43, %v3238_v27  ;;  %v3150_v43 = vld [vmem:[%s16479_s10 + $0xb68] sm:$0xff] }
 0x424   : > { %11035 = vmatprep.mubr.bf16.mxu0 %v20701_v6  ;;  %11168 = vmatpush1.bf16.xpose.msra.mxu1 %v14317_v44  ;;  %v3114_v44 = vld [vmem:[%s16479_s10 + $0xa48] sm:$0xff] }
 0x425   : > { %11199 = vmatprep.mubr.bf16.mxu1 %v20701_v6  ;;  %11005 = vmatprep.subr.bf16.mxu0 %v14198_v2  ;;  %v3118_v2 = vld [vmem:[%s16479_s10 + $0xa68] sm:$0xff] }
 0x426   : > { %11169 = vmatprep.subr.bf16.mxu1 %v14326_v20  ;;  %v3242_v20 = vld [vmem:[%s16479_s10 + $0xe48] sm:$0xff]  ;;  %v14262_v39 = vcombine.high %v3114_v44, %v3118_v2  ;;  %v14261_v21 = vcombine.low %v3114_v44, %v3118_v2 }
 0x427   : > { %v14389_v37 = vcombine.low %v3242_v20, %v3246_v10  ;;  %v3274_v27 = vld [vmem:[%s16479_s10 + $0xf48] sm:$0xff] }
 0x428   : > { %v3154_v2 = vld [vmem:[%s16479_s10 + $0xb88] sm:$0xff] }
 0x42b   : > { %11006 = vmatpush1.bf16.xpose.msra.mxu0 %v14197_v53  ;;  %v14390_v53 = vcombine.high %v3242_v20, %v3246_v10  ;;  %v3158_v20 = vld [vmem:[%s16479_s10 + $0xba8] sm:$0xff] }
 0x42c   : > { %11170 = vmatpush1.bf16.xpose.msra.mxu1 %v14325_v29  ;;  %11007 = vmatprep.subr.bf16.mxu0 %v14206_v60  ;;  %v3122_v29 = vld [vmem:[%s16479_s10 + $0xa88] sm:$0xff] }
 0x42d   : > { %11171 = vmatprep.subr.bf16.mxu1 %v14334_v51  ;;  %v3126_v60 = vld [vmem:[%s16479_s10 + $0xaa8] sm:$0xff] }
 0x42e   : > { %v3250_v51 = vld [vmem:[%s16479_s10 + $0xe88] sm:$0xff]  ;;  %v14270_v8 = vcombine.high %v3122_v29, %v3126_v60  ;;  %v14269_v16 = vcombine.low %v3122_v29, %v3126_v60 }
 0x42f   : > { %v3282_v10 = vld [vmem:[%s16479_s10 + $0xf88] sm:$0xff] }
 0x430   : > { %v3162_v60 = vld [vmem:[%s16479_s10 + $0xbc8] sm:$0xff] }
 0x433   : > { %11008 = vmatpush1.bf16.xpose.msra.mxu0 %v14205_v23  ;;  %v14398_v23 = vcombine.high %v3250_v51, %v3254_v35 }
 0x434   : > { %11172 = vmatpush1.bf16.xpose.msra.mxu1 %v14333_v54  ;;  %11009 = vmatprep.subr.bf16.mxu0 %v14214_v25  ;;  %v15766_v54 = vmov 1983009808  }
 0x435   : > { %11173 = vmatprep.subr.bf16.mxu1 %v14342_v11  ;;  %v11965_v25 = vunpack.c.l.s4 %v15766_v54  ;;  %v3130_v11 = vld [vmem:[%s16479_s10 + $0xac8] sm:$0xff] }
 0x43b   : > { %11010 = vmatpush1.bf16.xpose.msra.mxu0 %v14213_v17  ;;  %v14397_v17 = vcombine.low %v3250_v51, %v3254_v35  ;;  %v3166_v51 = vld [vmem:[%s16479_s10 + $0xbe8] sm:$0xff] }
 0x43c   : > { %11174 = vmatpush1.bf16.xpose.msra.mxu1 %v14341_v1  ;;  %11011 = vmatprep.subr.bf16.mxu0 %v14222_v57  ;;  %v14278_v1 = vcombine.high %v3130_v11, %v3134_v13  ;;  %v11966_v57 = vunpack.c.0.s8 %v11965_v25  ;;  %v3290_v35 = vld [vmem:[%s16479_s10 + $0xfc8] sm:$0xff]  ;;  %v3043_v25 = vld [vmem:[%s16479_s10 + $0x810] sm:$0xff] }
 0x43d   : > { %11175 = vmatprep.subr.bf16.mxu1 %v14350_v62  ;;  %v14406_v62 = vcombine.high %v3258_v5, %v3262_v42  ;;  %v3175_v5 = vld [vmem:[%s16479_s10 + $0xc30] sm:$0xff]  ;;  %v14309_v42 = vcombine.low %v3162_v60, %v3166_v51 }
 0x43e   : > { %v19473_v24 = vsub.s32 %v11966_v57, %v20702_v7  ;;  %v3051_v57 = vld [vmem:[%s16479_s10 + $0x850] sm:$0xff] }
 0x43f   : > { %v3183_v7 = vld [vmem:[%s16479_s10 + $0xc70] sm:$0xff] }
 0x443   : > { %11012 = vmatpush1.bf16.xpose.msra.mxu0 %v14221_v63  ;;  %v3138_v63 = vld [vmem:[%s16479_s10 + $0xb08] sm:$0xff] }
 0x444   : > { %11176 = vmatpush1.bf16.xpose.msra.mxu1 %v14349_v36  ;;  %11013 = vmatprep.subr.bf16.mxu0 %v14230_v48  ;;  %v3142_v36 = vld [vmem:[%s16479_s10 + $0xb28] sm:$0xff] }
 0x445   : > { %11177 = vmatprep.subr.bf16.mxu1 %v14358_v40  ;;  %v14286_v61 = vcombine.high %v3138_v63, %v3142_v36 }
 0x44b   : > { %11014 = vmatpush1.bf16.xpose.msra.mxu0 %v14229_v32 }
 0x44c   : > { %11178 = vmatpush1.bf16.xpose.msra.mxu1 %v14357_v31  ;;  %11015 = vmatprep.subr.bf16.mxu0 %v14238_v4  ;;  %v14277_v4 = vcombine.low %v3130_v11, %v3134_v13  ;;  %v3047_v11 = vld [vmem:[%s16479_s10 + $0x830] sm:$0xff] }
 0x44d   : > { %11179 = vmatprep.subr.bf16.mxu1 %v14366_v30  ;;  %v3171_v13 = vld [vmem:[%s16479_s10 + $0xc10] sm:$0xff] }
 0x453   : > { %11016 = vmatpush1.bf16.xpose.msra.mxu0 %v14237_v47 }
 0x454   : > { %11180 = vmatpush1.bf16.xpose.msra.mxu1 %v14365_v41  ;;  %11017 = vmatprep.subr.bf16.mxu0 %v14246_v34  ;;  %v14414_v41 = vcombine.high %v3266_v45, %v3270_v55  ;;  %v2653_v34 = vld [vmem:[#allocation10] sm:$0xff] }
 0x455   : > { %11181 = vmatprep.subr.bf16.mxu1 %v14374_v28 }
 0x45b   : > { %11018 = vmatpush1.bf16.xpose.msra.mxu0 %v14245_v56  ;;  %v3278_v56 = vld [vmem:[%s16479_s10 + $0xf68] sm:$0xff] }
 0x45c   : > { %11182 = vmatpush1.bf16.xpose.msra.mxu1 %v14373_v58  ;;  %11019 = vmatprep.subr.bf16.mxu0 %v14254_v19  ;;  %v14285_v58 = vcombine.low %v3138_v63, %v3142_v36  ;;  %v14413_v19 = vcombine.low %v3266_v45, %v3270_v55  ;;  %v14422_v44 = vcombine.high %v3274_v27, %v3278_v56  ;;  %v20704_v45 = vld [vmem:[#allocation42_spill] sm:$0xff]  ;;  %v3059_v55 = vld [vmem:[%s16479_s10 + $0x890] sm:$0xff] }
 0x45d   : > { %11183 = vmatprep.subr.bf16.mxu1 %v14382_v49  ;;  %v14294_v49 = vcombine.high %v3146_v0, %v3150_v43  ;;  %v14319_v63 = vcombine.low %v3171_v13, %v3175_v5 }
 0x463   : > { %11020 = vmatpush1.bf16.xpose.msra.mxu0 %v14253_v52  ;;  %v3286_v52 = vld [vmem:[%s16479_s10 + $0xfa8] sm:$0xff] }
 0x464   : > { %11184 = vmatpush1.bf16.xpose.msra.mxu1 %v14381_v22  ;;  %11021 = vmatprep.subr.bf16.mxu0 %v14262_v39  ;;  %v14293_v22 = vcombine.low %v3146_v0, %v3150_v43  ;;  %v14421_v39 = vcombine.low %v3274_v27, %v3278_v56  ;;  %v14430_v29 = vcombine.high %v3282_v10, %v3286_v52  ;;  %v3075_v0 = vld [vmem:[%s16479_s10 + $0x910] sm:$0xff] }
 0x465   : > { %11185 = vmatprep.subr.bf16.mxu1 %v14390_v53  ;;  %v14302_v53 = vcombine.high %v3154_v2, %v3158_v20  ;;  %v3079_v43 = vld [vmem:[%s16479_s10 + $0x930] sm:$0xff] }
 0x466   : > { %v3203_v27 = vld [vmem:[%s16479_s10 + $0xd10] sm:$0xff] }
 0x467   : > { %v3207_v56 = vld [vmem:[%s16479_s10 + $0xd30] sm:$0xff] }
 0x46b   : > { %11022 = vmatpush1.bf16.xpose.msra.mxu0 %v14261_v21  ;;  %v3294_v21 = vld [vmem:[%s16479_s10 + $0xfe8] sm:$0xff] }
 0x46c   : > { %11186 = vmatpush1.bf16.xpose.msra.mxu1 %v14389_v37  ;;  %11023 = vmatprep.subr.bf16.mxu0 %v14270_v8  ;;  %v14301_v37 = vcombine.low %v3154_v2, %v3158_v20  ;;  %v14429_v8 = vcombine.low %v3282_v10, %v3286_v52  ;;  %v14438_v54 = vcombine.high %v3290_v35, %v3294_v21  ;;  %v3083_v2 = vld [vmem:[%s16479_s10 + $0x950] sm:$0xff] }
 0x46d   : > { %11187 = vmatprep.subr.bf16.mxu1 %v14398_v23  ;;  %v14310_v23 = vcombine.high %v3162_v60, %v3166_v51  ;;  %v3087_v20 = vld [vmem:[%s16479_s10 + $0x970] sm:$0xff] }
 0x46e   : > { %v3211_v10 = vld [vmem:[%s16479_s10 + $0xd50] sm:$0xff] }
 0x46f   : > { %v3215_v52 = vld [vmem:[%s16479_s10 + $0xd70] sm:$0xff] }
 0x470   : > { %v3091_v60 = vld [vmem:[%s16479_s10 + $0x990] sm:$0xff] }
 0x471   : > { %v3095_v51 = vld [vmem:[%s16479_s10 + $0x9b0] sm:$0xff] }
 0x473   : > { %11024 = vmatpush1.bf16.xpose.msra.mxu0 %v14269_v16  ;;  %v14437_v16 = vcombine.low %v3290_v35, %v3294_v21  ;;  %v3219_v35 = vld [vmem:[%s16479_s10 + $0xd90] sm:$0xff] }
 0x474   : > { %11188 = vmatpush1.bf16.xpose.msra.mxu1 %v14397_v17  ;;  %11025 = vmatprep.subr.bf16.mxu0 %v14278_v1  ;;  %v14192_v17 = vcombine.high %v3043_v25, %v3047_v11  ;;  %v14320_v1 = vcombine.high %v3171_v13, %v3175_v5  ;;  %v3223_v21 = vld [vmem:[%s16479_s10 + $0xdb0] sm:$0xff] }
 0x475   : > { %v10791_v46 = vpop.f32.mrb[0].mxu0  ;;  %11189 = vmatprep.subr.bf16.mxu1 %v14406_v62  ;;  %v3055_v62 = vld [vmem:[%s16479_s10 + $0x870] sm:$0xff] }
 0x476   : > { %v10955_v12 = vpop.f32.mrb[0].mxu1  ;;  %v10793_v48 = vpop.f32.mrb[1].mxu0  ;;  %v14200_v36 = vcombine.high %v3051_v57, %v3055_v62  ;;  %v3227_v13 = vld [vmem:[%s16479_s10 + $0xdd0] sm:$0xff] }
 0x477   : > { %v10957_v40 = vpop.f32.mrb[1].mxu1  ;;  %v11962_v3 = vcombine.low %v10791_v46, %v10793_v48  ;;  %v10795_v32 = vpop.f32.mrb[2].mxu0  ;;  %v14191_v46 = vcombine.low %v3043_v25, %v3047_v11  ;;  %v20703_v48 = vld [vmem:[#allocation18_spill] sm:$0xff]  ;;  %v3099_v25 = vld [vmem:[%s16479_s10 + $0x9d0] sm:$0xff] }
 0x478   : > { %v11963_v18 = vcombine.low %v10955_v12, %v10957_v40  ;;  %v10959_v31 = vpop.f32.mrb[2].mxu1  ;;  %v10796_v30 = vpop.f32.mrb[3].mxu0  ;;  %v3179_v12 = vld [vmem:[%s16479_s10 + $0xc50] sm:$0xff] }
 0x479   : > { %v10960_v26 = vpop.f32.mrb[3].mxu1  ;;  %v11970_v9 = vrot.slane %v11962_v3, %v19473_v24  ;;  %v14328_v40 = vcombine.high %v3179_v12, %v3183_v7  ;;  %v3063_v3 = vld [vmem:[%s16479_s10 + $0x8b0] sm:$0xff]  ;;  %v14199_v31 = vcombine.low %v3051_v57, %v3055_v62 }
 0x47a   : > { %v11977_v47 = vrot.slane %v11963_v18, %v19473_v24  ;;  %v3187_v18 = vld [vmem:[%s16479_s10 + $0xc90] sm:$0xff]  ;;  %v14208_v30 = vcombine.high %v3059_v55, %v3063_v3 }
 0x47b   : > { %11026 = vmatpush1.bf16.xpose.msra.mxu0 %v14277_v4  ;;  %v3191_v32 = vld [vmem:[%s16479_s10 + $0xcb0] sm:$0xff]  ;;  %v14327_v4 = vcombine.low %v3179_v12, %v3183_v7 }
 0x47c   : > { %v11978_v28 = vcombine.low %v11970_v9, %v11977_v47  ;;  %11190 = vmatpush1.bf16.xpose.msra.mxu1 %v14405_v14  ;;  %11027 = vmatprep.subr.bf16.mxu0 %v14286_v61  ;;  %v14336_v26 = vcombine.high %v3187_v18, %v3191_v32  ;;  %v3067_v14 = vld [vmem:[%s16479_s10 + $0x8d0] sm:$0xff] }
 0x47d   : > { %11191 = vmatprep.subr.bf16.mxu1 %v14414_v41  ;;  %v3071_v61 = vld [vmem:[%s16479_s10 + $0x8f0] sm:$0xff]  ;;  %v14207_v41 = vcombine.low %v3059_v55, %v3063_v3 }
 0x47e   : > { %v12034_v50 = vadd.f32 %v11978_v28, %v2653_v34  ;;  %v3195_v9 = vld [vmem:[%s16479_s10 + $0xcd0] sm:$0xff]  ;;  %v14335_v34 = vcombine.low %v3187_v18, %v3191_v32  ;;  %v14216_v28 = vcombine.high %v3067_v14, %v3071_v61 }
 0x47f   : > { %v3199_v47 = vld [vmem:[%s16479_s10 + $0xcf0] sm:$0xff] }
 0x480   : > { %12038 = vst [vmem:[#allocation10] sm:$0xff] %v12034_v50  ;;  %v14344_v50 = vcombine.high %v3195_v9, %v3199_v47  ;;  %v3103_v11 = vld [vmem:[%s16479_s10 + $0x9f0] sm:$0xff] }
 0x481   : > { %v3231_v5 = vld [vmem:[%s16479_s10 + $0xdf0] sm:$0xff]  ;;  %v14247_v7 = vcombine.low %v3099_v25, %v3103_v11 }
 0x482   : > { %v3107_v57 = vld [vmem:[%s16479_s10 + $0xa10] sm:$0xff] }
 0x483   : > { %11028 = vmatpush1.bf16.xpose.msra.mxu0 %v14285_v58  ;;  %v14215_v58 = vcombine.low %v3067_v14, %v3071_v61  ;;  %v3111_v62 = vld [vmem:[%s16479_s10 + $0xa30] sm:$0xff] }
 0x484   : > { %11192 = vmatpush1.bf16.xpose.msra.mxu1 %v14413_v19  ;;  %11029 = vmatprep.subr.bf16.mxu0 %v14294_v49  ;;  %v14343_v19 = vcombine.low %v3195_v9, %v3199_v47  ;;  %v14224_v49 = vcombine.high %v3075_v0, %v3079_v43  ;;  %v3239_v12 = vld [vmem:[%s16479_s10 + $0xe30] sm:$0xff] }
 0x485   : > { %11193 = vmatprep.subr.bf16.mxu1 %v14422_v44  ;;  %v14352_v44 = vcombine.high %v3203_v27, %v3207_v56  ;;  %v3115_v55 = vld [vmem:[%s16479_s10 + $0xa50] sm:$0xff] }
 0x486   : > { %v3119_v3 = vld [vmem:[%s16479_s10 + $0xa70] sm:$0xff] }
 0x487   : > { %v3243_v18 = vld [vmem:[%s16479_s10 + $0xe50] sm:$0xff] }
 0x488   : > { %v3247_v32 = vld [vmem:[%s16479_s10 + $0xe70] sm:$0xff] }
 0x489   : > { %v3123_v14 = vld [vmem:[%s16479_s10 + $0xa90] sm:$0xff] }
 0x48a   : > { %v3127_v61 = vld [vmem:[%s16479_s10 + $0xab0] sm:$0xff] }
 0x48b   : > { %11030 = vmatpush1.bf16.xpose.msra.mxu0 %v14293_v22  ;;  %v14223_v22 = vcombine.low %v3075_v0, %v3079_v43  ;;  %v3251_v9 = vld [vmem:[%s16479_s10 + $0xe90] sm:$0xff] }
 0x48c   : > { %11194 = vmatpush1.bf16.xpose.msra.mxu1 %v14421_v39  ;;  %11031 = vmatprep.subr.bf16.mxu0 %v14302_v53  ;;  %v14351_v39 = vcombine.low %v3203_v27, %v3207_v56  ;;  %v14232_v53 = vcombine.high %v3083_v2, %v3087_v20  ;;  %v3255_v47 = vld [vmem:[%s16479_s10 + $0xeb0] sm:$0xff] }
 0x48d   : > { %11195 = vmatprep.subr.bf16.mxu1 %v14430_v29  ;;  %v14360_v29 = vcombine.high %v3211_v10, %v3215_v52  ;;  %v3131_v0 = vld [vmem:[%s16479_s10 + $0xad0] sm:$0xff] }
 0x48e   : > { %v3135_v43 = vld [vmem:[%s16479_s10 + $0xaf0] sm:$0xff] }
 0x48f   : > { %v3259_v27 = vld [vmem:[%s16479_s10 + $0xed0] sm:$0xff] }
 0x490   : > { %v3263_v56 = vld [vmem:[%s16479_s10 + $0xef0] sm:$0xff] }
 0x493   : > { %11032 = vmatpush1.bf16.xpose.msra.mxu0 %v14301_v37  ;;  %v14231_v37 = vcombine.low %v3083_v2, %v3087_v20  ;;  %v3139_v2 = vld [vmem:[%s16479_s10 + $0xb10] sm:$0xff] }
 0x494   : > { %11196 = vmatpush1.bf16.xpose.msra.mxu1 %v14429_v8  ;;  %11033 = vmatprep.subr.bf16.mxu0 %v14310_v23  ;;  %v14359_v8 = vcombine.low %v3211_v10, %v3215_v52  ;;  %v14240_v23 = vcombine.high %v3091_v60, %v3095_v51  ;;  %v3143_v20 = vld [vmem:[%s16479_s10 + $0xb30] sm:$0xff] }
 0x495   : > { %11197 = vmatprep.subr.bf16.mxu1 %v14438_v54  ;;  %v14368_v54 = vcombine.high %v3219_v35, %v3223_v21  ;;  %v3267_v10 = vld [vmem:[%s16479_s10 + $0xf10] sm:$0xff] }
 0x496   : > { %v3271_v52 = vld [vmem:[%s16479_s10 + $0xf30] sm:$0xff] }
 0x49b   : > { %11034 = vmatpush1.bf16.xpose.msra.mxu0 %v14309_v42  ;;  %v14239_v42 = vcombine.low %v3091_v60, %v3095_v51  ;;  %v3147_v60 = vld [vmem:[%s16479_s10 + $0xb50] sm:$0xff] }
 0x49c   : > { %11198 = vmatpush1.bf16.xpose.msra.mxu1 %v14437_v16  ;;  %11044 = vmatprep.subr.bf16.mxu0 %v14192_v17  ;;  %v14367_v16 = vcombine.low %v3219_v35, %v3223_v21  ;;  %v14248_v17 = vcombine.high %v3099_v25, %v3103_v11  ;;  %v3151_v51 = vld [vmem:[%s16479_s10 + $0xb70] sm:$0xff] }
 0x49d   : > { %11208 = vmatprep.subr.bf16.mxu1 %v14320_v1  ;;  %v14376_v1 = vcombine.high %v3227_v13, %v3231_v5  ;;  %v3275_v35 = vld [vmem:[%s16479_s10 + $0xf50] sm:$0xff] }
 0x49e   : > { %v3279_v21 = vld [vmem:[%s16479_s10 + $0xf70] sm:$0xff] }
 0x49f   : > { %v3155_v25 = vld [vmem:[%s16479_s10 + $0xb90] sm:$0xff] }
 0x4a0   : > { %v3159_v11 = vld [vmem:[%s16479_s10 + $0xbb0] sm:$0xff] }
 0x4a2   : > { %11036 = vmatmul.mubr.bf16.vlgmr.msra.gmra.mrb[4].mxu0 %v20703_v48 }
 0x4a3   : > { %11200 = vmatmul.mubr.bf16.vlgmr.msra.gmra.mrb[4].mxu1 %v20703_v48  ;;  %11045 = vmatpush1.bf16.xpose.msra.mxu0 %v14191_v46  ;;  %v3235_v46 = vld [vmem:[%s16479_s10 + $0xe10] sm:$0xff] }
 0x4a4   : > { %11076 = vmatprep.mubr.bf16.mxu0 %v20704_v45  ;;  %11209 = vmatpush1.bf16.xpose.msra.mxu1 %v14319_v63  ;;  %v14375_v63 = vcombine.low %v3227_v13, %v3231_v5  ;;  %v3283_v13 = vld [vmem:[%s16479_s10 + $0xf90] sm:$0xff] }
 0x4a5   : > { %11240 = vmatprep.mubr.bf16.mxu1 %v20704_v45  ;;  %11046 = vmatprep.subr.bf16.mxu0 %v14200_v36  ;;  %v14256_v36 = vcombine.high %v3107_v57, %v3111_v62  ;;  %v3287_v5 = vld [vmem:[%s16479_s10 + $0xfb0] sm:$0xff] }
 0x4a6   : > { %11210 = vmatprep.subr.bf16.mxu1 %v14328_v40  ;;  %v14384_v40 = vcombine.high %v3235_v46, %v3239_v12 }
 0x4ab   : > { %11047 = vmatpush1.bf16.xpose.msra.mxu0 %v14199_v31  ;;  %v14255_v31 = vcombine.low %v3107_v57, %v3111_v62  ;;  %v3163_v57 = vld [vmem:[%s16479_s10 + $0xbd0] sm:$0xff] }
 0x4ac   : > { %11211 = vmatpush1.bf16.xpose.msra.mxu1 %v14327_v4  ;;  %11048 = vmatprep.subr.bf16.mxu0 %v14208_v30  ;;  %v14383_v4 = vcombine.low %v3235_v46, %v3239_v12  ;;  %v14264_v30 = vcombine.high %v3115_v55, %v3119_v3  ;;  %v3167_v62 = vld [vmem:[%s16479_s10 + $0xbf0] sm:$0xff] }
 0x4ad   : > { %11212 = vmatprep.subr.bf16.mxu1 %v14336_v26  ;;  %v14392_v26 = vcombine.high %v3243_v18, %v3247_v32  ;;  %v3291_v46 = vld [vmem:[%s16479_s10 + $0xfd0] sm:$0xff] }
 0x4ae   : > { %v3295_v12 = vld [vmem:[%s16479_s10 + $0xff0] sm:$0xff] }
 0x4b3   : > { %11049 = vmatpush1.bf16.xpose.msra.mxu0 %v14207_v41  ;;  %v14263_v41 = vcombine.low %v3115_v55, %v3119_v3  ;;  %v3044_v55 = vld [vmem:[%s16479_s10 + $0x818] sm:$0xff] }
 0x4b4   : > { %11213 = vmatpush1.bf16.xpose.msra.mxu1 %v14335_v34  ;;  %11050 = vmatprep.subr.bf16.mxu0 %v14216_v28  ;;  %v14391_v34 = vcombine.low %v3243_v18, %v3247_v32  ;;  %v14272_v28 = vcombine.high %v3123_v14, %v3127_v61  ;;  %v3048_v3 = vld [vmem:[%s16479_s10 + $0x838] sm:$0xff] }
 0x4b5   : > { %11214 = vmatprep.subr.bf16.mxu1 %v14344_v50  ;;  %v14400_v50 = vcombine.high %v3251_v9, %v3255_v47  ;;  %v3172_v18 = vld [vmem:[%s16479_s10 + $0xc18] sm:$0xff] }
 0x4b6   : > { %v3176_v32 = vld [vmem:[%s16479_s10 + $0xc38] sm:$0xff] }
 0x4bb   : > { %11051 = vmatpush1.bf16.xpose.msra.mxu0 %v14215_v58  ;;  %v14271_v58 = vcombine.low %v3123_v14, %v3127_v61  ;;  %v3052_v14 = vld [vmem:[%s16479_s10 + $0x858] sm:$0xff] }
 0x4bc   : > { %11215 = vmatpush1.bf16.xpose.msra.mxu1 %v14343_v19  ;;  %11052 = vmatprep.subr.bf16.mxu0 %v14224_v49  ;;  %v14399_v19 = vcombine.low %v3251_v9, %v3255_v47  ;;  %v14280_v49 = vcombine.high %v3131_v0, %v3135_v43  ;;  %v3056_v61 = vld [vmem:[%s16479_s10 + $0x878] sm:$0xff]  ;;  %v14193_v9 = vcombine.low %v3044_v55, %v3048_v3 }
 0x4bd   : > { %11216 = vmatprep.subr.bf16.mxu1 %v14352_v44  ;;  %v14408_v44 = vcombine.high %v3259_v27, %v3263_v56  ;;  %v3180_v47 = vld [vmem:[%s16479_s10 + $0xc58] sm:$0xff] }
 0x4c3   : > { %11053 = vmatpush1.bf16.xpose.msra.mxu0 %v14223_v22  ;;  %v14279_v22 = vcombine.low %v3131_v0, %v3135_v43  ;;  %v3060_v43 = vld [vmem:[%s16479_s10 + $0x898] sm:$0xff] }
 0x4c4   : > { %11217 = vmatpush1.bf16.xpose.msra.mxu1 %v14351_v39  ;;  %11054 = vmatprep.subr.bf16.mxu0 %v14232_v53  ;;  %v14407_v39 = vcombine.low %v3259_v27, %v3263_v56  ;;  %v14288_v53 = vcombine.high %v3139_v2, %v3143_v20  ;;  %v3064_v27 = vld [vmem:[%s16479_s10 + $0x8b8] sm:$0xff] }
 0x4c5   : > { %11218 = vmatprep.subr.bf16.mxu1 %v14360_v29  ;;  %v14416_v29 = vcombine.high %v3267_v10, %v3271_v52  ;;  %v3188_v56 = vld [vmem:[%s16479_s10 + $0xc98] sm:$0xff] }
 0x4cb   : > { %11055 = vmatpush1.bf16.xpose.msra.mxu0 %v14231_v37  ;;  %v14287_v37 = vcombine.low %v3139_v2, %v3143_v20  ;;  %v3068_v20 = vld [vmem:[%s16479_s10 + $0x8d8] sm:$0xff] }
 0x4cc   : > { %11219 = vmatpush1.bf16.xpose.msra.mxu1 %v14359_v8  ;;  %11056 = vmatprep.subr.bf16.mxu0 %v14240_v23  ;;  %v14415_v8 = vcombine.low %v3267_v10, %v3271_v52  ;;  %v14296_v23 = vcombine.high %v3147_v60, %v3151_v51  ;;  %v3072_v10 = vld [vmem:[%s16479_s10 + $0x8f8] sm:$0xff] }
 0x4cd   : > { %11220 = vmatprep.subr.bf16.mxu1 %v14368_v54  ;;  %v14424_v54 = vcombine.high %v3275_v35, %v3279_v21  ;;  %v3196_v52 = vld [vmem:[%s16479_s10 + $0xcd8] sm:$0xff] }
 0x4d3   : > { %11057 = vmatpush1.bf16.xpose.msra.mxu0 %v14239_v42  ;;  %v14295_v42 = vcombine.low %v3147_v60, %v3151_v51  ;;  %v3076_v51 = vld [vmem:[%s16479_s10 + $0x918] sm:$0xff] }
 0x4d4   : > { %11221 = vmatpush1.bf16.xpose.msra.mxu1 %v14367_v16  ;;  %11058 = vmatprep.subr.bf16.mxu0 %v14248_v17  ;;  %v14423_v16 = vcombine.low %v3275_v35, %v3279_v21  ;;  %v14304_v17 = vcombine.high %v3155_v25, %v3159_v11  ;;  %v3080_v35 = vld [vmem:[%s16479_s10 + $0x938] sm:$0xff] }
 0x4d5   : > { %11222 = vmatprep.subr.bf16.mxu1 %v14376_v1  ;;  %v14432_v1 = vcombine.high %v3283_v13, %v3287_v5  ;;  %v3204_v21 = vld [vmem:[%s16479_s10 + $0xd18] sm:$0xff] }
 0x4db   : > { %11059 = vmatpush1.bf16.xpose.msra.mxu0 %v14247_v7  ;;  %v14303_v7 = vcombine.low %v3155_v25, %v3159_v11  ;;  %v3084_v11 = vld [vmem:[%s16479_s10 + $0x958] sm:$0xff] }
 0x4dc   : > { %11223 = vmatpush1.bf16.xpose.msra.mxu1 %v14375_v63  ;;  %11060 = vmatprep.subr.bf16.mxu0 %v14256_v36  ;;  %v14431_v63 = vcombine.low %v3283_v13, %v3287_v5  ;;  %v14312_v36 = vcombine.high %v3163_v57, %v3167_v62  ;;  %v3088_v13 = vld [vmem:[%s16479_s10 + $0x978] sm:$0xff] }
 0x4dd   : > { %11224 = vmatprep.subr.bf16.mxu1 %v14384_v40  ;;  %v14440_v40 = vcombine.high %v3291_v46, %v3295_v12  ;;  %v3212_v5 = vld [vmem:[%s16479_s10 + $0xd58] sm:$0xff] }
 0x4e3   : > { %11061 = vmatpush1.bf16.xpose.msra.mxu0 %v14255_v31  ;;  %v14311_v31 = vcombine.low %v3163_v57, %v3167_v62  ;;  %v3092_v62 = vld [vmem:[%s16479_s10 + $0x998] sm:$0xff] }
 0x4e4   : > { %11225 = vmatpush1.bf16.xpose.msra.mxu1 %v14383_v4  ;;  %11062 = vmatprep.subr.bf16.mxu0 %v14264_v30  ;;  %v14439_v4 = vcombine.low %v3291_v46, %v3295_v12  ;;  %v14194_v30 = vcombine.high %v3044_v55, %v3048_v3  ;;  %v3096_v46 = vld [vmem:[%s16479_s10 + $0x9b8] sm:$0xff] }
 0x4e5   : > { %11226 = vmatprep.subr.bf16.mxu1 %v14392_v26  ;;  %v14322_v26 = vcombine.high %v3172_v18, %v3176_v32  ;;  %v3220_v12 = vld [vmem:[%s16479_s10 + $0xd98] sm:$0xff] }
 0x4e6   : > { %v3100_v3 = vld [vmem:[%s16479_s10 + $0x9d8] sm:$0xff] }
 0x4eb   : > { %11063 = vmatpush1.bf16.xpose.msra.mxu0 %v14263_v41  ;;  %v3184_v41 = vld [vmem:[%s16479_s10 + $0xc78] sm:$0xff] }
 0x4ec   : > { %11227 = vmatpush1.bf16.xpose.msra.mxu1 %v14391_v34  ;;  %11064 = vmatprep.subr.bf16.mxu0 %v14272_v28  ;;  %v14321_v34 = vcombine.low %v3172_v18, %v3176_v32  ;;  %v14202_v28 = vcombine.high %v3052_v14, %v3056_v61  ;;  %v14330_v0 = vcombine.high %v3180_v47, %v3184_v41  ;;  %v3104_v18 = vld [vmem:[%s16479_s10 + $0x9f8] sm:$0xff] }
 0x4ed   : > { %11228 = vmatprep.subr.bf16.mxu1 %v14400_v50  ;;  %v20705_v50 = vld [vmem:[#allocation44_spill] sm:$0xff]  ;;  %v3228_v32 = vld [vmem:[%s16479_s10 + $0xdd8] sm:$0xff] }
 0x4f3   : > { %11065 = vmatpush1.bf16.xpose.msra.mxu0 %v14271_v58  ;;  %v3192_v58 = vld [vmem:[%s16479_s10 + $0xcb8] sm:$0xff] }
 0x4f4   : > { %11229 = vmatpush1.bf16.xpose.msra.mxu1 %v14399_v19  ;;  %11066 = vmatprep.subr.bf16.mxu0 %v14280_v49  ;;  %v14201_v19 = vcombine.low %v3052_v14, %v3056_v61  ;;  %v14329_v49 = vcombine.low %v3180_v47, %v3184_v41  ;;  %v14338_v2 = vcombine.high %v3188_v56, %v3192_v58  ;;  %v3108_v61 = vld [vmem:[%s16479_s10 + $0xa18] sm:$0xff] }
 0x4f5   : > { %11230 = vmatprep.subr.bf16.mxu1 %v14408_v44  ;;  %v14210_v44 = vcombine.high %v3060_v43, %v3064_v27  ;;  %v3236_v47 = vld [vmem:[%s16479_s10 + $0xe18] sm:$0xff] }
 0x4f6   : > { %v3240_v41 = vld [vmem:[%s16479_s10 + $0xe38] sm:$0xff] }
 0x4fb   : > { %11067 = vmatpush1.bf16.xpose.msra.mxu0 %v14279_v22  ;;  %v3200_v22 = vld [vmem:[%s16479_s10 + $0xcf8] sm:$0xff] }
 0x4fc   : > { %11231 = vmatpush1.bf16.xpose.msra.mxu1 %v14407_v39  ;;  %11068 = vmatprep.subr.bf16.mxu0 %v14288_v53  ;;  %v14209_v39 = vcombine.low %v3060_v43, %v3064_v27  ;;  %v14337_v53 = vcombine.low %v3188_v56, %v3192_v58  ;;  %v14346_v60 = vcombine.high %v3196_v52, %v3200_v22  ;;  %v3116_v27 = vld [vmem:[%s16479_s10 + $0xa58] sm:$0xff] }
 0x4fd   : > { %11232 = vmatprep.subr.bf16.mxu1 %v14416_v29  ;;  %v14218_v29 = vcombine.high %v3068_v20, %v3072_v10  ;;  %v14386_v43 = vcombine.high %v3236_v47, %v3240_v41  ;;  %v3120_v56 = vld [vmem:[%s16479_s10 + $0xa78] sm:$0xff] }
 0x4fe   : > { %v3244_v58 = vld [vmem:[%s16479_s10 + $0xe58] sm:$0xff] }
 0x503   : > { %11069 = vmatpush1.bf16.xpose.msra.mxu0 %v14287_v37  ;;  %v3208_v37 = vld [vmem:[%s16479_s10 + $0xd38] sm:$0xff] }
 0x504   : > { %11233 = vmatpush1.bf16.xpose.msra.mxu1 %v14415_v8  ;;  %11070 = vmatprep.subr.bf16.mxu0 %v14296_v23  ;;  %v14217_v8 = vcombine.low %v3068_v20, %v3072_v10  ;;  %v14345_v23 = vcombine.low %v3196_v52, %v3200_v22  ;;  %v14354_v25 = vcombine.high %v3204_v21, %v3208_v37  ;;  %v3124_v10 = vld [vmem:[%s16479_s10 + $0xa98] sm:$0xff] }
 0x505   : > { %11234 = vmatprep.subr.bf16.mxu1 %v14424_v54  ;;  %v14226_v54 = vcombine.high %v3076_v51, %v3080_v35  ;;  %v3128_v52 = vld [vmem:[%s16479_s10 + $0xab8] sm:$0xff] }
 0x506   : > { %v3252_v22 = vld [vmem:[%s16479_s10 + $0xe98] sm:$0xff] }
 0x50b   : > { %11071 = vmatpush1.bf16.xpose.msra.mxu0 %v14295_v42  ;;  %v3216_v42 = vld [vmem:[%s16479_s10 + $0xd78] sm:$0xff] }
 0x50c   : > { %11235 = vmatpush1.bf16.xpose.msra.mxu1 %v14423_v16  ;;  %11072 = vmatprep.subr.bf16.mxu0 %v14304_v17  ;;  %v14225_v16 = vcombine.low %v3076_v51, %v3080_v35  ;;  %v14353_v17 = vcombine.low %v3204_v21, %v3208_v37  ;;  %v14362_v57 = vcombine.high %v3212_v5, %v3216_v42  ;;  %v3132_v35 = vld [vmem:[%s16479_s10 + $0xad8] sm:$0xff] }
 0x50d   : > { %11236 = vmatprep.subr.bf16.mxu1 %v14432_v1  ;;  %v14234_v1 = vcombine.high %v3084_v11, %v3088_v13  ;;  %v3136_v21 = vld [vmem:[%s16479_s10 + $0xaf8] sm:$0xff] }
 0x50e   : > { %v3260_v37 = vld [vmem:[%s16479_s10 + $0xed8] sm:$0xff] }
 0x513   : > { %11073 = vmatpush1.bf16.xpose.msra.mxu0 %v14303_v7  ;;  %v3224_v7 = vld [vmem:[%s16479_s10 + $0xdb8] sm:$0xff] }
 0x514   : > { %11237 = vmatpush1.bf16.xpose.msra.mxu1 %v14431_v63  ;;  %11074 = vmatprep.subr.bf16.mxu0 %v14312_v36  ;;  %v14233_v63 = vcombine.low %v3084_v11, %v3088_v13  ;;  %v14361_v36 = vcombine.low %v3212_v5, %v3216_v42  ;;  %v14370_v55 = vcombine.high %v3220_v12, %v3224_v7  ;;  %v3140_v13 = vld [vmem:[%s16479_s10 + $0xb18] sm:$0xff] }
 0x515   : > { %11238 = vmatprep.subr.bf16.mxu1 %v14440_v40  ;;  %v14242_v40 = vcombine.high %v3092_v62, %v3096_v46  ;;  %v3144_v5 = vld [vmem:[%s16479_s10 + $0xb38] sm:$0xff] }
 0x516   : > { %v3268_v42 = vld [vmem:[%s16479_s10 + $0xf18] sm:$0xff] }
 0x51b   : > { %11075 = vmatpush1.bf16.xpose.msra.mxu0 %v14311_v31  ;;  %v3232_v31 = vld [vmem:[%s16479_s10 + $0xdf8] sm:$0xff] }
 0x51c   : > { %11239 = vmatpush1.bf16.xpose.msra.mxu1 %v14439_v4  ;;  %11085 = vmatprep.subr.bf16.mxu0 %v14194_v30  ;;  %v14241_v4 = vcombine.low %v3092_v62, %v3096_v46  ;;  %v14369_v30 = vcombine.low %v3220_v12, %v3224_v7  ;;  %v14378_v14 = vcombine.high %v3228_v32, %v3232_v31  ;;  %v3148_v46 = vld [vmem:[%s16479_s10 + $0xb58] sm:$0xff] }
 0x51d   : > { %11249 = vmatprep.subr.bf16.mxu1 %v14322_v26  ;;  %v14250_v26 = vcombine.high %v3100_v3, %v3104_v18  ;;  %v3152_v12 = vld [vmem:[%s16479_s10 + $0xb78] sm:$0xff] }
 0x51e   : > { %v3276_v7 = vld [vmem:[%s16479_s10 + $0xf58] sm:$0xff] }
 0x522   : > { %11077 = vmatmul.mubr.bf16.vlgmr.msra.gmra.mrb[4].mxu0 %v20705_v50 }
 0x523   : > { %11241 = vmatmul.mubr.bf16.vlgmr.msra.gmra.mrb[4].mxu1 %v20705_v50  ;;  %11086 = vmatpush1.bf16.xpose.msra.mxu0 %v14193_v9  ;;  %v3112_v9 = vld [vmem:[%s16479_s10 + $0xa38] sm:$0xff] }
 0x524   : > { %11117 = vmatprep.mubr.bf16.mxu0 %v19328_v59  ;;  %11250 = vmatpush1.bf16.xpose.msra.mxu1 %v14321_v34  ;;  %v14249_v34 = vcombine.low %v3100_v3, %v3104_v18  ;;  %v3156_v18 = vld [vmem:[%s16479_s10 + $0xb98] sm:$0xff] }
 0x525   : > { %11281 = vmatprep.mubr.bf16.mxu1 %v19328_v59  ;;  %11087 = vmatprep.subr.bf16.mxu0 %v14202_v28  ;;  %v14377_v28 = vcombine.low %v3228_v32, %v3232_v31  ;;  %v3160_v32 = vld [vmem:[%s16479_s10 + $0xbb8] sm:$0xff] }
 0x526   : > { %11251 = vmatprep.subr.bf16.mxu1 %v14330_v0  ;;  %v14258_v0 = vcombine.high %v3108_v61, %v3112_v9  ;;  %v3284_v31 = vld [vmem:[%s16479_s10 + $0xf98] sm:$0xff] }
 0x52b   : > { %11088 = vmatpush1.bf16.xpose.msra.mxu0 %v14201_v19  ;;  %v3248_v19 = vld [vmem:[%s16479_s10 + $0xe78] sm:$0xff] }
 0x52c   : > { %11252 = vmatpush1.bf16.xpose.msra.mxu1 %v14329_v49  ;;  %11089 = vmatprep.subr.bf16.mxu0 %v14210_v44  ;;  %v14257_v49 = vcombine.low %v3108_v61, %v3112_v9  ;;  %v14385_v44 = vcombine.low %v3236_v47, %v3240_v41  ;;  %v14394_v20 = vcombine.high %v3244_v58, %v3248_v19  ;;  %v3164_v9 = vld [vmem:[%s16479_s10 + $0xbd8] sm:$0xff] }
 0x52d   : > { %11253 = vmatprep.subr.bf16.mxu1 %v14338_v2  ;;  %v14266_v2 = vcombine.high %v3116_v27, %v3120_v56  ;;  %v3168_v47 = vld [vmem:[%s16479_s10 + $0xbf8] sm:$0xff] }
 0x52e   : > { %v3292_v41 = vld [vmem:[%s16479_s10 + $0xfd8] sm:$0xff] }
 0x533   : > { %11090 = vmatpush1.bf16.xpose.msra.mxu0 %v14209_v39  ;;  %v3256_v39 = vld [vmem:[%s16479_s10 + $0xeb8] sm:$0xff] }
 0x534   : > { %11254 = vmatpush1.bf16.xpose.msra.mxu1 %v14337_v53  ;;  %11091 = vmatprep.subr.bf16.mxu0 %v14218_v29  ;;  %v14265_v53 = vcombine.low %v3116_v27, %v3120_v56  ;;  %v14393_v29 = vcombine.low %v3244_v58, %v3248_v19  ;;  %v14402_v51 = vcombine.high %v3252_v22, %v3256_v39  ;;  %v3297_v56 = vld [vmem:[%s16479_s10 + $0x1000] sm:$0xff] }
 0x535   : > { %11255 = vmatprep.subr.bf16.mxu1 %v14346_v60  ;;  %v14274_v60 = vcombine.high %v3124_v10, %v3128_v52  ;;  %v3301_v58 = vld [vmem:[%s16479_s10 + $0x1020] sm:$0xff] }
 0x536   : > { %v3425_v19 = vld [vmem:[%s16479_s10 + $0x1400] sm:$0xff] }
 0x53b   : > { %11092 = vmatpush1.bf16.xpose.msra.mxu0 %v14217_v8  ;;  %v3264_v8 = vld [vmem:[%s16479_s10 + $0xef8] sm:$0xff] }
 0x53c   : > { %11256 = vmatpush1.bf16.xpose.msra.mxu1 %v14345_v23  ;;  %11093 = vmatprep.subr.bf16.mxu0 %v14226_v54  ;;  %v14273_v23 = vcombine.low %v3124_v10, %v3128_v52  ;;  %v14401_v54 = vcombine.low %v3252_v22, %v3256_v39  ;;  %v14410_v11 = vcombine.high %v3260_v37, %v3264_v8  ;;  %v3305_v52 = vld [vmem:[%s16479_s10 + $0x1040] sm:$0xff] }
 0x53d   : > { %11257 = vmatprep.subr.bf16.mxu1 %v14354_v25  ;;  %v14282_v25 = vcombine.high %v3132_v35, %v3136_v21  ;;  %v3309_v22 = vld [vmem:[%s16479_s10 + $0x1060] sm:$0xff]  ;;  %v14443_v39 = vcombine.low %v3297_v56, %v3301_v58 }
 0x543   : > { %11094 = vmatpush1.bf16.xpose.msra.mxu0 %v14225_v16  ;;  %v3272_v16 = vld [vmem:[%s16479_s10 + $0xf38] sm:$0xff] }
 0x544   : > { %11258 = vmatpush1.bf16.xpose.msra.mxu1 %v14353_v17  ;;  %11095 = vmatprep.subr.bf16.mxu0 %v14234_v1  ;;  %v14281_v17 = vcombine.low %v3132_v35, %v3136_v21  ;;  %v14409_v1 = vcombine.low %v3260_v37, %v3264_v8  ;;  %v14418_v62 = vcombine.high %v3268_v42, %v3272_v16  ;;  %v3313_v21 = vld [vmem:[%s16479_s10 + $0x1080] sm:$0xff] }
 0x545   : > { %11259 = vmatprep.subr.bf16.mxu1 %v14362_v57  ;;  %v14290_v57 = vcombine.high %v3140_v13, %v3144_v5  ;;  %v3317_v37 = vld [vmem:[%s16479_s10 + $0x10a0] sm:$0xff] }
 0x546   : > { %v3441_v8 = vld [vmem:[%s16479_s10 + $0x1480] sm:$0xff] }
 0x54b   : > { %11096 = vmatpush1.bf16.xpose.msra.mxu0 %v14233_v63  ;;  %v3280_v63 = vld [vmem:[%s16479_s10 + $0xf78] sm:$0xff] }
 0x54c   : > { %11260 = vmatpush1.bf16.xpose.msra.mxu1 %v14361_v36  ;;  %11097 = vmatprep.subr.bf16.mxu0 %v14242_v40  ;;  %v14289_v36 = vcombine.low %v3140_v13, %v3144_v5  ;;  %v14417_v40 = vcombine.low %v3268_v42, %v3272_v16  ;;  %v14426_v3 = vcombine.high %v3276_v7, %v3280_v63  ;;  %v3321_v5 = vld [vmem:[%s16479_s10 + $0x10c0] sm:$0xff] }
 0x54d   : > { %11261 = vmatprep.subr.bf16.mxu1 %v14370_v55  ;;  %v14298_v55 = vcombine.high %v3148_v46, %v3152_v12  ;;  %v3325_v42 = vld [vmem:[%s16479_s10 + $0x10e0] sm:$0xff] }
 0x54e   : > { %v3449_v16 = vld [vmem:[%s16479_s10 + $0x14c0] sm:$0xff] }
 0x553   : > { %11098 = vmatpush1.bf16.xpose.msra.mxu0 %v14241_v4  ;;  %v3288_v4 = vld [vmem:[%s16479_s10 + $0xfb8] sm:$0xff] }
 0x554   : > { %11262 = vmatpush1.bf16.xpose.msra.mxu1 %v14369_v30  ;;  %11099 = vmatprep.subr.bf16.mxu0 %v14250_v26  ;;  %v14297_v30 = vcombine.low %v3148_v46, %v3152_v12  ;;  %v14425_v26 = vcombine.low %v3276_v7, %v3280_v63  ;;  %v14434_v61 = vcombine.high %v3284_v31, %v3288_v4  ;;  %v3329_v12 = vld [vmem:[%s16479_s10 + $0x1100] sm:$0xff] }
 0x555   : > { %11263 = vmatprep.subr.bf16.mxu1 %v14378_v14  ;;  %v14306_v14 = vcombine.high %v3156_v18, %v3160_v32  ;;  %v3333_v7 = vld [vmem:[%s16479_s10 + $0x1120] sm:$0xff] }
 0x556   : > { %v3457_v63 = vld [vmem:[%s16479_s10 + $0x1500] sm:$0xff] }
 0x55b   : > { %11100 = vmatpush1.bf16.xpose.msra.mxu0 %v14249_v34  ;;  %v3296_v34 = vld [vmem:[%s16479_s10 + $0xff8] sm:$0xff] }
 0x55c   : > { %11264 = vmatpush1.bf16.xpose.msra.mxu1 %v14377_v28  ;;  %11101 = vmatprep.subr.bf16.mxu0 %v14258_v0  ;;  %v14305_v28 = vcombine.low %v3156_v18, %v3160_v32  ;;  %v14433_v0 = vcombine.low %v3284_v31, %v3288_v4  ;;  %v14442_v27 = vcombine.high %v3292_v41, %v3296_v34  ;;  %v3337_v32 = vld [vmem:[%s16479_s10 + $0x1140] sm:$0xff] }
 0x55d   : > { %11265 = vmatprep.subr.bf16.mxu1 %v14386_v43  ;;  %v14314_v43 = vcombine.high %v3164_v9, %v3168_v47  ;;  %v3341_v31 = vld [vmem:[%s16479_s10 + $0x1160] sm:$0xff] }
 0x55e   : > { %v3465_v4 = vld [vmem:[%s16479_s10 + $0x1540] sm:$0xff] }
 0x563   : > { %11102 = vmatpush1.bf16.xpose.msra.mxu0 %v14257_v49  ;;  %v3429_v49 = vld [vmem:[%s16479_s10 + $0x1420] sm:$0xff] }
 0x564   : > { %11266 = vmatpush1.bf16.xpose.msra.mxu1 %v14385_v44  ;;  %11103 = vmatprep.subr.bf16.mxu0 %v14266_v2  ;;  %v14313_v44 = vcombine.low %v3164_v9, %v3168_v47  ;;  %v14441_v2 = vcombine.low %v3292_v41, %v3296_v34  ;;  %v14572_v10 = vcombine.high %v3425_v19, %v3429_v49  ;;  %v3345_v47 = vld [vmem:[%s16479_s10 + $0x1180] sm:$0xff] }
 0x565   : > { %11267 = vmatprep.subr.bf16.mxu1 %v14394_v20  ;;  %v14444_v20 = vcombine.high %v3297_v56, %v3301_v58  ;;  %v3349_v41 = vld [vmem:[%s16479_s10 + $0x11a0] sm:$0xff] }
 0x566   : > { %v3473_v34 = vld [vmem:[%s16479_s10 + $0x1580] sm:$0xff] }
 0x567   : > { %v3353_v58 = vld [vmem:[%s16479_s10 + $0x11c0] sm:$0xff] }
 0x56b   : > { %11104 = vmatpush1.bf16.xpose.msra.mxu0 %v14265_v53  ;;  %v3433_v53 = vld [vmem:[%s16479_s10 + $0x1440] sm:$0xff] }
 0x56c   : > { %11268 = vmatpush1.bf16.xpose.msra.mxu1 %v14393_v29  ;;  %11105 = vmatprep.subr.bf16.mxu0 %v14274_v60  ;;  %v3437_v29 = vld [vmem:[%s16479_s10 + $0x1460] sm:$0xff]  ;;  %v14571_v60 = vcombine.low %v3425_v19, %v3429_v49 }
 0x56d   : > { %11269 = vmatprep.subr.bf16.mxu1 %v14402_v51  ;;  %v14452_v51 = vcombine.high %v3305_v52, %v3309_v22  ;;  %v14580_v35 = vcombine.high %v3433_v53, %v3437_v29  ;;  %v3357_v19 = vld [vmem:[%s16479_s10 + $0x11e0] sm:$0xff] }
 0x56e   : > { %v3481_v49 = vld [vmem:[%s16479_s10 + $0x15c0] sm:$0xff] }
 0x573   : > { %11106 = vmatpush1.bf16.xpose.msra.mxu0 %v14273_v23  ;;  %v3445_v23 = vld [vmem:[%s16479_s10 + $0x14a0] sm:$0xff] }
 0x574   : > { %11270 = vmatpush1.bf16.xpose.msra.mxu1 %v14401_v54  ;;  %11107 = vmatprep.subr.bf16.mxu0 %v14282_v25  ;;  %v14451_v54 = vcombine.low %v3305_v52, %v3309_v22  ;;  %v14579_v25 = vcombine.low %v3433_v53, %v3437_v29  ;;  %v14588_v13 = vcombine.high %v3441_v8, %v3445_v23  ;;  %v3361_v22 = vld [vmem:[%s16479_s10 + $0x1200] sm:$0xff] }
 0x575   : > { %11271 = vmatprep.subr.bf16.mxu1 %v14410_v11  ;;  %v14460_v11 = vcombine.high %v3313_v21, %v3317_v37  ;;  %v3489_v53 = vld [vmem:[%s16479_s10 + $0x1600] sm:$0xff] }
 0x576   : > { %v3493_v29 = vld [vmem:[%s16479_s10 + $0x1620] sm:$0xff] }
 0x57b   : > { %11108 = vmatpush1.bf16.xpose.msra.mxu0 %v14281_v17  ;;  %v3453_v17 = vld [vmem:[%s16479_s10 + $0x14e0] sm:$0xff] }
 0x57c   : > { %11272 = vmatpush1.bf16.xpose.msra.mxu1 %v14409_v1  ;;  %11109 = vmatprep.subr.bf16.mxu0 %v14290_v57  ;;  %v14459_v1 = vcombine.low %v3313_v21, %v3317_v37  ;;  %v14587_v57 = vcombine.low %v3441_v8, %v3445_v23  ;;  %v14596_v46 = vcombine.high %v3449_v16, %v3453_v17  ;;  %v3369_v37 = vld [vmem:[%s16479_s10 + $0x1240] sm:$0xff] }
 0x57d   : > { %11273 = vmatprep.subr.bf16.mxu1 %v14418_v62  ;;  %v14468_v62 = vcombine.high %v3321_v5, %v3325_v42  ;;  %v14636_v21 = vcombine.high %v3489_v53, %v3493_v29  ;;  %v3373_v8 = vld [vmem:[%s16479_s10 + $0x1260] sm:$0xff] }
 0x57e   : > { %v3497_v23 = vld [vmem:[%s16479_s10 + $0x1640] sm:$0xff] }
 0x583   : > { %11110 = vmatpush1.bf16.xpose.msra.mxu0 %v14289_v36  ;;  %v3461_v36 = vld [vmem:[%s16479_s10 + $0x1520] sm:$0xff] }
 0x584   : > { %11274 = vmatpush1.bf16.xpose.msra.mxu1 %v14417_v40  ;;  %11111 = vmatprep.subr.bf16.mxu0 %v14298_v55  ;;  %v14467_v40 = vcombine.low %v3321_v5, %v3325_v42  ;;  %v14595_v55 = vcombine.low %v3449_v16, %v3453_v17  ;;  %v14604_v18 = vcombine.high %v3457_v63, %v3461_v36  ;;  %v3377_v42 = vld [vmem:[%s16479_s10 + $0x1280] sm:$0xff] }
 0x585   : > { %11275 = vmatprep.subr.bf16.mxu1 %v14426_v3  ;;  %v14476_v3 = vcombine.high %v3329_v12, %v3333_v7  ;;  %v3381_v16 = vld [vmem:[%s16479_s10 + $0x12a0] sm:$0xff] }
 0x586   : > { %v3505_v17 = vld [vmem:[%s16479_s10 + $0x1680] sm:$0xff] }
 0x58b   : > { %11112 = vmatpush1.bf16.xpose.msra.mxu0 %v14297_v30  ;;  %v3469_v30 = vld [vmem:[%s16479_s10 + $0x1560] sm:$0xff] }
 0x58c   : > { %11276 = vmatpush1.bf16.xpose.msra.mxu1 %v14425_v26  ;;  %11113 = vmatprep.subr.bf16.mxu0 %v14306_v14  ;;  %v14475_v26 = vcombine.low %v3329_v12, %v3333_v7  ;;  %v14603_v14 = vcombine.low %v3457_v63, %v3461_v36  ;;  %v14612_v9 = vcombine.high %v3465_v4, %v3469_v30  ;;  %v3385_v7 = vld [vmem:[%s16479_s10 + $0x12c0] sm:$0xff] }
 0x58d   : > { %11277 = vmatprep.subr.bf16.mxu1 %v14434_v61  ;;  %v14484_v61 = vcombine.high %v3337_v32, %v3341_v31  ;;  %v3389_v63 = vld [vmem:[%s16479_s10 + $0x12e0] sm:$0xff] }
 0x58e   : > { %v3513_v36 = vld [vmem:[%s16479_s10 + $0x16c0] sm:$0xff] }
 0x593   : > { %11114 = vmatpush1.bf16.xpose.msra.mxu0 %v14305_v28  ;;  %v3477_v28 = vld [vmem:[%s16479_s10 + $0x15a0] sm:$0xff] }
 0x594   : > { %11278 = vmatpush1.bf16.xpose.msra.mxu1 %v14433_v0  ;;  %11115 = vmatprep.subr.bf16.mxu0 %v14314_v43  ;;  %v14483_v0 = vcombine.low %v3337_v32, %v3341_v31  ;;  %v14611_v43 = vcombine.low %v3465_v4, %v3469_v30  ;;  %v14620_v56 = vcombine.high %v3473_v34, %v3477_v28  ;;  %v3393_v31 = vld [vmem:[%s16479_s10 + $0x1300] sm:$0xff] }
 0x595   : > { %11279 = vmatprep.subr.bf16.mxu1 %v14442_v27  ;;  %v14492_v27 = vcombine.high %v3345_v47, %v3349_v41  ;;  %v3397_v4 = vld [vmem:[%s16479_s10 + $0x1320] sm:$0xff] }
 0x596   : > { %v3521_v30 = vld [vmem:[%s16479_s10 + $0x1700] sm:$0xff] }
 0x59b   : > { %11116 = vmatpush1.bf16.xpose.msra.mxu0 %v14313_v44  ;;  %v3485_v44 = vld [vmem:[%s16479_s10 + $0x15e0] sm:$0xff] }
 0x59c   : > { %11280 = vmatpush1.bf16.xpose.msra.mxu1 %v14441_v2  ;;  %11290 = vmatprep.subr.bf16.mxu0 %v14444_v20  ;;  %v14491_v2 = vcombine.low %v3345_v47, %v3349_v41  ;;  %v14619_v20 = vcombine.low %v3473_v34, %v3477_v28  ;;  %v14628_v52 = vcombine.high %v3481_v49, %v3485_v44  ;;  %v3401_v41 = vld [vmem:[%s16479_s10 + $0x1340] sm:$0xff] }
 0x59d   : > { %11454 = vmatprep.subr.bf16.mxu1 %v14572_v10  ;;  %v14500_v10 = vcombine.high %v3353_v58, %v3357_v19  ;;  %v3405_v34 = vld [vmem:[%s16479_s10 + $0x1360] sm:$0xff] }
 0x59e   : > { %v3529_v28 = vld [vmem:[%s16479_s10 + $0x1740] sm:$0xff] }
 0x5a2   : > { %11118 = vmatmul.mubr.bf16.vlgmr.msra.gmra.mrb[4].mxu0 %v19358_v33 }
 0x5a3   : > { %11282 = vmatmul.mubr.bf16.vlgmr.msra.gmra.mrb[4].mxu1 %v19358_v33  ;;  %11291 = vmatpush1.bf16.xpose.msra.mxu0 %v14443_v39  ;;  %v3365_v39 = vld [vmem:[%s16479_s10 + $0x1220] sm:$0xff] }
 0x5a4   : > { %11322 = vmatprep.mubr.bf16.mxu0 %v20699_v38  ;;  %11455 = vmatpush1.bf16.xpose.msra.mxu1 %v14571_v60  ;;  %v14499_v60 = vcombine.low %v3353_v58, %v3357_v19  ;;  %v3409_v19 = vld [vmem:[%s16479_s10 + $0x1380] sm:$0xff] }
 0x5a5   : > { %11486 = vmatprep.mubr.bf16.mxu1 %v20699_v38  ;;  %11292 = vmatprep.subr.bf16.mxu0 %v14452_v51  ;;  %v14627_v51 = vcombine.low %v3481_v49, %v3485_v44  ;;  %v3413_v49 = vld [vmem:[%s16479_s10 + $0x13a0] sm:$0xff] }
 0x5a6   : > { %11456 = vmatprep.subr.bf16.mxu1 %v14580_v35  ;;  %v14508_v35 = vcombine.high %v3361_v22, %v3365_v39  ;;  %v3537_v44 = vld [vmem:[%s16479_s10 + $0x1780] sm:$0xff] }
 0x5ab   : > { %11293 = vmatpush1.bf16.xpose.msra.mxu0 %v14451_v54  ;;  %v3501_v54 = vld [vmem:[%s16479_s10 + $0x1660] sm:$0xff] }
 0x5ac   : > { %11457 = vmatpush1.bf16.xpose.msra.mxu1 %v14579_v25  ;;  %11294 = vmatprep.subr.bf16.mxu0 %v14460_v11  ;;  %v14507_v25 = vcombine.low %v3361_v22, %v3365_v39  ;;  %v14635_v11 = vcombine.low %v3489_v53, %v3493_v29  ;;  %v14644_v5 = vcombine.high %v3497_v23, %v3501_v54  ;;  %v3417_v39 = vld [vmem:[%s16479_s10 + $0x13c0] sm:$0xff] }
 0x5ad   : > { %11458 = vmatprep.subr.bf16.mxu1 %v14588_v13  ;;  %v14516_v13 = vcombine.high %v3369_v37, %v3373_v8  ;;  %v3421_v53 = vld [vmem:[%s16479_s10 + $0x13e0] sm:$0xff] }
 0x5ae   : > { %v3545_v29 = vld [vmem:[%s16479_s10 + $0x17c0] sm:$0xff] }
 0x5b3   : > { %11295 = vmatpush1.bf16.xpose.msra.mxu0 %v14459_v1  ;;  %v3509_v1 = vld [vmem:[%s16479_s10 + $0x16a0] sm:$0xff] }
 0x5b4   : > { %11459 = vmatpush1.bf16.xpose.msra.mxu1 %v14587_v57  ;;  %11296 = vmatprep.subr.bf16.mxu0 %v14468_v62  ;;  %v14515_v57 = vcombine.low %v3369_v37, %v3373_v8  ;;  %v14643_v62 = vcombine.low %v3497_v23, %v3501_v54  ;;  %v14652_v12 = vcombine.high %v3505_v17, %v3509_v1  ;;  %v3298_v8 = vld [vmem:[%s16479_s10 + $0x1008] sm:$0xff] }
 0x5b5   : > { %11460 = vmatprep.subr.bf16.mxu1 %v14596_v46  ;;  %v14524_v46 = vcombine.high %v3377_v42, %v3381_v16  ;;  %v3302_v23 = vld [vmem:[%s16479_s10 + $0x1028] sm:$0xff] }
 0x5b6   : > { %v3426_v54 = vld [vmem:[%s16479_s10 + $0x1408] sm:$0xff] }
 0x5bb   : > { %11297 = vmatpush1.bf16.xpose.msra.mxu0 %v14467_v40  ;;  %v3517_v40 = vld [vmem:[%s16479_s10 + $0x16e0] sm:$0xff] }
 0x5bc   : > { %11461 = vmatpush1.bf16.xpose.msra.mxu1 %v14595_v55  ;;  %11298 = vmatprep.subr.bf16.mxu0 %v14476_v3  ;;  %v14523_v55 = vcombine.low %v3377_v42, %v3381_v16  ;;  %v14651_v3 = vcombine.low %v3505_v17, %v3509_v1  ;;  %v14660_v32 = vcombine.high %v3513_v36, %v3517_v40  ;;  %v3306_v16 = vld [vmem:[%s16479_s10 + $0x1048] sm:$0xff] }
 0x5bd   : > { %11462 = vmatprep.subr.bf16.mxu1 %v14604_v18  ;;  %v14532_v18 = vcombine.high %v3385_v7, %v3389_v63  ;;  %v3310_v17 = vld [vmem:[%s16479_s10 + $0x1068] sm:$0xff]  ;;  %v14445_v1 = vcombine.low %v3298_v8, %v3302_v23 }
 0x5c3   : > { %11299 = vmatpush1.bf16.xpose.msra.mxu0 %v14475_v26  ;;  %v3525_v26 = vld [vmem:[%s16479_s10 + $0x1720] sm:$0xff] }
 0x5c4   : > { %11463 = vmatpush1.bf16.xpose.msra.mxu1 %v14603_v14  ;;  %11300 = vmatprep.subr.bf16.mxu0 %v14484_v61  ;;  %v14531_v14 = vcombine.low %v3385_v7, %v3389_v63  ;;  %v14659_v61 = vcombine.low %v3513_v36, %v3517_v40  ;;  %v14668_v47 = vcombine.high %v3521_v30, %v3525_v26  ;;  %v3314_v63 = vld [vmem:[%s16479_s10 + $0x1088] sm:$0xff] }
 0x5c5   : > { %11464 = vmatprep.subr.bf16.mxu1 %v14612_v9  ;;  %v14540_v9 = vcombine.high %v3393_v31, %v3397_v4  ;;  %v3318_v36 = vld [vmem:[%s16479_s10 + $0x10a8] sm:$0xff] }
 0x5c6   : > { %v3442_v40 = vld [vmem:[%s16479_s10 + $0x1488] sm:$0xff] }
 0x5cb   : > { %11301 = vmatpush1.bf16.xpose.msra.mxu0 %v14483_v0  ;;  %v3533_v0 = vld [vmem:[%s16479_s10 + $0x1760] sm:$0xff] }
 0x5cc   : > { %11465 = vmatpush1.bf16.xpose.msra.mxu1 %v14611_v43  ;;  %11302 = vmatprep.subr.bf16.mxu0 %v14492_v27  ;;  %v14539_v43 = vcombine.low %v3393_v31, %v3397_v4  ;;  %v14667_v27 = vcombine.low %v3521_v30, %v3525_v26  ;;  %v14676_v58 = vcombine.high %v3529_v28, %v3533_v0  ;;  %v3322_v4 = vld [vmem:[%s16479_s10 + $0x10c8] sm:$0xff] }
 0x5cd   : > { %11466 = vmatprep.subr.bf16.mxu1 %v14620_v56  ;;  %v14548_v56 = vcombine.high %v3401_v41, %v3405_v34  ;;  %v3326_v30 = vld [vmem:[%s16479_s10 + $0x10e8] sm:$0xff] }
 0x5ce   : > { %v3450_v26 = vld [vmem:[%s16479_s10 + $0x14c8] sm:$0xff] }
 0x5d3   : > { %11303 = vmatpush1.bf16.xpose.msra.mxu0 %v14491_v2  ;;  %v3541_v2 = vld [vmem:[%s16479_s10 + $0x17a0] sm:$0xff] }
 0x5d4   : > { %11467 = vmatpush1.bf16.xpose.msra.mxu1 %v14619_v20  ;;  %11304 = vmatprep.subr.bf16.mxu0 %v14500_v10  ;;  %v14547_v20 = vcombine.low %v3401_v41, %v3405_v34  ;;  %v14675_v10 = vcombine.low %v3529_v28, %v3533_v0  ;;  %v14684_v22 = vcombine.high %v3537_v44, %v3541_v2  ;;  %v3330_v34 = vld [vmem:[%s16479_s10 + $0x1108] sm:$0xff] }
 0x5d5   : > { %11468 = vmatprep.subr.bf16.mxu1 %v14628_v52  ;;  %v14556_v52 = vcombine.high %v3409_v19, %v3413_v49  ;;  %v3334_v28 = vld [vmem:[%s16479_s10 + $0x1128] sm:$0xff] }
 0x5d6   : > { %v3458_v0 = vld [vmem:[%s16479_s10 + $0x1508] sm:$0xff] }
 0x5db   : > { %11305 = vmatpush1.bf16.xpose.msra.mxu0 %v14499_v60  ;;  %v3549_v60 = vld [vmem:[%s16479_s10 + $0x17e0] sm:$0xff] }
 0x5dc   : > { %11469 = vmatpush1.bf16.xpose.msra.mxu1 %v14627_v51  ;;  %11306 = vmatprep.subr.bf16.mxu0 %v14508_v35  ;;  %v14555_v51 = vcombine.low %v3409_v19, %v3413_v49  ;;  %v14683_v35 = vcombine.low %v3537_v44, %v3541_v2  ;;  %v14692_v37 = vcombine.high %v3545_v29, %v3549_v60  ;;  %v3338_v49 = vld [vmem:[%s16479_s10 + $0x1148] sm:$0xff] }
 0x5dd   : > { %11470 = vmatprep.subr.bf16.mxu1 %v14636_v21  ;;  %v14564_v21 = vcombine.high %v3417_v39, %v3421_v53  ;;  %v3342_v44 = vld [vmem:[%s16479_s10 + $0x1168] sm:$0xff] }
 0x5de   : > { %v3466_v2 = vld [vmem:[%s16479_s10 + $0x1548] sm:$0xff] }
 0x5e3   : > { %11307 = vmatpush1.bf16.xpose.msra.mxu0 %v14507_v25  ;;  %v3430_v25 = vld [vmem:[%s16479_s10 + $0x1428] sm:$0xff] }
 0x5e4   : > { %11471 = vmatpush1.bf16.xpose.msra.mxu1 %v14635_v11  ;;  %11308 = vmatprep.subr.bf16.mxu0 %v14516_v13  ;;  %v14563_v11 = vcombine.low %v3417_v39, %v3421_v53  ;;  %v14691_v13 = vcombine.low %v3545_v29, %v3549_v60  ;;  %v14574_v42 = vcombine.high %v3426_v54, %v3430_v25  ;;  %v3346_v53 = vld [vmem:[%s16479_s10 + $0x1188] sm:$0xff] }
 0x5e5   : > { %11472 = vmatprep.subr.bf16.mxu1 %v14644_v5  ;;  %v14446_v5 = vcombine.high %v3298_v8, %v3302_v23  ;;  %v3350_v29 = vld [vmem:[%s16479_s10 + $0x11a8] sm:$0xff] }
 0x5e6   : > { %v3474_v60 = vld [vmem:[%s16479_s10 + $0x1588] sm:$0xff] }
 0x5e7   : > { %v3354_v23 = vld [vmem:[%s16479_s10 + $0x11c8] sm:$0xff] }
 0x5eb   : > { %11309 = vmatpush1.bf16.xpose.msra.mxu0 %v14515_v57  ;;  %v3434_v57 = vld [vmem:[%s16479_s10 + $0x1448] sm:$0xff] }
 0x5ec   : > { %11473 = vmatpush1.bf16.xpose.msra.mxu1 %v14643_v62  ;;  %11310 = vmatprep.subr.bf16.mxu0 %v14524_v46  ;;  %v3438_v62 = vld [vmem:[%s16479_s10 + $0x1468] sm:$0xff]  ;;  %v14573_v46 = vcombine.low %v3426_v54, %v3430_v25 }
 0x5ed   : > { %11474 = vmatprep.subr.bf16.mxu1 %v14652_v12  ;;  %v14454_v12 = vcombine.high %v3306_v16, %v3310_v17  ;;  %v14582_v7 = vcombine.high %v3434_v57, %v3438_v62  ;;  %v3358_v54 = vld [vmem:[%s16479_s10 + $0x11e8] sm:$0xff] }
 0x5ee   : > { %v3482_v25 = vld [vmem:[%s16479_s10 + $0x15c8] sm:$0xff] }
 0x5f3   : > { %11311 = vmatpush1.bf16.xpose.msra.mxu0 %v14523_v55  ;;  %v3446_v55 = vld [vmem:[%s16479_s10 + $0x14a8] sm:$0xff] }
 0x5f4   : > { %11475 = vmatpush1.bf16.xpose.msra.mxu1 %v14651_v3  ;;  %11312 = vmatprep.subr.bf16.mxu0 %v14532_v18  ;;  %v14453_v3 = vcombine.low %v3306_v16, %v3310_v17  ;;  %v14581_v18 = vcombine.low %v3434_v57, %v3438_v62  ;;  %v14590_v31 = vcombine.high %v3442_v40, %v3446_v55  ;;  %v3362_v17 = vld [vmem:[%s16479_s10 + $0x1208] sm:$0xff] }
 0x5f5   : > { %11476 = vmatprep.subr.bf16.mxu1 %v14660_v32  ;;  %v14462_v32 = vcombine.high %v3314_v63, %v3318_v36  ;;  %v3490_v57 = vld [vmem:[%s16479_s10 + $0x1608] sm:$0xff] }
 0x5f6   : > { %v3494_v62 = vld [vmem:[%s16479_s10 + $0x1628] sm:$0xff] }
 0x5fb   : > { %11313 = vmatpush1.bf16.xpose.msra.mxu0 %v14531_v14  ;;  %v3454_v14 = vld [vmem:[%s16479_s10 + $0x14e8] sm:$0xff] }
 0x5fc   : > { %11477 = vmatpush1.bf16.xpose.msra.mxu1 %v14659_v61  ;;  %11314 = vmatprep.subr.bf16.mxu0 %v14540_v9  ;;  %v14461_v61 = vcombine.low %v3314_v63, %v3318_v36  ;;  %v14589_v9 = vcombine.low %v3442_v40, %v3446_v55  ;;  %v14598_v41 = vcombine.high %v3450_v26, %v3454_v14  ;;  %v3370_v36 = vld [vmem:[%s16479_s10 + $0x1248] sm:$0xff] }
 0x5fd   : > { %11478 = vmatprep.subr.bf16.mxu1 %v14668_v47  ;;  %v14470_v47 = vcombine.high %v3322_v4, %v3326_v30  ;;  %v14638_v63 = vcombine.high %v3490_v57, %v3494_v62  ;;  %v3374_v40 = vld [vmem:[%s16479_s10 + $0x1268] sm:$0xff] }
 0x5fe   : > { %v3498_v55 = vld [vmem:[%s16479_s10 + $0x1648] sm:$0xff] }
 0x603   : > { %11315 = vmatpush1.bf16.xpose.msra.mxu0 %v14539_v43  ;;  %v3462_v43 = vld [vmem:[%s16479_s10 + $0x1528] sm:$0xff] }
 0x604   : > { %11479 = vmatpush1.bf16.xpose.msra.mxu1 %v14667_v27  ;;  %11316 = vmatprep.subr.bf16.mxu0 %v14548_v56  ;;  %v14469_v27 = vcombine.low %v3322_v4, %v3326_v30  ;;  %v14597_v56 = vcombine.low %v3450_v26, %v3454_v14  ;;  %v14606_v19 = vcombine.high %v3458_v0, %v3462_v43  ;;  %v3378_v30 = vld [vmem:[%s16479_s10 + $0x1288] sm:$0xff] }
 0x605   : > { %11480 = vmatprep.subr.bf16.mxu1 %v14676_v58  ;;  %v14478_v58 = vcombine.high %v3330_v34, %v3334_v28  ;;  %v3382_v26 = vld [vmem:[%s16479_s10 + $0x12a8] sm:$0xff] }
 0x606   : > { %v3506_v14 = vld [vmem:[%s16479_s10 + $0x1688] sm:$0xff] }
 0x60b   : > { %11317 = vmatpush1.bf16.xpose.msra.mxu0 %v14547_v20  ;;  %v3470_v20 = vld [vmem:[%s16479_s10 + $0x1568] sm:$0xff] }
 0x60c   : > { %11481 = vmatpush1.bf16.xpose.msra.mxu1 %v14675_v10  ;;  %11318 = vmatprep.subr.bf16.mxu0 %v14556_v52  ;;  %v14477_v10 = vcombine.low %v3330_v34, %v3334_v28  ;;  %v14605_v52 = vcombine.low %v3458_v0, %v3462_v43  ;;  %v14614_v39 = vcombine.high %v3466_v2, %v3470_v20  ;;  %v3386_v28 = vld [vmem:[%s16479_s10 + $0x12c8] sm:$0xff] }
 0x60d   : > { %11482 = vmatprep.subr.bf16.mxu1 %v14684_v22  ;;  %v14486_v22 = vcombine.high %v3338_v49, %v3342_v44  ;;  %v3390_v0 = vld [vmem:[%s16479_s10 + $0x12e8] sm:$0xff] }
 0x60e   : > { %v3514_v43 = vld [vmem:[%s16479_s10 + $0x16c8] sm:$0xff] }
 0x613   : > { %11319 = vmatpush1.bf16.xpose.msra.mxu0 %v14555_v51  ;;  %v3478_v51 = vld [vmem:[%s16479_s10 + $0x15a8] sm:$0xff] }
 0x614   : > { %11483 = vmatpush1.bf16.xpose.msra.mxu1 %v14683_v35  ;;  %11320 = vmatprep.subr.bf16.mxu0 %v14564_v21  ;;  %v14485_v35 = vcombine.low %v3338_v49, %v3342_v44  ;;  %v14613_v21 = vcombine.low %v3466_v2, %v3470_v20  ;;  %v14622_v8 = vcombine.high %v3474_v60, %v3478_v51  ;;  %v3394_v2 = vld [vmem:[%s16479_s10 + $0x1308] sm:$0xff] }
 0x615   : > { %11484 = vmatprep.subr.bf16.mxu1 %v14692_v37  ;;  %v14494_v37 = vcombine.high %v3346_v53, %v3350_v29  ;;  %v3398_v20 = vld [vmem:[%s16479_s10 + $0x1328] sm:$0xff] }
 0x61b   : > { %11321 = vmatpush1.bf16.xpose.msra.mxu0 %v14563_v11  ;;  %v3486_v11 = vld [vmem:[%s16479_s10 + $0x15e8] sm:$0xff] }
 0x61c   : > { %11485 = vmatpush1.bf16.xpose.msra.mxu1 %v14691_v13  ;;  %11331 = vmatprep.subr.bf16.mxu0 %v14446_v5  ;;  %v14493_v13 = vcombine.low %v3346_v53, %v3350_v29  ;;  %v14621_v5 = vcombine.low %v3474_v60, %v3478_v51  ;;  %v14630_v16 = vcombine.high %v3482_v25, %v3486_v11 }
 0x61d   : > { %11495 = vmatprep.subr.bf16.mxu1 %v14574_v42  ;;  %v14502_v42 = vcombine.high %v3354_v23, %v3358_v54  ;;  %v14533_v51 = vcombine.low %v3386_v28, %v3390_v0 }
 0x622   : > { %11323 = vmatmul.mubr.bf16.vlgmr.msra.gmra.mrb[8].mxu0 %v20700_v15 }
 0x623   : > { %11487 = vmatmul.mubr.bf16.vlgmr.msra.gmra.mrb[8].mxu1 %v20700_v15  ;;  %11332 = vmatpush1.bf16.xpose.msra.mxu0 %v14445_v1  ;;  %v3366_v1 = vld [vmem:[%s16479_s10 + $0x1228] sm:$0xff] }
 0x624   : > { %11363 = vmatprep.mubr.bf16.mxu0 %v20701_v6  ;;  %11496 = vmatpush1.bf16.xpose.msra.mxu1 %v14573_v46  ;;  %v14501_v46 = vcombine.low %v3354_v23, %v3358_v54  ;;  %v14542_v23 = vcombine.high %v3394_v2, %v3398_v20 }
 0x625   : > { %11527 = vmatprep.mubr.bf16.mxu1 %v20701_v6  ;;  %11333 = vmatprep.subr.bf16.mxu0 %v14454_v12  ;;  %v14629_v12 = vcombine.low %v3482_v25, %v3486_v11 }
 0x626   : > { %11497 = vmatprep.subr.bf16.mxu1 %v14582_v7  ;;  %v14510_v7 = vcombine.high %v3362_v17, %v3366_v1 }
 0x62b   : > { %11334 = vmatpush1.bf16.xpose.msra.mxu0 %v14453_v3  ;;  %v3502_v3 = vld [vmem:[%s16479_s10 + $0x1668] sm:$0xff] }
 0x62c   : > { %11498 = vmatpush1.bf16.xpose.msra.mxu1 %v14581_v18  ;;  %11335 = vmatprep.subr.bf16.mxu0 %v14462_v32  ;;  %v14509_v18 = vcombine.low %v3362_v17, %v3366_v1  ;;  %v14637_v32 = vcombine.low %v3490_v57, %v3494_v62  ;;  %v14646_v4 = vcombine.high %v3498_v55, %v3502_v3  ;;  %v3406_v17 = vld [vmem:[%s16479_s10 + $0x1368] sm:$0xff] }
 0x62d   : > { %11499 = vmatprep.subr.bf16.mxu1 %v14590_v31  ;;  %v14518_v31 = vcombine.high %v3370_v36, %v3374_v40  ;;  %v3530_v57 = vld [vmem:[%s16479_s10 + $0x1748] sm:$0xff] }
 0x62e   : > { %v3534_v62 = vld [vmem:[%s16479_s10 + $0x1768] sm:$0xff] }
 0x633   : > { %11336 = vmatpush1.bf16.xpose.msra.mxu0 %v14461_v61  ;;  %v3510_v61 = vld [vmem:[%s16479_s10 + $0x16a8] sm:$0xff] }
 0x634   : > { %11500 = vmatpush1.bf16.xpose.msra.mxu1 %v14589_v9  ;;  %11337 = vmatprep.subr.bf16.mxu0 %v14470_v47  ;;  %v14517_v9 = vcombine.low %v3370_v36, %v3374_v40  ;;  %v14645_v47 = vcombine.low %v3498_v55, %v3502_v3  ;;  %v14654_v34 = vcombine.high %v3506_v14, %v3510_v61  ;;  %v3410_v36 = vld [vmem:[%s16479_s10 + $0x1388] sm:$0xff] }
 0x635   : > { %11501 = vmatprep.subr.bf16.mxu1 %v14598_v41  ;;  %v14526_v41 = vcombine.high %v3378_v30, %v3382_v26  ;;  %v3414_v40 = vld [vmem:[%s16479_s10 + $0x13a8] sm:$0xff] }
 0x636   : > { %v3538_v55 = vld [vmem:[%s16479_s10 + $0x1788] sm:$0xff] }
 0x637   : > { %v3542_v3 = vld [vmem:[%s16479_s10 + $0x17a8] sm:$0xff] }
 0x63b   : > { %11338 = vmatpush1.bf16.xpose.msra.mxu0 %v14469_v27  ;;  %v3518_v27 = vld [vmem:[%s16479_s10 + $0x16e8] sm:$0xff] }
 0x63c   : > { %11502 = vmatpush1.bf16.xpose.msra.mxu1 %v14597_v56  ;;  %11339 = vmatprep.subr.bf16.mxu0 %v14478_v58  ;;  %v14525_v56 = vcombine.low %v3378_v30, %v3382_v26  ;;  %v14653_v58 = vcombine.low %v3506_v14, %v3510_v61  ;;  %v14662_v49 = vcombine.high %v3514_v43, %v3518_v27  ;;  %v3418_v30 = vld [vmem:[%s16479_s10 + $0x13c8] sm:$0xff] }
 0x63d   : > { %11503 = vmatprep.subr.bf16.mxu1 %v14606_v19  ;;  %v14534_v19 = vcombine.high %v3386_v28, %v3390_v0  ;;  %v3422_v26 = vld [vmem:[%s16479_s10 + $0x13e8] sm:$0xff]  ;;  %v3299_v28 = vld [vmem:[%s16479_s10 + $0x1010] sm:$0xff] }
 0x63e   : > { %v3546_v14 = vld [vmem:[%s16479_s10 + $0x17c8] sm:$0xff]  ;;  %v3303_v0 = vld [vmem:[%s16479_s10 + $0x1030] sm:$0xff] }
 0x63f   : > { %v3550_v61 = vld [vmem:[%s16479_s10 + $0x17e8] sm:$0xff] }
 0x643   : > { %11340 = vmatpush1.bf16.xpose.msra.mxu0 %v14477_v10 }
 0x644   : > { %11504 = vmatpush1.bf16.xpose.msra.mxu1 %v14605_v52  ;;  %11341 = vmatprep.subr.bf16.mxu0 %v14486_v22  ;;  %v3522_v22 = vld [vmem:[%s16479_s10 + $0x1708] sm:$0xff] }
 0x645   : > { %11505 = vmatprep.subr.bf16.mxu1 %v14614_v39  ;;  %v3526_v39 = vld [vmem:[%s16479_s10 + $0x1728] sm:$0xff] }
 0x646   : > { %v14670_v11 = vcombine.high %v3522_v22, %v3526_v39 }
 0x64b   : > { %11342 = vmatpush1.bf16.xpose.msra.mxu0 %v14485_v35 }
 0x64c   : > { %11506 = vmatpush1.bf16.xpose.msra.mxu1 %v14613_v21  ;;  %11343 = vmatprep.subr.bf16.mxu0 %v14494_v37 }
 0x64d   : > { %11507 = vmatprep.subr.bf16.mxu1 %v14622_v8  ;;  %v14661_v8 = vcombine.low %v3514_v43, %v3518_v27  ;;  %v3427_v43 = vld [vmem:[%s16479_s10 + $0x1410] sm:$0xff] }
 0x64e   : > { %v3431_v27 = vld [vmem:[%s16479_s10 + $0x1430] sm:$0xff] }
 0x653   : > { %11344 = vmatpush1.bf16.xpose.msra.mxu0 %v14493_v13 }
 0x654   : > { %11508 = vmatpush1.bf16.xpose.msra.mxu1 %v14621_v5  ;;  %11345 = vmatprep.subr.bf16.mxu0 %v14502_v42  ;;  %v2654_v5 = vld [vmem:[#allocation10 + $0x8] sm:$0xff] }
 0x655   : > { %11509 = vmatprep.subr.bf16.mxu1 %v14630_v16  ;;  %v3402_v16 = vld [vmem:[%s16479_s10 + $0x1348] sm:$0xff] }
 0x65b   : > { %11346 = vmatpush1.bf16.xpose.msra.mxu0 %v14501_v46  ;;  %v14541_v46 = vcombine.low %v3394_v2, %v3398_v20  ;;  %v3311_v2 = vld [vmem:[%s16479_s10 + $0x1070] sm:$0xff]  ;;  %v14447_v20 = vcombine.low %v3299_v28, %v3303_v0 }
 0x65c   : > { %11510 = vmatpush1.bf16.xpose.msra.mxu1 %v14629_v12  ;;  %11347 = vmatprep.subr.bf16.mxu0 %v14510_v7  ;;  %v14669_v12 = vcombine.low %v3522_v22, %v3526_v39  ;;  %v14550_v7 = vcombine.high %v3402_v16, %v3406_v17  ;;  %v14575_v22 = vcombine.low %v3427_v43, %v3431_v27 }
 0x65d   : > { %11511 = vmatprep.subr.bf16.mxu1 %v14638_v63  ;;  %v14678_v63 = vcombine.high %v3530_v57, %v3534_v62 }
 0x663   : > { %11348 = vmatpush1.bf16.xpose.msra.mxu0 %v14509_v18  ;;  %v14549_v18 = vcombine.low %v3402_v16, %v3406_v17 }
 0x664   : > { %11512 = vmatpush1.bf16.xpose.msra.mxu1 %v14637_v32  ;;  %11349 = vmatprep.subr.bf16.mxu0 %v14518_v31  ;;  %v14677_v32 = vcombine.low %v3530_v57, %v3534_v62  ;;  %v14558_v31 = vcombine.high %v3410_v36, %v3414_v40  ;;  %v3335_v57 = vld [vmem:[%s16479_s10 + $0x1130] sm:$0xff] }
 0x665   : > { %11513 = vmatprep.subr.bf16.mxu1 %v14646_v4  ;;  %v14686_v4 = vcombine.high %v3538_v55, %v3542_v3  ;;  %v3459_v62 = vld [vmem:[%s16479_s10 + $0x1510] sm:$0xff] }
 0x66b   : > { %11350 = vmatpush1.bf16.xpose.msra.mxu0 %v14517_v9  ;;  %v14557_v9 = vcombine.low %v3410_v36, %v3414_v40  ;;  %v3339_v40 = vld [vmem:[%s16479_s10 + $0x1150] sm:$0xff] }
 0x66c   : > { %11514 = vmatpush1.bf16.xpose.msra.mxu1 %v14645_v47  ;;  %11351 = vmatprep.subr.bf16.mxu0 %v14526_v41  ;;  %v14685_v47 = vcombine.low %v3538_v55, %v3542_v3  ;;  %v14566_v41 = vcombine.high %v3418_v30, %v3422_v26  ;;  %v3343_v55 = vld [vmem:[%s16479_s10 + $0x1170] sm:$0xff] }
 0x66d   : > { %11515 = vmatprep.subr.bf16.mxu1 %v14654_v34  ;;  %v14694_v34 = vcombine.high %v3546_v14, %v3550_v61  ;;  %v3467_v3 = vld [vmem:[%s16479_s10 + $0x1550] sm:$0xff] }
 0x673   : > { %11352 = vmatpush1.bf16.xpose.msra.mxu0 %v14525_v56  ;;  %v14565_v56 = vcombine.low %v3418_v30, %v3422_v26  ;;  %v3347_v26 = vld [vmem:[%s16479_s10 + $0x1190] sm:$0xff] }
 0x674   : > { %11516 = vmatpush1.bf16.xpose.msra.mxu1 %v14653_v58  ;;  %11353 = vmatprep.subr.bf16.mxu0 %v14534_v19  ;;  %v14693_v58 = vcombine.low %v3546_v14, %v3550_v61  ;;  %v14448_v19 = vcombine.high %v3299_v28, %v3303_v0  ;;  %v3351_v14 = vld [vmem:[%s16479_s10 + $0x11b0] sm:$0xff] }
 0x675   : > { %v11119_v44 = vpop.f32.mrb[4].mxu0  ;;  %11517 = vmatprep.subr.bf16.mxu1 %v14662_v49  ;;  %v14576_v49 = vcombine.high %v3427_v43, %v3431_v27  ;;  %v3475_v61 = vld [vmem:[%s16479_s10 + $0x1590] sm:$0xff] }
 0x676   : > { %v11283_v10 = vpop.f32.mrb[4].mxu1  ;;  %v11121_v52 = vpop.f32.mrb[5].mxu0  ;;  %v3355_v0 = vld [vmem:[%s16479_s10 + $0x11d0] sm:$0xff] }
 0x677   : > { %v11979_v53 = vcombine.low %v11119_v44, %v11121_v52  ;;  %v11285_v29 = vpop.f32.mrb[5].mxu1  ;;  %v11123_v60 = vpop.f32.mrb[6].mxu0  ;;  %v3307_v44 = vld [vmem:[%s16479_s10 + $0x1050] sm:$0xff] }
 0x678   : > { %v11980_v35 = vcombine.low %v11283_v10, %v11285_v29  ;;  %v11287_v21 = vpop.f32.mrb[6].mxu1  ;;  %v11124_v37 = vpop.f32.mrb[7].mxu0  ;;  %v3435_v10 = vld [vmem:[%s16479_s10 + $0x1450] sm:$0xff]  ;;  %v14456_v39 = vcombine.high %v3307_v44, %v3311_v2 }
 0x679   : > { %v11987_v54 = vrot.slane %v11979_v53, %v19473_v24  ;;  %v11288_v25 = vpop.f32.mrb[7].mxu1  ;;  %v3439_v52 = vld [vmem:[%s16479_s10 + $0x1470] sm:$0xff]  ;;  %v14455_v21 = vcombine.low %v3307_v44, %v3311_v2 }
 0x67a   : > { %v11994_v13 = vrot.slane %v11980_v35, %v19473_v24  ;;  %v14584_v53 = vcombine.high %v3435_v10, %v3439_v52  ;;  %v3315_v29 = vld [vmem:[%s16479_s10 + $0x1090] sm:$0xff]  ;;  %v14583_v37 = vcombine.low %v3435_v10, %v3439_v52 }
 0x67b   : > { %11354 = vmatpush1.bf16.xpose.msra.mxu0 %v14533_v51  ;;  %v3319_v60 = vld [vmem:[%s16479_s10 + $0x10b0] sm:$0xff] }
 0x67c   : > { %v11995_v42 = vcombine.low %v11987_v54, %v11994_v13  ;;  %11518 = vmatpush1.bf16.xpose.msra.mxu1 %v14661_v8  ;;  %11355 = vmatprep.subr.bf16.mxu0 %v14542_v23  ;;  %v3443_v51 = vld [vmem:[%s16479_s10 + $0x1490] sm:$0xff]  ;;  %v14464_v8 = vcombine.high %v3315_v29, %v3319_v60 }
 0x67d   : > { %11519 = vmatprep.subr.bf16.mxu1 %v14670_v11  ;;  %v3447_v35 = vld [vmem:[%s16479_s10 + $0x14b0] sm:$0xff] }
 0x67e   : > { %v12035_v1 = vadd.f32 %v11995_v42, %v2654_v5  ;;  %v14592_v23 = vcombine.high %v3443_v51, %v3447_v35  ;;  %v3323_v54 = vld [vmem:[%s16479_s10 + $0x10d0] sm:$0xff]  ;;  %v14463_v5 = vcombine.low %v3315_v29, %v3319_v60  ;;  %v14591_v42 = vcombine.low %v3443_v51, %v3447_v35 }
 0x67f   : > { %v3327_v25 = vld [vmem:[%s16479_s10 + $0x10f0] sm:$0xff] }
 0x680   : > { %12039 = vst [vmem:[#allocation10 + $0x8] sm:$0xff] %v12035_v1  ;;  %v3451_v11 = vld [vmem:[%s16479_s10 + $0x14d0] sm:$0xff]  ;;  %v14472_v16 = vcombine.high %v3323_v54, %v3327_v25 }
 0x681   : > { %v3455_v13 = vld [vmem:[%s16479_s10 + $0x14f0] sm:$0xff] }
 0x682   : > { %v14600_v17 = vcombine.high %v3451_v11, %v3455_v13  ;;  %v3331_v1 = vld [vmem:[%s16479_s10 + $0x1110] sm:$0xff] }
 0x683   : > { %11356 = vmatpush1.bf16.xpose.msra.mxu0 %v14541_v46  ;;  %v3463_v46 = vld [vmem:[%s16479_s10 + $0x1530] sm:$0xff] }
 0x684   : > { %11520 = vmatpush1.bf16.xpose.msra.mxu1 %v14669_v12  ;;  %11357 = vmatprep.subr.bf16.mxu0 %v14550_v7  ;;  %v14471_v12 = vcombine.low %v3323_v54, %v3327_v25  ;;  %v14599_v7 = vcombine.low %v3451_v11, %v3455_v13  ;;  %v14608_v36 = vcombine.high %v3459_v62, %v3463_v46  ;;  %v3359_v43 = vld [vmem:[%s16479_s10 + $0x11f0] sm:$0xff] }
 0x685   : > { %11521 = vmatprep.subr.bf16.mxu1 %v14678_v63  ;;  %v14480_v63 = vcombine.high %v3331_v1, %v3335_v57  ;;  %v3483_v27 = vld [vmem:[%s16479_s10 + $0x15d0] sm:$0xff] }
 0x686   : > { %v3363_v2 = vld [vmem:[%s16479_s10 + $0x1210] sm:$0xff] }
 0x687   : > { %v3491_v10 = vld [vmem:[%s16479_s10 + $0x1610] sm:$0xff] }
 0x688   : > { %v3495_v52 = vld [vmem:[%s16479_s10 + $0x1630] sm:$0xff] }
 0x689   : > { %v14640_v29 = vcombine.high %v3491_v10, %v3495_v52  ;;  %v3371_v60 = vld [vmem:[%s16479_s10 + $0x1250] sm:$0xff] }
 0x68a   : > { %v3375_v51 = vld [vmem:[%s16479_s10 + $0x1270] sm:$0xff] }
 0x68b   : > { %11358 = vmatpush1.bf16.xpose.msra.mxu0 %v14549_v18  ;;  %v3471_v18 = vld [vmem:[%s16479_s10 + $0x1570] sm:$0xff] }
 0x68c   : > { %11522 = vmatpush1.bf16.xpose.msra.mxu1 %v14677_v32  ;;  %11359 = vmatprep.subr.bf16.mxu0 %v14558_v31  ;;  %v14479_v32 = vcombine.low %v3331_v1, %v3335_v57  ;;  %v14607_v31 = vcombine.low %v3459_v62, %v3463_v46  ;;  %v14616_v30 = vcombine.high %v3467_v3, %v3471_v18  ;;  %v3499_v35 = vld [vmem:[%s16479_s10 + $0x1650] sm:$0xff] }
 0x68d   : > { %11523 = vmatprep.subr.bf16.mxu1 %v14686_v4  ;;  %v14488_v4 = vcombine.high %v3339_v40, %v3343_v55  ;;  %v3379_v25 = vld [vmem:[%s16479_s10 + $0x1290] sm:$0xff] }
 0x68e   : > { %v3383_v11 = vld [vmem:[%s16479_s10 + $0x12b0] sm:$0xff] }
 0x68f   : > { %v3507_v13 = vld [vmem:[%s16479_s10 + $0x1690] sm:$0xff] }
 0x690   : > { %v3387_v57 = vld [vmem:[%s16479_s10 + $0x12d0] sm:$0xff] }
 0x691   : > { %v3391_v62 = vld [vmem:[%s16479_s10 + $0x12f0] sm:$0xff] }
 0x692   : > { %v3515_v46 = vld [vmem:[%s16479_s10 + $0x16d0] sm:$0xff] }
 0x693   : > { %11360 = vmatpush1.bf16.xpose.msra.mxu0 %v14557_v9  ;;  %v3479_v9 = vld [vmem:[%s16479_s10 + $0x15b0] sm:$0xff] }
 0x694   : > { %11524 = vmatpush1.bf16.xpose.msra.mxu1 %v14685_v47  ;;  %11361 = vmatprep.subr.bf16.mxu0 %v14566_v41  ;;  %v14487_v47 = vcombine.low %v3339_v40, %v3343_v55  ;;  %v14615_v41 = vcombine.low %v3467_v3, %v3471_v18  ;;  %v14624_v28 = vcombine.high %v3475_v61, %v3479_v9  ;;  %v3395_v55 = vld [vmem:[%s16479_s10 + $0x1310] sm:$0xff] }
 0x695   : > { %11525 = vmatprep.subr.bf16.mxu1 %v14694_v34  ;;  %v14496_v34 = vcombine.high %v3347_v26, %v3351_v14  ;;  %v3399_v3 = vld [vmem:[%s16479_s10 + $0x1330] sm:$0xff] }
 0x696   : > { %v3523_v18 = vld [vmem:[%s16479_s10 + $0x1710] sm:$0xff] }
 0x69b   : > { %11362 = vmatpush1.bf16.xpose.msra.mxu0 %v14565_v56  ;;  %v3487_v56 = vld [vmem:[%s16479_s10 + $0x15f0] sm:$0xff] }
 0x69c   : > { %11526 = vmatpush1.bf16.xpose.msra.mxu1 %v14693_v58  ;;  %11372 = vmatprep.subr.bf16.mxu0 %v14448_v19  ;;  %v14495_v58 = vcombine.low %v3347_v26, %v3351_v14  ;;  %v14623_v19 = vcombine.low %v3475_v61, %v3479_v9  ;;  %v14632_v44 = vcombine.high %v3483_v27, %v3487_v56  ;;  %v3403_v14 = vld [vmem:[%s16479_s10 + $0x1350] sm:$0xff] }
 0x69d   : > { %11536 = vmatprep.subr.bf16.mxu1 %v14576_v49  ;;  %v14504_v49 = vcombine.high %v3355_v0, %v3359_v43  ;;  %v3407_v61 = vld [vmem:[%s16479_s10 + $0x1370] sm:$0xff] }
 0x69e   : > { %v3531_v9 = vld [vmem:[%s16479_s10 + $0x1750] sm:$0xff] }
 0x6a2   : > { %11364 = vmatmul.mubr.bf16.vlgmr.msra.gmra.mrb[8].mxu0 %v20703_v48 }
 0x6a3   : > { %11528 = vmatmul.mubr.bf16.vlgmr.msra.gmra.mrb[8].mxu1 %v20703_v48  ;;  %11373 = vmatpush1.bf16.xpose.msra.mxu0 %v14447_v20  ;;  %v3367_v20 = vld [vmem:[%s16479_s10 + $0x1230] sm:$0xff] }
 0x6a4   : > { %11404 = vmatprep.mubr.bf16.mxu0 %v20704_v45  ;;  %11537 = vmatpush1.bf16.xpose.msra.mxu1 %v14575_v22  ;;  %v14503_v22 = vcombine.low %v3355_v0, %v3359_v43  ;;  %v3411_v43 = vld [vmem:[%s16479_s10 + $0x1390] sm:$0xff] }
 0x6a5   : > { %11568 = vmatprep.mubr.bf16.mxu1 %v20704_v45  ;;  %11374 = vmatprep.subr.bf16.mxu0 %v14456_v39  ;;  %v14631_v39 = vcombine.low %v3483_v27, %v3487_v56  ;;  %v3415_v27 = vld [vmem:[%s16479_s10 + $0x13b0] sm:$0xff] }
 0x6a6   : > { %11538 = vmatprep.subr.bf16.mxu1 %v14584_v53  ;;  %v14512_v53 = vcombine.high %v3363_v2, %v3367_v20  ;;  %v3539_v56 = vld [vmem:[%s16479_s10 + $0x1790] sm:$0xff] }
 0x6ab   : > { %11375 = vmatpush1.bf16.xpose.msra.mxu0 %v14455_v21  ;;  %v3503_v21 = vld [vmem:[%s16479_s10 + $0x1670] sm:$0xff] }
 0x6ac   : > { %11539 = vmatpush1.bf16.xpose.msra.mxu1 %v14583_v37  ;;  %11376 = vmatprep.subr.bf16.mxu0 %v14464_v8  ;;  %v14511_v37 = vcombine.low %v3363_v2, %v3367_v20  ;;  %v14639_v8 = vcombine.low %v3491_v10, %v3495_v52  ;;  %v14648_v54 = vcombine.high %v3499_v35, %v3503_v21  ;;  %v3419_v20 = vld [vmem:[%s16479_s10 + $0x13d0] sm:$0xff] }
 0x6ad   : > { %11540 = vmatprep.subr.bf16.mxu1 %v14592_v23  ;;  %v14520_v23 = vcombine.high %v3371_v60, %v3375_v51  ;;  %v3423_v10 = vld [vmem:[%s16479_s10 + $0x13f0] sm:$0xff] }
 0x6ae   : > { %v3547_v52 = vld [vmem:[%s16479_s10 + $0x17d0] sm:$0xff] }
 0x6b3   : > { %11377 = vmatpush1.bf16.xpose.msra.mxu0 %v14463_v5  ;;  %v3511_v5 = vld [vmem:[%s16479_s10 + $0x16b0] sm:$0xff] }
 0x6b4   : > { %11541 = vmatpush1.bf16.xpose.msra.mxu1 %v14591_v42  ;;  %11378 = vmatprep.subr.bf16.mxu0 %v14472_v16  ;;  %v14519_v42 = vcombine.low %v3371_v60, %v3375_v51  ;;  %v14647_v16 = vcombine.low %v3499_v35, %v3503_v21  ;;  %v14656_v1 = vcombine.high %v3507_v13, %v3511_v5  ;;  %v3300_v51 = vld [vmem:[%s16479_s10 + $0x1018] sm:$0xff] }
 0x6b5   : > { %11542 = vmatprep.subr.bf16.mxu1 %v14600_v17  ;;  %v14528_v17 = vcombine.high %v3379_v25, %v3383_v11  ;;  %v3304_v35 = vld [vmem:[%s16479_s10 + $0x1038] sm:$0xff] }
 0x6b6   : > { %v3428_v21 = vld [vmem:[%s16479_s10 + $0x1418] sm:$0xff] }
 0x6bb   : > { %11379 = vmatpush1.bf16.xpose.msra.mxu0 %v14471_v12  ;;  %v3519_v12 = vld [vmem:[%s16479_s10 + $0x16f0] sm:$0xff] }
 0x6bc   : > { %11543 = vmatpush1.bf16.xpose.msra.mxu1 %v14599_v7  ;;  %11380 = vmatprep.subr.bf16.mxu0 %v14480_v63  ;;  %v14527_v7 = vcombine.low %v3379_v25, %v3383_v11  ;;  %v14655_v63 = vcombine.low %v3507_v13, %v3511_v5  ;;  %v14664_v40 = vcombine.high %v3515_v46, %v3519_v12  ;;  %v3308_v11 = vld [vmem:[%s16479_s10 + $0x1058] sm:$0xff] }
 0x6bd   : > { %11544 = vmatprep.subr.bf16.mxu1 %v14608_v36  ;;  %v14536_v36 = vcombine.high %v3387_v57, %v3391_v62  ;;  %v3312_v13 = vld [vmem:[%s16479_s10 + $0x1078] sm:$0xff]  ;;  %v14449_v5 = vcombine.low %v3300_v51, %v3304_v35 }
 0x6c3   : > { %11381 = vmatpush1.bf16.xpose.msra.mxu0 %v14479_v32  ;;  %v3527_v32 = vld [vmem:[%s16479_s10 + $0x1730] sm:$0xff] }
 0x6c4   : > { %11545 = vmatpush1.bf16.xpose.msra.mxu1 %v14607_v31  ;;  %11382 = vmatprep.subr.bf16.mxu0 %v14488_v4  ;;  %v14535_v31 = vcombine.low %v3387_v57, %v3391_v62  ;;  %v14663_v4 = vcombine.low %v3515_v46, %v3519_v12  ;;  %v14672_v26 = vcombine.high %v3523_v18, %v3527_v32  ;;  %v3316_v62 = vld [vmem:[%s16479_s10 + $0x1098] sm:$0xff] }
 0x6c5   : > { %11546 = vmatprep.subr.bf16.mxu1 %v14616_v30  ;;  %v14544_v30 = vcombine.high %v3395_v55, %v3399_v3  ;;  %v3320_v46 = vld [vmem:[%s16479_s10 + $0x10b8] sm:$0xff] }
 0x6c6   : > { %v3444_v12 = vld [vmem:[%s16479_s10 + $0x1498] sm:$0xff] }
 0x6cb   : > { %11383 = vmatpush1.bf16.xpose.msra.mxu0 %v14487_v47  ;;  %v3535_v47 = vld [vmem:[%s16479_s10 + $0x1770] sm:$0xff] }
 0x6cc   : > { %11547 = vmatpush1.bf16.xpose.msra.mxu1 %v14615_v41  ;;  %11384 = vmatprep.subr.bf16.mxu0 %v14496_v34  ;;  %v14543_v41 = vcombine.low %v3395_v55, %v3399_v3  ;;  %v14671_v34 = vcombine.low %v3523_v18, %v3527_v32  ;;  %v14680_v0 = vcombine.high %v3531_v9, %v3535_v47  ;;  %v3324_v3 = vld [vmem:[%s16479_s10 + $0x10d8] sm:$0xff] }
 0x6cd   : > { %11548 = vmatprep.subr.bf16.mxu1 %v14624_v28  ;;  %v14552_v28 = vcombine.high %v3403_v14, %v3407_v61  ;;  %v3328_v18 = vld [vmem:[%s16479_s10 + $0x10f8] sm:$0xff] }
 0x6ce   : > { %v3452_v32 = vld [vmem:[%s16479_s10 + $0x14d8] sm:$0xff] }
 0x6d3   : > { %11385 = vmatpush1.bf16.xpose.msra.mxu0 %v14495_v58  ;;  %v3543_v58 = vld [vmem:[%s16479_s10 + $0x17b0] sm:$0xff] }
 0x6d4   : > { %11549 = vmatpush1.bf16.xpose.msra.mxu1 %v14623_v19  ;;  %11386 = vmatprep.subr.bf16.mxu0 %v14504_v49  ;;  %v14551_v19 = vcombine.low %v3403_v14, %v3407_v61  ;;  %v14679_v49 = vcombine.low %v3531_v9, %v3535_v47  ;;  %v14688_v2 = vcombine.high %v3539_v56, %v3543_v58  ;;  %v3332_v61 = vld [vmem:[%s16479_s10 + $0x1118] sm:$0xff] }
 0x6d5   : > { %11550 = vmatprep.subr.bf16.mxu1 %v14632_v44  ;;  %v14560_v44 = vcombine.high %v3411_v43, %v3415_v27  ;;  %v3336_v9 = vld [vmem:[%s16479_s10 + $0x1138] sm:$0xff] }
 0x6d6   : > { %v3460_v47 = vld [vmem:[%s16479_s10 + $0x1518] sm:$0xff] }
 0x6db   : > { %11387 = vmatpush1.bf16.xpose.msra.mxu0 %v14503_v22  ;;  %v3551_v22 = vld [vmem:[%s16479_s10 + $0x17f0] sm:$0xff] }
 0x6dc   : > { %11551 = vmatpush1.bf16.xpose.msra.mxu1 %v14631_v39  ;;  %11388 = vmatprep.subr.bf16.mxu0 %v14512_v53  ;;  %v14559_v39 = vcombine.low %v3411_v43, %v3415_v27  ;;  %v14687_v53 = vcombine.low %v3539_v56, %v3543_v58  ;;  %v14696_v60 = vcombine.high %v3547_v52, %v3551_v22  ;;  %v3340_v27 = vld [vmem:[%s16479_s10 + $0x1158] sm:$0xff] }
 0x6dd   : > { %11552 = vmatprep.subr.bf16.mxu1 %v14640_v29  ;;  %v14568_v29 = vcombine.high %v3419_v20, %v3423_v10  ;;  %v3344_v56 = vld [vmem:[%s16479_s10 + $0x1178] sm:$0xff] }
 0x6de   : > { %v3468_v58 = vld [vmem:[%s16479_s10 + $0x1558] sm:$0xff] }
 0x6e3   : > { %11389 = vmatpush1.bf16.xpose.msra.mxu0 %v14511_v37  ;;  %v3432_v37 = vld [vmem:[%s16479_s10 + $0x1438] sm:$0xff] }
 0x6e4   : > { %11553 = vmatpush1.bf16.xpose.msra.mxu1 %v14639_v8  ;;  %11390 = vmatprep.subr.bf16.mxu0 %v14520_v23  ;;  %v14567_v8 = vcombine.low %v3419_v20, %v3423_v10  ;;  %v14695_v23 = vcombine.low %v3547_v52, %v3551_v22  ;;  %v14578_v25 = vcombine.high %v3428_v21, %v3432_v37  ;;  %v3348_v10 = vld [vmem:[%s16479_s10 + $0x1198] sm:$0xff] }
 0x6e5   : > { %11554 = vmatprep.subr.bf16.mxu1 %v14648_v54  ;;  %v14450_v54 = vcombine.high %v3300_v51, %v3304_v35  ;;  %v3352_v52 = vld [vmem:[%s16479_s10 + $0x11b8] sm:$0xff] }
 0x6e6   : > { %v3476_v22 = vld [vmem:[%s16479_s10 + $0x1598] sm:$0xff] }
 0x6e7   : > { %v3356_v35 = vld [vmem:[%s16479_s10 + $0x11d8] sm:$0xff] }
 0x6eb   : > { %11391 = vmatpush1.bf16.xpose.msra.mxu0 %v14519_v42  ;;  %v3436_v42 = vld [vmem:[%s16479_s10 + $0x1458] sm:$0xff] }
 0x6ec   : > { %11555 = vmatpush1.bf16.xpose.msra.mxu1 %v14647_v16  ;;  %11392 = vmatprep.subr.bf16.mxu0 %v14528_v17  ;;  %v3440_v16 = vld [vmem:[%s16479_s10 + $0x1478] sm:$0xff]  ;;  %v14577_v17 = vcombine.low %v3428_v21, %v3432_v37 }
 0x6ed   : > { %11556 = vmatprep.subr.bf16.mxu1 %v14656_v1  ;;  %v14458_v1 = vcombine.high %v3308_v11, %v3312_v13  ;;  %v14586_v57 = vcombine.high %v3436_v42, %v3440_v16  ;;  %v3360_v21 = vld [vmem:[%s16479_s10 + $0x11f8] sm:$0xff] }
 0x6ee   : > { %v3484_v37 = vld [vmem:[%s16479_s10 + $0x15d8] sm:$0xff] }
 0x6f3   : > { %11393 = vmatpush1.bf16.xpose.msra.mxu0 %v14527_v7  ;;  %v3448_v7 = vld [vmem:[%s16479_s10 + $0x14b8] sm:$0xff] }
 0x6f4   : > { %11557 = vmatpush1.bf16.xpose.msra.mxu1 %v14655_v63  ;;  %11394 = vmatprep.subr.bf16.mxu0 %v14536_v36  ;;  %v14457_v63 = vcombine.low %v3308_v11, %v3312_v13  ;;  %v14585_v36 = vcombine.low %v3436_v42, %v3440_v16  ;;  %v14594_v55 = vcombine.high %v3444_v12, %v3448_v7  ;;  %v3364_v13 = vld [vmem:[%s16479_s10 + $0x1218] sm:$0xff] }
 0x6f5   : > { %11558 = vmatprep.subr.bf16.mxu1 %v14664_v40  ;;  %v14466_v40 = vcombine.high %v3316_v62, %v3320_v46  ;;  %v3492_v42 = vld [vmem:[%s16479_s10 + $0x1618] sm:$0xff] }
 0x6f6   : > { %v3496_v16 = vld [vmem:[%s16479_s10 + $0x1638] sm:$0xff] }
 0x6fb   : > { %11395 = vmatpush1.bf16.xpose.msra.mxu0 %v14535_v31  ;;  %v3456_v31 = vld [vmem:[%s16479_s10 + $0x14f8] sm:$0xff] }
 0x6fc   : > { %11559 = vmatpush1.bf16.xpose.msra.mxu1 %v14663_v4  ;;  %11396 = vmatprep.subr.bf16.mxu0 %v14544_v30  ;;  %v14465_v4 = vcombine.low %v3316_v62, %v3320_v46  ;;  %v14593_v30 = vcombine.low %v3444_v12, %v3448_v7  ;;  %v14602_v14 = vcombine.high %v3452_v32, %v3456_v31  ;;  %v3372_v46 = vld [vmem:[%s16479_s10 + $0x1258] sm:$0xff] }
 0x6fd   : > { %11560 = vmatprep.subr.bf16.mxu1 %v14672_v26  ;;  %v14474_v26 = vcombine.high %v3324_v3, %v3328_v18  ;;  %v14642_v62 = vcombine.high %v3492_v42, %v3496_v16  ;;  %v3376_v12 = vld [vmem:[%s16479_s10 + $0x1278] sm:$0xff] }
 0x6fe   : > { %v3500_v7 = vld [vmem:[%s16479_s10 + $0x1658] sm:$0xff] }
 0x703   : > { %11397 = vmatpush1.bf16.xpose.msra.mxu0 %v14543_v41  ;;  %v3464_v41 = vld [vmem:[%s16479_s10 + $0x1538] sm:$0xff] }
 0x704   : > { %11561 = vmatpush1.bf16.xpose.msra.mxu1 %v14671_v34  ;;  %11398 = vmatprep.subr.bf16.mxu0 %v14552_v28  ;;  %v14473_v34 = vcombine.low %v3324_v3, %v3328_v18  ;;  %v14601_v28 = vcombine.low %v3452_v32, %v3456_v31  ;;  %v14610_v43 = vcombine.high %v3460_v47, %v3464_v41  ;;  %v3380_v18 = vld [vmem:[%s16479_s10 + $0x1298] sm:$0xff] }
 0x705   : > { %11562 = vmatprep.subr.bf16.mxu1 %v14680_v0  ;;  %v14482_v0 = vcombine.high %v3332_v61, %v3336_v9  ;;  %v3384_v32 = vld [vmem:[%s16479_s10 + $0x12b8] sm:$0xff] }
 0x706   : > { %v3508_v31 = vld [vmem:[%s16479_s10 + $0x1698] sm:$0xff] }
 0x70b   : > { %11399 = vmatpush1.bf16.xpose.msra.mxu0 %v14551_v19  ;;  %v3472_v19 = vld [vmem:[%s16479_s10 + $0x1578] sm:$0xff] }
 0x70c   : > { %11563 = vmatpush1.bf16.xpose.msra.mxu1 %v14679_v49  ;;  %11400 = vmatprep.subr.bf16.mxu0 %v14560_v44  ;;  %v14481_v49 = vcombine.low %v3332_v61, %v3336_v9  ;;  %v14609_v44 = vcombine.low %v3460_v47, %v3464_v41  ;;  %v14618_v20 = vcombine.high %v3468_v58, %v3472_v19  ;;  %v3388_v9 = vld [vmem:[%s16479_s10 + $0x12d8] sm:$0xff] }
 0x70d   : > { %11564 = vmatprep.subr.bf16.mxu1 %v14688_v2  ;;  %v14490_v2 = vcombine.high %v3340_v27, %v3344_v56  ;;  %v3392_v47 = vld [vmem:[%s16479_s10 + $0x12f8] sm:$0xff] }
 0x70e   : > { %v3516_v41 = vld [vmem:[%s16479_s10 + $0x16d8] sm:$0xff] }
 0x713   : > { %11401 = vmatpush1.bf16.xpose.msra.mxu0 %v14559_v39  ;;  %v3480_v39 = vld [vmem:[%s16479_s10 + $0x15b8] sm:$0xff] }
 0x714   : > { %11565 = vmatpush1.bf16.xpose.msra.mxu1 %v14687_v53  ;;  %11402 = vmatprep.subr.bf16.mxu0 %v14568_v29  ;;  %v14489_v53 = vcombine.low %v3340_v27, %v3344_v56  ;;  %v14617_v29 = vcombine.low %v3468_v58, %v3472_v19  ;;  %v14626_v51 = vcombine.high %v3476_v22, %v3480_v39  ;;  %v3396_v56 = vld [vmem:[%s16479_s10 + $0x1318] sm:$0xff] }
 0x715   : > { %11566 = vmatprep.subr.bf16.mxu1 %v14696_v60  ;;  %v14498_v60 = vcombine.high %v3348_v10, %v3352_v52  ;;  %v3400_v58 = vld [vmem:[%s16479_s10 + $0x1338] sm:$0xff] }
 0x716   : > { %v3524_v19 = vld [vmem:[%s16479_s10 + $0x1718] sm:$0xff] }
 0x71b   : > { %11403 = vmatpush1.bf16.xpose.msra.mxu0 %v14567_v8  ;;  %v3488_v8 = vld [vmem:[%s16479_s10 + $0x15f8] sm:$0xff] }
 0x71c   : > { %11567 = vmatpush1.bf16.xpose.msra.mxu1 %v14695_v23  ;;  %11413 = vmatprep.subr.bf16.mxu0 %v14450_v54  ;;  %v14497_v23 = vcombine.low %v3348_v10, %v3352_v52  ;;  %v14625_v54 = vcombine.low %v3476_v22, %v3480_v39  ;;  %v14634_v11 = vcombine.high %v3484_v37, %v3488_v8  ;;  %v3404_v52 = vld [vmem:[%s16479_s10 + $0x1358] sm:$0xff] }
 0x71d   : > { %11577 = vmatprep.subr.bf16.mxu1 %v14578_v25  ;;  %v14506_v25 = vcombine.high %v3356_v35, %v3360_v21  ;;  %v3408_v22 = vld [vmem:[%s16479_s10 + $0x1378] sm:$0xff] }
 0x71e   : > { %v3532_v39 = vld [vmem:[%s16479_s10 + $0x1758] sm:$0xff] }
 0x722   : > { %11405 = vmatmul.mubr.bf16.vlgmr.msra.gmra.mrb[8].mxu0 %v20705_v50 }
 0x723   : > { %11569 = vmatmul.mubr.bf16.vlgmr.msra.gmra.mrb[8].mxu1 %v20705_v50  ;;  %11414 = vmatpush1.bf16.xpose.msra.mxu0 %v14449_v5  ;;  %v3368_v5 = vld [vmem:[%s16479_s10 + $0x1238] sm:$0xff] }
 0x724   : > { %11445 = vmatprep.mubr.bf16.mxu0 %v19328_v59  ;;  %11578 = vmatpush1.bf16.xpose.msra.mxu1 %v14577_v17  ;;  %v14505_v17 = vcombine.low %v3356_v35, %v3360_v21  ;;  %v3412_v21 = vld [vmem:[%s16479_s10 + $0x1398] sm:$0xff] }
 0x725   : > { %11609 = vmatprep.mubr.bf16.mxu1 %v19328_v59  ;;  %11415 = vmatprep.subr.bf16.mxu0 %v14458_v1  ;;  %v14633_v1 = vcombine.low %v3484_v37, %v3488_v8  ;;  %v3416_v37 = vld [vmem:[%s16479_s10 + $0x13b8] sm:$0xff] }
 0x726   : > { %11579 = vmatprep.subr.bf16.mxu1 %v14586_v57  ;;  %v14514_v57 = vcombine.high %v3364_v13, %v3368_v5  ;;  %v3540_v8 = vld [vmem:[%s16479_s10 + $0x1798] sm:$0xff] }
 0x72b   : > { %11416 = vmatpush1.bf16.xpose.msra.mxu0 %v14457_v63  ;;  %v3504_v63 = vld [vmem:[%s16479_s10 + $0x1678] sm:$0xff] }
 0x72c   : > { %11580 = vmatpush1.bf16.xpose.msra.mxu1 %v14585_v36  ;;  %11417 = vmatprep.subr.bf16.mxu0 %v14466_v40  ;;  %v14513_v36 = vcombine.low %v3364_v13, %v3368_v5  ;;  %v14641_v40 = vcombine.low %v3492_v42, %v3496_v16  ;;  %v14650_v3 = vcombine.high %v3500_v7, %v3504_v63  ;;  %v3420_v5 = vld [vmem:[%s16479_s10 + $0x13d8] sm:$0xff] }
 0x72d   : > { %11581 = vmatprep.subr.bf16.mxu1 %v14594_v55  ;;  %v14522_v55 = vcombine.high %v3372_v46, %v3376_v12  ;;  %v3424_v42 = vld [vmem:[%s16479_s10 + $0x13f8] sm:$0xff] }
 0x72e   : > { %v3548_v16 = vld [vmem:[%s16479_s10 + $0x17d8] sm:$0xff] }
 0x733   : > { %11418 = vmatpush1.bf16.xpose.msra.mxu0 %v14465_v4  ;;  %v3512_v4 = vld [vmem:[%s16479_s10 + $0x16b8] sm:$0xff] }
 0x734   : > { %11582 = vmatpush1.bf16.xpose.msra.mxu1 %v14593_v30  ;;  %11419 = vmatprep.subr.bf16.mxu0 %v14474_v26  ;;  %v14521_v30 = vcombine.low %v3372_v46, %v3376_v12  ;;  %v14649_v26 = vcombine.low %v3500_v7, %v3504_v63  ;;  %v14658_v61 = vcombine.high %v3508_v31, %v3512_v4  ;;  %v3553_v12 = vld [vmem:[%s16479_s10 + $0x1800] sm:$0xff] }
 0x735   : > { %11583 = vmatprep.subr.bf16.mxu1 %v14602_v14  ;;  %v14530_v14 = vcombine.high %v3380_v18, %v3384_v32  ;;  %v3557_v7 = vld [vmem:[%s16479_s10 + $0x1820] sm:$0xff] }
 0x736   : > { %v3681_v63 = vld [vmem:[%s16479_s10 + $0x1c00] sm:$0xff] }
 0x73b   : > { %11420 = vmatpush1.bf16.xpose.msra.mxu0 %v14473_v34  ;;  %v3520_v34 = vld [vmem:[%s16479_s10 + $0x16f8] sm:$0xff] }
 0x73c   : > { %11584 = vmatpush1.bf16.xpose.msra.mxu1 %v14601_v28  ;;  %11421 = vmatprep.subr.bf16.mxu0 %v14482_v0  ;;  %v14529_v28 = vcombine.low %v3380_v18, %v3384_v32  ;;  %v14657_v0 = vcombine.low %v3508_v31, %v3512_v4  ;;  %v14666_v27 = vcombine.high %v3516_v41, %v3520_v34  ;;  %v3561_v32 = vld [vmem:[%s16479_s10 + $0x1840] sm:$0xff] }
 0x73d   : > { %11585 = vmatprep.subr.bf16.mxu1 %v14610_v43  ;;  %v14538_v43 = vcombine.high %v3388_v9, %v3392_v47  ;;  %v3565_v31 = vld [vmem:[%s16479_s10 + $0x1860] sm:$0xff]  ;;  %v14699_v4 = vcombine.low %v3553_v12, %v3557_v7 }
 0x743   : > { %11422 = vmatpush1.bf16.xpose.msra.mxu0 %v14481_v49  ;;  %v3528_v49 = vld [vmem:[%s16479_s10 + $0x1738] sm:$0xff] }
 0x744   : > { %11586 = vmatpush1.bf16.xpose.msra.mxu1 %v14609_v44  ;;  %11423 = vmatprep.subr.bf16.mxu0 %v14490_v2  ;;  %v14537_v44 = vcombine.low %v3388_v9, %v3392_v47  ;;  %v14665_v2 = vcombine.low %v3516_v41, %v3520_v34  ;;  %v14674_v10 = vcombine.high %v3524_v19, %v3528_v49  ;;  %v3569_v47 = vld [vmem:[%s16479_s10 + $0x1880] sm:$0xff] }
 0x745   : > { %11587 = vmatprep.subr.bf16.mxu1 %v14618_v20  ;;  %v14546_v20 = vcombine.high %v3396_v56, %v3400_v58  ;;  %v3573_v41 = vld [vmem:[%s16479_s10 + $0x18a0] sm:$0xff] }
 0x746   : > { %v3697_v34 = vld [vmem:[%s16479_s10 + $0x1c80] sm:$0xff] }
 0x74b   : > { %11424 = vmatpush1.bf16.xpose.msra.mxu0 %v14489_v53  ;;  %v3536_v53 = vld [vmem:[%s16479_s10 + $0x1778] sm:$0xff] }
 0x74c   : > { %11588 = vmatpush1.bf16.xpose.msra.mxu1 %v14617_v29  ;;  %11425 = vmatprep.subr.bf16.mxu0 %v14498_v60  ;;  %v14545_v29 = vcombine.low %v3396_v56, %v3400_v58  ;;  %v14673_v60 = vcombine.low %v3524_v19, %v3528_v49  ;;  %v14682_v35 = vcombine.high %v3532_v39, %v3536_v53  ;;  %v3581_v58 = vld [vmem:[%s16479_s10 + $0x18e0] sm:$0xff] }
 0x74d   : > { %11589 = vmatprep.subr.bf16.mxu1 %v14626_v51  ;;  %v14554_v51 = vcombine.high %v3404_v52, %v3408_v22  ;;  %v3705_v19 = vld [vmem:[%s16479_s10 + $0x1cc0] sm:$0xff] }
 0x74e   : > { %v3709_v49 = vld [vmem:[%s16479_s10 + $0x1ce0] sm:$0xff] }
 0x753   : > { %11426 = vmatpush1.bf16.xpose.msra.mxu0 %v14497_v23  ;;  %v3544_v23 = vld [vmem:[%s16479_s10 + $0x17b8] sm:$0xff] }
 0x754   : > { %11590 = vmatpush1.bf16.xpose.msra.mxu1 %v14625_v54  ;;  %11427 = vmatprep.subr.bf16.mxu0 %v14506_v25  ;;  %v14553_v54 = vcombine.low %v3404_v52, %v3408_v22  ;;  %v14681_v25 = vcombine.low %v3532_v39, %v3536_v53  ;;  %v14690_v13 = vcombine.high %v3540_v8, %v3544_v23  ;;  %v3585_v52 = vld [vmem:[%s16479_s10 + $0x1900] sm:$0xff] }
 0x755   : > { %11591 = vmatprep.subr.bf16.mxu1 %v14634_v11  ;;  %v14562_v11 = vcombine.high %v3412_v21, %v3416_v37  ;;  %v3589_v22 = vld [vmem:[%s16479_s10 + $0x1920] sm:$0xff] }
 0x756   : > { %v3713_v39 = vld [vmem:[%s16479_s10 + $0x1d00] sm:$0xff] }
 0x757   : > { %v3717_v53 = vld [vmem:[%s16479_s10 + $0x1d20] sm:$0xff] }
 0x75b   : > { %11428 = vmatpush1.bf16.xpose.msra.mxu0 %v14505_v17  ;;  %v3552_v17 = vld [vmem:[%s16479_s10 + $0x17f8] sm:$0xff] }
 0x75c   : > { %11592 = vmatpush1.bf16.xpose.msra.mxu1 %v14633_v1  ;;  %11429 = vmatprep.subr.bf16.mxu0 %v14514_v57  ;;  %v14561_v1 = vcombine.low %v3412_v21, %v3416_v37  ;;  %v14689_v57 = vcombine.low %v3540_v8, %v3544_v23  ;;  %v14698_v46 = vcombine.high %v3548_v16, %v3552_v17  ;;  %v3593_v21 = vld [vmem:[%s16479_s10 + $0x1940] sm:$0xff] }
 0x75d   : > { %11593 = vmatprep.subr.bf16.mxu1 %v14642_v62  ;;  %v14570_v62 = vcombine.high %v3420_v5, %v3424_v42  ;;  %v3597_v37 = vld [vmem:[%s16479_s10 + $0x1960] sm:$0xff] }
 0x75e   : > { %v3721_v8 = vld [vmem:[%s16479_s10 + $0x1d40] sm:$0xff] }
 0x75f   : > { %v3725_v23 = vld [vmem:[%s16479_s10 + $0x1d60] sm:$0xff] }
 0x763   : > { %11430 = vmatpush1.bf16.xpose.msra.mxu0 %v14513_v36  ;;  %v3685_v36 = vld [vmem:[%s16479_s10 + $0x1c20] sm:$0xff] }
 0x764   : > { %11594 = vmatpush1.bf16.xpose.msra.mxu1 %v14641_v40  ;;  %11431 = vmatprep.subr.bf16.mxu0 %v14522_v55  ;;  %v14569_v40 = vcombine.low %v3420_v5, %v3424_v42  ;;  %v14697_v55 = vcombine.low %v3548_v16, %v3552_v17  ;;  %v14828_v18 = vcombine.high %v3681_v63, %v3685_v36  ;;  %v3601_v5 = vld [vmem:[%s16479_s10 + $0x1980] sm:$0xff] }
 0x765   : > { %11595 = vmatprep.subr.bf16.mxu1 %v14650_v3  ;;  %v14700_v3 = vcombine.high %v3553_v12, %v3557_v7  ;;  %v3605_v42 = vld [vmem:[%s16479_s10 + $0x19a0] sm:$0xff] }
 0x766   : > { %v3729_v16 = vld [vmem:[%s16479_s10 + $0x1d80] sm:$0xff] }
 0x767   : > { %v3733_v17 = vld [vmem:[%s16479_s10 + $0x1da0] sm:$0xff] }
 0x768   : > { %v3609_v12 = vld [vmem:[%s16479_s10 + $0x19c0] sm:$0xff] }
 0x769   : > { %v3613_v7 = vld [vmem:[%s16479_s10 + $0x19e0] sm:$0xff] }
 0x76b   : > { %11432 = vmatpush1.bf16.xpose.msra.mxu0 %v14521_v30  ;;  %v3689_v30 = vld [vmem:[%s16479_s10 + $0x1c40] sm:$0xff] }
 0x76c   : > { %11596 = vmatpush1.bf16.xpose.msra.mxu1 %v14649_v26  ;;  %11433 = vmatprep.subr.bf16.mxu0 %v14530_v14  ;;  %v3693_v26 = vld [vmem:[%s16479_s10 + $0x1c60] sm:$0xff]  ;;  %v14827_v14 = vcombine.low %v3681_v63, %v3685_v36 }
 0x76d   : > { %11597 = vmatprep.subr.bf16.mxu1 %v14658_v61  ;;  %v14708_v61 = vcombine.high %v3561_v32, %v3565_v31  ;;  %v14836_v9 = vcombine.high %v3689_v30, %v3693_v26  ;;  %v3737_v63 = vld [vmem:[%s16479_s10 + $0x1dc0] sm:$0xff] }
 0x76e   : > { %v3741_v36 = vld [vmem:[%s16479_s10 + $0x1de0] sm:$0xff] }
 0x773   : > { %11434 = vmatpush1.bf16.xpose.msra.mxu0 %v14529_v28  ;;  %v3701_v28 = vld [vmem:[%s16479_s10 + $0x1ca0] sm:$0xff] }
 0x774   : > { %11598 = vmatpush1.bf16.xpose.msra.mxu1 %v14657_v0  ;;  %11435 = vmatprep.subr.bf16.mxu0 %v14538_v43  ;;  %v14707_v0 = vcombine.low %v3561_v32, %v3565_v31  ;;  %v14835_v43 = vcombine.low %v3689_v30, %v3693_v26  ;;  %v14844_v56 = vcombine.high %v3697_v34, %v3701_v28  ;;  %v3617_v32 = vld [vmem:[%s16479_s10 + $0x1a00] sm:$0xff] }
 0x775   : > { %11599 = vmatprep.subr.bf16.mxu1 %v14666_v27  ;;  %v14716_v27 = vcombine.high %v3569_v47, %v3573_v41  ;;  %v3621_v31 = vld [vmem:[%s16479_s10 + $0x1a20] sm:$0xff]  ;;  %v14755_v26 = vcombine.low %v3609_v12, %v3613_v7 }
 0x776   : > { %v3749_v30 = vld [vmem:[%s16479_s10 + $0x1e20] sm:$0xff] }
 0x77b   : > { %11436 = vmatpush1.bf16.xpose.msra.mxu0 %v14537_v44  ;;  %v14715_v44 = vcombine.low %v3569_v47, %v3573_v41  ;;  %v3625_v47 = vld [vmem:[%s16479_s10 + $0x1a40] sm:$0xff] }
 0x77c   : > { %11600 = vmatpush1.bf16.xpose.msra.mxu1 %v14665_v2  ;;  %11437 = vmatprep.subr.bf16.mxu0 %v14546_v20  ;;  %v14843_v2 = vcombine.low %v3697_v34, %v3701_v28  ;;  %v3629_v41 = vld [vmem:[%s16479_s10 + $0x1a60] sm:$0xff] }
 0x77d   : > { %11601 = vmatprep.subr.bf16.mxu1 %v14674_v10  ;;  %v14852_v10 = vcombine.high %v3705_v19, %v3709_v49  ;;  %v3753_v34 = vld [vmem:[%s16479_s10 + $0x1e40] sm:$0xff] }
 0x77e   : > { %v3757_v28 = vld [vmem:[%s16479_s10 + $0x1e60] sm:$0xff] }
 0x783   : > { %11438 = vmatpush1.bf16.xpose.msra.mxu0 %v14545_v29 }
 0x784   : > { %11602 = vmatpush1.bf16.xpose.msra.mxu1 %v14673_v60  ;;  %11439 = vmatprep.subr.bf16.mxu0 %v14554_v51  ;;  %v14851_v60 = vcombine.low %v3705_v19, %v3709_v49  ;;  %v14732_v51 = vcombine.high %v3585_v52, %v3589_v22  ;;  %v3761_v19 = vld [vmem:[%s16479_s10 + $0x1e80] sm:$0xff] }
 0x785   : > { %11603 = vmatprep.subr.bf16.mxu1 %v14682_v35  ;;  %v14860_v35 = vcombine.high %v3713_v39, %v3717_v53  ;;  %v3765_v49 = vld [vmem:[%s16479_s10 + $0x1ea0] sm:$0xff] }
 0x78b   : > { %11440 = vmatpush1.bf16.xpose.msra.mxu0 %v14553_v54  ;;  %v14731_v54 = vcombine.low %v3585_v52, %v3589_v22  ;;  %v3641_v52 = vld [vmem:[%s16479_s10 + $0x1ac0] sm:$0xff] }
 0x78c   : > { %11604 = vmatpush1.bf16.xpose.msra.mxu1 %v14681_v25  ;;  %11441 = vmatprep.subr.bf16.mxu0 %v14562_v11  ;;  %v14859_v25 = vcombine.low %v3713_v39, %v3717_v53  ;;  %v14740_v11 = vcombine.high %v3593_v21, %v3597_v37  ;;  %v3645_v22 = vld [vmem:[%s16479_s10 + $0x1ae0] sm:$0xff] }
 0x78d   : > { %11605 = vmatprep.subr.bf16.mxu1 %v14690_v13  ;;  %v14868_v13 = vcombine.high %v3721_v8, %v3725_v23  ;;  %v3769_v39 = vld [vmem:[%s16479_s10 + $0x1ec0] sm:$0xff] }
 0x78e   : > { %v3773_v53 = vld [vmem:[%s16479_s10 + $0x1ee0] sm:$0xff] }
 0x793   : > { %11442 = vmatpush1.bf16.xpose.msra.mxu0 %v14561_v1  ;;  %v14739_v1 = vcombine.low %v3593_v21, %v3597_v37  ;;  %v3649_v21 = vld [vmem:[%s16479_s10 + $0x1b00] sm:$0xff] }
 0x794   : > { %11606 = vmatpush1.bf16.xpose.msra.mxu1 %v14689_v57  ;;  %11443 = vmatprep.subr.bf16.mxu0 %v14570_v62  ;;  %v14867_v57 = vcombine.low %v3721_v8, %v3725_v23  ;;  %v14748_v62 = vcombine.high %v3601_v5, %v3605_v42  ;;  %v3653_v37 = vld [vmem:[%s16479_s10 + $0x1b20] sm:$0xff] }
 0x795   : > { %11607 = vmatprep.subr.bf16.mxu1 %v14698_v46  ;;  %v14876_v46 = vcombine.high %v3729_v16, %v3733_v17  ;;  %v3777_v8 = vld [vmem:[%s16479_s10 + $0x1f00] sm:$0xff] }
 0x796   : > { %v3781_v23 = vld [vmem:[%s16479_s10 + $0x1f20] sm:$0xff] }
 0x79b   : > { %11444 = vmatpush1.bf16.xpose.msra.mxu0 %v14569_v40  ;;  %v14747_v40 = vcombine.low %v3601_v5, %v3605_v42  ;;  %v3657_v5 = vld [vmem:[%s16479_s10 + $0x1b40] sm:$0xff] }
 0x79c   : > { %11608 = vmatpush1.bf16.xpose.msra.mxu1 %v14697_v55  ;;  %11618 = vmatprep.subr.bf16.mxu0 %v14700_v3  ;;  %v14875_v55 = vcombine.low %v3729_v16, %v3733_v17  ;;  %v14756_v3 = vcombine.high %v3609_v12, %v3613_v7  ;;  %v3661_v42 = vld [vmem:[%s16479_s10 + $0x1b60] sm:$0xff] }
 0x79d   : > { %11782 = vmatprep.subr.bf16.mxu1 %v14828_v18  ;;  %v14884_v18 = vcombine.high %v3737_v63, %v3741_v36  ;;  %v3785_v16 = vld [vmem:[%s16479_s10 + $0x1f40] sm:$0xff] }
 0x79e   : > { %v3789_v17 = vld [vmem:[%s16479_s10 + $0x1f60] sm:$0xff] }
 0x79f   : > { %v3665_v12 = vld [vmem:[%s16479_s10 + $0x1b80] sm:$0xff] }
 0x7a0   : > { %v3669_v7 = vld [vmem:[%s16479_s10 + $0x1ba0] sm:$0xff] }
 0x7a2   : > { %11446 = vmatmul.mubr.bf16.vlgmr.msra.gmra.mrb[8].mxu0 %v19358_v33 }
 0x7a3   : > { %11610 = vmatmul.mubr.bf16.vlgmr.msra.gmra.mrb[8].mxu1 %v19358_v33  ;;  %11619 = vmatpush1.bf16.xpose.msra.mxu0 %v14699_v4  ;;  %v3745_v4 = vld [vmem:[%s16479_s10 + $0x1e00] sm:$0xff] }
 0x7a4   : > { %11650 = vmatprep.mubr.bf16.mxu0 %v20699_v38  ;;  %11783 = vmatpush1.bf16.xpose.msra.mxu1 %v14827_v14  ;;  %v14883_v14 = vcombine.low %v3737_v63, %v3741_v36  ;;  %v3793_v63 = vld [vmem:[%s16479_s10 + $0x1f80] sm:$0xff] }
 0x7a5   : > { %11814 = vmatprep.mubr.bf16.mxu1 %v20699_v38  ;;  %11620 = vmatprep.subr.bf16.mxu0 %v14708_v61  ;;  %v3577_v38 = vld [vmem:[%s16479_s10 + $0x18c0] sm:$0xff]  ;;  %v14764_v61 = vcombine.high %v3617_v32, %v3621_v31 }
 0x7a6   : > { %11784 = vmatprep.subr.bf16.mxu1 %v14836_v9  ;;  %v14724_v20 = vcombine.high %v3577_v38, %v3581_v58  ;;  %v14723_v29 = vcombine.low %v3577_v38, %v3581_v58  ;;  %v14892_v9 = vcombine.high %v3745_v4, %v3749_v30  ;;  %v3633_v38 = vld [vmem:[%s16479_s10 + $0x1a80] sm:$0xff] }
 0x7a7   : > { %v3637_v58 = vld [vmem:[%s16479_s10 + $0x1aa0] sm:$0xff] }
 0x7a8   : > { %v3797_v36 = vld [vmem:[%s16479_s10 + $0x1fa0] sm:$0xff] }
 0x7ab   : > { %11621 = vmatpush1.bf16.xpose.msra.mxu0 %v14707_v0  ;;  %v14763_v0 = vcombine.low %v3617_v32, %v3621_v31  ;;  %v3673_v32 = vld [vmem:[%s16479_s10 + $0x1bc0] sm:$0xff] }
 0x7ac   : > { %11785 = vmatpush1.bf16.xpose.msra.mxu1 %v14835_v43  ;;  %11622 = vmatprep.subr.bf16.mxu0 %v14716_v27  ;;  %v14891_v43 = vcombine.low %v3745_v4, %v3749_v30  ;;  %v14772_v27 = vcombine.high %v3625_v47, %v3629_v41  ;;  %v3677_v31 = vld [vmem:[%s16479_s10 + $0x1be0] sm:$0xff] }
 0x7ad   : > { %11786 = vmatprep.subr.bf16.mxu1 %v14844_v56  ;;  %v14900_v56 = vcombine.high %v3753_v34, %v3757_v28  ;;  %v3801_v4 = vld [vmem:[%s16479_s10 + $0x1fc0] sm:$0xff] }
 0x7ae   : > { %v3805_v30 = vld [vmem:[%s16479_s10 + $0x1fe0] sm:$0xff] }
 0x7b3   : > { %11623 = vmatpush1.bf16.xpose.msra.mxu0 %v14715_v44  ;;  %v14771_v44 = vcombine.low %v3625_v47, %v3629_v41  ;;  %v3554_v47 = vld [vmem:[%s16479_s10 + $0x1808] sm:$0xff] }
 0x7b4   : > { %11787 = vmatpush1.bf16.xpose.msra.mxu1 %v14843_v2  ;;  %11624 = vmatprep.subr.bf16.mxu0 %v14724_v20  ;;  %v14899_v2 = vcombine.low %v3753_v34, %v3757_v28  ;;  %v14780_v20 = vcombine.high %v3633_v38, %v3637_v58  ;;  %v3558_v41 = vld [vmem:[%s16479_s10 + $0x1828] sm:$0xff] }
 0x7b5   : > { %11788 = vmatprep.subr.bf16.mxu1 %v14852_v10  ;;  %v14908_v10 = vcombine.high %v3761_v19, %v3765_v49  ;;  %v3682_v34 = vld [vmem:[%s16479_s10 + $0x1c08] sm:$0xff] }
 0x7b6   : > { %v3686_v28 = vld [vmem:[%s16479_s10 + $0x1c28] sm:$0xff] }
 0x7bb   : > { %11625 = vmatpush1.bf16.xpose.msra.mxu0 %v14723_v29  ;;  %v14779_v29 = vcombine.low %v3633_v38, %v3637_v58  ;;  %v3562_v38 = vld [vmem:[%s16479_s10 + $0x1848] sm:$0xff] }
 0x7bc   : > { %11789 = vmatpush1.bf16.xpose.msra.mxu1 %v14851_v60  ;;  %11626 = vmatprep.subr.bf16.mxu0 %v14732_v51  ;;  %v14907_v60 = vcombine.low %v3761_v19, %v3765_v49  ;;  %v14788_v51 = vcombine.high %v3641_v52, %v3645_v22  ;;  %v3566_v58 = vld [vmem:[%s16479_s10 + $0x1868] sm:$0xff]  ;;  %v14701_v19 = vcombine.low %v3554_v47, %v3558_v41 }
 0x7bd   : > { %11790 = vmatprep.subr.bf16.mxu1 %v14860_v35  ;;  %v14916_v35 = vcombine.high %v3769_v39, %v3773_v53  ;;  %v3690_v49 = vld [vmem:[%s16479_s10 + $0x1c48] sm:$0xff] }
 0x7c3   : > { %11627 = vmatpush1.bf16.xpose.msra.mxu0 %v14731_v54  ;;  %v14787_v54 = vcombine.low %v3641_v52, %v3645_v22  ;;  %v3570_v52 = vld [vmem:[%s16479_s10 + $0x1888] sm:$0xff] }
 0x7c4   : > { %11791 = vmatpush1.bf16.xpose.msra.mxu1 %v14859_v25  ;;  %11628 = vmatprep.subr.bf16.mxu0 %v14740_v11  ;;  %v14915_v25 = vcombine.low %v3769_v39, %v3773_v53  ;;  %v14796_v11 = vcombine.high %v3649_v21, %v3653_v37  ;;  %v3574_v22 = vld [vmem:[%s16479_s10 + $0x18a8] sm:$0xff] }
 0x7c5   : > { %11792 = vmatprep.subr.bf16.mxu1 %v14868_v13  ;;  %v14924_v13 = vcombine.high %v3777_v8, %v3781_v23  ;;  %v3698_v39 = vld [vmem:[%s16479_s10 + $0x1c88] sm:$0xff] }
 0x7c6   : > { %v3702_v53 = vld [vmem:[%s16479_s10 + $0x1ca8] sm:$0xff] }
 0x7cb   : > { %11629 = vmatpush1.bf16.xpose.msra.mxu0 %v14739_v1  ;;  %v14795_v1 = vcombine.low %v3649_v21, %v3653_v37  ;;  %v3706_v21 = vld [vmem:[%s16479_s10 + $0x1cc8] sm:$0xff] }
 0x7cc   : > { %11793 = vmatpush1.bf16.xpose.msra.mxu1 %v14867_v57  ;;  %11630 = vmatprep.subr.bf16.mxu0 %v14748_v62  ;;  %v14923_v57 = vcombine.low %v3777_v8, %v3781_v23  ;;  %v14804_v62 = vcombine.high %v3657_v5, %v3661_v42  ;;  %v3710_v37 = vld [vmem:[%s16479_s10 + $0x1ce8] sm:$0xff]  ;;  %v14717_v8 = vcombine.low %v3570_v52, %v3574_v22 }
 0x7cd   : > { %11794 = vmatprep.subr.bf16.mxu1 %v14876_v46  ;;  %v14932_v46 = vcombine.high %v3785_v16, %v3789_v17  ;;  %v14845_v23 = vcombine.low %v3698_v39, %v3702_v53 }
 0x7d3   : > { %11631 = vmatpush1.bf16.xpose.msra.mxu0 %v14747_v40  ;;  %v14803_v40 = vcombine.low %v3657_v5, %v3661_v42  ;;  %v3714_v5 = vld [vmem:[%s16479_s10 + $0x1d08] sm:$0xff] }
 0x7d4   : > { %11795 = vmatpush1.bf16.xpose.msra.mxu1 %v14875_v55  ;;  %11632 = vmatprep.subr.bf16.mxu0 %v14756_v3  ;;  %v14931_v55 = vcombine.low %v3785_v16, %v3789_v17  ;;  %v14812_v3 = vcombine.high %v3665_v12, %v3669_v7  ;;  %v3718_v42 = vld [vmem:[%s16479_s10 + $0x1d28] sm:$0xff]  ;;  %v14853_v17 = vcombine.low %v3706_v21, %v3710_v37 }
 0x7d5   : > { %11796 = vmatprep.subr.bf16.mxu1 %v14884_v18  ;;  %v14940_v18 = vcombine.high %v3793_v63, %v3797_v36 }
 0x7db   : > { %11633 = vmatpush1.bf16.xpose.msra.mxu0 %v14755_v26  ;;  %v14811_v26 = vcombine.low %v3665_v12, %v3669_v7  ;;  %v3722_v12 = vld [vmem:[%s16479_s10 + $0x1d48] sm:$0xff] }
 0x7dc   : > { %11797 = vmatpush1.bf16.xpose.msra.mxu1 %v14883_v14  ;;  %11634 = vmatprep.subr.bf16.mxu0 %v14764_v61  ;;  %v14939_v14 = vcombine.low %v3793_v63, %v3797_v36  ;;  %v14820_v61 = vcombine.high %v3673_v32, %v3677_v31  ;;  %v3726_v7 = vld [vmem:[%s16479_s10 + $0x1d68] sm:$0xff]  ;;  %v14861_v36 = vcombine.low %v3714_v5, %v3718_v42 }
 0x7dd   : > { %11798 = vmatprep.subr.bf16.mxu1 %v14892_v9  ;;  %v14948_v9 = vcombine.high %v3801_v4, %v3805_v30 }
 0x7e3   : > { %11635 = vmatpush1.bf16.xpose.msra.mxu0 %v14763_v0  ;;  %v14819_v0 = vcombine.low %v3673_v32, %v3677_v31  ;;  %v3730_v32 = vld [vmem:[%s16479_s10 + $0x1d88] sm:$0xff] }
 0x7e4   : > { %11799 = vmatpush1.bf16.xpose.msra.mxu1 %v14891_v43  ;;  %11636 = vmatprep.subr.bf16.mxu0 %v14772_v27  ;;  %v14947_v43 = vcombine.low %v3801_v4, %v3805_v30  ;;  %v14702_v27 = vcombine.high %v3554_v47, %v3558_v41  ;;  %v3734_v31 = vld [vmem:[%s16479_s10 + $0x1da8] sm:$0xff]  ;;  %v14869_v30 = vcombine.low %v3722_v12, %v3726_v7 }
 0x7e5   : > { %11800 = vmatprep.subr.bf16.mxu1 %v14900_v56  ;;  %v14830_v56 = vcombine.high %v3682_v34, %v3686_v28  ;;  %v3738_v47 = vld [vmem:[%s16479_s10 + $0x1dc8] sm:$0xff] }
 0x7e6   : > { %v3742_v41 = vld [vmem:[%s16479_s10 + $0x1de8] sm:$0xff] }
 0x7eb   : > { %11637 = vmatpush1.bf16.xpose.msra.mxu0 %v14771_v44  ;;  %v3694_v44 = vld [vmem:[%s16479_s10 + $0x1c68] sm:$0xff] }
 0x7ec   : > { %11801 = vmatpush1.bf16.xpose.msra.mxu1 %v14899_v2  ;;  %11638 = vmatprep.subr.bf16.mxu0 %v14780_v20  ;;  %v14829_v2 = vcombine.low %v3682_v34, %v3686_v28  ;;  %v14710_v20 = vcombine.high %v3562_v38, %v3566_v58  ;;  %v14877_v28 = vcombine.low %v3730_v32, %v3734_v31 }
 0x7ed   : > { %11802 = vmatprep.subr.bf16.mxu1 %v14908_v10  ;;  %v14838_v10 = vcombine.high %v3690_v49, %v3694_v44 }
 0x7f3   : > { %11639 = vmatpush1.bf16.xpose.msra.mxu0 %v14779_v29  ;;  %v14709_v29 = vcombine.low %v3562_v38, %v3566_v58  ;;  %v3746_v38 = vld [vmem:[%s16479_s10 + $0x1e08] sm:$0xff] }
 0x7f4   : > { %11803 = vmatpush1.bf16.xpose.msra.mxu1 %v14907_v60  ;;  %11640 = vmatprep.subr.bf16.mxu0 %v14788_v51  ;;  %v14837_v60 = vcombine.low %v3690_v49, %v3694_v44  ;;  %v14718_v51 = vcombine.high %v3570_v52, %v3574_v22  ;;  %v3750_v58 = vld [vmem:[%s16479_s10 + $0x1e28] sm:$0xff]  ;;  %v14885_v49 = vcombine.low %v3738_v47, %v3742_v41 }
 0x7f5   : > { %11804 = vmatprep.subr.bf16.mxu1 %v14916_v35  ;;  %v3582_v35 = vld [vmem:[%s16479_s10 + $0x18e8] sm:$0xff] }
 0x7f6   : > { %v3754_v52 = vld [vmem:[%s16479_s10 + $0x1e48] sm:$0xff] }
 0x7f7   : > { %v3758_v22 = vld [vmem:[%s16479_s10 + $0x1e68] sm:$0xff] }
 0x7fb   : > { %11641 = vmatpush1.bf16.xpose.msra.mxu0 %v14787_v54 }
 0x7fc   : > { %11805 = vmatpush1.bf16.xpose.msra.mxu1 %v14915_v25  ;;  %11642 = vmatprep.subr.bf16.mxu0 %v14796_v11  ;;  %v14854_v25 = vcombine.high %v3706_v21, %v3710_v37  ;;  %v3586_v11 = vld [vmem:[%s16479_s10 + $0x1908] sm:$0xff]  ;;  %v14901_v37 = vcombine.low %v3754_v52, %v3758_v22 }
 0x7fd   : > { %11806 = vmatprep.subr.bf16.mxu1 %v14924_v13  ;;  %v3590_v13 = vld [vmem:[%s16479_s10 + $0x1928] sm:$0xff] }
 0x7fe   : > { %v14733_v63 = vcombine.low %v3586_v11, %v3590_v13 }
 0x803   : > { %11643 = vmatpush1.bf16.xpose.msra.mxu0 %v14795_v1  ;;  %v14734_v1 = vcombine.high %v3586_v11, %v3590_v13  ;;  %v3770_v11 = vld [vmem:[%s16479_s10 + $0x1ec8] sm:$0xff] }
 0x804   : > { %11807 = vmatpush1.bf16.xpose.msra.mxu1 %v14923_v57  ;;  %11644 = vmatprep.subr.bf16.mxu0 %v14804_v62  ;;  %v14862_v57 = vcombine.high %v3714_v5, %v3718_v42  ;;  %v3594_v62 = vld [vmem:[%s16479_s10 + $0x1948] sm:$0xff] }
 0x805   : > { %11808 = vmatprep.subr.bf16.mxu1 %v14932_v46  ;;  %v3598_v46 = vld [vmem:[%s16479_s10 + $0x1968] sm:$0xff] }
 0x806   : > { %v14741_v4 = vcombine.low %v3594_v62, %v3598_v46  ;;  %v3774_v13 = vld [vmem:[%s16479_s10 + $0x1ee8] sm:$0xff] }
 0x80b   : > { %11645 = vmatpush1.bf16.xpose.msra.mxu0 %v14803_v40  ;;  %v14742_v40 = vcombine.high %v3594_v62, %v3598_v46  ;;  %v3654_v62 = vld [vmem:[%s16479_s10 + $0x1b28] sm:$0xff] }
 0x80c   : > { %11809 = vmatpush1.bf16.xpose.msra.mxu1 %v14931_v55  ;;  %11646 = vmatprep.subr.bf16.mxu0 %v14812_v3  ;;  %v14870_v55 = vcombine.high %v3722_v12, %v3726_v7  ;;  %v3602_v3 = vld [vmem:[%s16479_s10 + $0x1988] sm:$0xff] }
 0x80d   : > { %11810 = vmatprep.subr.bf16.mxu1 %v14940_v18  ;;  %v3606_v18 = vld [vmem:[%s16479_s10 + $0x19a8] sm:$0xff] }
 0x80e   : > { %v14749_v34 = vcombine.low %v3602_v3, %v3606_v18  ;;  %v3778_v7 = vld [vmem:[%s16479_s10 + $0x1f08] sm:$0xff] }
 0x813   : > { %11647 = vmatpush1.bf16.xpose.msra.mxu0 %v14811_v26  ;;  %v14750_v26 = vcombine.high %v3602_v3, %v3606_v18 }
 0x814   : > { %11811 = vmatpush1.bf16.xpose.msra.mxu1 %v14939_v14  ;;  %11648 = vmatprep.subr.bf16.mxu0 %v14820_v61  ;;  %v14878_v14 = vcombine.high %v3730_v32, %v3734_v31  ;;  %v3610_v61 = vld [vmem:[%s16479_s10 + $0x19c8] sm:$0xff] }
 0x815   : > { %11812 = vmatprep.subr.bf16.mxu1 %v14948_v9  ;;  %v3614_v9 = vld [vmem:[%s16479_s10 + $0x19e8] sm:$0xff] }
 0x81b   : > { %11649 = vmatpush1.bf16.xpose.msra.mxu0 %v14819_v0  ;;  %v14758_v0 = vcombine.high %v3610_v61, %v3614_v9 }
 0x81c   : > { %11813 = vmatpush1.bf16.xpose.msra.mxu1 %v14947_v43  ;;  %11659 = vmatprep.subr.bf16.mxu0 %v14702_v27  ;;  %v14886_v43 = vcombine.high %v3738_v47, %v3742_v41  ;;  %v3618_v27 = vld [vmem:[%s16479_s10 + $0x1a08] sm:$0xff]  ;;  %v2655_v47 = vld [vmem:[#allocation10 + $0x10] sm:$0xff] }
 0x81d   : > { %11823 = vmatprep.subr.bf16.mxu1 %v14830_v56  ;;  %v3622_v56 = vld [vmem:[%s16479_s10 + $0x1a28] sm:$0xff] }
 0x81e   : > { %v14766_v44 = vcombine.high %v3618_v27, %v3622_v56 }
 0x822   : > { %11651 = vmatmul.mubr.bf16.vlgmr.msra.gmra.mrb[12].mxu0 %v20700_v15 }
 0x823   : > { %11815 = vmatmul.mubr.bf16.vlgmr.msra.gmra.mrb[12].mxu1 %v20700_v15  ;;  %11660 = vmatpush1.bf16.xpose.msra.mxu0 %v14701_v19  ;;  %v14846_v15 = vcombine.high %v3698_v39, %v3702_v53  ;;  %v14757_v19 = vcombine.low %v3610_v61, %v3614_v9  ;;  %v14765_v39 = vcombine.low %v3618_v27, %v3622_v56  ;;  %v3790_v27 = vld [vmem:[%s16479_s10 + $0x1f68] sm:$0xff] }
 0x824   : > { %11691 = vmatprep.mubr.bf16.mxu0 %v20701_v6  ;;  %11824 = vmatpush1.bf16.xpose.msra.mxu1 %v14829_v2  ;;  %v14894_v2 = vcombine.high %v3746_v38, %v3750_v58  ;;  %v14893_v53 = vcombine.low %v3746_v38, %v3750_v58 }
 0x825   : > { %11855 = vmatprep.mubr.bf16.mxu1 %v20701_v6  ;;  %11661 = vmatprep.subr.bf16.mxu0 %v14710_v20  ;;  %v3578_v6 = vld [vmem:[%s16479_s10 + $0x18c8] sm:$0xff] }
 0x826   : > { %11825 = vmatprep.subr.bf16.mxu1 %v14838_v10  ;;  %v14726_v54 = vcombine.high %v3578_v6, %v3582_v35  ;;  %v14725_v16 = vcombine.low %v3578_v6, %v3582_v35  ;;  %v3626_v20 = vld [vmem:[%s16479_s10 + $0x1a48] sm:$0xff] }
 0x827   : > { %v3630_v10 = vld [vmem:[%s16479_s10 + $0x1a68] sm:$0xff] }
 0x828   : > { %v3762_v6 = vld [vmem:[%s16479_s10 + $0x1e88] sm:$0xff]  ;;  %v14773_v21 = vcombine.low %v3626_v20, %v3630_v10 }
 0x829   : > { %v3766_v35 = vld [vmem:[%s16479_s10 + $0x1ea8] sm:$0xff] }
 0x82a   : > { %v14909_v42 = vcombine.low %v3762_v6, %v3766_v35 }
 0x82b   : > { %11662 = vmatpush1.bf16.xpose.msra.mxu0 %v14709_v29  ;;  %v14774_v29 = vcombine.high %v3626_v20, %v3630_v10  ;;  %v3798_v20 = vld [vmem:[%s16479_s10 + $0x1fa8] sm:$0xff] }
 0x82c   : > { %11826 = vmatpush1.bf16.xpose.msra.mxu1 %v14837_v60  ;;  %11663 = vmatprep.subr.bf16.mxu0 %v14718_v51  ;;  %v14902_v60 = vcombine.high %v3754_v52, %v3758_v22  ;;  %v3634_v51 = vld [vmem:[%s16479_s10 + $0x1a88] sm:$0xff] }
 0x82d   : > { %11827 = vmatprep.subr.bf16.mxu1 %v14846_v15  ;;  %v3638_v15 = vld [vmem:[%s16479_s10 + $0x1aa8] sm:$0xff] }
 0x82e   : > { %v14781_v5 = vcombine.low %v3634_v51, %v3638_v15 }
 0x833   : > { %11664 = vmatpush1.bf16.xpose.msra.mxu0 %v14717_v8  ;;  %v14782_v8 = vcombine.high %v3634_v51, %v3638_v15  ;;  %v3806_v51 = vld [vmem:[%s16479_s10 + $0x1fe8] sm:$0xff] }
 0x834   : > { %11828 = vmatpush1.bf16.xpose.msra.mxu1 %v14845_v23  ;;  %11665 = vmatprep.subr.bf16.mxu0 %v14726_v54  ;;  %v14910_v23 = vcombine.high %v3762_v6, %v3766_v35  ;;  %v3642_v54 = vld [vmem:[%s16479_s10 + $0x1ac8] sm:$0xff] }
 0x835   : > { %11829 = vmatprep.subr.bf16.mxu1 %v14854_v25  ;;  %v3646_v25 = vld [vmem:[%s16479_s10 + $0x1ae8] sm:$0xff] }
 0x836   : > { %v14789_v3 = vcombine.low %v3642_v54, %v3646_v25 }
 0x83b   : > { %11666 = vmatpush1.bf16.xpose.msra.mxu0 %v14725_v16  ;;  %v14790_v16 = vcombine.high %v3642_v54, %v3646_v25  ;;  %v3687_v54 = vld [vmem:[%s16479_s10 + $0x1c30] sm:$0xff] }
 0x83c   : > { %11830 = vmatpush1.bf16.xpose.msra.mxu1 %v14853_v17  ;;  %11667 = vmatprep.subr.bf16.mxu0 %v14734_v1  ;;  %v14918_v17 = vcombine.high %v3770_v11, %v3774_v13 }
 0x83d   : > { %11831 = vmatprep.subr.bf16.mxu1 %v14862_v57  ;;  %v3650_v57 = vld [vmem:[%s16479_s10 + $0x1b08] sm:$0xff] }
 0x83e   : > { %v14797_v56 = vcombine.low %v3650_v57, %v3654_v62 }
 0x843   : > { %11668 = vmatpush1.bf16.xpose.msra.mxu0 %v14733_v63  ;;  %v3782_v63 = vld [vmem:[%s16479_s10 + $0x1f28] sm:$0xff] }
 0x844   : > { %11832 = vmatpush1.bf16.xpose.msra.mxu1 %v14861_v36  ;;  %11669 = vmatprep.subr.bf16.mxu0 %v14742_v40  ;;  %v14926_v61 = vcombine.high %v3778_v7, %v3782_v63  ;;  %v14925_v38 = vcombine.low %v3778_v7, %v3782_v63  ;;  %v3571_v7 = vld [vmem:[%s16479_s10 + $0x1890] sm:$0xff] }
 0x845   : > { %11833 = vmatprep.subr.bf16.mxu1 %v14870_v55  ;;  %v3575_v63 = vld [vmem:[%s16479_s10 + $0x18b0] sm:$0xff] }
 0x84b   : > { %11670 = vmatpush1.bf16.xpose.msra.mxu0 %v14741_v4  ;;  %v14917_v4 = vcombine.low %v3770_v11, %v3774_v13 }
 0x84c   : > { %11834 = vmatpush1.bf16.xpose.msra.mxu1 %v14869_v30  ;;  %11671 = vmatprep.subr.bf16.mxu0 %v14750_v26  ;;  %v14798_v30 = vcombine.high %v3650_v57, %v3654_v62  ;;  %v3695_v57 = vld [vmem:[%s16479_s10 + $0x1c70] sm:$0xff] }
 0x84d   : > { %11835 = vmatprep.subr.bf16.mxu1 %v14878_v14 }
 0x853   : > { %11672 = vmatpush1.bf16.xpose.msra.mxu0 %v14749_v34  ;;  %v3658_v34 = vld [vmem:[%s16479_s10 + $0x1b48] sm:$0xff] }
 0x854   : > { %11836 = vmatpush1.bf16.xpose.msra.mxu1 %v14877_v28  ;;  %11673 = vmatprep.subr.bf16.mxu0 %v14758_v0  ;;  %v3662_v28 = vld [vmem:[%s16479_s10 + $0x1b68] sm:$0xff] }
 0x855   : > { %11837 = vmatprep.subr.bf16.mxu1 %v14886_v43  ;;  %v3786_v43 = vld [vmem:[%s16479_s10 + $0x1f48] sm:$0xff]  ;;  %v14806_v58 = vcombine.high %v3658_v34, %v3662_v28  ;;  %v14805_v10 = vcombine.low %v3658_v34, %v3662_v28  ;;  %v3719_v34 = vld [vmem:[%s16479_s10 + $0x1d30] sm:$0xff] }
 0x856   : > { %v14933_v52 = vcombine.low %v3786_v43, %v3790_v27 }
 0x85b   : > { %11674 = vmatpush1.bf16.xpose.msra.mxu0 %v14757_v19  ;;  %v14934_v19 = vcombine.high %v3786_v43, %v3790_v27 }
 0x85c   : > { %11838 = vmatpush1.bf16.xpose.msra.mxu1 %v14885_v49  ;;  %11675 = vmatprep.subr.bf16.mxu0 %v14766_v44  ;;  %v3666_v49 = vld [vmem:[%s16479_s10 + $0x1b88] sm:$0xff] }
 0x85d   : > { %11839 = vmatprep.subr.bf16.mxu1 %v14894_v2  ;;  %v3670_v44 = vld [vmem:[%s16479_s10 + $0x1ba8] sm:$0xff] }
 0x85e   : > { %v3794_v2 = vld [vmem:[%s16479_s10 + $0x1f88] sm:$0xff]  ;;  %v14814_v22 = vcombine.high %v3666_v49, %v3670_v44  ;;  %v14813_v15 = vcombine.low %v3666_v49, %v3670_v44 }
 0x85f   : > { %v14941_v6 = vcombine.low %v3794_v2, %v3798_v20 }
 0x863   : > { %11676 = vmatpush1.bf16.xpose.msra.mxu0 %v14765_v39  ;;  %v14942_v39 = vcombine.high %v3794_v2, %v3798_v20 }
 0x864   : > { %11840 = vmatpush1.bf16.xpose.msra.mxu1 %v14893_v53  ;;  %11677 = vmatprep.subr.bf16.mxu0 %v14774_v29  ;;  %v3674_v53 = vld [vmem:[%s16479_s10 + $0x1bc8] sm:$0xff] }
 0x865   : > { %11841 = vmatprep.subr.bf16.mxu1 %v14902_v60  ;;  %v3678_v29 = vld [vmem:[%s16479_s10 + $0x1be8] sm:$0xff] }
 0x866   : > { %v3802_v60 = vld [vmem:[%s16479_s10 + $0x1fc8] sm:$0xff]  ;;  %v14822_v35 = vcombine.high %v3674_v53, %v3678_v29  ;;  %v14821_v25 = vcombine.low %v3674_v53, %v3678_v29 }
 0x867   : > { %v14949_v11 = vcombine.low %v3802_v60, %v3806_v51 }
 0x86b   : > { %11678 = vmatpush1.bf16.xpose.msra.mxu0 %v14773_v21  ;;  %v14950_v21 = vcombine.high %v3802_v60, %v3806_v51 }
 0x86c   : > { %11842 = vmatpush1.bf16.xpose.msra.mxu1 %v14901_v37  ;;  %11679 = vmatprep.subr.bf16.mxu0 %v14782_v8  ;;  %v3555_v37 = vld [vmem:[%s16479_s10 + $0x1810] sm:$0xff] }
 0x86d   : > { %11843 = vmatprep.subr.bf16.mxu1 %v14910_v23  ;;  %v3559_v8 = vld [vmem:[%s16479_s10 + $0x1830] sm:$0xff] }
 0x86e   : > { %v3683_v23 = vld [vmem:[%s16479_s10 + $0x1c10] sm:$0xff]  ;;  %v14704_v13 = vcombine.high %v3555_v37, %v3559_v8 }
 0x86f   : > { %v14831_v62 = vcombine.low %v3683_v23, %v3687_v54 }
 0x873   : > { %11680 = vmatpush1.bf16.xpose.msra.mxu0 %v14781_v5  ;;  %v14832_v5 = vcombine.high %v3683_v23, %v3687_v54 }
 0x874   : > { %11844 = vmatpush1.bf16.xpose.msra.mxu1 %v14909_v42  ;;  %11681 = vmatprep.subr.bf16.mxu0 %v14790_v16  ;;  %v3563_v42 = vld [vmem:[%s16479_s10 + $0x1850] sm:$0xff] }
 0x875   : > { %v11447_v1 = vpop.f32.mrb[8].mxu0  ;;  %11845 = vmatprep.subr.bf16.mxu1 %v14918_v17  ;;  %v3567_v16 = vld [vmem:[%s16479_s10 + $0x1870] sm:$0xff]  ;;  %v14703_v17 = vcombine.low %v3555_v37, %v3559_v8 }
 0x876   : > { %v11611_v46 = vpop.f32.mrb[8].mxu1  ;;  %v11449_v12 = vpop.f32.mrb[9].mxu0 }
 0x877   : > { %v11996_v36 = vcombine.low %v11447_v1, %v11449_v12  ;;  %v11613_v40 = vpop.f32.mrb[9].mxu1  ;;  %v11451_v55 = vpop.f32.mrb[10].mxu0  ;;  %v3691_v1 = vld [vmem:[%s16479_s10 + $0x1c50] sm:$0xff] }
 0x878   : > { %v11997_v18 = vcombine.low %v11611_v46, %v11613_v40  ;;  %v11615_v32 = vpop.f32.mrb[10].mxu1  ;;  %v11452_v31 = vpop.f32.mrb[11].mxu0  ;;  %v14712_v46 = vcombine.high %v3563_v42, %v3567_v16  ;;  %v14840_v12 = vcombine.high %v3691_v1, %v3695_v57  ;;  %v3703_v40 = vld [vmem:[%s16479_s10 + $0x1cb0] sm:$0xff]  ;;  %v14711_v55 = vcombine.low %v3563_v42, %v3567_v16 }
 0x879   : > { %v12004_v26 = vrot.slane %v11996_v36, %v19473_v24  ;;  %v11616_v14 = vpop.f32.mrb[11].mxu1  ;;  %v3699_v36 = vld [vmem:[%s16479_s10 + $0x1c90] sm:$0xff] }
 0x87a   : > { %v12011_v9 = vrot.slane %v11997_v18, %v19473_v24  ;;  %v14720_v18 = vcombine.high %v3571_v7, %v3575_v63  ;;  %v3583_v32 = vld [vmem:[%s16479_s10 + $0x18f0] sm:$0xff] }
 0x87b   : > { %11682 = vmatpush1.bf16.xpose.msra.mxu0 %v14789_v3  ;;  %v14839_v3 = vcombine.low %v3691_v1, %v3695_v57  ;;  %v3707_v31 = vld [vmem:[%s16479_s10 + $0x1cd0] sm:$0xff] }
 0x87c   : > { %v12012_v41 = vcombine.low %v12004_v26, %v12011_v9  ;;  %11846 = vmatpush1.bf16.xpose.msra.mxu1 %v14917_v4  ;;  %11683 = vmatprep.subr.bf16.mxu0 %v14798_v30  ;;  %v3711_v4 = vld [vmem:[%s16479_s10 + $0x1cf0] sm:$0xff]  ;;  %v14719_v30 = vcombine.low %v3571_v7, %v3575_v63  ;;  %v14847_v26 = vcombine.low %v3699_v36, %v3703_v40 }
 0x87d   : > { %11847 = vmatprep.subr.bf16.mxu1 %v14926_v61  ;;  %v14856_v61 = vcombine.high %v3707_v31, %v3711_v4  ;;  %v3587_v9 = vld [vmem:[%s16479_s10 + $0x1910] sm:$0xff] }
 0x87e   : > { %v12036_v0 = vadd.f32 %v12012_v41, %v2655_v47  ;;  %v3591_v47 = vld [vmem:[%s16479_s10 + $0x1930] sm:$0xff] }
 0x87f   : > { %v3715_v41 = vld [vmem:[%s16479_s10 + $0x1d10] sm:$0xff]  ;;  %v14736_v43 = vcombine.high %v3587_v9, %v3591_v47  ;;  %v14735_v49 = vcombine.low %v3587_v9, %v3591_v47 }
 0x880   : > { %12040 = vst [vmem:[#allocation10 + $0x10] sm:$0xff] %v12036_v0  ;;  %v14855_v0 = vcombine.low %v3707_v31, %v3711_v4  ;;  %v14864_v27 = vcombine.high %v3715_v41, %v3719_v34  ;;  %v14863_v44 = vcombine.low %v3715_v41, %v3719_v34  ;;  %v3627_v57 = vld [vmem:[%s16479_s10 + $0x1a50] sm:$0xff] }
 0x883   : > { %11684 = vmatpush1.bf16.xpose.msra.mxu0 %v14797_v56  ;;  %v3595_v56 = vld [vmem:[%s16479_s10 + $0x1950] sm:$0xff] }
 0x884   : > { %11848 = vmatpush1.bf16.xpose.msra.mxu1 %v14925_v38  ;;  %11685 = vmatprep.subr.bf16.mxu0 %v14806_v58  ;;  %v3599_v38 = vld [vmem:[%s16479_s10 + $0x1970] sm:$0xff] }
 0x885   : > { %11849 = vmatprep.subr.bf16.mxu1 %v14934_v19  ;;  %v3723_v58 = vld [vmem:[%s16479_s10 + $0x1d50] sm:$0xff]  ;;  %v14744_v2 = vcombine.high %v3595_v56, %v3599_v38  ;;  %v14743_v53 = vcombine.low %v3595_v56, %v3599_v38 }
 0x886   : > { %v3727_v19 = vld [vmem:[%s16479_s10 + $0x1d70] sm:$0xff] }
 0x887   : > { %v14872_v20 = vcombine.high %v3723_v58, %v3727_v19  ;;  %v14871_v29 = vcombine.low %v3723_v58, %v3727_v19 }
 0x88b   : > { %11686 = vmatpush1.bf16.xpose.msra.mxu0 %v14805_v10  ;;  %v3603_v10 = vld [vmem:[%s16479_s10 + $0x1990] sm:$0xff] }
 0x88c   : > { %11850 = vmatpush1.bf16.xpose.msra.mxu1 %v14933_v52  ;;  %11687 = vmatprep.subr.bf16.mxu0 %v14814_v22  ;;  %v3607_v52 = vld [vmem:[%s16479_s10 + $0x19b0] sm:$0xff] }
 0x88d   : > { %11851 = vmatprep.subr.bf16.mxu1 %v14942_v39  ;;  %v3731_v22 = vld [vmem:[%s16479_s10 + $0x1d90] sm:$0xff]  ;;  %v14752_v60 = vcombine.high %v3603_v10, %v3607_v52  ;;  %v14751_v37 = vcombine.low %v3603_v10, %v3607_v52 }
 0x88e   : > { %v3735_v39 = vld [vmem:[%s16479_s10 + $0x1db0] sm:$0xff] }
 0x88f   : > { %v14880_v51 = vcombine.high %v3731_v22, %v3735_v39  ;;  %v14879_v8 = vcombine.low %v3731_v22, %v3735_v39 }
 0x893   : > { %11688 = vmatpush1.bf16.xpose.msra.mxu0 %v14813_v15  ;;  %v3611_v15 = vld [vmem:[%s16479_s10 + $0x19d0] sm:$0xff] }
 0x894   : > { %11852 = vmatpush1.bf16.xpose.msra.mxu1 %v14941_v6  ;;  %11689 = vmatprep.subr.bf16.mxu0 %v14822_v35  ;;  %v3615_v6 = vld [vmem:[%s16479_s10 + $0x19f0] sm:$0xff] }
 0x895   : > { %11853 = vmatprep.subr.bf16.mxu1 %v14950_v21  ;;  %v3739_v35 = vld [vmem:[%s16479_s10 + $0x1dd0] sm:$0xff]  ;;  %v14760_v23 = vcombine.high %v3611_v15, %v3615_v6  ;;  %v14759_v42 = vcombine.low %v3611_v15, %v3615_v6 }
 0x896   : > { %v3743_v21 = vld [vmem:[%s16479_s10 + $0x1df0] sm:$0xff] }
 0x897   : > { %v14888_v54 = vcombine.high %v3739_v35, %v3743_v21  ;;  %v14887_v16 = vcombine.low %v3739_v35, %v3743_v21 }
 0x89b   : > { %11690 = vmatpush1.bf16.xpose.msra.mxu0 %v14821_v25  ;;  %v3619_v25 = vld [vmem:[%s16479_s10 + $0x1a10] sm:$0xff] }
 0x89c   : > { %11854 = vmatpush1.bf16.xpose.msra.mxu1 %v14949_v11  ;;  %11700 = vmatprep.subr.bf16.mxu0 %v14704_v13  ;;  %v3623_v11 = vld [vmem:[%s16479_s10 + $0x1a30] sm:$0xff] }
 0x89d   : > { %11864 = vmatprep.subr.bf16.mxu1 %v14832_v5  ;;  %v3747_v13 = vld [vmem:[%s16479_s10 + $0x1e10] sm:$0xff]  ;;  %v14767_v7 = vcombine.low %v3619_v25, %v3623_v11 }
 0x89e   : > { %v3751_v5 = vld [vmem:[%s16479_s10 + $0x1e30] sm:$0xff] }
 0x89f   : > { %v14896_v1 = vcombine.high %v3747_v13, %v3751_v5  ;;  %v14895_v63 = vcombine.low %v3747_v13, %v3751_v5 }
 0x8a2   : > { %11692 = vmatmul.mubr.bf16.vlgmr.msra.gmra.mrb[12].mxu0 %v20703_v48 }
 0x8a3   : > { %11856 = vmatmul.mubr.bf16.vlgmr.msra.gmra.mrb[12].mxu1 %v20703_v48  ;;  %11701 = vmatpush1.bf16.xpose.msra.mxu0 %v14703_v17  ;;  %v14848_v48 = vcombine.high %v3699_v36, %v3703_v40  ;;  %v14768_v17 = vcombine.high %v3619_v25, %v3623_v11 }
 0x8a4   : > { %11732 = vmatprep.mubr.bf16.mxu0 %v20704_v45  ;;  %11865 = vmatpush1.bf16.xpose.msra.mxu1 %v14831_v62  ;;  %v3631_v62 = vld [vmem:[%s16479_s10 + $0x1a70] sm:$0xff] }
 0x8a5   : > { %11896 = vmatprep.mubr.bf16.mxu1 %v20704_v45  ;;  %11702 = vmatprep.subr.bf16.mxu0 %v14712_v46  ;;  %v3579_v45 = vld [vmem:[%s16479_s10 + $0x18d0] sm:$0xff]  ;;  %v14776_v36 = vcombine.high %v3627_v57, %v3631_v62 }
 0x8a6   : > { %11866 = vmatprep.subr.bf16.mxu1 %v14840_v12  ;;  %v14728_v14 = vcombine.high %v3579_v45, %v3583_v32  ;;  %v14727_v28 = vcombine.low %v3579_v45, %v3583_v32  ;;  %v3755_v46 = vld [vmem:[%s16479_s10 + $0x1e50] sm:$0xff]  ;;  %v14775_v45 = vcombine.low %v3627_v57, %v3631_v62 }
 0x8a7   : > { %v3759_v12 = vld [vmem:[%s16479_s10 + $0x1e70] sm:$0xff] }
 0x8a8   : > { %v14904_v40 = vcombine.high %v3755_v46, %v3759_v12  ;;  %v14903_v32 = vcombine.low %v3755_v46, %v3759_v12 }
 0x8ab   : > { %11703 = vmatpush1.bf16.xpose.msra.mxu0 %v14711_v55  ;;  %v3635_v55 = vld [vmem:[%s16479_s10 + $0x1a90] sm:$0xff] }
 0x8ac   : > { %11867 = vmatpush1.bf16.xpose.msra.mxu1 %v14839_v3  ;;  %11704 = vmatprep.subr.bf16.mxu0 %v14720_v18  ;;  %v3639_v3 = vld [vmem:[%s16479_s10 + $0x1ab0] sm:$0xff] }
 0x8ad   : > { %11868 = vmatprep.subr.bf16.mxu1 %v14848_v48  ;;  %v3763_v18 = vld [vmem:[%s16479_s10 + $0x1e90] sm:$0xff]  ;;  %v14784_v31 = vcombine.high %v3635_v55, %v3639_v3  ;;  %v14783_v9 = vcombine.low %v3635_v55, %v3639_v3  ;;  %v3696_v55 = vld [vmem:[%s16479_s10 + $0x1c78] sm:$0xff] }
 0x8ae   : > { %v3767_v48 = vld [vmem:[%s16479_s10 + $0x1eb0] sm:$0xff] }
 0x8af   : > { %v14912_v4 = vcombine.high %v3763_v18, %v3767_v48  ;;  %v14911_v47 = vcombine.low %v3763_v18, %v3767_v48 }
 0x8b3   : > { %11705 = vmatpush1.bf16.xpose.msra.mxu0 %v14719_v30  ;;  %v3643_v30 = vld [vmem:[%s16479_s10 + $0x1ad0] sm:$0xff] }
 0x8b4   : > { %11869 = vmatpush1.bf16.xpose.msra.mxu1 %v14847_v26  ;;  %11706 = vmatprep.subr.bf16.mxu0 %v14728_v14  ;;  %v3647_v26 = vld [vmem:[%s16479_s10 + $0x1af0] sm:$0xff] }
 0x8b5   : > { %11870 = vmatprep.subr.bf16.mxu1 %v14856_v61  ;;  %v3771_v14 = vld [vmem:[%s16479_s10 + $0x1ed0] sm:$0xff]  ;;  %v14792_v41 = vcombine.high %v3643_v30, %v3647_v26  ;;  %v14791_v56 = vcombine.low %v3643_v30, %v3647_v26 }
 0x8b6   : > { %v3775_v61 = vld [vmem:[%s16479_s10 + $0x1ef0] sm:$0xff] }
 0x8b7   : > { %v14920_v34 = vcombine.high %v3771_v14, %v3775_v61  ;;  %v14919_v38 = vcombine.low %v3771_v14, %v3775_v61  ;;  %v3584_v61 = vld [vmem:[%s16479_s10 + $0x18f8] sm:$0xff] }
 0x8bb   : > { %11707 = vmatpush1.bf16.xpose.msra.mxu0 %v14727_v28  ;;  %v3651_v28 = vld [vmem:[%s16479_s10 + $0x1b10] sm:$0xff] }
 0x8bc   : > { %11871 = vmatpush1.bf16.xpose.msra.mxu1 %v14855_v0  ;;  %11708 = vmatprep.subr.bf16.mxu0 %v14736_v43  ;;  %v3655_v0 = vld [vmem:[%s16479_s10 + $0x1b30] sm:$0xff] }
 0x8bd   : > { %11872 = vmatprep.subr.bf16.mxu1 %v14864_v27  ;;  %v3779_v43 = vld [vmem:[%s16479_s10 + $0x1f10] sm:$0xff]  ;;  %v14800_v58 = vcombine.high %v3651_v28, %v3655_v0  ;;  %v14799_v10 = vcombine.low %v3651_v28, %v3655_v0 }
 0x8be   : > { %v3783_v27 = vld [vmem:[%s16479_s10 + $0x1f30] sm:$0xff] }
 0x8bf   : > { %v14928_v19 = vcombine.high %v3779_v43, %v3783_v27  ;;  %v14927_v52 = vcombine.low %v3779_v43, %v3783_v27  ;;  %v3588_v43 = vld [vmem:[%s16479_s10 + $0x1918] sm:$0xff] }
 0x8c0   : > { %v3592_v27 = vld [vmem:[%s16479_s10 + $0x1938] sm:$0xff] }
 0x8c3   : > { %11709 = vmatpush1.bf16.xpose.msra.mxu0 %v14735_v49  ;;  %v3659_v49 = vld [vmem:[%s16479_s10 + $0x1b50] sm:$0xff] }
 0x8c4   : > { %11873 = vmatpush1.bf16.xpose.msra.mxu1 %v14863_v44  ;;  %11710 = vmatprep.subr.bf16.mxu0 %v14744_v2  ;;  %v3663_v44 = vld [vmem:[%s16479_s10 + $0x1b70] sm:$0xff] }
 0x8c5   : > { %11874 = vmatprep.subr.bf16.mxu1 %v14872_v20  ;;  %v3787_v2 = vld [vmem:[%s16479_s10 + $0x1f50] sm:$0xff]  ;;  %v14808_v22 = vcombine.high %v3659_v49, %v3663_v44  ;;  %v14807_v15 = vcombine.low %v3659_v49, %v3663_v44  ;;  %v14738_v49 = vcombine.high %v3588_v43, %v3592_v27 }
 0x8c6   : > { %v3791_v20 = vld [vmem:[%s16479_s10 + $0x1f70] sm:$0xff] }
 0x8c7   : > { %v14936_v39 = vcombine.high %v3787_v2, %v3791_v20  ;;  %v14935_v6 = vcombine.low %v3787_v2, %v3791_v20  ;;  %v3596_v2 = vld [vmem:[%s16479_s10 + $0x1958] sm:$0xff] }
 0x8c8   : > { %v3600_v20 = vld [vmem:[%s16479_s10 + $0x1978] sm:$0xff] }
 0x8cb   : > { %11711 = vmatpush1.bf16.xpose.msra.mxu0 %v14743_v53  ;;  %v3667_v53 = vld [vmem:[%s16479_s10 + $0x1b90] sm:$0xff] }
 0x8cc   : > { %11875 = vmatpush1.bf16.xpose.msra.mxu1 %v14871_v29  ;;  %11712 = vmatprep.subr.bf16.mxu0 %v14752_v60  ;;  %v3671_v29 = vld [vmem:[%s16479_s10 + $0x1bb0] sm:$0xff] }
 0x8cd   : > { %11876 = vmatprep.subr.bf16.mxu1 %v14880_v51  ;;  %v3795_v60 = vld [vmem:[%s16479_s10 + $0x1f90] sm:$0xff]  ;;  %v14816_v35 = vcombine.high %v3667_v53, %v3671_v29  ;;  %v14815_v25 = vcombine.low %v3667_v53, %v3671_v29  ;;  %v14746_v53 = vcombine.high %v3596_v2, %v3600_v20 }
 0x8ce   : > { %v3799_v51 = vld [vmem:[%s16479_s10 + $0x1fb0] sm:$0xff] }
 0x8cf   : > { %v14944_v21 = vcombine.high %v3795_v60, %v3799_v51  ;;  %v14943_v11 = vcombine.low %v3795_v60, %v3799_v51  ;;  %v3604_v60 = vld [vmem:[%s16479_s10 + $0x1998] sm:$0xff] }
 0x8d0   : > { %v3608_v51 = vld [vmem:[%s16479_s10 + $0x19b8] sm:$0xff] }
 0x8d3   : > { %11713 = vmatpush1.bf16.xpose.msra.mxu0 %v14751_v37  ;;  %v3675_v37 = vld [vmem:[%s16479_s10 + $0x1bd0] sm:$0xff] }
 0x8d4   : > { %11877 = vmatpush1.bf16.xpose.msra.mxu1 %v14879_v8  ;;  %11714 = vmatprep.subr.bf16.mxu0 %v14760_v23  ;;  %v3679_v8 = vld [vmem:[%s16479_s10 + $0x1bf0] sm:$0xff] }
 0x8d5   : > { %11878 = vmatprep.subr.bf16.mxu1 %v14888_v54  ;;  %v3803_v23 = vld [vmem:[%s16479_s10 + $0x1fd0] sm:$0xff]  ;;  %v14824_v13 = vcombine.high %v3675_v37, %v3679_v8  ;;  %v14823_v57 = vcombine.low %v3675_v37, %v3679_v8  ;;  %v14754_v37 = vcombine.high %v3604_v60, %v3608_v51 }
 0x8d6   : > { %v3807_v54 = vld [vmem:[%s16479_s10 + $0x1ff0] sm:$0xff] }
 0x8d7   : > { %v14952_v5 = vcombine.high %v3803_v23, %v3807_v54  ;;  %v14951_v62 = vcombine.low %v3803_v23, %v3807_v54  ;;  %v3612_v23 = vld [vmem:[%s16479_s10 + $0x19d8] sm:$0xff] }
 0x8d8   : > { %v3616_v54 = vld [vmem:[%s16479_s10 + $0x19f8] sm:$0xff] }
 0x8db   : > { %11715 = vmatpush1.bf16.xpose.msra.mxu0 %v14759_v42  ;;  %v3556_v42 = vld [vmem:[%s16479_s10 + $0x1818] sm:$0xff] }
 0x8dc   : > { %11879 = vmatpush1.bf16.xpose.msra.mxu1 %v14887_v16  ;;  %11716 = vmatprep.subr.bf16.mxu0 %v14768_v17  ;;  %v3560_v16 = vld [vmem:[%s16479_s10 + $0x1838] sm:$0xff] }
 0x8dd   : > { %11880 = vmatprep.subr.bf16.mxu1 %v14896_v1  ;;  %v3684_v17 = vld [vmem:[%s16479_s10 + $0x1c18] sm:$0xff]  ;;  %v14706_v46 = vcombine.high %v3556_v42, %v3560_v16 }
 0x8de   : > { %v3688_v1 = vld [vmem:[%s16479_s10 + $0x1c38] sm:$0xff] }
 0x8df   : > { %v14834_v12 = vcombine.high %v3684_v17, %v3688_v1  ;;  %v14833_v3 = vcombine.low %v3684_v17, %v3688_v1  ;;  %v3620_v17 = vld [vmem:[%s16479_s10 + $0x1a18] sm:$0xff] }
 0x8e0   : > { %v3624_v1 = vld [vmem:[%s16479_s10 + $0x1a38] sm:$0xff] }
 0x8e3   : > { %11717 = vmatpush1.bf16.xpose.msra.mxu0 %v14767_v7  ;;  %v3564_v7 = vld [vmem:[%s16479_s10 + $0x1858] sm:$0xff] }
 0x8e4   : > { %11881 = vmatpush1.bf16.xpose.msra.mxu1 %v14895_v63  ;;  %11718 = vmatprep.subr.bf16.mxu0 %v14776_v36  ;;  %v3568_v63 = vld [vmem:[%s16479_s10 + $0x1878] sm:$0xff]  ;;  %v14705_v36 = vcombine.low %v3556_v42, %v3560_v16  ;;  %v14762_v42 = vcombine.high %v3612_v23, %v3616_v54 }
 0x8e5   : > { %11882 = vmatprep.subr.bf16.mxu1 %v14904_v40  ;;  %v3692_v40 = vld [vmem:[%s16479_s10 + $0x1c58] sm:$0xff]  ;;  %v14714_v18 = vcombine.high %v3564_v7, %v3568_v63  ;;  %v14713_v30 = vcombine.low %v3564_v7, %v3568_v63  ;;  %v14770_v7 = vcombine.high %v3620_v17, %v3624_v1 }
 0x8e6   : > { %v14842_v48 = vcombine.high %v3692_v40, %v3696_v55  ;;  %v14841_v26 = vcombine.low %v3692_v40, %v3696_v55  ;;  %v3632_v40 = vld [vmem:[%s16479_s10 + $0x1a78] sm:$0xff] }
 0x8e7   : > { %v3756_v55 = vld [vmem:[%s16479_s10 + $0x1e58] sm:$0xff] }
 0x8eb   : > { %11719 = vmatpush1.bf16.xpose.msra.mxu0 %v14775_v45  ;;  %v3572_v45 = vld [vmem:[%s16479_s10 + $0x1898] sm:$0xff] }
 0x8ec   : > { %11883 = vmatpush1.bf16.xpose.msra.mxu1 %v14903_v32  ;;  %11720 = vmatprep.subr.bf16.mxu0 %v14784_v31  ;;  %v3576_v32 = vld [vmem:[%s16479_s10 + $0x18b8] sm:$0xff] }
 0x8ed   : > { %11884 = vmatprep.subr.bf16.mxu1 %v14912_v4  ;;  %v3700_v31 = vld [vmem:[%s16479_s10 + $0x1c98] sm:$0xff]  ;;  %v14722_v14 = vcombine.high %v3572_v45, %v3576_v32 }
 0x8ee   : > { %v3704_v4 = vld [vmem:[%s16479_s10 + $0x1cb8] sm:$0xff] }
 0x8f3   : > { %11721 = vmatpush1.bf16.xpose.msra.mxu0 %v14783_v9  ;;  %v3708_v9 = vld [vmem:[%s16479_s10 + $0x1cd8] sm:$0xff] }
 0x8f4   : > { %11885 = vmatpush1.bf16.xpose.msra.mxu1 %v14911_v47  ;;  %11722 = vmatprep.subr.bf16.mxu0 %v14792_v41  ;;  %v3712_v47 = vld [vmem:[%s16479_s10 + $0x1cf8] sm:$0xff]  ;;  %v14721_v41 = vcombine.low %v3572_v45, %v3576_v32 }
 0x8f5   : > { %11886 = vmatprep.subr.bf16.mxu1 %v14920_v34  ;;  %v14849_v34 = vcombine.low %v3700_v31, %v3704_v4  ;;  %v14858_v0 = vcombine.high %v3708_v9, %v3712_v47 }
 0x8fb   : > { %11723 = vmatpush1.bf16.xpose.msra.mxu0 %v14791_v56  ;;  %v3716_v56 = vld [vmem:[%s16479_s10 + $0x1d18] sm:$0xff] }
 0x8fc   : > { %11887 = vmatpush1.bf16.xpose.msra.mxu1 %v14919_v38  ;;  %11724 = vmatprep.subr.bf16.mxu0 %v14800_v58  ;;  %v3720_v38 = vld [vmem:[%s16479_s10 + $0x1d38] sm:$0xff] }
 0x8fd   : > { %11888 = vmatprep.subr.bf16.mxu1 %v14928_v19  ;;  %v14857_v19 = vcombine.low %v3708_v9, %v3712_v47  ;;  %v14866_v44 = vcombine.high %v3716_v56, %v3720_v38  ;;  %v3644_v9 = vld [vmem:[%s16479_s10 + $0x1ad8] sm:$0xff] }
 0x8fe   : > { %v3648_v47 = vld [vmem:[%s16479_s10 + $0x1af8] sm:$0xff] }
 0x903   : > { %11725 = vmatpush1.bf16.xpose.msra.mxu0 %v14799_v10  ;;  %v3724_v10 = vld [vmem:[%s16479_s10 + $0x1d58] sm:$0xff] }
 0x904   : > { %11889 = vmatpush1.bf16.xpose.msra.mxu1 %v14927_v52  ;;  %11726 = vmatprep.subr.bf16.mxu0 %v14808_v22  ;;  %v3728_v52 = vld [vmem:[%s16479_s10 + $0x1d78] sm:$0xff]  ;;  %v14737_v22 = vcombine.low %v3588_v43, %v3592_v27  ;;  %v14794_v43 = vcombine.high %v3644_v9, %v3648_v47 }
 0x905   : > { %11890 = vmatprep.subr.bf16.mxu1 %v14936_v39  ;;  %v14865_v39 = vcombine.low %v3716_v56, %v3720_v38  ;;  %v14874_v29 = vcombine.high %v3724_v10, %v3728_v52  ;;  %v3652_v56 = vld [vmem:[%s16479_s10 + $0x1b18] sm:$0xff] }
 0x906   : > { %v3656_v38 = vld [vmem:[%s16479_s10 + $0x1b38] sm:$0xff] }
 0x90b   : > { %11727 = vmatpush1.bf16.xpose.msra.mxu0 %v14807_v15  ;;  %v3732_v15 = vld [vmem:[%s16479_s10 + $0x1d98] sm:$0xff] }
 0x90c   : > { %11891 = vmatpush1.bf16.xpose.msra.mxu1 %v14935_v6  ;;  %11728 = vmatprep.subr.bf16.mxu0 %v14816_v35  ;;  %v3736_v6 = vld [vmem:[%s16479_s10 + $0x1db8] sm:$0xff]  ;;  %v14745_v35 = vcombine.low %v3596_v2, %v3600_v20  ;;  %v14802_v2 = vcombine.high %v3652_v56, %v3656_v38 }
 0x90d   : > { %11892 = vmatprep.subr.bf16.mxu1 %v14944_v21  ;;  %v14873_v21 = vcombine.low %v3724_v10, %v3728_v52  ;;  %v14882_v8 = vcombine.high %v3732_v15, %v3736_v6  ;;  %v3660_v10 = vld [vmem:[%s16479_s10 + $0x1b58] sm:$0xff] }
 0x90e   : > { %v3664_v52 = vld [vmem:[%s16479_s10 + $0x1b78] sm:$0xff] }
 0x913   : > { %11729 = vmatpush1.bf16.xpose.msra.mxu0 %v14815_v25  ;;  %v3740_v25 = vld [vmem:[%s16479_s10 + $0x1dd8] sm:$0xff] }
 0x914   : > { %11893 = vmatpush1.bf16.xpose.msra.mxu1 %v14943_v11  ;;  %11730 = vmatprep.subr.bf16.mxu0 %v14824_v13  ;;  %v3744_v11 = vld [vmem:[%s16479_s10 + $0x1df8] sm:$0xff]  ;;  %v14753_v13 = vcombine.low %v3604_v60, %v3608_v51  ;;  %v14810_v60 = vcombine.high %v3660_v10, %v3664_v52 }
 0x915   : > { %11894 = vmatprep.subr.bf16.mxu1 %v14952_v5  ;;  %v14881_v5 = vcombine.low %v3732_v15, %v3736_v6  ;;  %v14890_v16 = vcombine.high %v3740_v25, %v3744_v11  ;;  %v3668_v15 = vld [vmem:[%s16479_s10 + $0x1b98] sm:$0xff] }
 0x916   : > { %v3672_v6 = vld [vmem:[%s16479_s10 + $0x1bb8] sm:$0xff] }
 0x91b   : > { %11731 = vmatpush1.bf16.xpose.msra.mxu0 %v14823_v57  ;;  %v3748_v57 = vld [vmem:[%s16479_s10 + $0x1e18] sm:$0xff] }
 0x91c   : > { %11895 = vmatpush1.bf16.xpose.msra.mxu1 %v14951_v62  ;;  %11741 = vmatprep.subr.bf16.mxu0 %v14706_v46  ;;  %v3752_v62 = vld [vmem:[%s16479_s10 + $0x1e38] sm:$0xff]  ;;  %v14761_v46 = vcombine.low %v3612_v23, %v3616_v54  ;;  %v14818_v23 = vcombine.high %v3668_v15, %v3672_v6 }
 0x91d   : > { %11905 = vmatprep.subr.bf16.mxu1 %v14834_v12  ;;  %v14889_v12 = vcombine.low %v3740_v25, %v3744_v11  ;;  %v14898_v63 = vcombine.high %v3748_v57, %v3752_v62  ;;  %v3676_v25 = vld [vmem:[%s16479_s10 + $0x1bd8] sm:$0xff] }
 0x91e   : > { %v3680_v11 = vld [vmem:[%s16479_s10 + $0x1bf8] sm:$0xff] }
 0x922   : > { %11733 = vmatmul.mubr.bf16.vlgmr.msra.gmra.mrb[12].mxu0 %v20705_v50 }
 0x923   : > { %11897 = vmatmul.mubr.bf16.vlgmr.msra.gmra.mrb[12].mxu1 %v20705_v50  ;;  %11742 = vmatpush1.bf16.xpose.msra.mxu0 %v14705_v36  ;;  %v14850_v50 = vcombine.high %v3700_v31, %v3704_v4  ;;  %v3628_v36 = vld [vmem:[%s16479_s10 + $0x1a58] sm:$0xff] }
 0x924   : > { %11773 = vmatprep.mubr.bf16.mxu0 %v19328_v59  ;;  %11906 = vmatpush1.bf16.xpose.msra.mxu1 %v14833_v3  ;;  %v3760_v3 = vld [vmem:[%s16479_s10 + $0x1e78] sm:$0xff]  ;;  %v14778_v45 = vcombine.high %v3628_v36, %v3632_v40 }
 0x925   : > { %11937 = vmatprep.mubr.bf16.mxu1 %v19328_v59  ;;  %11743 = vmatprep.subr.bf16.mxu0 %v14714_v18  ;;  %v3580_v59 = vld [vmem:[%s16479_s10 + $0x18d8] sm:$0xff]  ;;  %v14769_v18 = vcombine.low %v3620_v17, %v3624_v1  ;;  %v14906_v32 = vcombine.high %v3756_v55, %v3760_v3  ;;  %v14826_v17 = vcombine.high %v3676_v25, %v3680_v11 }
 0x926   : > { %11907 = vmatprep.subr.bf16.mxu1 %v14842_v48  ;;  %v14730_v28 = vcombine.high %v3580_v59, %v3584_v61  ;;  %v14729_v58 = vcombine.low %v3580_v59, %v3584_v61  ;;  %v14897_v48 = vcombine.low %v3748_v57, %v3752_v62  ;;  %v3636_v31 = vld [vmem:[%s16479_s10 + $0x1a98] sm:$0xff]  ;;  %v14825_v57 = vcombine.low %v3676_v25, %v3680_v11 }
 0x927   : > { %v3640_v4 = vld [vmem:[%s16479_s10 + $0x1ab8] sm:$0xff] }
 0x928   : > { %v14786_v59 = vcombine.high %v3636_v31, %v3640_v4 }
 0x92b   : > { %11744 = vmatpush1.bf16.xpose.msra.mxu0 %v14713_v30  ;;  %v3764_v30 = vld [vmem:[%s16479_s10 + $0x1e98] sm:$0xff] }
 0x92c   : > { %11908 = vmatpush1.bf16.xpose.msra.mxu1 %v14841_v26  ;;  %11745 = vmatprep.subr.bf16.mxu0 %v14722_v14  ;;  %v3768_v26 = vld [vmem:[%s16479_s10 + $0x1eb8] sm:$0xff]  ;;  %v14777_v14 = vcombine.low %v3628_v36, %v3632_v40 }
 0x92d   : > { %11909 = vmatprep.subr.bf16.mxu1 %v14850_v50  ;;  %v14905_v50 = vcombine.low %v3756_v55, %v3760_v3  ;;  %v14914_v61 = vcombine.high %v3764_v30, %v3768_v26 }
 0x933   : > { %11746 = vmatpush1.bf16.xpose.msra.mxu0 %v14721_v41  ;;  %v3772_v41 = vld [vmem:[%s16479_s10 + $0x1ed8] sm:$0xff] }
 0x934   : > { %11910 = vmatpush1.bf16.xpose.msra.mxu1 %v14849_v34  ;;  %11747 = vmatprep.subr.bf16.mxu0 %v14730_v28  ;;  %v3776_v34 = vld [vmem:[%s16479_s10 + $0x1ef8] sm:$0xff]  ;;  %v14785_v28 = vcombine.low %v3636_v31, %v3640_v4  ;;  %v2656_v31 = vld [vmem:[#allocation10 + $0x18] sm:$0xff] }
 0x935   : > { %11911 = vmatprep.subr.bf16.mxu1 %v14858_v0  ;;  %v14913_v0 = vcombine.low %v3764_v30, %v3768_v26  ;;  %v14922_v27 = vcombine.high %v3772_v41, %v3776_v34 }
 0x93b   : > { %11748 = vmatpush1.bf16.xpose.msra.mxu0 %v14729_v58  ;;  %v3780_v58 = vld [vmem:[%s16479_s10 + $0x1f18] sm:$0xff] }
 0x93c   : > { %11912 = vmatpush1.bf16.xpose.msra.mxu1 %v14857_v19  ;;  %11749 = vmatprep.subr.bf16.mxu0 %v14738_v49  ;;  %v3784_v19 = vld [vmem:[%s16479_s10 + $0x1f38] sm:$0xff]  ;;  %v14793_v49 = vcombine.low %v3644_v9, %v3648_v47 }
 0x93d   : > { %11913 = vmatprep.subr.bf16.mxu1 %v14866_v44  ;;  %v14921_v44 = vcombine.low %v3772_v41, %v3776_v34  ;;  %v14930_v20 = vcombine.high %v3780_v58, %v3784_v19 }
 0x943   : > { %11750 = vmatpush1.bf16.xpose.msra.mxu0 %v14737_v22  ;;  %v3788_v22 = vld [vmem:[%s16479_s10 + $0x1f58] sm:$0xff] }
 0x944   : > { %11914 = vmatpush1.bf16.xpose.msra.mxu1 %v14865_v39  ;;  %11751 = vmatprep.subr.bf16.mxu0 %v14746_v53  ;;  %v3792_v39 = vld [vmem:[%s16479_s10 + $0x1f78] sm:$0xff]  ;;  %v14801_v53 = vcombine.low %v3652_v56, %v3656_v38 }
 0x945   : > { %11915 = vmatprep.subr.bf16.mxu1 %v14874_v29  ;;  %v14929_v29 = vcombine.low %v3780_v58, %v3784_v19  ;;  %v14938_v51 = vcombine.high %v3788_v22, %v3792_v39 }
 0x94b   : > { %11752 = vmatpush1.bf16.xpose.msra.mxu0 %v14745_v35  ;;  %v3796_v35 = vld [vmem:[%s16479_s10 + $0x1f98] sm:$0xff] }
 0x94c   : > { %11916 = vmatpush1.bf16.xpose.msra.mxu1 %v14873_v21  ;;  %11753 = vmatprep.subr.bf16.mxu0 %v14754_v37  ;;  %v3800_v21 = vld [vmem:[%s16479_s10 + $0x1fb8] sm:$0xff]  ;;  %v14809_v37 = vcombine.low %v3660_v10, %v3664_v52 }
 0x94d   : > { %11917 = vmatprep.subr.bf16.mxu1 %v14882_v8  ;;  %v14937_v8 = vcombine.low %v3788_v22, %v3792_v39  ;;  %v14946_v54 = vcombine.high %v3796_v35, %v3800_v21 }
 0x953   : > { %11754 = vmatpush1.bf16.xpose.msra.mxu0 %v14753_v13  ;;  %v3804_v13 = vld [vmem:[%s16479_s10 + $0x1fd8] sm:$0xff] }
 0x954   : > { %11918 = vmatpush1.bf16.xpose.msra.mxu1 %v14881_v5  ;;  %11755 = vmatprep.subr.bf16.mxu0 %v14762_v42  ;;  %v3808_v5 = vld [vmem:[%s16479_s10 + $0x1ff8] sm:$0xff]  ;;  %v14817_v42 = vcombine.low %v3668_v15, %v3672_v6 }
 0x955   : > { %11919 = vmatprep.subr.bf16.mxu1 %v14890_v16  ;;  %v14945_v16 = vcombine.low %v3796_v35, %v3800_v21  ;;  %v14954_v1 = vcombine.high %v3804_v13, %v3808_v5  ;;  %v14953_v62 = vcombine.low %v3804_v13, %v3808_v5 }
 0x95b   : > { %11756 = vmatpush1.bf16.xpose.msra.mxu0 %v14761_v46 }
 0x95c   : > { %11920 = vmatpush1.bf16.xpose.msra.mxu1 %v14889_v12  ;;  %11757 = vmatprep.subr.bf16.mxu0 %v14770_v7 }
 0x95d   : > { %11921 = vmatprep.subr.bf16.mxu1 %v14898_v63 }
 0x963   : > { %11758 = vmatpush1.bf16.xpose.msra.mxu0 %v14769_v18 }
 0x964   : > { %11922 = vmatpush1.bf16.xpose.msra.mxu1 %v14897_v48  ;;  %11759 = vmatprep.subr.bf16.mxu0 %v14778_v45 }
 0x965   : > { %11923 = vmatprep.subr.bf16.mxu1 %v14906_v32 }
 0x96b   : > { %11760 = vmatpush1.bf16.xpose.msra.mxu0 %v14777_v14 }
 0x96c   : > { %11924 = vmatpush1.bf16.xpose.msra.mxu1 %v14905_v50  ;;  %11761 = vmatprep.subr.bf16.mxu0 %v14786_v59  ;;  %v12050_v59 = vld [vmem:[#allocation7] sm:$0xff] (!%p14955_p3) }
 0x96d   : > { %11925 = vmatprep.subr.bf16.mxu1 %v14914_v61  ;;  %v12051_v61 = vld [vmem:[#allocation7 + $0x8] sm:$0xff] (!%p14955_p3) }
 0x973   : > { %11762 = vmatpush1.bf16.xpose.msra.mxu0 %v14785_v28 }
 0x974   : > { %11926 = vmatpush1.bf16.xpose.msra.mxu1 %v14913_v0  ;;  %11763 = vmatprep.subr.bf16.mxu0 %v14794_v43 }
 0x975   : > { %11927 = vmatprep.subr.bf16.mxu1 %v14922_v27 }
 0x97b   : > { %11764 = vmatpush1.bf16.xpose.msra.mxu0 %v14793_v49 }
 0x97c   : > { %11928 = vmatpush1.bf16.xpose.msra.mxu1 %v14921_v44  ;;  %11765 = vmatprep.subr.bf16.mxu0 %v14802_v2 }
 0x97d   : > { %11929 = vmatprep.subr.bf16.mxu1 %v14930_v20 }
 0x983   : > { %11766 = vmatpush1.bf16.xpose.msra.mxu0 %v14801_v53 }
 0x984   : > { %11930 = vmatpush1.bf16.xpose.msra.mxu1 %v14929_v29  ;;  %11767 = vmatprep.subr.bf16.mxu0 %v14810_v60 }
 0x985   : > { %11931 = vmatprep.subr.bf16.mxu1 %v14938_v51  ;;  %v12046_v51 = vld [vmem:[#allocation10] sm:$0xff] (!%p14955_p3) }
 0x98b   : > { %11768 = vmatpush1.bf16.xpose.msra.mxu0 %v14809_v37  ;;  %v12047_v37 = vld [vmem:[#allocation10 + $0x8] sm:$0xff] (!%p14955_p3) }
 0x98c   : > { %11932 = vmatpush1.bf16.xpose.msra.mxu1 %v14937_v8  ;;  %11769 = vmatprep.subr.bf16.mxu0 %v14818_v23  ;;  %v12048_v8 = vld [vmem:[#allocation10 + $0x10] sm:$0xff] (!%p14955_p3) }
 0x98d   : > { %11933 = vmatprep.subr.bf16.mxu1 %v14946_v54 }
 0x993   : > { %11770 = vmatpush1.bf16.xpose.msra.mxu0 %v14817_v42 }
 0x994   : > { %11934 = vmatpush1.bf16.xpose.msra.mxu1 %v14945_v16  ;;  %11771 = vmatprep.subr.bf16.mxu0 %v14826_v17 }
 0x995   : > { %11935 = vmatprep.subr.bf16.mxu1 %v14954_v1 }
 0x99b   : > { %11772 = vmatpush1.bf16.xpose.msra.mxu0 %v14825_v57 }
 0x99c   : > { %11936 = vmatpush1.bf16.xpose.msra.mxu1 %v14953_v62 }
 0x9a2   : > { %11774 = vmatmul.mubr.bf16.vlgmr.msra.gmra.mrb[12].mxu0 %v19358_v33 }
 0x9a3   : > { %11938 = vmatmul.mubr.bf16.vlgmr.msra.gmra.mrb[12].mxu1 %v19358_v33  ;;  %v20706_v33 = vld [vmem:[#allocation17_spill] sm:$0xff] (!%p14955_p3) }
 0x9a4   : > { %v12056_v26 = vsub.s32 (!%p14955_p3), 0, %v20706_v33  ;;  %v12060_v14 = vsub.s32 (!%p14955_p3), 1, %v20706_v33  ;;  %v12064_v50 = vsub.s32 (!%p14955_p3), 2, %v20706_v33  ;;  %v12068_v9 = vsub.s32 (!%p14955_p3), 3, %v20706_v33 }
 0x9a5   : > { %v12072_v47 = vsub.s32 (!%p14955_p3), 4, %v20706_v33  ;;  %v12076_v41 = vsub.s32 (!%p14955_p3), 5, %v20706_v33  ;;  %v12080_v43 = vsub.s32 (!%p14955_p3), 6, %v20706_v33  ;;  %v12084_v58 = vsub.s32 (!%p14955_p3), 7, %v20706_v33 }
 0x9a6   : > { %v12057_v34 = vrot.slane (!%p14955_p3), %v12050_v59, %v12056_v26  ;;  %v12061_v28 = vrot.slane (!%p14955_p3), %v12050_v59, %v12060_v14  ;;  %v12065_v0 = vrot.slane (!%p14955_p3), %v12050_v59, %v12064_v50  ;;  %v12069_v27 = vrot.slane (!%p14955_p3), %v12050_v59, %v12068_v9 }
 0x9a7   : > { %v12073_v56 = vrot.slane (!%p14955_p3), %v12050_v59, %v12072_v47  ;;  %v12077_v38 = vrot.slane (!%p14955_p3), %v12050_v59, %v12076_v41  ;;  %v12081_v19 = vrot.slane (!%p14955_p3), %v12050_v59, %v12080_v43  ;;  %v12089_v49 = vrot.slane (!%p14955_p3), %v12051_v61, %v12056_v26 }
 0x9a8   : > { %v12093_v44 = vrot.slane (!%p14955_p3), %v12051_v61, %v12060_v14  ;;  %v12097_v2 = vrot.slane (!%p14955_p3), %v12051_v61, %v12064_v50  ;;  %v12085_v20 = vrot.slane (!%p14955_p3), %v12050_v59, %v12084_v58  ;;  %v12101_v10 = vrot.slane (!%p14955_p3), %v12051_v61, %v12068_v9 }
 0x9a9   : > { %v12105_v52 = vrot.slane (!%p14955_p3), %v12051_v61, %v12072_v47  ;;  %v12109_v22 = vrot.slane (!%p14955_p3), %v12051_v61, %v12076_v41  ;;  %v12113_v39 = vrot.slane (!%p14955_p3), %v12051_v61, %v12080_v43  ;;  %v12117_v53 = vrot.slane (!%p14955_p3), %v12051_v61, %v12084_v58 }
 0x9aa   : > { %v12118_v29 = vcombine.low (!%p14955_p3), %v12057_v34, %v12061_v28  ;;  %v12119_v60 = vcombine.low (!%p14955_p3), %v12065_v0, %v12069_v27  ;;  %v12135_v15 = vcombine.low (!%p14955_p3), %v12073_v56, %v12077_v38  ;;  %v12136_v6 = vcombine.low (!%p14955_p3), %v12081_v19, %v12085_v20 }
 0x9ab   : > { %v12152_v35 = vcombine.low (!%p14955_p3), %v12089_v49, %v12093_v44  ;;  %v12153_v21 = vcombine.low (!%p14955_p3), %v12097_v2, %v12101_v10  ;;  %v12169_v25 = vcombine.low (!%p14955_p3), %v12105_v52, %v12109_v22  ;;  %v12170_v11 = vcombine.low (!%p14955_p3), %v12113_v39, %v12117_v53 }
 0x9ac   : > { %v12126_v23 = vrot.slane (!%p14955_p3), %v12118_v29, %v19473_v24  ;;  %v12133_v54 = vrot.slane (!%p14955_p3), %v12119_v60, %v19473_v24  ;;  %v12143_v13 = vrot.slane (!%p14955_p3), %v12135_v15, %v19473_v24  ;;  %v12150_v5 = vrot.slane (!%p14955_p3), %v12136_v6, %v19473_v24 }
 0x9ad   : > { %v12160_v42 = vrot.slane (!%p14955_p3), %v12152_v35, %v19473_v24  ;;  %v12167_v16 = vrot.slane (!%p14955_p3), %v12153_v21, %v19473_v24  ;;  %v12177_v57 = vrot.slane (!%p14955_p3), %v12169_v25, %v19473_v24  ;;  %v12184_v62 = vrot.slane (!%p14955_p3), %v12170_v11, %v19473_v24 }
 0x9ae   : > { %v12134_v1 = vcombine.low (!%p14955_p3), %v12126_v23, %v12133_v54 }
 0xa75   : > { %v11775_v46 = vpop.f32.mrb[12].mxu0 }
 0xa76   : > { %v11939_v12 = vpop.f32.mrb[12].mxu1  ;;  %v11777_v7 = vpop.f32.mrb[13].mxu0 }
 0xa77   : > { %v12013_v63 = vcombine.low %v11775_v46, %v11777_v7  ;;  %v11941_v36 = vpop.f32.mrb[13].mxu1  ;;  %v11779_v40 = vpop.f32.mrb[14].mxu0  ;;  %v12151_v46 = vcombine.low (!%p14955_p3), %v12143_v13, %v12150_v5  ;;  %v12185_v7 = vcombine.low (!%p14955_p3), %v12177_v57, %v12184_v62 }
 0xa78   : > { %v12014_v55 = vcombine.low %v11939_v12, %v11941_v36  ;;  %v11943_v3 = vpop.f32.mrb[14].mxu1  ;;  %v11780_v18 = vpop.f32.mrb[15].mxu0  ;;  %v12168_v12 = vcombine.low (!%p14955_p3), %v12160_v42, %v12167_v16 }
 0xa79   : > { %v12021_v48 = vrot.slane %v12013_v63, %v19473_v24  ;;  %v11944_v45 = vpop.f32.mrb[15].mxu1  ;;  %v20198_v63 = vadd.f32 (!%p14955_p3), %v12134_v1, %v12046_v51  ;;  %v20200_v36 = vadd.f32 (!%p14955_p3), %v12151_v46, %v12047_v37  ;;  %v15441_v46 = vld [vmem:[#allocation9 + $0x40] sm:$0xff] (!%p14955_p3)  }
 0xa7a   : > { %v12028_v32 = vrot.slane %v12014_v55, %v19473_v24  ;;  %12045 = sbr.rel (%p14955_p3) target bundleno = 3220 (0xc94), region = 98  ;;  %v20202_v40 = vadd.f32 (!%p14955_p3), %v12168_v12, %v12048_v8  ;;  %v15442_v12 = vld [vmem:[#allocation9] sm:$0xff] (!%p14955_p3)   ;;  %15092 = vmatprep.subr.bf16.mxu0 (!%p14955_p3), %v15441_v46 }
 0xa7b   : > { %v12194_v3 = vmul.f32 (!%p14955_p3), %v20198_v63, %v20198_v63  ;;  %v12195_v18 = vmul.f32 (!%p14955_p3), %v20200_v36, %v20200_v36  ;;  %15093 = vmatpush3.bf16.msra.mxu0 (!%p14955_p3), %v15442_v12 }
 0xa7c   : > { %v12029_v4 = vcombine.low %v12021_v48, %v12028_v32  ;;  %v12196_v48 = vmul.f32 (!%p14955_p3), %v20202_v40, %v20202_v40 }
 0xa7d   : > { %v12202_v32 = vcombine.high (!%p14955_p3), %v12194_v3, %v12194_v3 }
 0xa7e   : > { %v12037_v30 = vadd.f32 %v12029_v4, %v2656_v31  ;;  %v12209_v31 = vrot.slane (!%p14955_p3), %v12194_v3, %v19473_v24  ;;  %v12219_v4 = vcombine.high (!%p14955_p3), %v12195_v18, %v12195_v18  ;;  %v12236_v26 = vcombine.high (!%p14955_p3), %v12196_v48, %v12196_v48  ;;  %v15444_v3 = vld [vmem:[#allocation9 + $0x80] sm:$0xff] (!%p14955_p3)  }
 0xa7f   : > { %v12243_v14 = vrot.slane (!%p14955_p3), %v12196_v48, %v19473_v24  ;;  %v12216_v50 = vrot.slane (!%p14955_p3), %v12202_v32, %v19473_v24  ;;  %v15446_v48 = vld [vmem:[#allocation9 + $0x8] sm:$0xff] (!%p14955_p3)  }
 0xa80   : > { %12041 = vst [vmem:[#allocation10 + $0x18] sm:$0xff] %v12037_v30  ;;  %v12226_v30 = vrot.slane (!%p14955_p3), %v12195_v18, %v19473_v24  ;;  %v12217_v59 = vcombine.high (!%p14955_p3), %v12209_v31, %v12209_v31  ;;  %v12233_v47 = vrot.slane (!%p14955_p3), %v12219_v4, %v19473_v24  ;;  %v12250_v34 = vrot.slane (!%p14955_p3), %v12236_v26, %v19473_v24  ;;  %v15445_v18 = vld [vmem:[#allocation9 + $0x48] sm:$0xff] (!%p14955_p3)   ;;  %v15450_v4 = vld [vmem:[#allocation9 + $0x10] sm:$0xff] (!%p14955_p3)  }
 0xa81   : > { %v12251_v28 = vcombine.high %v12243_v14, %v12243_v14  ;;  %v12218_v0 = vcombine.high %v12216_v50, %v12216_v50  ;;  %v12287_v56 = vsel %vm12286_vm8, %v12209_v31, 0.0  ;;  %v12290_v49 = vsel %vm12286_vm8, %v12216_v50, 0.0  ;;  %15094 = vmatprep.subr.bf16.mxu0 %v15445_v18  ;;  %v15448_v32 = vld [vmem:[#allocation9 + $0x88] sm:$0xff]   ;;  %v15449_v31 = vld [vmem:[#allocation9 + $0x50] sm:$0xff]   ;;  %v15454_v50 = vld [vmem:[#allocation9 + $0x18] sm:$0xff]  }
 0xa82   : > { %v12234_v41 = vcombine.high %v12226_v30, %v12226_v30  ;;  %v12235_v38 = vcombine.high %v12233_v47, %v12233_v47  ;;  %v12252_v58 = vcombine.high %v12250_v34, %v12250_v34  ;;  %v12288_v19 = vsel %vm12286_vm8, %v12217_v59, 0.0  ;;  %15095 = vmatpush3.bf16.msra.mxu0 %v15446_v48  ;;  %v15452_v26 = vld [vmem:[#allocation9 + $0x90] sm:$0xff]   ;;  %v15455_v59 = vld [vmem:[#allocation9 + $0xd8] sm:$0xff]  }
 0xa83   : > { %v12289_v2 = vadd.f32 %v12288_v19, %v12287_v56  ;;  %v12292_v20 = vsel %vm12286_vm8, %v12218_v0, 0.0  ;;  %v12294_v10 = vsel %vm12286_vm8, %v12226_v30, 0.0  ;;  %v12298_v22 = vsel %vm12286_vm8, %v12233_v47, 0.0  ;;  %15096 = vmatprep.subr.bf16.mxu0 %v15449_v31  ;;  %v15451_v30 = vld [vmem:[#allocation9 + $0xd0] sm:$0xff]   ;;  %v15458_v47 = vld [vmem:[#allocation9 + $0x20] sm:$0xff]   ;;  %v15463_v0 = vld [vmem:[#allocation9 + $0xe8] sm:$0xff]  }
 0xa84   : > { %v12296_v52 = vsel %vm12286_vm8, %v12234_v41, 0.0  ;;  %v12300_v39 = vsel %vm12286_vm8, %v12235_v38, 0.0  ;;  %v12302_v53 = vsel %vm12286_vm8, %v12243_v14, 0.0  ;;  %v12304_v60 = vsel %vm12286_vm8, %v12251_v28, 0.0  ;;  %v15453_v14 = vld [vmem:[#allocation9 + $0x58] sm:$0xff]   ;;  %v15459_v41 = vld [vmem:[#allocation9 + $0xe0] sm:$0xff]  }
 0xa85   : > { %v12291_v29 = vadd.f32 %v12290_v49, %v12289_v2  ;;  %v12306_v51 = vsel %vm12286_vm8, %v12250_v34, 0.0  ;;  %v12308_v15 = vsel %vm12286_vm8, %v12252_v58, 0.0  ;;  %v15461_v34 = vld [vmem:[#allocation9 + $0x68] sm:$0xff]   ;;  %v15460_v28 = vld [vmem:[#allocation9 + $0xa0] sm:$0xff]   ;;  %v15465_v56 = vld [vmem:[#allocation9 + $0x70] sm:$0xff]  }
 0xa86   : > { %15097 = vmatpush3.bf16.msra.mxu0 %v15450_v4  ;;  %v15467_v38 = vld [vmem:[#allocation9 + $0xf0] sm:$0xff]   ;;  %v15469_v19 = vld [vmem:[#allocation9 + $0x78] sm:$0xff]  }
 0xa87   : > { %v12049_v17 = vld [vmem:[#allocation10 + $0x18] sm:$0xff]  ;;  %v12293_v8 = vadd.f32 %v12292_v20, %v12291_v29  ;;  %15098 = vmatprep.subr.bf16.mxu0 %v15453_v14  ;;  %v15466_v58 = vld [vmem:[#allocation9 + $0x30] sm:$0xff]  }
 0xa88   : > { %v20204_v55 = vadd.f32 %v12185_v7, %v12049_v17  ;;  %v15443_v7 = vld [vmem:[#allocation9 + $0xc0] sm:$0xff]   ;;  %v15468_v49 = vld [vmem:[#allocation9 + $0xb0] sm:$0xff]   ;;  %v15470_v2 = vld [vmem:[#allocation9 + $0x38] sm:$0xff]  }
 0xa89   : > { %v12295_v23 = vadd.f32 %v12294_v10, %v12293_v8  ;;  %15114 = vmatprep.subr.bf16.mxu1 %v15443_v7  ;;  %v15472_v20 = vld [vmem:[#allocation9 + $0xb8] sm:$0xff]   ;;  %v15473_v10 = vld [vmem:[#allocation9 + $0x140] sm:$0xff]   ;;  %v15481_v4 = vld [vmem:[#allocation9 + $0x150] sm:$0xff]  }
 0xa8a   : > { %v12197_v45 = vmul.f32 %v20204_v55, %v20204_v55  ;;  %15115 = vmatpush3.bf16.msra.mxu1 %v15444_v3  ;;  %15099 = vmatpush3.bf16.msra.mxu0 %v15454_v50  ;;  %v15476_v7 = vld [vmem:[#allocation9 + $0x180] sm:$0xff]   ;;  %v15477_v3 = vld [vmem:[#allocation9 + $0x148] sm:$0xff]   ;;  %v15482_v14 = vld [vmem:[#allocation9 + $0x110] sm:$0xff]  }
 0xa8b   : > { %v12297_v54 = vadd.f32 %v12296_v52, %v12295_v23  ;;  %v15475_v52 = vld [vmem:[#allocation9 + $0x1c0] sm:$0xff]   ;;  %v15485_v50 = vld [vmem:[#allocation9 + $0x158] sm:$0xff]  }
 0xa8c   : > { %v12253_v61 = vcombine.high %v12197_v45, %v12197_v45  ;;  %v12260_v9 = vrot.slane %v12197_v45, %v19473_v24  ;;  %v15447_v45 = vld [vmem:[#allocation9 + $0xc8] sm:$0xff]  }
 0xa8d   : > { %v12299_v25 = vadd.f32 %v12298_v22, %v12297_v54  ;;  %15116 = vmatprep.subr.bf16.mxu1 %v15447_v45  ;;  %v15479_v45 = vld [vmem:[#allocation9 + $0x1c8] sm:$0xff]  }
 0xa8e   : > { %v12267_v43 = vrot.slane %v12253_v61, %v19473_v24  ;;  %v12268_v27 = vcombine.high %v12260_v9, %v12260_v9  ;;  %v12310_v6 = vsel %vm12286_vm8, %v12260_v9, 0.0  ;;  %15117 = vmatpush3.bf16.msra.mxu1 %v15448_v32  ;;  %v15456_v61 = vld [vmem:[#allocation9 + $0x98] sm:$0xff]   ;;  %v15457_v9 = vld [vmem:[#allocation9 + $0x60] sm:$0xff]   ;;  %v15478_v32 = vld [vmem:[#allocation9 + $0x108] sm:$0xff]  }
 0xa8f   : > { %v12301_v11 = vadd.f32 %v12300_v39, %v12299_v25  ;;  %15118 = vmatprep.subr.bf16.mxu1 %v15451_v30  ;;  %15100 = vmatprep.subr.bf16.mxu0 %v15457_v9  ;;  %v15767_v39 = vmov 269488144   ;;  %v15480_v30 = vld [vmem:[#allocation9 + $0x188] sm:$0xff]   ;;  %v15486_v9 = vld [vmem:[#allocation9 + $0x118] sm:$0xff]  }
 0xa90   : > { %v12269_v44 = vcombine.high %v12267_v43, %v12267_v43  ;;  %v12312_v35 = vsel %vm12286_vm8, %v12268_v27, 0.0  ;;  %v12314_v21 = vsel %vm12286_vm8, %v12267_v43, 0.0  ;;  %15101 = vmatpush3.bf16.msra.mxu0 %v15458_v47  ;;  %v15462_v43 = vld [vmem:[#allocation9 + $0x28] sm:$0xff]   ;;  %v15489_v47 = vld [vmem:[#allocation9 + $0x160] sm:$0xff]  }
 0xa91   : > { %v12303_v13 = vadd.f32 %v12302_v53, %v12301_v11  ;;  %v15464_v27 = vld [vmem:[#allocation9 + $0xa8] sm:$0xff]   ;;  %15102 = vmatprep.subr.bf16.mxu0 %v15461_v34  ;;  %v12330_v53 = vunpack.c.l.s4 %v15767_v39  ;;  %v15491_v34 = vld [vmem:[#allocation9 + $0x1e0] sm:$0xff]  }
 0xa92   : > { %v12316_v37 = vsel %vm12286_vm8, %v12269_v44, 0.0  ;;  %15119 = vmatpush3.bf16.msra.mxu1 %v15452_v26  ;;  %v15471_v44 = vld [vmem:[#allocation9 + $0xf8] sm:$0xff]   ;;  %v15483_v26 = vld [vmem:[#allocation9 + $0x1d0] sm:$0xff]  }
 0xa93   : > { %v12305_v5 = vadd.f32 %v12304_v60, %v12303_v13  ;;  %15120 = vmatprep.subr.bf16.mxu1 %v15455_v59  ;;  %v12331_v29 = vunpack.c.0.s8 %v12330_v53  ;;  %v15484_v59 = vld [vmem:[#allocation9 + $0x190] sm:$0xff]   ;;  %v15505_v53 = vld [vmem:[#allocation9 + $0x240] sm:$0xff]  }
 0xa94   : > { %15103 = vmatpush3.bf16.msra.mxu0 %v15462_v43  ;;  %v15492_v43 = vld [vmem:[#allocation9 + $0x1a0] sm:$0xff]  }
 0xa95   : > { %v12307_v42 = vadd.f32 %v12306_v51, %v12305_v5  ;;  %15104 = vmatprep.subr.bf16.mxu0 %v15465_v56  ;;  %v15494_v56 = vld [vmem:[#allocation9 + $0x128] sm:$0xff]  }
 0xa96   : > { %15121 = vmatpush3.bf16.msra.mxu1 %v15456_v61  ;;  %v15487_v61 = vld [vmem:[#allocation9 + $0x1d8] sm:$0xff]  }
 0xa97   : > { %v12309_v16 = vadd.f32 %v12308_v15, %v12307_v42  ;;  %15122 = vmatprep.subr.bf16.mxu1 %v15459_v41  ;;  %v15488_v41 = vld [vmem:[#allocation9 + $0x198] sm:$0xff]  }
 0xa98   : > { %15105 = vmatpush3.bf16.msra.mxu0 %v15466_v58  ;;  %v15496_v58 = vld [vmem:[#allocation9 + $0x1a8] sm:$0xff]  }
 0xa99   : > { %v12311_v17 = vadd.f32 %v12310_v6, %v12309_v16  ;;  %15106 = vmatprep.subr.bf16.mxu0 %v15469_v19  ;;  %v15499_v19 = vld [vmem:[#allocation9 + $0x1f0] sm:$0xff]  }
 0xa9a   : > { %15123 = vmatpush3.bf16.msra.mxu1 %v15460_v28  ;;  %v15490_v28 = vld [vmem:[#allocation9 + $0x120] sm:$0xff]  }
 0xa9b   : > { %v12313_v1 = vadd.f32 %v12312_v35, %v12311_v17  ;;  %15124 = vmatprep.subr.bf16.mxu1 %v15463_v0  ;;  %v12334_v35 = vsub.s32 %v12331_v29, %v20706_v33  ;;  %v15493_v0 = vld [vmem:[#allocation9 + $0x168] sm:$0xff]   ;;  %v15504_v29 = vld [vmem:[#allocation9 + $0x1b8] sm:$0xff]  }
 0xa9c   : > { %15107 = vmatpush3.bf16.msra.mxu0 %v15470_v2  ;;  %v15501_v2 = vld [vmem:[#allocation9 + $0x178] sm:$0xff]  }
 0xa9d   : > { %v12315_v57 = vadd.f32 %v12314_v21, %v12313_v1  ;;  %15136 = vmatprep.subr.bf16.mxu0 %v15473_v10  ;;  %v15474_v1 = vld [vmem:[#allocation9 + $0x100] sm:$0xff]  }
 0xa9e   : > { %15125 = vmatpush3.bf16.msra.mxu1 %v15464_v27  ;;  %v15495_v27 = vld [vmem:[#allocation9 + $0x1e8] sm:$0xff]  }
 0xa9f   : > { %v12317_v62 = vadd.f32 %v12316_v37, %v12315_v57  ;;  %15126 = vmatprep.subr.bf16.mxu1 %v15467_v38  ;;  %v15497_v38 = vld [vmem:[#allocation9 + $0x170] sm:$0xff]  }
 0xaa1   : > { %12318 = vadd.xlane.f32.xlu0 %v12317_v62 }
 0xaa2   : > { %15127 = vmatpush3.bf16.msra.mxu1 %v15468_v49  ;;  %v15498_v49 = vld [vmem:[#allocation9 + $0x130] sm:$0xff]  }
 0xaa3   : > { %15128 = vmatprep.subr.bf16.mxu1 %v15471_v44 }
 0xaa6   : > { %15129 = vmatpush3.bf16.msra.mxu1 %v15472_v20  ;;  %v15500_v20 = vld [vmem:[#allocation9 + $0x1b0] sm:$0xff]  }
 0xaa7   : > { %15158 = vmatprep.subr.bf16.mxu1 %v15475_v52  ;;  %v15503_v52 = vld [vmem:[#allocation9 + $0x1f8] sm:$0xff]  }
 0xb2e   : > { %v12319_v22 = vpop.xlane.xlu0 %12318 }
 0xb2f   : > { %15569 = vrsqrt.f32 %v12319_v22  ;;  %vm12322_vm9 = vcmp.eq.f32.partialorder %v12319_v22, inf  ;;  %v12325_v15 = vand.u32 2147483648, %v12319_v22  ;;  %vm12324_vm10 = vcmp.eq.f32.partialorder %v12319_v22, 0.0 }
 0xb39   : > { %v15570_v60 = vpop.eup %15569 }
 0xb3a   : > { %v12321_v51 = vmul.f32 %v15570_v60, %v12319_v22 }
 0xb3c   : > { %v12323_v6 = vsel %vm12322_vm9, %v12319_v22, %v12321_v51  ;;  %v15502_v22 = vld [vmem:[#allocation9 + $0x138] sm:$0xff]   ;;  %v15507_v51 = vld [vmem:[#allocation9 + $0x2c0] sm:$0xff]  }
 0xb3d   : > { %v12326_v21 = vsel %vm12324_vm10, %v12325_v15, %v12323_v6  ;;  %v15506_v15 = vld [vmem:[#allocation9 + $0x200] sm:$0xff]  }
 0xb3e   : > { %v12327_v37 = vmax.f32 %v12326_v21, 1e-08  ;;  %v15509_v21 = vld [vmem:[#allocation9 + $0x248] sm:$0xff]  }
 0xb40   : > { %v12335_v8 = vrot.slane %v12327_v37, %v12334_v35 }
 0xb42   : > { %15571 = vrcp.f32 %v12335_v8  ;;  %v15508_v8 = vld [vmem:[#allocation9 + $0x280] sm:$0xff]  }
 0xb4c   : > { %v15572_v23 = vpop.eup %15571 }
 0xb4d   : > { %v12338_v54 = vmul.f32 %v15572_v23, %v20198_v63  ;;  %v12339_v25 = vmul.f32 %v15572_v23, %v20200_v36  ;;  %v20242_v11 = vmul.f32 %v15572_v23, %v20202_v40  ;;  %v20245_v13 = vmul.f32 %v15572_v23, %v20204_v55 }
 0xb4f   : > { %12342 = vst [vmem:[#allocation10] sm:$0xff] %v12338_v54  ;;  %v12358_v5 = vrot.slane %v12338_v54, %v19473_v24  ;;  %v12351_v42 = vcombine.high %v12338_v54, %v12338_v54  ;;  %12343 = vst [vmem:[#allocation10 + $0x8] sm:$0xff] %v12339_v25  ;;  %v20249_v33 = vrot.slane %v12339_v25, %v19473_v24  ;;  %v15511_v54 = vld [vmem:[#allocation9 + $0x2c8] sm:$0xff]  }
 0xb50   : > { %v12368_v16 = vcombine.high %v12339_v25, %v12339_v25  ;;  %12344 = vst [vmem:[#allocation10 + $0x10] sm:$0xff] %v20242_v11  ;;  %12345 = vst [vmem:[#allocation10 + $0x18] sm:$0xff] %v20245_v13  ;;  %v12385_v44 = vcombine.high %v20242_v11, %v20242_v11  ;;  %v20265_v10 = vrot.slane %v20242_v11, %v19473_v24  ;;  %v15510_v11 = vld [vmem:[#allocation9 + $0x208] sm:$0xff]  }
 0xb51   : > { %v12366_v63 = vcombine.high %v12358_v5, %v12358_v5  ;;  %v12365_v36 = vrot.slane %v12351_v42, %v19473_v24  ;;  %v12383_v40 = vcombine.high %v20249_v33, %v20249_v33  ;;  %v12435_v62 = vpack.c.bf16 %v12358_v5, %v12358_v5  ;;  %v15513_v5 = vld [vmem:[#allocation9 + $0x250] sm:$0xff]   ;;  %v15512_v42 = vld [vmem:[#allocation9 + $0x288] sm:$0xff]  }
 0xb52   : > { %v20257_v55 = vrot.slane %v12368_v16, %v19473_v24  ;;  %v20268_v39 = vrot.slane %v12385_v44, %v19473_v24  ;;  %v12400_v60 = vcombine.high %v20265_v10, %v20265_v10  ;;  %v12439_v35 = vpack.c.bf16 %v20249_v33, %v20249_v33  ;;  %v15515_v33 = vld [vmem:[#allocation9 + $0x2d0] sm:$0xff]  }
 0xb53   : > { %v12436_v17 = vpack.c.bf16 %v12366_v63, %v12366_v63  ;;  %v12367_v57 = vcombine.high %v12365_v36, %v12365_v36  ;;  %v12440_v18 = vpack.c.bf16 %v12383_v40, %v12383_v40  ;;  %v12437_v48 = vpack.c.bf16 %v12365_v36, %v12365_v36  ;;  %v15514_v16 = vld [vmem:[#allocation9 + $0x210] sm:$0xff]   ;;  %v15517_v63 = vld [vmem:[#allocation9 + $0x258] sm:$0xff]  }
 0xb54   : > { %v12384_v46 = vcombine.high %v20257_v55, %v20257_v55  ;;  %v12401_v6 = vcombine.high %v20268_v39, %v20268_v39  ;;  %v12444_v37 = vpack.c.bf16 %v12400_v60, %v12400_v60  ;;  %v12441_v23 = vpack.c.bf16 %v20257_v55, %v20257_v55  ;;  %v15516_v36 = vld [vmem:[#allocation9 + $0x290] sm:$0xff]   ;;  %v15519_v40 = vld [vmem:[#allocation9 + $0x2d8] sm:$0xff]   ;;  %v15554_v60 = vld [vmem:[#allocation9 + $0x320] sm:$0xff]  }
 0xb55   : > { %13507 = vmatprep.mubr.bf16.mxu0 %v12436_v17  ;;  %v12438_v12 = vpack.c.bf16 %v12367_v57, %v12367_v57  ;;  %v15518_v55 = vld [vmem:[#allocation9 + $0x218] sm:$0xff]   ;;  %v15521_v17 = vld [vmem:[#allocation9 + $0x260] sm:$0xff]   ;;  %v15547_v44 = vld [vmem:[#allocation9 + $0x3d0] sm:$0xff]  }
 0xb56   : > { %13508 = vmatmul.mubr.bf16.vlgmr.msra.gmra.mrb[0].mxu0 %v12435_v62  ;;  %v12442_v31 = vpack.c.bf16 %v12384_v46, %v12384_v46  ;;  %v12446_v25 = vpack.c.bf16 %v12401_v6, %v12401_v6  ;;  %v15523_v57 = vld [vmem:[#allocation9 + $0x2e0] sm:$0xff]   ;;  %v15525_v46 = vld [vmem:[#allocation9 + $0x268] sm:$0xff]  }
 0xb57   : > { %15137 = vmatpush3.bf16.msra.mxu0 %v15474_v1  ;;  %13547 = vmatprep.mubr.bf16.mxu1 %v12438_v12  ;;  %v15520_v1 = vld [vmem:[#allocation9 + $0x298] sm:$0xff]   ;;  %v15522_v62 = vld [vmem:[#allocation9 + $0x220] sm:$0xff]   ;;  %v15559_v6 = vld [vmem:[#allocation9 + $0x3e8] sm:$0xff]  }
 0xb58   : > { %13587 = vmatprep.mubr.bf16.mxu0 %v12440_v18  ;;  %13548 = vmatmul.mubr.bf16.vlgmr.msra.gmra.mrb[0].mxu1 %v12437_v48  ;;  %v15524_v12 = vld [vmem:[#allocation9 + $0x2a0] sm:$0xff]   ;;  %v15529_v18 = vld [vmem:[#allocation9 + $0x270] sm:$0xff]   ;;  %v15528_v48 = vld [vmem:[#allocation9 + $0x2a8] sm:$0xff]  }
 0xb59   : > { %15159 = vmatpush3.bf16.msra.mxu1 %v15476_v7  ;;  %15138 = vmatprep.subr.bf16.mxu0 %v15477_v3  ;;  %v15527_v7 = vld [vmem:[#allocation9 + $0x2e8] sm:$0xff]  }
 0xb5a   : > { %13627 = vmatprep.mubr.bf16.mxu1 %v12442_v31  ;;  %15160 = vmatprep.subr.bf16.mxu1 %v15479_v45  ;;  %v15526_v3 = vld [vmem:[#allocation9 + $0x228] sm:$0xff]   ;;  %v15531_v45 = vld [vmem:[#allocation9 + $0x2f0] sm:$0xff]   ;;  %v12402_v31 = vcombine.high %v20245_v13, %v20245_v13 }
 0xb5b   : > { %15139 = vmatpush3.bf16.msra.mxu0 %v15478_v32  ;;  %v15530_v32 = vld [vmem:[#allocation9 + $0x230] sm:$0xff]  }
 0xb5c   : > { %15140 = vmatprep.subr.bf16.mxu0 %v15481_v4  ;;  %v15533_v4 = vld [vmem:[#allocation9 + $0x278] sm:$0xff]  }
 0xb5d   : > { %15161 = vmatpush3.bf16.msra.mxu1 %v15480_v30  ;;  %v15532_v30 = vld [vmem:[#allocation9 + $0x2b0] sm:$0xff]  }
 0xb5e   : > { %15162 = vmatprep.subr.bf16.mxu1 %v15483_v26  ;;  %v20282_v26 = vrot.slane %v20245_v13, %v19473_v24 }
 0xb5f   : > { %15141 = vmatpush3.bf16.msra.mxu0 %v15482_v14  ;;  %v15535_v14 = vld [vmem:[#allocation9 + $0x2f8] sm:$0xff]  }
 0xb60   : > { %15142 = vmatprep.subr.bf16.mxu0 %v15485_v50  ;;  %v15534_v50 = vld [vmem:[#allocation9 + $0x238] sm:$0xff]  }
 0xb61   : > { %15163 = vmatpush3.bf16.msra.mxu1 %v15484_v59  ;;  %v20285_v59 = vrot.slane %v12402_v31, %v19473_v24  ;;  %v15541_v24 = vld [vmem:[#allocation9 + $0x348] sm:$0xff]  }
 0xb62   : > { %15164 = vmatprep.subr.bf16.mxu1 %v15487_v61  ;;  %v15537_v61 = vld [vmem:[#allocation9 + $0x340] sm:$0xff]  }
 0xb63   : > { %15143 = vmatpush3.bf16.msra.mxu0 %v15486_v9  ;;  %v15536_v9 = vld [vmem:[#allocation9 + $0x2b8] sm:$0xff]   ;;  %v12418_v13 = vcombine.high %v20285_v59, %v20285_v59 }
 0xb64   : > { %15144 = vmatprep.subr.bf16.mxu0 %v15489_v47  ;;  %v12417_v47 = vcombine.high %v20282_v26, %v20282_v26 }
 0xb65   : > { %15165 = vmatpush3.bf16.msra.mxu1 %v15488_v41  ;;  %v15539_v41 = vld [vmem:[#allocation9 + $0x3c0] sm:$0xff]  }
 0xb66   : > { %15166 = vmatprep.subr.bf16.mxu1 %v15491_v34  ;;  %v15538_v34 = vld [vmem:[#allocation9 + $0x300] sm:$0xff]  }
 0xb67   : > { %15145 = vmatpush3.bf16.msra.mxu0 %v15490_v28  ;;  %v12443_v28 = vpack.c.bf16 %v20265_v10, %v20265_v10  ;;  %v15548_v10 = vld [vmem:[#allocation9 + $0x390] sm:$0xff]  }
 0xb68   : > { %15146 = vmatprep.subr.bf16.mxu0 %v15493_v0  ;;  %v12448_v0 = vpack.c.bf16 %v12417_v47, %v12417_v47 }
 0xb69   : > { %15167 = vmatpush3.bf16.msra.mxu1 %v15492_v43  ;;  %v15540_v43 = vld [vmem:[#allocation9 + $0x380] sm:$0xff]  }
 0xb6a   : > { %15168 = vmatprep.subr.bf16.mxu1 %v15495_v27  ;;  %v12445_v27 = vpack.c.bf16 %v20268_v39, %v20268_v39  ;;  %v15553_v39 = vld [vmem:[#allocation9 + $0x360] sm:$0xff]  }
 0xb6b   : > { %15147 = vmatpush3.bf16.msra.mxu0 %v15494_v56  ;;  %v15543_v56 = vld [vmem:[#allocation9 + $0x3c8] sm:$0xff]  }
 0xb6c   : > { %15148 = vmatprep.subr.bf16.mxu0 %v15497_v38  ;;  %v12450_v38 = vpack.c.bf16 %v12418_v13, %v12418_v13 }
 0xb6d   : > { %15169 = vmatpush3.bf16.msra.mxu1 %v15496_v58  ;;  %v15542_v58 = vld [vmem:[#allocation9 + $0x308] sm:$0xff]  }
 0xb6e   : > { %15170 = vmatprep.subr.bf16.mxu1 %v15499_v19  ;;  %v15545_v19 = vld [vmem:[#allocation9 + $0x350] sm:$0xff]  }
 0xb6f   : > { %15149 = vmatpush3.bf16.msra.mxu0 %v15498_v49  ;;  %v15544_v49 = vld [vmem:[#allocation9 + $0x388] sm:$0xff]  }
 0xb70   : > { %15150 = vmatprep.subr.bf16.mxu0 %v15501_v2  ;;  %v15546_v2 = vld [vmem:[#allocation9 + $0x310] sm:$0xff]  }
 0xb71   : > { %15171 = vmatpush3.bf16.msra.mxu1 %v15500_v20  ;;  %v15549_v20 = vld [vmem:[#allocation9 + $0x358] sm:$0xff]  }
 0xb72   : > { %15172 = vmatprep.subr.bf16.mxu1 %v15503_v52  ;;  %v15551_v52 = vld [vmem:[#allocation9 + $0x3d8] sm:$0xff]  }
 0xb73   : > { %15151 = vmatpush3.bf16.msra.mxu0 %v15502_v22  ;;  %v15550_v22 = vld [vmem:[#allocation9 + $0x318] sm:$0xff]  }
 0xb74   : > { %15180 = vmatprep.subr.bf16.mxu0 %v15505_v53  ;;  %v15552_v53 = vld [vmem:[#allocation9 + $0x398] sm:$0xff]  }
 0xb75   : > { %15173 = vmatpush3.bf16.msra.mxu1 %v15504_v29  ;;  %v15555_v29 = vld [vmem:[#allocation9 + $0x3e0] sm:$0xff]  }
 0xb76   : > { %13588 = vmatmul.mubr.bf16.vlgmr.msra.gmra.mrb[4].mxu0 %v12439_v35  ;;  %15202 = vmatprep.subr.bf16.mxu1 %v15507_v51  ;;  %v15557_v51 = vld [vmem:[#allocation9 + $0x368] sm:$0xff]  }
 0xb77   : > { %15181 = vmatpush3.bf16.msra.mxu0 %v15506_v15  ;;  %13667 = vmatprep.mubr.bf16.mxu0 %v12444_v37  ;;  %v15556_v15 = vld [vmem:[#allocation9 + $0x3a0] sm:$0xff]   ;;  %v15558_v35 = vld [vmem:[#allocation9 + $0x328] sm:$0xff]  }
 0xb78   : > { %13628 = vmatmul.mubr.bf16.vlgmr.msra.gmra.mrb[4].mxu1 %v12441_v23  ;;  %15182 = vmatprep.subr.bf16.mxu0 %v15509_v21  ;;  %v15561_v21 = vld [vmem:[#allocation9 + $0x370] sm:$0xff]   ;;  %v15560_v37 = vld [vmem:[#allocation9 + $0x3a8] sm:$0xff]  }
 0xb79   : > { %15203 = vmatpush3.bf16.msra.mxu1 %v15508_v8  ;;  %13707 = vmatprep.mubr.bf16.mxu1 %v12446_v25  ;;  %v15563_v8 = vld [vmem:[#allocation9 + $0x3f0] sm:$0xff]  }
 0xb7a   : > { %15204 = vmatprep.subr.bf16.mxu1 %v15511_v54  ;;  %v15562_v23 = vld [vmem:[#allocation9 + $0x330] sm:$0xff]   ;;  %v15565_v54 = vld [vmem:[#allocation9 + $0x378] sm:$0xff]  }
 0xb7b   : > { %15183 = vmatpush3.bf16.msra.mxu0 %v15510_v11  ;;  %v15564_v25 = vld [vmem:[#allocation9 + $0x3b0] sm:$0xff]   ;;  %v15567_v11 = vld [vmem:[#allocation9 + $0x3f8] sm:$0xff]  }
 0xb7c   : > { %15184 = vmatprep.subr.bf16.mxu0 %v15513_v5  ;;  %v15566_v5 = vld [vmem:[#allocation9 + $0x338] sm:$0xff]  }
 0xb7d   : > { %15205 = vmatpush3.bf16.msra.mxu1 %v15512_v42  ;;  %v15568_v42 = vld [vmem:[#allocation9 + $0x3b8] sm:$0xff]  }
 0xb7e   : > { %15206 = vmatprep.subr.bf16.mxu1 %v15515_v33  ;;  %v12447_v33 = vpack.c.bf16 %v20282_v26, %v20282_v26 }
 0xb7f   : > { %15185 = vmatpush3.bf16.msra.mxu0 %v15514_v16  ;;  %v12449_v16 = vpack.c.bf16 %v20285_v59, %v20285_v59 }
 0xb80   : > { %15186 = vmatprep.subr.bf16.mxu0 %v15517_v63 }
 0xb81   : > { %15207 = vmatpush3.bf16.msra.mxu1 %v15516_v36 }
 0xb82   : > { %15208 = vmatprep.subr.bf16.mxu1 %v15519_v40 }
 0xb83   : > { %15187 = vmatpush3.bf16.msra.mxu0 %v15518_v55 }
 0xb84   : > { %15188 = vmatprep.subr.bf16.mxu0 %v15521_v17 }
 0xb85   : > { %15209 = vmatpush3.bf16.msra.mxu1 %v15520_v1 }
 0xb86   : > { %15210 = vmatprep.subr.bf16.mxu1 %v15523_v57 }
 0xb87   : > { %15189 = vmatpush3.bf16.msra.mxu0 %v15522_v62 }
 0xb88   : > { %15190 = vmatprep.subr.bf16.mxu0 %v15525_v46 }
 0xb89   : > { %15211 = vmatpush3.bf16.msra.mxu1 %v15524_v12 }
 0xb8a   : > { %15212 = vmatprep.subr.bf16.mxu1 %v15527_v7 }
 0xb8b   : > { %15191 = vmatpush3.bf16.msra.mxu0 %v15526_v3 }
 0xb8c   : > { %15192 = vmatprep.subr.bf16.mxu0 %v15529_v18 }
 0xb8d   : > { %15213 = vmatpush3.bf16.msra.mxu1 %v15528_v48 }
 0xb8e   : > { %15214 = vmatprep.subr.bf16.mxu1 %v15531_v45 }
 0xb8f   : > { %15193 = vmatpush3.bf16.msra.mxu0 %v15530_v32 }
 0xb90   : > { %15194 = vmatprep.subr.bf16.mxu0 %v15533_v4 }
 0xb91   : > { %15215 = vmatpush3.bf16.msra.mxu1 %v15532_v30 }
 0xb92   : > { %15216 = vmatprep.subr.bf16.mxu1 %v15535_v14 }
 0xb93   : > { %15195 = vmatpush3.bf16.msra.mxu0 %v15534_v50 }
 0xb94   : > { %15224 = vmatprep.subr.bf16.mxu0 %v15537_v61 }
 0xb95   : > { %15217 = vmatpush3.bf16.msra.mxu1 %v15536_v9 }
 0xb96   : > { %13668 = vmatmul.mubr.bf16.vlgmr.msra.gmra.mrb[8].mxu0 %v12443_v28  ;;  %15246 = vmatprep.subr.bf16.mxu1 %v15539_v41 }
 0xb97   : > { %15225 = vmatpush3.bf16.msra.mxu0 %v15538_v34  ;;  %13747 = vmatprep.mubr.bf16.mxu0 %v12448_v0 }
 0xb98   : > { %13708 = vmatmul.mubr.bf16.vlgmr.msra.gmra.mrb[8].mxu1 %v12445_v27  ;;  %15226 = vmatprep.subr.bf16.mxu0 %v15541_v24 }
 0xb99   : > { %15247 = vmatpush3.bf16.msra.mxu1 %v15540_v43  ;;  %13787 = vmatprep.mubr.bf16.mxu1 %v12450_v38 }
 0xb9a   : > { %15248 = vmatprep.subr.bf16.mxu1 %v15543_v56 }
 0xb9b   : > { %15227 = vmatpush3.bf16.msra.mxu0 %v15542_v58 }
 0xb9c   : > { %15228 = vmatprep.subr.bf16.mxu0 %v15545_v19 }
 0xb9d   : > { %15249 = vmatpush3.bf16.msra.mxu1 %v15544_v49 }
 0xb9e   : > { %15250 = vmatprep.subr.bf16.mxu1 %v15547_v44 }
 0xb9f   : > { %15229 = vmatpush3.bf16.msra.mxu0 %v15546_v2 }
 0xba0   : > { %15230 = vmatprep.subr.bf16.mxu0 %v15549_v20 }
 0xba1   : > { %15251 = vmatpush3.bf16.msra.mxu1 %v15548_v10 }
 0xba2   : > { %15252 = vmatprep.subr.bf16.mxu1 %v15551_v52 }
 0xba3   : > { %15231 = vmatpush3.bf16.msra.mxu0 %v15550_v22 }
 0xba4   : > { %15232 = vmatprep.subr.bf16.mxu0 %v15553_v39  ;;  %v13795_v39 = vstv %s12346_s7 }
 0xba5   : > { %15253 = vmatpush3.bf16.msra.mxu1 %v15552_v53 }
 0xba6   : > { %15254 = vmatprep.subr.bf16.mxu1 %v15555_v29 }
 0xba7   : > { %15233 = vmatpush3.bf16.msra.mxu0 %v15554_v60 }
 0xba8   : > { %15234 = vmatprep.subr.bf16.mxu0 %v15557_v51 }
 0xba9   : > { %15255 = vmatpush3.bf16.msra.mxu1 %v15556_v15 }
 0xbaa   : > { %15256 = vmatprep.subr.bf16.mxu1 %v15559_v6 }
 0xbab   : > { %15235 = vmatpush3.bf16.msra.mxu0 %v15558_v35 }
 0xbac   : > { %15236 = vmatprep.subr.bf16.mxu0 %v15561_v21 }
 0xbad   : > { %15257 = vmatpush3.bf16.msra.mxu1 %v15560_v37 }
 0xbae   : > { %15258 = vmatprep.subr.bf16.mxu1 %v15563_v8 }
 0xbaf   : > { %15237 = vmatpush3.bf16.msra.mxu0 %v15562_v23 }
 0xbb0   : > { %15238 = vmatprep.subr.bf16.mxu0 %v15565_v54 }
 0xbb1   : > { %15259 = vmatpush3.bf16.msra.mxu1 %v15564_v25 }
 0xbb2   : > { %15260 = vmatprep.subr.bf16.mxu1 %v15567_v11 }
 0xbb3   : > { %15239 = vmatpush3.bf16.msra.mxu0 %v15566_v5 }
 0xbb5   : > { %15261 = vmatpush3.bf16.msra.mxu1 %v15568_v42 }
 0xbb6   : > { %13748 = vmatmul.mubr.bf16.vlgmr.msra.gmra.mrb[12].mxu0 %v12447_v33 }
 0xbb8   : > { %13788 = vmatmul.mubr.bf16.vlgmr.msra.gmra.mrb[12].mxu1 %v12449_v16 }
 0xc29   : > { %v15108_v63 = vpop.f32.mrb[0].mxu0 }
 0xc2a   : > { %v15109_v36 = vpop.f32.mrb[1].mxu0 }
 0xc2b   : > { %v15110_v40 = vadd.f32 %v15109_v36, %v15108_v63  ;;  %v15111_v55 = vpop.f32.mrb[2].mxu0  ;;  %v15130_v17 = vpop.f32.mrb[0].mxu1 }
 0xc2c   : > { %v15112_v1 = vpop.f32.mrb[3].mxu0  ;;  %v15131_v57 = vpop.f32.mrb[1].mxu1 }
 0xc2d   : > { %v15132_v62 = vadd.f32 %v15131_v57, %v15130_v17  ;;  %v15133_v46 = vpop.f32.mrb[2].mxu1 }
 0xc2e   : > { %v15134_v12 = vpop.f32.mrb[3].mxu1 }
 0xc2f   : > { %v13550_v7 = vadd.f32 %v15132_v62, %v15110_v40 }
 0xc49   : > { %v15152_v3 = vpop.f32.mrb[4].mxu0 }
 0xc4a   : > { %v15153_v18 = vpop.f32.mrb[5].mxu0 }
 0xc4b   : > { %v15154_v48 = vadd.f32 %v15153_v18, %v15152_v3  ;;  %v15155_v45 = vpop.f32.mrb[6].mxu0  ;;  %v15174_v32 = vpop.f32.mrb[4].mxu1 }
 0xc4c   : > { %v15156_v31 = vpop.f32.mrb[7].mxu0  ;;  %v15175_v4 = vpop.f32.mrb[5].mxu1 }
 0xc4d   : > { %v13590_v30 = vadd.f32 %v15154_v48, %v13550_v7  ;;  %v15176_v26 = vadd.f32 %v15175_v4, %v15174_v32  ;;  %v15177_v14 = vpop.f32.mrb[6].mxu1 }
 0xc4e   : > { %v15178_v50 = vpop.f32.mrb[7].mxu1 }
 0xc4f   : > { %v13630_v59 = vadd.f32 %v15176_v26, %v13590_v30 }
 0xc69   : > { %v15196_v61 = vpop.f32.mrb[8].mxu0 }
 0xc6a   : > { %v15197_v9 = vpop.f32.mrb[9].mxu0 }
 0xc6b   : > { %v15198_v47 = vadd.f32 %v15197_v9, %v15196_v61  ;;  %v15199_v41 = vpop.f32.mrb[10].mxu0  ;;  %v15218_v34 = vpop.f32.mrb[8].mxu1 }
 0xc6c   : > { %v15200_v13 = vpop.f32.mrb[11].mxu0  ;;  %v15219_v28 = vpop.f32.mrb[9].mxu1 }
 0xc6d   : > { %v13670_v24 = vadd.f32 %v15198_v47, %v13630_v59  ;;  %v15220_v0 = vadd.f32 %v15219_v28, %v15218_v34  ;;  %v15221_v43 = vpop.f32.mrb[10].mxu1 }
 0xc6e   : > { %v15222_v27 = vpop.f32.mrb[11].mxu1 }
 0xc6f   : > { %v13710_v56 = vadd.f32 %v15220_v0, %v13670_v24 }
 0xc89   : > { %v15240_v38 = vpop.f32.mrb[12].mxu0 }
 0xc8a   : > { %v15241_v58 = vpop.f32.mrb[13].mxu0 }
 0xc8b   : > { %v15242_v19 = vadd.f32 %v15241_v58, %v15240_v38  ;;  %v15243_v49 = vpop.f32.mrb[14].mxu0  ;;  %v15262_v44 = vpop.f32.mrb[12].mxu1 }
 0xc8c   : > { %v15244_v2 = vpop.f32.mrb[15].mxu0  ;;  %v15263_v20 = vpop.f32.mrb[13].mxu1 }
 0xc8d   : > { %v13750_v10 = vadd.f32 %v15242_v19, %v13710_v56  ;;  %v15264_v52 = vadd.f32 %v15263_v20, %v15262_v44  ;;  %v15265_v22 = vpop.f32.mrb[14].mxu1 }
 0xc8e   : > { %v15266_v53 = vpop.f32.mrb[15].mxu1 }
 0xc8f   : > { %v13790_v29 = vadd.f32 %v15264_v52, %v13750_v10 }
 0xc91   : > { %v13796_v60 = vmul.f32 %v13795_v39, %v13790_v29 }
 0xc93   : > { %13797 = vst [vmem:[#allocation11] sm:$0x3] %v13796_v60 }
 0xc94 PF: > { %p15393_p6 = scmp.eq.s32.totalorder %s15827_s4, 1  ;;  %s15768_s8 = smov [#allocation10]  }
 0xc95   : > { %s13805_s9 = sshll.u32 %s15768_s8, 4  ;;  %s15769_s19 = smov [#allocation11]   ;;  %s13806_s9 = int_to_ptr.vmem [resolvable:$true] %s13805_s9 }
 0xc96   : > { %s13816_s21 = sshll.u32 %s15769_s19, 4  ;;  %s15657_s22 = scalar_lea.vmem %s13806_s9, 512  ;;  %s13817_s21 = int_to_ptr.vmem [resolvable:$true] %s13816_s21 }
 0xc97   : > { %p15658_p7 = scmp.ne.s32.totalorder %s13806_s9, %s15657_s22  ;;  %p15664_p0 = scmp.lt.s32.totalorder %s13806_s9, %s13806_s9 }
 0xc98   : > { %p15665_p12 = scmp.lt.s32.totalorder %s15657_s22, %s15657_s22 }
 0xc99   : > { %p15659_p11 = pnand %p15658_p7, %p15393_p6 }
 0xc9a   : > { %p15666_p8 = por %p15665_p12, %p15664_p0 }
 0xc9b   : > { %p15660_p13 = pneg %p15659_p11 }
 0xc9d   : > { %p15667_p9 = pnand %p15666_p8, %p15660_p13 }
 0xc9f   : > { %15670 = shalt.err (!%p15667_p9)
}
 0xca0   : > { %s15671_s13 = scalar_lea.hbm %s20362_s5, 512 }
 0xca1   : > { %p15672_p4 = scmp.ne.s32.totalorder %s20362_s5, %s15671_s13  ;;  %p15677_p1 = scmp.lt.u32.totalorder %s15671_s13, %s20362_s5 }
 0xca3   : > { %p15673_p10 = pnand %p15672_p4, %p15393_p6 }
 0xca5   : > { %p15674_p5 = pneg %p15673_p10 }
 0xca7   : > { %p15679_p2 = pnand %p15677_p1, %p15674_p5 }
 0xca9   : > { %15682 = shalt.err (!%p15679_p2)
}
 0xcaa   : > { %15375 = dma.vmem_to_hbm [thread:$0]  (%p15393_p6), %s13806_s9, 512, %s20362_s5, [#allocation6]  }
 0xcab   : > { %s15683_s23 = scalar_lea.vmem %s13817_s21, 32  ;;  %p15690_p13 = scmp.lt.s32.totalorder %s13817_s21, %s13817_s21 }
 0xcac   : > { %p15684_p3 = scmp.ne.s32.totalorder %s13817_s21, %s15683_s23  ;;  %p15691_p0 = scmp.lt.s32.totalorder %s15683_s23, %s15683_s23 }
 0xcae   : > { %p15685_p7 = pnand %p15684_p3, %p15393_p6  ;;  %p15692_p12 = por %p15691_p0, %p15690_p13 }
 0xcb0   : > { %p15686_p11 = pneg %p15685_p7 }
 0xcb2   : > { %p15693_p8 = pnand %p15692_p12, %p15686_p11 }
 0xcb4   : > { %15696 = shalt.err (!%p15693_p8)
}
 0xcb5   : > { %s15697_s29 = scalar_lea.hbm %s20363_s6, 32 }
 0xcb6   : > { %p15698_p9 = scmp.ne.s32.totalorder %s20363_s6, %s15697_s29  ;;  %p15703_p5 = scmp.lt.u32.totalorder %s15697_s29, %s20363_s6 }
 0xcb8   : > { %p15699_p4 = pnand %p15698_p9, %p15393_p6 }
 0xcba   : > { %p15700_p10 = pneg %p15699_p4 }
 0xcbc   : > { %p15705_p1 = pnand %p15703_p5, %p15700_p10 }
 0xcbe   : > { %15708 = shalt.err (!%p15705_p1)
}
 0xcbf   : > { %15377 = dma.vmem_to_hbm [thread:$0]  (%p15393_p6), %s13817_s21, 32, %s20363_s6, [#allocation12]  }
 0xcc0   : > { %15734 = dma.done.wait (%p15393_p6), [#allocation6], 512  }
 0xcc1   : > { %15736 = vsyncadd (%p15393_p6), [#allocation6], 4294966784 }
 0xcc2   : > { %15738 = dma.done.wait (%p15393_p6), [#allocation12], 32  }
 0xcc3   : > { %15740 = vsyncadd (%p15393_p6), [#allocation12], 4294967264 }
 0xcc4 PF: > { %p21_p2 = scmp.ge.s32.totalorder %s15830_s27, 4   ;;  %s20707_s23 = smov %s15747_s24 }
 0xcc5   : > { %s20708_s24 = smov %s15751_s25  ;;  %s20709_s25 = smov %s15840_s30 }
 0xcc6   : > { %s20710_s26 = smov %s15830_s27  ;;  %23 = sbr.rel (!%p21_p2) target bundleno = 8 (0x8), region = 147 }
 0xccd   :  { %13833 = vsyncpa [#allocation5], 1 }
 0xcce   :  { %13835 = vsyncpa [#allocation5 + $0x1], 1 }
 0xccf   :  { %13836 = vsyncpa [#allocation8], 1 }
 0xcd0   :  { %13837 = vsyncpa [#allocation6], 1 }
 0xcd1   :  { %13839 = vsyncpa [#allocation6 + $0x1], 1 }
 0xcd2   :  { %13840 = vsyncpa [#allocation12], 1 }

</bundles_post_ra>
